<compile_context>
chip_gen: v6e
topology: v6e:2x2x1
jax: 0.10.0
libtpu: 0.0.40
codegen_flags: <defaults>
</compile_context>

<pallas_src>
import jax
import jax.numpy as jnp
from jax import lax
from jax.experimental import pallas as pl
from jax.experimental.pallas import tpu as pltpu


def _round_up(x, m):
    return (x + m - 1) // m * m


def _padded_bytes(shape, dtype):
    """Physical VMEM footprint: last dim -> 128 lanes, 2nd-last -> 8*packing sublanes."""
    itemsize = jnp.dtype(dtype).itemsize
    packing = max(1, 4 // itemsize)
    dims = list(shape)
    if len(dims) >= 1:
        dims[-1] = _round_up(dims[-1], 128)
    if len(dims) >= 2:
        dims[-2] = _round_up(dims[-2], 8 * packing)
    n = 1
    for d in dims:
        n *= d
    return n * itemsize


def _vmem_capacity_bytes():
    try:
        return int(pltpu.get_tpu_info().vmem_capacity_bytes)
    except Exception:
        return 128 * 1024 * 1024


def _const_spec(block_shape, index_map):
    # Invariant operand (same block every grid step): single-buffer it to save VMEM.
    try:
        return pl.BlockSpec(block_shape, index_map, pipeline_mode=pl.Buffered(1))
    except Exception:
        return pl.BlockSpec(block_shape, index_map)


# --------------------------------------------------------------------------------------
# Kernel
# --------------------------------------------------------------------------------------
def _vgg_block_kernel(x_ref, w1_ref, sh1_ref, w2_ref, sh2_ref,
                      out_ref, xpad_ref, midpad_ref):
    """One batch-block per grid step.

    x_ref:    (B, H, W, Cin)           bf16 input block (unpadded channels)
    w1_ref:   (9, Cin, Cmid_p)         bf16 per-tap conv1 weights (BN1 scale folded in)
    sh1_ref:  (1, Cmid_p)              f32 folded BN1 shift (conv1 bias folded)
    w2_ref:   (9, Cmid_p, Cout_p)      bf16 per-tap conv2 weights (BN2 scale folded in)
    sh2_ref:  (1, Cout_p)              f32 folded BN2 shift (conv2 bias folded)
    out_ref:  (B, H, W, Cout_p)        bf16 lane-dense output block
    xpad_ref:   (B, H+2, W+2, Cin)     bf16 scratch: zero-halo'd input
    midpad_ref: (B, H+2, W+2, Cmid_p)  bf16 scratch: zero-halo'd intermediate
    """
    B, H, W, Cin = x_ref.shape
    Cmid_p = midpad_ref.shape[3]
    Cout_p = out_ref.shape[3]
    M = B * H * W

    def zero_halo(pad_ref, C):
        # Zero only the 1-pixel halo (thin strips); the interior is fully rewritten
        # below.  Done every step (cheap) so each core's scratch is correct no matter
        # which subset of grid steps it executes.
        z_row = jnp.zeros((B, 1, W + 2, C), pad_ref.dtype)
        z_col = jnp.zeros((B, H, 1, C), pad_ref.dtype)
        pad_ref[:, 0:1, :, :] = z_row
        pad_ref[:, H + 1:H + 2, :, :] = z_row
        pad_ref[:, 1:H + 1, 0:1, :] = z_col
        pad_ref[:, 1:H + 1, W + 1:W + 2, :] = z_col

    zero_halo(xpad_ref, Cin)
    zero_halo(midpad_ref, Cmid_p)

    # Stage the input block inside the halo (padding handled in-kernel, no wrapper pad).
    # TODO(synk): use memory_space=pl.ANY + make_async_copy straight into the interior
    # (manual 2-deep buffering) to drop this one extra VMEM->VMEM pass of the input.
    xpad_ref[:, 1:H + 1, 1:W + 1, :] = x_ref[...]

    def conv3x3(pad_ref, w_ref):
        # Direct tap-accumulated matmuls: nine (M, C) x (C, Cout) bf16 MXU dots over
        # shifted views of the padded scratch, f32 value accumulator (no im2col scratch).
        C = pad_ref.shape[3]
        Cout = w_ref.shape[2]
        acc = jnp.zeros((M, Cout), jnp.float32)
        for dy in range(3):
            for dx in range(3):
                tap = pad_ref[:, dy:dy + H, dx:dx + W, :].reshape(M, C)
                acc = acc + jnp.dot(tap, w_ref[dy * 3 + dx],
                                    preferred_element_type=jnp.float32)
        return acc

    # ---- conv1 (BN1 scale pre-folded into w1) + shift + ReLU ----
    acc1 = conv3x3(xpad_ref, w1_ref)
    mid = jnp.maximum(acc1 + sh1_ref[...], 0.0)
    midpad_ref[:, 1:H + 1, 1:W + 1, :] = (
        mid.reshape(B, H, W, Cmid_p).astype(midpad_ref.dtype))   # lane-dense bf16 store

    # ---- conv2 (BN2 scale pre-folded into w2) + shift + ReLU ----
    acc2 = conv3x3(midpad_ref, w2_ref)
    y = jnp.maximum(acc2 + sh2_ref[...], 0.0)
    out_ref[...] = y.reshape(B, H, W, Cout_p).astype(out_ref.dtype)   # bf16, full-lane vst


# --------------------------------------------------------------------------------------
# VMEM sizing
# --------------------------------------------------------------------------------------
def _pick_batch_block(N, H, W, Cin, Cmid_p, Cout_p, budget_bytes):
    """Largest batch block whose per-step VMEM working set fits the budget,
    capped so the batch grid keeps >= 2 steps (megacore + pipeline overlap)."""
    bf16, f32 = jnp.bfloat16, jnp.float32

    def per_step(bb):
        M = bb * H * W
        b = 0
        b += 2 * _padded_bytes((bb, H, W, Cin), bf16)            # double-buffered input
        b += 2 * _padded_bytes((bb, H, W, Cout_p), bf16)         # double-buffered output
        b += _padded_bytes((bb, H + 2, W + 2, Cin), bf16)        # xpad scratch
        b += _padded_bytes((bb, H + 2, W + 2, Cmid_p), bf16)     # midpad scratch
        b += _padded_bytes((9, Cin, Cmid_p), bf16)               # w1 (single-buffered)
        b += _padded_bytes((9, Cmid_p, Cout_p), bf16)            # w2 (single-buffered)
        b += _padded_bytes((1, Cmid_p), f32) + _padded_bytes((1, Cout_p), f32)
        b += M * Cmid_p * 4 + M * Cout_p * 4                     # f32 accumulators
        b += _padded_bytes((M, max(Cin, Cmid_p)), bf16)          # per-tap LHS temporary
        return b

    bb = 1
    for cand in range(1, N + 1):
        if N % cand == 0 and per_step(cand) <= budget_bytes:
            bb = cand
    if N >= 2:
        bb = min(bb, N // 2)          # keep >= 2 grid steps for the 2 TCs / pipelining
    while N % bb:
        bb -= 1
    bb = max(bb, 1)
    return bb, per_step(bb)


# --------------------------------------------------------------------------------------
# Parameter prep (BN folding) and wrappers
# --------------------------------------------------------------------------------------
def _prepare_params(params, eps=1e-5):
    """Fold BN (eval-mode) into the conv weights; pack taps; pad channels to x128."""
    (w1, b1, g1, be1, m1, v1, w2, b2, g2, be2, m2, v2) = params
    Cmid, Cin = w1.shape[0], w1.shape[1]
    Cout = w2.shape[0]
    Cmid_p = _round_up(Cmid, 128)
    Cout_p = _round_up(Cout, 128)

    # BN(conv(x, w) + b) = conv(x, w*s) + (be + (b - m)*s),  s = g / sqrt(v + eps)
    s1 = g1 / jnp.sqrt(v1 + eps)
    s2 = g2 / jnp.sqrt(v2 + eps)

    # OIHW -> HWIO, scale output channels in f32, per-tap pack (9, Cin, Cout), pad, bf16.
    w1_t = (jnp.transpose(w1, (2, 3, 1, 0)) * s1[None, None, None, :]).reshape(9, Cin, Cmid)
    w1_t = jnp.pad(w1_t, ((0, 0), (0, 0), (0, Cmid_p - Cmid))).astype(jnp.bfloat16)
    w2_t = (jnp.transpose(w2, (2, 3, 1, 0)) * s2[None, None, None, :]).reshape(9, Cmid, Cout)
    w2_t = jnp.pad(w2_t, ((0, 0), (0, Cmid_p - Cmid), (0, Cout_p - Cout))).astype(jnp.bfloat16)

    sh1 = jnp.pad(be1 + (b1 - m1) * s1, (0, Cmid_p - Cmid)).reshape(1, Cmid_p).astype(jnp.float32)
    sh2 = jnp.pad(be2 + (b2 - m2) * s2, (0, Cout_p - Cout)).reshape(1, Cout_p).astype(jnp.float32)
    return w1_t, sh1, w2_t, sh2, Cout


def vgg_block_forward_nhwc(x_nhwc, prepared, *, keep_channel_pad=False):
    """Fused VGGBlock, NHWC in -> NHWC out (bf16).  Preferred entry point: a surrounding
    NHWC model pays no transpose glue, and the x128 channel pad can flow downstream."""
    w1_t, sh1, w2_t, sh2, Cout = prepared
    N, H, W, Cin = x_nhwc.shape
    Cmid_p = w1_t.shape[2]
    Cout_p = w2_t.shape[2]

    x_bf16 = x_nhwc.astype(jnp.bfloat16)

    vmem_cap = _vmem_capacity_bytes()
    bb, est = _pick_batch_block(N, H, W, Cin, Cmid_p, Cout_p, budget_bytes=vmem_cap // 2)
    # TODO(synk): add H-strip spatial tiling (second grid axis with a 1-row halo) for
    # production H*W*C working sets that exceed the budget even at bb=1 (v7x, 64 MiB).

    vmem_limit = int(min(vmem_cap * 0.9, max(2 * est, 32 * 1024 * 1024)))
    vmem_limit = min(vmem_limit, 128 * 1024 * 1024)

    grid_spec = pltpu.PrefetchScalarGridSpec(
        num_scalar_prefetch=0,
        grid=(N // bb,),
        in_specs=[
            pl.BlockSpec((bb, H, W, Cin), lambda n: (n, 0, 0, 0)),
            _const_spec((9, Cin, Cmid_p), lambda n: (0, 0, 0)),
            _const_spec((1, Cmid_p), lambda n: (0, 0)),
            _const_spec((9, Cmid_p, Cout_p), lambda n: (0, 0, 0)),
            _const_spec((1, Cout_p), lambda n: (0, 0)),
        ],
        out_specs=pl.BlockSpec((bb, H, W, Cout_p), lambda n: (n, 0, 0, 0)),
        scratch_shapes=[
            pltpu.VMEM((bb, H + 2, W + 2, Cin), jnp.bfloat16),
            pltpu.VMEM((bb, H + 2, W + 2, Cmid_p), jnp.bfloat16),
        ],
    )

    out_p = pl.pallas_call(
        _vgg_block_kernel,
        out_shape=jax.ShapeDtypeStruct((N, H, W, Cout_p), jnp.bfloat16),
        grid_spec=grid_spec,
        compiler_params=pltpu.CompilerParams(
            dimension_semantics=("parallel",),
            vmem_limit_bytes=vmem_limit,
        ),
    )(x_bf16, w1_t, sh1, w2_t, sh2)

    if keep_channel_pad or Cout_p == Cout:
        return out_p
    return out_p[..., :Cout]


def vgg_block_forward(x_nchw, params, *, eps=1e-5):
    """Spec-compatible NCHW entry point (PyTorch layout).  Prefer vgg_block_forward_nhwc
    end-to-end to avoid the NCHW<->NHWC transposes (full extra HBM passes)."""
    prepared = _prepare_params(params, eps)
    x_nhwc = jnp.transpose(x_nchw, (0, 2, 3, 1))
    out_nhwc = vgg_block_forward_nhwc(x_nhwc, prepared)
    return jnp.transpose(out_nhwc, (0, 3, 1, 2))


# --------------------------------------------------------------------------------------
# Reference + test
# --------------------------------------------------------------------------------------
def _reference_forward(x_nchw, params, *, eps=1e-5):
    """Plain-JAX f32 reference (eval-mode BN) for correctness checking."""
    (w1, b1, g1, be1, m1, v1, w2, b2, g2, be2, m2, v2) = params
    dn = lax.conv_dimension_numbers(x_nchw.shape, w1.shape, ('NCHW', 'OIHW', 'NCHW'))

    def conv_bn_relu(x, w, b, g, be, mu, var):
        y = lax.conv_general_dilated(x, w, (1, 1), ((1, 1), (1, 1)),
                                     dimension_numbers=dn)
        y = y + b[None, :, None, None]
        y = (y - mu[None, :, None, None]) / jnp.sqrt(var[None, :, None, None] + eps)
        y = y * g[None, :, None, None] + be[None, :, None, None]
        return jnp.maximum(y, 0.0)

    h = conv_bn_relu(x_nchw, w1, b1, g1, be1, m1, v1)
    return conv_bn_relu(h, w2, b2, g2, be2, m2, v2)


def _init_params(key, in_channels, middle_channels, out_channels):
    ks = jax.random.split(key, 8)
    w1 = jax.random.normal(ks[0], (middle_channels, in_channels, 3, 3), jnp.float32) * 0.1
    b1 = jax.random.normal(ks[1], (middle_channels,), jnp.float32) * 0.05
    g1 = 1.0 + 0.1 * jax.random.normal(ks[2], (middle_channels,), jnp.float32)
    be1 = 0.05 * jax.random.normal(ks[3], (middle_channels,), jnp.float32)
    m1 = 0.02 * jax.random.normal(ks[4], (middle_channels,), jnp.float32)
    v1 = 1.0 + 0.1 * jnp.abs(jax.random.normal(ks[5], (middle_channels,), jnp.float32))

    w2 = jax.random.normal(ks[6], (out_channels, middle_channels, 3, 3), jnp.float32) * 0.1
    b2 = jax.random.normal(ks[7], (out_channels,), jnp.float32) * 0.05
    g2 = jnp.full((out_channels,), 1.05, jnp.float32)
    be2 = jnp.full((out_channels,), -0.02, jnp.float32)
    m2 = jnp.full((out_channels,), 0.01, jnp.float32)
    v2 = jnp.full((out_channels,), 1.1, jnp.float32)
    return (w1, b1, g1, be1, m1, v1, w2, b2, g2, be2, m2, v2)


if __name__ == "__main__":
    key = jax.random.PRNGKey(0)
    k_x, k_p = jax.random.split(key)

    N, Cin, Cmid, Cout, H, W = 2, 4, 8, 8, 16, 16
    x = jax.random.normal(k_x, (N, Cin, H, W), jnp.float32)
    params = _init_params(k_p, Cin, Cmid, Cout)

    out = vgg_block_forward(x, params)
    out = jax.block_until_ready(out)

    ref = _reference_forward(x, params)
    assert out.shape == (N, Cout, H, W)
    # bf16 MXU operands + bf16 output vs. the f32 reference -> relaxed tolerance.
    out_f32 = out.astype(jnp.float32)
    max_err = jnp.max(jnp.abs(out_f32 - ref))
    assert jnp.allclose(out_f32, ref, rtol=5e-2, atol=5e-2), f"max abs err {max_err}"

    print("KERNEL_OK")
</pallas_src>

<mosaic_0001>
module attributes {stable_mosaic.version = 11 : i64} {
  func.func @_vgg_block_kernel(%arg0: i32, %arg1: memref<1x16x16x4xbf16, #tpu.memory_space<vmem>>, %arg2: memref<9x4x128xbf16, #tpu.memory_space<vmem>>, %arg3: memref<1x128xf32, #tpu.memory_space<vmem>>, %arg4: memref<9x128x128xbf16, #tpu.memory_space<vmem>>, %arg5: memref<1x128xf32, #tpu.memory_space<vmem>>, %arg6: memref<1x16x16x128xbf16, #tpu.memory_space<vmem>>, %arg7: memref<1x18x18x4xbf16, #tpu.memory_space<vmem>>, %arg8: memref<1x18x18x128xbf16, #tpu.memory_space<vmem>>) attributes {dimension_semantics = [#tpu.dimension_semantics<parallel>], iteration_bounds = array<i64: 2>, scalar_prefetch = 0 : i64, scratch_operands = 2 : i64, tpu.core_type = #tpu.core_type<tc>, window_params = [{transform_indices = @transform_0, window_bounds = array<i64: 1, 16, 16, 4>}, {pipeline_mode = #tpu.pipeline_mode<synchronous>, transform_indices = @transform_1, window_bounds = array<i64: 9, 4, 128>}, {pipeline_mode = #tpu.pipeline_mode<synchronous>, transform_indices = @transform_2, window_bounds = array<i64: 1, 128>}, {pipeline_mode = #tpu.pipeline_mode<synchronous>, transform_indices = @transform_3, window_bounds = array<i64: 9, 128, 128>}, {pipeline_mode = #tpu.pipeline_mode<synchronous>, transform_indices = @transform_4, window_bounds = array<i64: 1, 128>}, {transform_indices = @transform_5, window_bounds = array<i64: 1, 16, 16, 128>}]} {
    %cst = arith.constant 0.000000e+00 : bf16
    %0 = vector.broadcast %cst : bf16 to vector<1x1x18x4xbf16>
    %cst_0 = arith.constant 0.000000e+00 : bf16
    %1 = vector.broadcast %cst_0 : bf16 to vector<1x16x1x4xbf16>
    %c0 = arith.constant 0 : index
    %c0_1 = arith.constant 0 : index
    %c0_2 = arith.constant 0 : index
    %c0_3 = arith.constant 0 : index
    %2 = vector.load %arg7[%c0, %c0_1, %c0_2, %c0_3] : memref<1x18x18x4xbf16, #tpu.memory_space<vmem>>, vector<1x1x18x4xbf16>
    tpu.vector_store %arg7[%c0, %c0_1, %c0_2, %c0_3], %0 {strides = array<i32>} : memref<1x18x18x4xbf16, #tpu.memory_space<vmem>>, vector<1x1x18x4xbf16>,
    %c0_4 = arith.constant 0 : index
    %c17 = arith.constant 17 : index
    %c0_5 = arith.constant 0 : index
    %c0_6 = arith.constant 0 : index
    %3 = vector.load %arg7[%c0_4, %c17, %c0_5, %c0_6] : memref<1x18x18x4xbf16, #tpu.memory_space<vmem>>, vector<1x1x18x4xbf16>
    tpu.vector_store %arg7[%c0_4, %c17, %c0_5, %c0_6], %0 {strides = array<i32>} : memref<1x18x18x4xbf16, #tpu.memory_space<vmem>>, vector<1x1x18x4xbf16>,
    %c0_7 = arith.constant 0 : index
    %c1 = arith.constant 1 : index
    %c0_8 = arith.constant 0 : index
    %c0_9 = arith.constant 0 : index
    %4 = vector.load %arg7[%c0_7, %c1, %c0_8, %c0_9] : memref<1x18x18x4xbf16, #tpu.memory_space<vmem>>, vector<1x16x1x4xbf16>
    tpu.vector_store %arg7[%c0_7, %c1, %c0_8, %c0_9], %1 {strides = array<i32>} : memref<1x18x18x4xbf16, #tpu.memory_space<vmem>>, vector<1x16x1x4xbf16>,
    %c0_10 = arith.constant 0 : index
    %c1_11 = arith.constant 1 : index
    %c17_12 = arith.constant 17 : index
    %c0_13 = arith.constant 0 : index
    %5 = vector.load %arg7[%c0_10, %c1_11, %c17_12, %c0_13] : memref<1x18x18x4xbf16, #tpu.memory_space<vmem>>, vector<1x16x1x4xbf16>
    tpu.vector_store %arg7[%c0_10, %c1_11, %c17_12, %c0_13], %1 {strides = array<i32>} : memref<1x18x18x4xbf16, #tpu.memory_space<vmem>>, vector<1x16x1x4xbf16>,
    %cst_14 = arith.constant 0.000000e+00 : bf16
    %6 = vector.broadcast %cst_14 : bf16 to vector<1x1x18x128xbf16>
    %cst_15 = arith.constant 0.000000e+00 : bf16
    %7 = vector.broadcast %cst_15 : bf16 to vector<1x16x1x128xbf16>
    %c0_16 = arith.constant 0 : index
    %c0_17 = arith.constant 0 : index
    %c0_18 = arith.constant 0 : index
    %c0_19 = arith.constant 0 : index
    %8 = vector.load %arg8[%c0_16, %c0_17, %c0_18, %c0_19] : memref<1x18x18x128xbf16, #tpu.memory_space<vmem>>, vector<1x1x18x128xbf16>
    tpu.vector_store %arg8[%c0_16, %c0_17, %c0_18, %c0_19], %6 {strides = array<i32>} : memref<1x18x18x128xbf16, #tpu.memory_space<vmem>>, vector<1x1x18x128xbf16>,
    %c0_20 = arith.constant 0 : index
    %c17_21 = arith.constant 17 : index
    %c0_22 = arith.constant 0 : index
    %c0_23 = arith.constant 0 : index
    %9 = vector.load %arg8[%c0_20, %c17_21, %c0_22, %c0_23] : memref<1x18x18x128xbf16, #tpu.memory_space<vmem>>, vector<1x1x18x128xbf16>
    tpu.vector_store %arg8[%c0_20, %c17_21, %c0_22, %c0_23], %6 {strides = array<i32>} : memref<1x18x18x128xbf16, #tpu.memory_space<vmem>>, vector<1x1x18x128xbf16>,
    %c0_24 = arith.constant 0 : index
    %c1_25 = arith.constant 1 : index
    %c0_26 = arith.constant 0 : index
    %c0_27 = arith.constant 0 : index
    %10 = vector.load %arg8[%c0_24, %c1_25, %c0_26, %c0_27] : memref<1x18x18x128xbf16, #tpu.memory_space<vmem>>, vector<1x16x1x128xbf16>
    tpu.vector_store %arg8[%c0_24, %c1_25, %c0_26, %c0_27], %7 {strides = array<i32>} : memref<1x18x18x128xbf16, #tpu.memory_space<vmem>>, vector<1x16x1x128xbf16>,
    %c0_28 = arith.constant 0 : index
    %c1_29 = arith.constant 1 : index
    %c17_30 = arith.constant 17 : index
    %c0_31 = arith.constant 0 : index
    %11 = vector.load %arg8[%c0_28, %c1_29, %c17_30, %c0_31] : memref<1x18x18x128xbf16, #tpu.memory_space<vmem>>, vector<1x16x1x128xbf16>
    tpu.vector_store %arg8[%c0_28, %c1_29, %c17_30, %c0_31], %7 {strides = array<i32>} : memref<1x18x18x128xbf16, #tpu.memory_space<vmem>>, vector<1x16x1x128xbf16>,
    %c0_32 = arith.constant 0 : index
    %c0_33 = arith.constant 0 : index
    %c0_34 = arith.constant 0 : index
    %c0_35 = arith.constant 0 : index
    %12 = vector.load %arg1[%c0_32, %c0_33, %c0_34, %c0_35] : memref<1x16x16x4xbf16, #tpu.memory_space<vmem>>, vector<1x16x16x4xbf16>
    %c0_36 = arith.constant 0 : index
    %c1_37 = arith.constant 1 : index
    %c1_38 = arith.constant 1 : index
    %c0_39 = arith.constant 0 : index
    %13 = vector.load %arg7[%c0_36, %c1_37, %c1_38, %c0_39] : memref<1x18x18x4xbf16, #tpu.memory_space<vmem>>, vector<1x16x16x4xbf16>
    tpu.vector_store %arg7[%c0_36, %c1_37, %c1_38, %c0_39], %12 {strides = array<i32>} : memref<1x18x18x4xbf16, #tpu.memory_space<vmem>>, vector<1x16x16x4xbf16>,
    %cst_40 = arith.constant 0.000000e+00 : f32
    %14 = vector.broadcast %cst_40 : f32 to vector<256x128xf32>
    %c0_41 = arith.constant 0 : index
    %c0_42 = arith.constant 0 : index
    %c0_43 = arith.constant 0 : index
    %c0_44 = arith.constant 0 : index
    %15 = vector.load %arg7[%c0_41, %c0_42, %c0_43, %c0_44] : memref<1x18x18x4xbf16, #tpu.memory_space<vmem>>, vector<1x16x16x4xbf16>
    %16 = vector.shape_cast %15 : vector<1x16x16x4xbf16> to vector<256x4xbf16>
    %c0_45 = arith.constant 0 : index
    %c0_46 = arith.constant 0 : index
    %c0_47 = arith.constant 0 : index
    %17 = vector.load %arg2[%c0_45, %c0_46, %c0_47] : memref<9x4x128xbf16, #tpu.memory_space<vmem>>, vector<1x4x128xbf16>
    %18 = vector.shape_cast %17 : vector<1x4x128xbf16> to vector<4x128xbf16>
    %cst_48 = arith.constant dense<0.000000e+00> : vector<256x128xf32>
    %19 = tpu.matmul %16, %18, %cst_48 {dimension_numbers = #tpu.dot_dimension_numbers<[1], [0], [0], [1], [0, 0, 1, 1], [], []>} : vector<256x4xbf16>, vector<4x128xbf16>, vector<256x128xf32> -> vector<256x128xf32>
    %20 = arith.addf %14, %19 : vector<256x128xf32>
    %c0_49 = arith.constant 0 : index
    %c0_50 = arith.constant 0 : index
    %c1_51 = arith.constant 1 : index
    %c0_52 = arith.constant 0 : index
    %21 = vector.load %arg7[%c0_49, %c0_50, %c1_51, %c0_52] : memref<1x18x18x4xbf16, #tpu.memory_space<vmem>>, vector<1x16x16x4xbf16>
    %22 = vector.shape_cast %21 : vector<1x16x16x4xbf16> to vector<256x4xbf16>
    %c1_53 = arith.constant 1 : index
    %c0_54 = arith.constant 0 : index
    %c0_55 = arith.constant 0 : index
    %23 = vector.load %arg2[%c1_53, %c0_54, %c0_55] : memref<9x4x128xbf16, #tpu.memory_space<vmem>>, vector<1x4x128xbf16>
    %24 = vector.shape_cast %23 : vector<1x4x128xbf16> to vector<4x128xbf16>
    %cst_56 = arith.constant dense<0.000000e+00> : vector<256x128xf32>
    %25 = tpu.matmul %22, %24, %cst_56 {dimension_numbers = #tpu.dot_dimension_numbers<[1], [0], [0], [1], [0, 0, 1, 1], [], []>} : vector<256x4xbf16>, vector<4x128xbf16>, vector<256x128xf32> -> vector<256x128xf32>
    %26 = arith.addf %20, %25 : vector<256x128xf32>
    %c0_57 = arith.constant 0 : index
    %c0_58 = arith.constant 0 : index
    %c2 = arith.constant 2 : index
    %c0_59 = arith.constant 0 : index
    %27 = vector.load %arg7[%c0_57, %c0_58, %c2, %c0_59] : memref<1x18x18x4xbf16, #tpu.memory_space<vmem>>, vector<1x16x16x4xbf16>
    %28 = vector.shape_cast %27 : vector<1x16x16x4xbf16> to vector<256x4xbf16>
    %c2_60 = arith.constant 2 : index
    %c0_61 = arith.constant 0 : index
    %c0_62 = arith.constant 0 : index
    %29 = vector.load %arg2[%c2_60, %c0_61, %c0_62] : memref<9x4x128xbf16, #tpu.memory_space<vmem>>, vector<1x4x128xbf16>
    %30 = vector.shape_cast %29 : vector<1x4x128xbf16> to vector<4x128xbf16>
    %cst_63 = arith.constant dense<0.000000e+00> : vector<256x128xf32>
    %31 = tpu.matmul %28, %30, %cst_63 {dimension_numbers = #tpu.dot_dimension_numbers<[1], [0], [0], [1], [0, 0, 1, 1], [], []>} : vector<256x4xbf16>, vector<4x128xbf16>, vector<256x128xf32> -> vector<256x128xf32>
    %32 = arith.addf %26, %31 : vector<256x128xf32>
    %c0_64 = arith.constant 0 : index
    %c1_65 = arith.constant 1 : index
    %c0_66 = arith.constant 0 : index
    %c0_67 = arith.constant 0 : index
    %33 = vector.load %arg7[%c0_64, %c1_65, %c0_66, %c0_67] : memref<1x18x18x4xbf16, #tpu.memory_space<vmem>>, vector<1x16x16x4xbf16>
    %34 = vector.shape_cast %33 : vector<1x16x16x4xbf16> to vector<256x4xbf16>
    %c3 = arith.constant 3 : index
    %c0_68 = arith.constant 0 : index
    %c0_69 = arith.constant 0 : index
    %35 = vector.load %arg2[%c3, %c0_68, %c0_69] : memref<9x4x128xbf16, #tpu.memory_space<vmem>>, vector<1x4x128xbf16>
    %36 = vector.shape_cast %35 : vector<1x4x128xbf16> to vector<4x128xbf16>
    %cst_70 = arith.constant dense<0.000000e+00> : vector<256x128xf32>
    %37 = tpu.matmul %34, %36, %cst_70 {dimension_numbers = #tpu.dot_dimension_numbers<[1], [0], [0], [1], [0, 0, 1, 1], [], []>} : vector<256x4xbf16>, vector<4x128xbf16>, vector<256x128xf32> -> vector<256x128xf32>
    %38 = arith.addf %32, %37 : vector<256x128xf32>
    %c0_71 = arith.constant 0 : index
    %c1_72 = arith.constant 1 : index
    %c1_73 = arith.constant 1 : index
    %c0_74 = arith.constant 0 : index
    %39 = vector.load %arg7[%c0_71, %c1_72, %c1_73, %c0_74] : memref<1x18x18x4xbf16, #tpu.memory_space<vmem>>, vector<1x16x16x4xbf16>
    %40 = vector.shape_cast %39 : vector<1x16x16x4xbf16> to vector<256x4xbf16>
    %c4 = arith.constant 4 : index
    %c0_75 = arith.constant 0 : index
    %c0_76 = arith.constant 0 : index
    %41 = vector.load %arg2[%c4, %c0_75, %c0_76] : memref<9x4x128xbf16, #tpu.memory_space<vmem>>, vector<1x4x128xbf16>
    %42 = vector.shape_cast %41 : vector<1x4x128xbf16> to vector<4x128xbf16>
    %cst_77 = arith.constant dense<0.000000e+00> : vector<256x128xf32>
    %43 = tpu.matmul %40, %42, %cst_77 {dimension_numbers = #tpu.dot_dimension_numbers<[1], [0], [0], [1], [0, 0, 1, 1], [], []>} : vector<256x4xbf16>, vector<4x128xbf16>, vector<256x128xf32> -> vector<256x128xf32>
    %44 = arith.addf %38, %43 : vector<256x128xf32>
    %c0_78 = arith.constant 0 : index
    %c1_79 = arith.constant 1 : index
    %c2_80 = arith.constant 2 : index
    %c0_81 = arith.constant 0 : index
    %45 = vector.load %arg7[%c0_78, %c1_79, %c2_80, %c0_81] : memref<1x18x18x4xbf16, #tpu.memory_space<vmem>>, vector<1x16x16x4xbf16>
    %46 = vector.shape_cast %45 : vector<1x16x16x4xbf16> to vector<256x4xbf16>
    %c5 = arith.constant 5 : index
    %c0_82 = arith.constant 0 : index
    %c0_83 = arith.constant 0 : index
    %47 = vector.load %arg2[%c5, %c0_82, %c0_83] : memref<9x4x128xbf16, #tpu.memory_space<vmem>>, vector<1x4x128xbf16>
    %48 = vector.shape_cast %47 : vector<1x4x128xbf16> to vector<4x128xbf16>
    %cst_84 = arith.constant dense<0.000000e+00> : vector<256x128xf32>
    %49 = tpu.matmul %46, %48, %cst_84 {dimension_numbers = #tpu.dot_dimension_numbers<[1], [0], [0], [1], [0, 0, 1, 1], [], []>} : vector<256x4xbf16>, vector<4x128xbf16>, vector<256x128xf32> -> vector<256x128xf32>
    %50 = arith.addf %44, %49 : vector<256x128xf32>
    %c0_85 = arith.constant 0 : index
    %c2_86 = arith.constant 2 : index
    %c0_87 = arith.constant 0 : index
    %c0_88 = arith.constant 0 : index
    %51 = vector.load %arg7[%c0_85, %c2_86, %c0_87, %c0_88] : memref<1x18x18x4xbf16, #tpu.memory_space<vmem>>, vector<1x16x16x4xbf16>
    %52 = vector.shape_cast %51 : vector<1x16x16x4xbf16> to vector<256x4xbf16>
    %c6 = arith.constant 6 : index
    %c0_89 = arith.constant 0 : index
    %c0_90 = arith.constant 0 : index
    %53 = vector.load %arg2[%c6, %c0_89, %c0_90] : memref<9x4x128xbf16, #tpu.memory_space<vmem>>, vector<1x4x128xbf16>
    %54 = vector.shape_cast %53 : vector<1x4x128xbf16> to vector<4x128xbf16>
    %cst_91 = arith.constant dense<0.000000e+00> : vector<256x128xf32>
    %55 = tpu.matmul %52, %54, %cst_91 {dimension_numbers = #tpu.dot_dimension_numbers<[1], [0], [0], [1], [0, 0, 1, 1], [], []>} : vector<256x4xbf16>, vector<4x128xbf16>, vector<256x128xf32> -> vector<256x128xf32>
    %56 = arith.addf %50, %55 : vector<256x128xf32>
    %c0_92 = arith.constant 0 : index
    %c2_93 = arith.constant 2 : index
    %c1_94 = arith.constant 1 : index
    %c0_95 = arith.constant 0 : index
    %57 = vector.load %arg7[%c0_92, %c2_93, %c1_94, %c0_95] : memref<1x18x18x4xbf16, #tpu.memory_space<vmem>>, vector<1x16x16x4xbf16>
    %58 = vector.shape_cast %57 : vector<1x16x16x4xbf16> to vector<256x4xbf16>
    %c7 = arith.constant 7 : index
    %c0_96 = arith.constant 0 : index
    %c0_97 = arith.constant 0 : index
    %59 = vector.load %arg2[%c7, %c0_96, %c0_97] : memref<9x4x128xbf16, #tpu.memory_space<vmem>>, vector<1x4x128xbf16>
    %60 = vector.shape_cast %59 : vector<1x4x128xbf16> to vector<4x128xbf16>
    %cst_98 = arith.constant dense<0.000000e+00> : vector<256x128xf32>
    %61 = tpu.matmul %58, %60, %cst_98 {dimension_numbers = #tpu.dot_dimension_numbers<[1], [0], [0], [1], [0, 0, 1, 1], [], []>} : vector<256x4xbf16>, vector<4x128xbf16>, vector<256x128xf32> -> vector<256x128xf32>
    %62 = arith.addf %56, %61 : vector<256x128xf32>
    %c0_99 = arith.constant 0 : index
    %c2_100 = arith.constant 2 : index
    %c2_101 = arith.constant 2 : index
    %c0_102 = arith.constant 0 : index
    %63 = vector.load %arg7[%c0_99, %c2_100, %c2_101, %c0_102] : memref<1x18x18x4xbf16, #tpu.memory_space<vmem>>, vector<1x16x16x4xbf16>
    %64 = vector.shape_cast %63 : vector<1x16x16x4xbf16> to vector<256x4xbf16>
    %c8 = arith.constant 8 : index
    %c0_103 = arith.constant 0 : index
    %c0_104 = arith.constant 0 : index
    %65 = vector.load %arg2[%c8, %c0_103, %c0_104] : memref<9x4x128xbf16, #tpu.memory_space<vmem>>, vector<1x4x128xbf16>
    %66 = vector.shape_cast %65 : vector<1x4x128xbf16> to vector<4x128xbf16>
    %cst_105 = arith.constant dense<0.000000e+00> : vector<256x128xf32>
    %67 = tpu.matmul %64, %66, %cst_105 {dimension_numbers = #tpu.dot_dimension_numbers<[1], [0], [0], [1], [0, 0, 1, 1], [], []>} : vector<256x4xbf16>, vector<4x128xbf16>, vector<256x128xf32> -> vector<256x128xf32>
    %68 = arith.addf %62, %67 : vector<256x128xf32>
    %c0_106 = arith.constant 0 : index
    %c0_107 = arith.constant 0 : index
    %69 = vector.load %arg3[%c0_106, %c0_107] : memref<1x128xf32, #tpu.memory_space<vmem>>, vector<1x128xf32>
    %70 = vector.broadcast %69 : vector<1x128xf32> to vector<256x128xf32>
    %71 = arith.addf %68, %70 : vector<256x128xf32>
    %cst_108 = arith.constant 0.000000e+00 : f32
    %72 = vector.broadcast %cst_108 : f32 to vector<256x128xf32>
    %73 = arith.maximumf %71, %72 : vector<256x128xf32>
    %74 = vector.shape_cast %73 : vector<256x128xf32> to vector<1x16x16x128xf32>
    %75 = arith.truncf %74 : vector<1x16x16x128xf32> to vector<1x16x16x128xbf16>
    %c0_109 = arith.constant 0 : index
    %c1_110 = arith.constant 1 : index
    %c1_111 = arith.constant 1 : index
    %c0_112 = arith.constant 0 : index
    %76 = vector.load %arg8[%c0_109, %c1_110, %c1_111, %c0_112] : memref<1x18x18x128xbf16, #tpu.memory_space<vmem>>, vector<1x16x16x128xbf16>
    tpu.vector_store %arg8[%c0_109, %c1_110, %c1_111, %c0_112], %75 {strides = array<i32>} : memref<1x18x18x128xbf16, #tpu.memory_space<vmem>>, vector<1x16x16x128xbf16>,
    %cst_113 = arith.constant 0.000000e+00 : f32
    %77 = vector.broadcast %cst_113 : f32 to vector<256x128xf32>
    %c0_114 = arith.constant 0 : index
    %c0_115 = arith.constant 0 : index
    %c0_116 = arith.constant 0 : index
    %c0_117 = arith.constant 0 : index
    %78 = vector.load %arg8[%c0_114, %c0_115, %c0_116, %c0_117] : memref<1x18x18x128xbf16, #tpu.memory_space<vmem>>, vector<1x16x16x128xbf16>
    %79 = vector.shape_cast %78 : vector<1x16x16x128xbf16> to vector<256x128xbf16>
    %c0_118 = arith.constant 0 : index
    %c0_119 = arith.constant 0 : index
    %c0_120 = arith.constant 0 : index
    %80 = vector.load %arg4[%c0_118, %c0_119, %c0_120] : memref<9x128x128xbf16, #tpu.memory_space<vmem>>, vector<1x128x128xbf16>
    %81 = vector.shape_cast %80 : vector<1x128x128xbf16> to vector<128x128xbf16>
    %cst_121 = arith.constant dense<0.000000e+00> : vector<256x128xf32>
    %82 = tpu.matmul %79, %81, %cst_121 {dimension_numbers = #tpu.dot_dimension_numbers<[1], [0], [0], [1], [0, 0, 1, 1], [], []>} : vector<256x128xbf16>, vector<128x128xbf16>, vector<256x128xf32> -> vector<256x128xf32>
    %83 = arith.addf %77, %82 : vector<256x128xf32>
    %c0_122 = arith.constant 0 : index
    %c0_123 = arith.constant 0 : index
    %c1_124 = arith.constant 1 : index
    %c0_125 = arith.constant 0 : index
    %84 = vector.load %arg8[%c0_122, %c0_123, %c1_124, %c0_125] : memref<1x18x18x128xbf16, #tpu.memory_space<vmem>>, vector<1x16x16x128xbf16>
    %85 = vector.shape_cast %84 : vector<1x16x16x128xbf16> to vector<256x128xbf16>
    %c1_126 = arith.constant 1 : index
    %c0_127 = arith.constant 0 : index
    %c0_128 = arith.constant 0 : index
    %86 = vector.load %arg4[%c1_126, %c0_127, %c0_128] : memref<9x128x128xbf16, #tpu.memory_space<vmem>>, vector<1x128x128xbf16>
    %87 = vector.shape_cast %86 : vector<1x128x128xbf16> to vector<128x128xbf16>
    %cst_129 = arith.constant dense<0.000000e+00> : vector<256x128xf32>
    %88 = tpu.matmul %85, %87, %cst_129 {dimension_numbers = #tpu.dot_dimension_numbers<[1], [0], [0], [1], [0, 0, 1, 1], [], []>} : vector<256x128xbf16>, vector<128x128xbf16>, vector<256x128xf32> -> vector<256x128xf32>
    %89 = arith.addf %83, %88 : vector<256x128xf32>
    %c0_130 = arith.constant 0 : index
    %c0_131 = arith.constant 0 : index
    %c2_132 = arith.constant 2 : index
    %c0_133 = arith.constant 0 : index
    %90 = vector.load %arg8[%c0_130, %c0_131, %c2_132, %c0_133] : memref<1x18x18x128xbf16, #tpu.memory_space<vmem>>, vector<1x16x16x128xbf16>
    %91 = vector.shape_cast %90 : vector<1x16x16x128xbf16> to vector<256x128xbf16>
    %c2_134 = arith.constant 2 : index
    %c0_135 = arith.constant 0 : index
    %c0_136 = arith.constant 0 : index
    %92 = vector.load %arg4[%c2_134, %c0_135, %c0_136] : memref<9x128x128xbf16, #tpu.memory_space<vmem>>, vector<1x128x128xbf16>
    %93 = vector.shape_cast %92 : vector<1x128x128xbf16> to vector<128x128xbf16>
    %cst_137 = arith.constant dense<0.000000e+00> : vector<256x128xf32>
    %94 = tpu.matmul %91, %93, %cst_137 {dimension_numbers = #tpu.dot_dimension_numbers<[1], [0], [0], [1], [0, 0, 1, 1], [], []>} : vector<256x128xbf16>, vector<128x128xbf16>, vector<256x128xf32> -> vector<256x128xf32>
    %95 = arith.addf %89, %94 : vector<256x128xf32>
    %c0_138 = arith.constant 0 : index
    %c1_139 = arith.constant 1 : index
    %c0_140 = arith.constant 0 : index
    %c0_141 = arith.constant 0 : index
    %96 = vector.load %arg8[%c0_138, %c1_139, %c0_140, %c0_141] : memref<1x18x18x128xbf16, #tpu.memory_space<vmem>>, vector<1x16x16x128xbf16>
    %97 = vector.shape_cast %96 : vector<1x16x16x128xbf16> to vector<256x128xbf16>
    %c3_142 = arith.constant 3 : index
    %c0_143 = arith.constant 0 : index
    %c0_144 = arith.constant 0 : index
    %98 = vector.load %arg4[%c3_142, %c0_143, %c0_144] : memref<9x128x128xbf16, #tpu.memory_space<vmem>>, vector<1x128x128xbf16>
    %99 = vector.shape_cast %98 : vector<1x128x128xbf16> to vector<128x128xbf16>
    %cst_145 = arith.constant dense<0.000000e+00> : vector<256x128xf32>
    %100 = tpu.matmul %97, %99, %cst_145 {dimension_numbers = #tpu.dot_dimension_numbers<[1], [0], [0], [1], [0, 0, 1, 1], [], []>} : vector<256x128xbf16>, vector<128x128xbf16>, vector<256x128xf32> -> vector<256x128xf32>
    %101 = arith.addf %95, %100 : vector<256x128xf32>
    %c0_146 = arith.constant 0 : index
    %c1_147 = arith.constant 1 : index
    %c1_148 = arith.constant 1 : index
    %c0_149 = arith.constant 0 : index
    %102 = vector.load %arg8[%c0_146, %c1_147, %c1_148, %c0_149] : memref<1x18x18x128xbf16, #tpu.memory_space<vmem>>, vector<1x16x16x128xbf16>
    %103 = vector.shape_cast %102 : vector<1x16x16x128xbf16> to vector<256x128xbf16>
    %c4_150 = arith.constant 4 : index
    %c0_151 = arith.constant 0 : index
    %c0_152 = arith.constant 0 : index
    %104 = vector.load %arg4[%c4_150, %c0_151, %c0_152] : memref<9x128x128xbf16, #tpu.memory_space<vmem>>, vector<1x128x128xbf16>
    %105 = vector.shape_cast %104 : vector<1x128x128xbf16> to vector<128x128xbf16>
    %cst_153 = arith.constant dense<0.000000e+00> : vector<256x128xf32>
    %106 = tpu.matmul %103, %105, %cst_153 {dimension_numbers = #tpu.dot_dimension_numbers<[1], [0], [0], [1], [0, 0, 1, 1], [], []>} : vector<256x128xbf16>, vector<128x128xbf16>, vector<256x128xf32> -> vector<256x128xf32>
    %107 = arith.addf %101, %106 : vector<256x128xf32>
    %c0_154 = arith.constant 0 : index
    %c1_155 = arith.constant 1 : index
    %c2_156 = arith.constant 2 : index
    %c0_157 = arith.constant 0 : index
    %108 = vector.load %arg8[%c0_154, %c1_155, %c2_156, %c0_157] : memref<1x18x18x128xbf16, #tpu.memory_space<vmem>>, vector<1x16x16x128xbf16>
    %109 = vector.shape_cast %108 : vector<1x16x16x128xbf16> to vector<256x128xbf16>
    %c5_158 = arith.constant 5 : index
    %c0_159 = arith.constant 0 : index
    %c0_160 = arith.constant 0 : index
    %110 = vector.load %arg4[%c5_158, %c0_159, %c0_160] : memref<9x128x128xbf16, #tpu.memory_space<vmem>>, vector<1x128x128xbf16>
    %111 = vector.shape_cast %110 : vector<1x128x128xbf16> to vector<128x128xbf16>
    %cst_161 = arith.constant dense<0.000000e+00> : vector<256x128xf32>
    %112 = tpu.matmul %109, %111, %cst_161 {dimension_numbers = #tpu.dot_dimension_numbers<[1], [0], [0], [1], [0, 0, 1, 1], [], []>} : vector<256x128xbf16>, vector<128x128xbf16>, vector<256x128xf32> -> vector<256x128xf32>
    %113 = arith.addf %107, %112 : vector<256x128xf32>
    %c0_162 = arith.constant 0 : index
    %c2_163 = arith.constant 2 : index
    %c0_164 = arith.constant 0 : index
    %c0_165 = arith.constant 0 : index
    %114 = vector.load %arg8[%c0_162, %c2_163, %c0_164, %c0_165] : memref<1x18x18x128xbf16, #tpu.memory_space<vmem>>, vector<1x16x16x128xbf16>
    %115 = vector.shape_cast %114 : vector<1x16x16x128xbf16> to vector<256x128xbf16>
    %c6_166 = arith.constant 6 : index
    %c0_167 = arith.constant 0 : index
    %c0_168 = arith.constant 0 : index
    %116 = vector.load %arg4[%c6_166, %c0_167, %c0_168] : memref<9x128x128xbf16, #tpu.memory_space<vmem>>, vector<1x128x128xbf16>
    %117 = vector.shape_cast %116 : vector<1x128x128xbf16> to vector<128x128xbf16>
    %cst_169 = arith.constant dense<0.000000e+00> : vector<256x128xf32>
    %118 = tpu.matmul %115, %117, %cst_169 {dimension_numbers = #tpu.dot_dimension_numbers<[1], [0], [0], [1], [0, 0, 1, 1], [], []>} : vector<256x128xbf16>, vector<128x128xbf16>, vector<256x128xf32> -> vector<256x128xf32>
    %119 = arith.addf %113, %118 : vector<256x128xf32>
    %c0_170 = arith.constant 0 : index
    %c2_171 = arith.constant 2 : index
    %c1_172 = arith.constant 1 : index
    %c0_173 = arith.constant 0 : index
    %120 = vector.load %arg8[%c0_170, %c2_171, %c1_172, %c0_173] : memref<1x18x18x128xbf16, #tpu.memory_space<vmem>>, vector<1x16x16x128xbf16>
    %121 = vector.shape_cast %120 : vector<1x16x16x128xbf16> to vector<256x128xbf16>
    %c7_174 = arith.constant 7 : index
    %c0_175 = arith.constant 0 : index
    %c0_176 = arith.constant 0 : index
    %122 = vector.load %arg4[%c7_174, %c0_175, %c0_176] : memref<9x128x128xbf16, #tpu.memory_space<vmem>>, vector<1x128x128xbf16>
    %123 = vector.shape_cast %122 : vector<1x128x128xbf16> to vector<128x128xbf16>
    %cst_177 = arith.constant dense<0.000000e+00> : vector<256x128xf32>
    %124 = tpu.matmul %121, %123, %cst_177 {dimension_numbers = #tpu.dot_dimension_numbers<[1], [0], [0], [1], [0, 0, 1, 1], [], []>} : vector<256x128xbf16>, vector<128x128xbf16>, vector<256x128xf32> -> vector<256x128xf32>
    %125 = arith.addf %119, %124 : vector<256x128xf32>
    %c0_178 = arith.constant 0 : index
    %c2_179 = arith.constant 2 : index
    %c2_180 = arith.constant 2 : index
    %c0_181 = arith.constant 0 : index
    %126 = vector.load %arg8[%c0_178, %c2_179, %c2_180, %c0_181] : memref<1x18x18x128xbf16, #tpu.memory_space<vmem>>, vector<1x16x16x128xbf16>
    %127 = vector.shape_cast %126 : vector<1x16x16x128xbf16> to vector<256x128xbf16>
    %c8_182 = arith.constant 8 : index
    %c0_183 = arith.constant 0 : index
    %c0_184 = arith.constant 0 : index
    %128 = vector.load %arg4[%c8_182, %c0_183, %c0_184] : memref<9x128x128xbf16, #tpu.memory_space<vmem>>, vector<1x128x128xbf16>
    %129 = vector.shape_cast %128 : vector<1x128x128xbf16> to vector<128x128xbf16>
    %cst_185 = arith.constant dense<0.000000e+00> : vector<256x128xf32>
    %130 = tpu.matmul %127, %129, %cst_185 {dimension_numbers = #tpu.dot_dimension_numbers<[1], [0], [0], [1], [0, 0, 1, 1], [], []>} : vector<256x128xbf16>, vector<128x128xbf16>, vector<256x128xf32> -> vector<256x128xf32>
    %131 = arith.addf %125, %130 : vector<256x128xf32>
    %c0_186 = arith.constant 0 : index
    %c0_187 = arith.constant 0 : index
    %132 = vector.load %arg5[%c0_186, %c0_187] : memref<1x128xf32, #tpu.memory_space<vmem>>, vector<1x128xf32>
    %133 = vector.broadcast %132 : vector<1x128xf32> to vector<256x128xf32>
    %134 = arith.addf %131, %133 : vector<256x128xf32>
    %cst_188 = arith.constant 0.000000e+00 : f32
    %135 = vector.broadcast %cst_188 : f32 to vector<256x128xf32>
    %136 = arith.maximumf %134, %135 : vector<256x128xf32>
    %137 = vector.shape_cast %136 : vector<256x128xf32> to vector<1x16x16x128xf32>
    %138 = arith.truncf %137 : vector<1x16x16x128xf32> to vector<1x16x16x128xbf16>
    %c0_189 = arith.constant 0 : index
    %c0_190 = arith.constant 0 : index
    %c0_191 = arith.constant 0 : index
    %c0_192 = arith.constant 0 : index
    %139 = vector.load %arg6[%c0_189, %c0_190, %c0_191, %c0_192] : memref<1x16x16x128xbf16, #tpu.memory_space<vmem>>, vector<1x16x16x128xbf16>
    tpu.vector_store %arg6[%c0_189, %c0_190, %c0_191, %c0_192], %138 {strides = array<i32>} : memref<1x16x16x128xbf16, #tpu.memory_space<vmem>>, vector<1x16x16x128xbf16>,
    return
  }
  func.func @transform_0(%arg0: i32) -> (i32, i32, i32, i32) {
    %c0_i32 = arith.constant 0 : i32
    %c0_i32_0 = arith.constant 0 : i32
    %c0_i32_1 = arith.constant 0 : i32
    %c0_i32_2 = arith.constant 0 : i32
    return %arg0, %c0_i32, %c0_i32_0, %c0_i32_1 : i32, i32, i32, i32
  }
  func.func @transform_1(%arg0: i32) -> (i32, i32, i32) {
    %c0_i32 = arith.constant 0 : i32
    %c0_i32_0 = arith.constant 0 : i32
    %c0_i32_1 = arith.constant 0 : i32
    %c0_i32_2 = arith.constant 0 : i32
    return %c0_i32, %c0_i32_0, %c0_i32_1 : i32, i32, i32
  }
  func.func @transform_2(%arg0: i32) -> (i32, i32) {
    %c0_i32 = arith.constant 0 : i32
    %c0_i32_0 = arith.constant 0 : i32
    %c0_i32_1 = arith.constant 0 : i32
    return %c0_i32, %c0_i32_0 : i32, i32
  }
  func.func @transform_3(%arg0: i32) -> (i32, i32, i32) {
    %c0_i32 = arith.constant 0 : i32
    %c0_i32_0 = arith.constant 0 : i32
    %c0_i32_1 = arith.constant 0 : i32
    %c0_i32_2 = arith.constant 0 : i32
    return %c0_i32, %c0_i32_0, %c0_i32_1 : i32, i32, i32
  }
  func.func @transform_4(%arg0: i32) -> (i32, i32) {
    %c0_i32 = arith.constant 0 : i32
    %c0_i32_0 = arith.constant 0 : i32
    %c0_i32_1 = arith.constant 0 : i32
    return %c0_i32, %c0_i32_0 : i32, i32
  }
  func.func @transform_5(%arg0: i32) -> (i32, i32, i32, i32) {
    %c0_i32 = arith.constant 0 : i32
    %c0_i32_0 = arith.constant 0 : i32
    %c0_i32_1 = arith.constant 0 : i32
    %c0_i32_2 = arith.constant 0 : i32
    return %arg0, %c0_i32, %c0_i32_0, %c0_i32_1 : i32, i32, i32, i32
  }
}

</mosaic_0001>

<bundles_post_ra>
// kernel: tpu_custom_call.1
= control target key start
LH: loop header
LB: loop body
LE: loop exit
PB: predicated region body
PF: predicated region fallthrough
CT: control target
= control target key end

     0   :  { %10 = vsyncpa [#allocation5], 0  ;;  %s18299_s0 = inlined_call_operand.vmem [shape: bf16[2,16,16,4], index: 0, kind: input, shape index: {}]   ;;  %s18300_s1 = inlined_call_operand.vmem [shape: bf16[9,4,128], index: 1, kind: input, shape index: {}]   ;;  %s18301_s2 = inlined_call_operand.vmem [shape: f32[1,128], index: 2, kind: input, shape index: {}]   ;;  %s18302_s3 = inlined_call_operand.hbm [shape: bf16[9,128,128], index: 3, kind: input, shape index: {}]   ;;  %s18303_s4 = inlined_call_operand.vmem [shape: f32[1,128], index: 4, kind: input, shape index: {}]   ;;  %s18304_s5 = inlined_call_operand.hbm [shape: bf16[2,16,16,128], index: 5, kind: output, shape index: {}]  }
   0x1   :  { %11 = vsyncpa [#allocation6], 0 }
   0x2   :  { %13 = vsyncpa [#allocation6 + $0x1], 0  ;;  %s13550_s18 = smov 0   ;;  %s13552_s19 = smov 0  }
   0x3   :  { %s13554_s20 = smov 0   ;;  %s13556_s21 = smov 0  }
   0x4 LB: > { %s13571_s22 = sadd.s32 4294967295, %s13511_s21   ;;  %s11205_s23 = sadd.s32 4294967294, %s13511_s21   ;;  %s13511_s21 = sphi %s13556_s21, %s18669_s21   ;;  %s13507_s20 = sphi %s13554_s20, %s18668_s20   ;;  %s13503_s19 = sphi %s13552_s19, %s18667_s19   ;;  %s13499_s18 = sphi %s13550_s18, %s18666_s18  }
   0x5   : > { %s13575_s24 = sadd.s32 1, %s13511_s21   ;;  %s136_s25 = sadd.s32 1, %s13507_s20 }
   0x6   : > { %s133_s26 = ssub.s32 %s13511_s21, %s13575_s24  ;;  %p146_p0 = scmp.ne.s32.totalorder %s13507_s20, %s13503_s19 }
   0x7   : > { %p134_p1 = scmp.eq.s32.totalorder %s133_s26, 0  ;;  %p147_p2 = scmp.eq.s32.totalorder %s13571_s22, 1 }
   0x8   : > { %p152_p3 = scmp.ne.s32.totalorder %s13503_s19, %s13499_s18  ;;  %p153_p4 = scmp.eq.s32.totalorder %s11205_s23, 1 }
   0x9   : > { %s13586_s27 = scalar_select %p134_p1, %s13507_s20, %s136_s25  }
   0xa   : > { %p13588_p5 = por %p147_p2, %p146_p0  ;;  %p13592_p6 = por %p153_p4, %p152_p3 }
   0xb   : > { %p11206_p7 = scmp.ge.s32.totalorder %s13511_s21, 1  ;;  %p160_p8 = scmp.lt.s32.totalorder %s13511_s21, 3 }
   0xc   : > { %s18329_s29 = scalar_select %p13592_p6, 1, 0 }
   0xd   : > { %p13184_p9 = scmp.eq.s32.totalorder %s13571_s22, 0  ;;  %p13599_p10 = pnand %p11206_p7, %p160_p8 }
   0xe   : > { %s13513_s6 = smov [#allocation4]  }
   0xf   : > { %s178_s7 = sshll.u32 %s13513_s6, 4  ;;  %p13176_p11 = pneg %p13599_p10  ;;  %s179_s7 = int_to_ptr.vmem [resolvable:$true] %s178_s7 }
  0x10   : > { %s13432_s8 = scalar_lea.vmem %s179_s7, 9216  ;;  %p13440_p3 = scmp.lt.s32.totalorder %s179_s7, %s179_s7 }
  0x11   : > { %p13177_p12 = pnand %p13184_p9, %p13176_p11  ;;  %p13433_p0 = scmp.ne.s32.totalorder %s179_s7, %s13432_s8 }
  0x12   : > { %p13441_p4 = scmp.lt.s32.totalorder %s13432_s8, %s13432_s8 }
  0x13   : > { %p13423_p13 = pneg %p13177_p12 }
  0x14   : > { %p13442_p6 = por %p13441_p4, %p13440_p3 }
  0x15   : > { %p13435_p1 = pnand %p13433_p0, %p13423_p13 }
  0x17   : > { %p13436_p2 = pneg %p13435_p1 }
  0x19   : > { %p13443_p7 = pnand %p13442_p6, %p13436_p2 }
  0x1b   : > { %13446 = shalt.err (!%p13443_p7)
}
  0x1c   : > { %s13514_s9 = smov 64   ;;  %s13515_s10 = smov 4  }
  0x1d   : > { %13179 = dma.hbm_to_vmem [thread:$0]  (!%p13177_p12), %s18302_s3, 9216, %s179_s7, [#allocation5], %s13514_s9, %s13514_s9, %s13515_s10  }
  0x1e   : > { %205 = sbr.rel (%p13599_p10) target bundleno = 1242 (0x4da), region = 40 }
  0x23   : > { %13490 = dma.done.wait (%p13184_p9), [#allocation5], 9216  }
  0x24   : > { %13492 = vsyncadd (%p13184_p9), [#allocation5], 4294958080  ;;  %vm239_vm0 = vcmask 27648   ;;  %vm242_vm1 = vcmask 24576   ;;  %v13516_v0 = vmov 0   ;;  %p233_p6 = scmp.lt.s32.totalorder %s13571_s22, 1 }
  0x25   : > { %240 = vst.msk [vmem:[#allocation2] sm:$0xf] %vm239_vm0, %v13516_v0  ;;  %241 = vst.msk [vmem:[#allocation2 + $0x4] sm:$0xf] %vm239_vm0, %v13516_v0  ;;  %vm1460_vm2 = vcmask 1041408   ;;  %vm1411_vm7 = vcmask 31744  }
  0x26   : > { %243 = vst.msk [vmem:[#allocation2 + $0x8] sm:$0x1] %vm242_vm1, %v13516_v0  ;;  %247 = vst.msk [vmem:[#allocation2 + $0xd4] sm:$0x1] %vm242_vm1, %v13516_v0  ;;  %s234_s13 = scalar_select %p233_p6, %s13571_s22, 1  ;;  %v18335_v33 = vmov 0 }
  0x27   : > { %245 = vst.msk [vmem:[#allocation2 + $0xcc] sm:$0xf] %vm239_vm0, %v13516_v0  ;;  %246 = vst.msk [vmem:[#allocation2 + $0xd0] sm:$0xf] %vm239_vm0, %v13516_v0  ;;  %vm250_vm3 = vsmask.f32 256 }
  0x28   : > { %350 = vst [vmem:[#allocation3] sm:$0xf] %v13516_v0  ;;  %351 = vst [vmem:[#allocation3 + $0x4] sm:$0xf] %v13516_v0  ;;  %vm300_vm4 = vsmask.f32 7938 }
  0x29   : > { %352 = vst [vmem:[#allocation3 + $0x8] sm:$0x1] %v13516_v0  ;;  %354 = vst [vmem:[#allocation3 + $0xcc] sm:$0xf] %v13516_v0  ;;  %vm974_vm5 = vsmask.f32 3328 }
  0x2a   : > { %355 = vst [vmem:[#allocation3 + $0xd0] sm:$0xf] %v13516_v0  ;;  %356 = vst [vmem:[#allocation3 + $0xd4] sm:$0x1] %v13516_v0  ;;  %vm975_vm6 = vsmask.f32 7440 }
  0x2b   : > { %s11893_s14 = sshll.u32 %s234_s13, 7  ;;  %v11214_v1 = vld [vmem:[%s18300_s1 + $0x2] sm:$0x3]  ;;  %v957_v2 = vld [vmem:[%s18300_s1] sm:$0x3]  ;;  %vm13636_vm9 = vmand %vm242_vm1, %vm250_vm3  ;;  %v18338_v49 = vmov 0 }
  0x2c   : > { %vm489_vm8 = vsmask.f32 4368  ;;  %13161 = vmatprep.subr.msk.bf16.mxu0 %vm1460_vm2, %v11214_v1  ;;  %v1462_v3 = vsel %vm1460_vm2, %v11214_v1, 0  ;;  %13162 = vmatprep.subr.msk.bf16.mxu1 %vm1460_vm2, %v957_v2  ;;  %v1754_v4 = vsel %vm1460_vm2, %v957_v2, 0  ;;  %v925_v6 = vld [vmem:[#allocation2] sm:$0xf]  ;;  %vm13642_vm10 = vmand %vm242_vm1, %vm300_vm4  ;;  %s13649_s30 = scalar_lea.vmem %s18299_s0, %s11893_s14 }
  0x2d   : > { %v926_v7 = vld [vmem:[#allocation2 + $0x4] sm:$0xf]  ;;  %12424 = vmatpush3.bf16.msra.mxu0 %v1462_v3  ;;  %12458 = vmatpush3.bf16.msra.mxu1 %v1754_v4  ;;  %v958_v9 = vld [vmem:[#allocation2 + $0x8] sm:$0x1]  ;;  %v978_v10 = vshrl.u32 %v925_v6, 16  ;;  %v981_v11 = vshll.u32 %v925_v6, 16  ;;  %vm13667_vm11 = vmor %vm974_vm5, %vm975_vm6 }
  0x2e   : > { %v987_v12 = vshll.u32 %v926_v7, 16  ;;  %v991_v13 = vshrl.u32 %v926_v7, 16  ;;  %v997_v14 = vshll.u32 %v958_v9, 16  ;;  %v11247_v15 = vcombine.low %v925_v6, %v926_v7  ;;  %v13654_v16 = vld [vmem:[%s18300_s1 + $0x4] sm:$0x3]  ;;  %vm13683_vm12 = vmor %vm250_vm3, %vm489_vm8  ;;  %s230_s12 = sand.u32 1, %s13503_s19  }
  0x2f   : > { %v252_v17 = vld [vmem:[#allocation2 + $0xc] sm:$0x1]  ;;  %v980_v18 = vrot.slane %v978_v10, 4  ;;  %v983_v19 = vrot.slane %v981_v11, 5  ;;  %13163 = vmatprep.subr.msk.bf16.mxu0 %vm1460_vm2, %v13654_v16  ;;  %v302_v22 = vld [vmem:[#allocation2 + $0x14] sm:$0x1]  ;;  %vm13689_vm13 = vmand %vm239_vm0, %vm300_vm4 }
  0x30   : > { %v989_v20 = vrot.slane %v987_v12, 5  ;;  %v993_v21 = vrot.slane %v991_v13, 4  ;;  %v999_v23 = vrot.slane %v997_v14, 5  ;;  %12459 = vmatprep.mubr.msk.bf16.mxu1 %vm1411_vm7, %v11247_v15  ;;  %v253_v24 = vsel %vm13636_vm9, 0, %v252_v17  ;;  %v457_v26 = vld [vmem:[%s13649_s30] sm:$0xf] }
  0x31   : > { %v303_v25 = vsel %vm13642_vm10, 0, %v302_v22  ;;  %v984_v27 = vor.u32 %v983_v19, %v980_v18  ;;  %254 = vst [vmem:[#allocation2 + $0xc] sm:$0x1] %v253_v24  ;;  %v458_v29 = vld [vmem:[%s13649_s30 + $0x4] sm:$0xf]  ;;  %v492_v30 = vshrl.u32 %v457_v26, 16 }
  0x32   : > { %v994_v28 = vor.u32 %v993_v21, %v989_v20  ;;  %304 = vst [vmem:[#allocation2 + $0x14] sm:$0x1] %v303_v25  ;;  %v495_v31 = vshll.u32 %v457_v26, 16  ;;  %v255_v32 = vld [vmem:[#allocation2 + $0x18] sm:$0x1]  ;;  %v18336_v33 = vsel %vm13667_vm11, 4294967295, %v18335_v33 }
  0x33   : > { %18337 = vst [vmem:[#allocation10_spill] sm:$0xff] %v18336_v33  ;;  %v500_v34 = vshrl.u32 %v458_v29, 16  ;;  %v503_v35 = vshll.u32 %v458_v29, 16  ;;  %v256_v36 = vsel %vm13636_vm9, 0, %v255_v32  ;;  %v305_v37 = vld [vmem:[#allocation2 + $0x20] sm:$0x1] }
  0x34   : > { %v985_v38 = vrot.slane %v984_v27, 4  ;;  %v995_v39 = vrot.slane %v994_v28, 4  ;;  %v494_v40 = vrot.slane %v492_v30, 7  ;;  %257 = vst [vmem:[#allocation2 + $0x18] sm:$0x1] %v256_v36  ;;  %v306_v41 = vsel %vm13642_vm10, 0, %v305_v37 }
  0x35   : > { %v459_v42 = vld [vmem:[%s13649_s30 + $0x8] sm:$0xf]  ;;  %v502_v43 = vrot.slane %v500_v34, 7  ;;  %307 = vst [vmem:[#allocation2 + $0x20] sm:$0x1] %v306_v41  ;;  %v18339_v49 = vsel %vm13683_vm12, 4294967295, %v18338_v49 }
  0x36   : > { %v460_v44 = vld [vmem:[%s13649_s30 + $0xc] sm:$0xf]  ;;  %v509_v45 = vshrl.u32 %v459_v42, 16  ;;  %v512_v46 = vshll.u32 %v459_v42, 16  ;;  %v990_v47 = vsel %vm13667_vm11, %v985_v38, %v989_v20  ;;  %v1000_v48 = vsel %vm13667_vm11, %v995_v39, %v999_v23  ;;  %18340 = vst [vmem:[#allocation11_spill] sm:$0xff] %v18339_v49  ;;  %s11211_s13 = sshll.u32 %s230_s12, 7 }
  0x37   : > { %v497_v50 = vor.u32 %v495_v31, %v494_v40  ;;  %v498_v51 = vrot.slane %v494_v40, 4  ;;  %v258_v52 = vld [vmem:[#allocation2 + $0x24] sm:$0x1]  ;;  %v308_v53 = vld [vmem:[#allocation2 + $0x2c] sm:$0x1]  ;;  %v11215_v55 = vcombine.low %v990_v47, %v1000_v48  ;;  %v505_v56 = vor.u32 %v503_v35, %v502_v43  ;;  %s18131_s14 = scalar_lea.vmem [#allocation7], %s11211_s13 }
  0x38   : > { %v507_v57 = vrot.slane %v502_v43, 4  ;;  %v511_v58 = vrot.slane %v509_v45, 7  ;;  %v461_v59 = vld [vmem:[%s13649_s30 + $0x10] sm:$0xf]  ;;  %v462_v60 = vld [vmem:[%s13649_s30 + $0x14] sm:$0xf] }
  0x39   : > { %v517_v61 = vshrl.u32 %v460_v44, 16  ;;  %v520_v62 = vshll.u32 %v460_v44, 16  ;;  %v259_v63 = vsel %vm13636_vm9, 0, %v258_v52  ;;  %v309_v0 = vsel %vm13642_vm10, 0, %v308_v53  ;;  %v261_v1 = vld [vmem:[#allocation2 + $0x30] sm:$0x1]  ;;  %12425 = vmatprep.mubr.msk.bf16.mxu0 %vm1411_vm7, %v11215_v55 }
  0x3a   : > { %v506_v2 = vsel %vm13683_vm12, %v498_v51, %v505_v56  ;;  %v813_v3 = vld [vmem:[#allocation2 + $0xc] sm:$0xf]  ;;  %v817_v4 = vld [vmem:[#allocation2 + $0x14] sm:$0x1]  ;;  %v514_v6 = vor.u32 %v512_v46, %v511_v58  ;;  %v515_v7 = vrot.slane %v511_v58, 4  ;;  %v526_v9 = vshrl.u32 %v461_v59, 16 }
  0x3b   : > { %260 = vst [vmem:[#allocation2 + $0x24] sm:$0x1] %v259_v63  ;;  %310 = vst [vmem:[#allocation2 + $0x2c] sm:$0x1] %v309_v0  ;;  %v814_v10 = vsel %vm13689_vm13, %v497_v50, %v813_v3  ;;  %v818_v11 = vsel %vm13636_vm9, %v507_v57, %v817_v4  ;;  %v519_v12 = vrot.slane %v517_v61, 7  ;;  %v529_v13 = vshll.u32 %v461_v59, 16 }
  0x3c   : > { %816 = vst.msk [vmem:[#allocation2 + $0x10] sm:$0xf] %vm239_vm0, %v506_v2  ;;  %v311_v14 = vld [vmem:[#allocation2 + $0x38] sm:$0x1]  ;;  %815 = vst [vmem:[#allocation2 + $0xc] sm:$0xf] %v814_v10 }
  0x3d   : > { %v463_v15 = vld [vmem:[%s13649_s30 + $0x18] sm:$0xf]  ;;  %819 = vst [vmem:[#allocation2 + $0x14] sm:$0x1] %v818_v11  ;;  %v528_v18 = vrot.slane %v526_v9, 7  ;;  %v534_v19 = vshrl.u32 %v462_v60, 16  ;;  %v522_v22 = vor.u32 %v520_v62, %v519_v12 }
  0x3e   : > { %v820_v17 = vld [vmem:[#allocation2 + $0x18] sm:$0xf]  ;;  %v537_v20 = vshll.u32 %v462_v60, 16  ;;  %v262_v21 = vsel %vm13636_vm9, 0, %v261_v1  ;;  %v524_v23 = vrot.slane %v519_v12, 4  ;;  %v312_v26 = vsel %vm13642_vm10, 0, %v311_v14 }
  0x3f   : > { %v821_v24 = vsel %vm13689_vm13, %v514_v6, %v820_v17  ;;  %v824_v25 = vld [vmem:[#allocation2 + $0x20] sm:$0x1]  ;;  %263 = vst [vmem:[#allocation2 + $0x30] sm:$0x1] %v262_v21  ;;  %v464_v27 = vld [vmem:[%s13649_s30 + $0x1c] sm:$0xf]  ;;  %v531_v28 = vor.u32 %v529_v13, %v528_v18  ;;  %v523_v34 = vsel %vm13683_vm12, %v515_v7, %v522_v22 }
  0x40   : > { %822 = vst [vmem:[#allocation2 + $0x18] sm:$0xf] %v821_v24  ;;  %v532_v29 = vrot.slane %v528_v18, 4  ;;  %v536_v30 = vrot.slane %v534_v19, 7  ;;  %313 = vst [vmem:[#allocation2 + $0x38] sm:$0x1] %v312_v26  ;;  %v825_v35 = vsel %vm13636_vm9, %v524_v23, %v824_v25 }
  0x41   : > { %v543_v31 = vshrl.u32 %v463_v15, 16  ;;  %v264_v32 = vld [vmem:[#allocation2 + $0x3c] sm:$0x1]  ;;  %v546_v36 = vshll.u32 %v463_v15, 16  ;;  %v551_v37 = vshrl.u32 %v464_v27, 16  ;;  %v554_v41 = vshll.u32 %v464_v27, 16 }
  0x42   : > { %823 = vst.msk [vmem:[#allocation2 + $0x1c] sm:$0xf] %vm239_vm0, %v523_v34  ;;  %826 = vst [vmem:[#allocation2 + $0x20] sm:$0x1] %v825_v35  ;;  %v539_v38 = vor.u32 %v537_v20, %v536_v30  ;;  %v541_v39 = vrot.slane %v536_v30, 4  ;;  %v265_v45 = vsel %vm13636_vm9, 0, %v264_v32 }
  0x43   : > { %v545_v40 = vrot.slane %v543_v31, 7  ;;  %v827_v42 = vld [vmem:[#allocation2 + $0x24] sm:$0xf]  ;;  %v831_v43 = vld [vmem:[#allocation2 + $0x2c] sm:$0x1]  ;;  %v13720_v44 = vrot.slane %v551_v37, 7 }
  0x44   : > { %v13724_v46 = vld [vmem:[#allocation2 + $0x10] sm:$0xf]  ;;  %v540_v47 = vsel %vm13683_vm12, %v532_v29, %v539_v38  ;;  %v828_v48 = vsel %vm13689_vm13, %v531_v28, %v827_v42  ;;  %v832_v50 = vsel %vm13636_vm9, %v541_v39, %v831_v43  ;;  %266 = vst [vmem:[#allocation2 + $0x3c] sm:$0x1] %v265_v45  ;;  %v927_v51 = vld [vmem:[#allocation2 + $0xc] sm:$0xf] }
  0x45   : > { %v959_v52 = vld [vmem:[#allocation2 + $0x14] sm:$0x1]  ;;  %v1011_v53 = vshll.u32 %v13724_v46, 16  ;;  %v1015_v55 = vshrl.u32 %v13724_v46, 16  ;;  %829 = vst [vmem:[#allocation2 + $0x24] sm:$0xf] %v828_v48  ;;  %v548_v56 = vor.u32 %v546_v36, %v545_v40  ;;  %v11248_v0 = vcombine.low %v927_v51, %v13724_v46 }
  0x46   : > { %830 = vst.msk [vmem:[#allocation2 + $0x28] sm:$0xf] %vm239_vm0, %v540_v47  ;;  %833 = vst [vmem:[#allocation2 + $0x2c] sm:$0x1] %v832_v50  ;;  %v1002_v57 = vshrl.u32 %v927_v51, 16  ;;  %v1005_v58 = vshll.u32 %v927_v51, 16  ;;  %v556_v2 = vor.u32 %v554_v41, %v13720_v44 }
  0x47   : > { %v1021_v59 = vshll.u32 %v959_v52, 16  ;;  %v2179_v60 = vsel %vm1460_vm2, %v13654_v16, 0  ;;  %v834_v61 = vld [vmem:[#allocation2 + $0x30] sm:$0xf]  ;;  %v1013_v62 = vrot.slane %v1011_v53, 5  ;;  %v1017_v63 = vrot.slane %v1015_v55, 4  ;;  %12460 = vmatmul.mubr.msk.bf16.vlgmr.msra.gmra.mxu1 %vm1411_vm7, %v11248_v0 }
  0x48   : > { %v929_v1 = vld [vmem:[#allocation2 + $0x18] sm:$0xf]  ;;  %v1004_v3 = vrot.slane %v1002_v57, 4  ;;  %v1007_v4 = vrot.slane %v1005_v58, 5  ;;  %v549_v13 = vrot.slane %v545_v40, 4  ;;  %v835_v16 = vsel %vm13689_vm13, %v548_v56, %v834_v61  ;;  %s11958_s15 = sshll.u32 %s13571_s22, 11 }
  0x49   : > { %v1023_v6 = vrot.slane %v1021_v59, 5  ;;  %v1026_v7 = vshrl.u32 %v929_v1, 16  ;;  %v1018_v9 = vor.u32 %v1017_v63, %v1013_v62  ;;  %v930_v10 = vld [vmem:[#allocation2 + $0x1c] sm:$0xf]  ;;  %v960_v11 = vld [vmem:[#allocation2 + $0x20] sm:$0x1]  ;;  %s18251_s25 = scalar_lea.hbm %s18304_s5, %s11958_s15 }
  0x4a   : > { %v1029_v12 = vshll.u32 %v929_v1, 16  ;;  %v1008_v14 = vor.u32 %v1007_v4, %v1004_v3  ;;  %v1035_v17 = vshll.u32 %v930_v10, 16  ;;  %v1039_v18 = vshrl.u32 %v930_v10, 16  ;;  %836 = vst [vmem:[#allocation2 + $0x30] sm:$0xf] %v835_v16  ;;  %s11131_s16 = sshll.u32 %s18131_s14, 4  ;;  %s18253_s16 = int_to_ptr.vmem [resolvable:$true] %s11131_s16 }
  0x4b   : > { %v1028_v15 = vrot.slane %v1026_v7, 4  ;;  %v1019_v19 = vrot.slane %v1018_v9, 4  ;;  %v1045_v21 = vshll.u32 %v960_v11, 16  ;;  %v11249_v22 = vcombine.low %v929_v1, %v930_v10  ;;  %v314_v43 = vld [vmem:[#allocation2 + $0x44] sm:$0x1]  ;;  %s18259_s26 = scalar_lea.sflag [#allocation6], %s230_s12 }
  0x4c   : > { %v1031_v20 = vrot.slane %v1029_v12, 5  ;;  %v1009_v23 = vrot.slane %v1008_v14, 4  ;;  %v1037_v24 = vrot.slane %v1035_v17, 5  ;;  %v1041_v25 = vrot.slane %v1039_v18, 4  ;;  %v931_v26 = vld [vmem:[#allocation2 + $0x24] sm:$0xf] }
  0x4d   : > { %v557_v27 = vsel %vm13683_vm12, %v549_v13, %v556_v2  ;;  %v1024_v28 = vsel %vm13667_vm11, %v1019_v19, %v1023_v6  ;;  %v1047_v30 = vrot.slane %v1045_v21, 5  ;;  %12463 = vmatprep.mubr.msk.bf16.mxu1 %vm1411_vm7, %v11249_v22  ;;  %v932_v31 = vld [vmem:[#allocation2 + $0x28] sm:$0xf]  ;;  %v961_v32 = vld [vmem:[#allocation2 + $0x2c] sm:$0x1]  ;;  %v1050_v34 = vshrl.u32 %v931_v26, 16 }
  0x4e   : > { %v1032_v29 = vor.u32 %v1031_v20, %v1028_v15  ;;  %837 = vst.msk [vmem:[#allocation2 + $0x34] sm:$0xf] %vm239_vm0, %v557_v27  ;;  %v1014_v35 = vsel %vm13667_vm11, %v1009_v23, %v1013_v62  ;;  %v1042_v36 = vor.u32 %v1041_v25, %v1037_v24  ;;  %v1053_v37 = vshll.u32 %v931_v26, 16  ;;  %v838_v51 = vld [vmem:[#allocation2 + $0x38] sm:$0x1]  ;;  %s13447_s22 = scalar_lea.vmem %s18253_s16, 2048 }
  0x4f   : > { %v1059_v38 = vshll.u32 %v932_v31, 16  ;;  %v11216_v39 = vcombine.low %v1014_v35, %v1024_v28  ;;  %v1052_v41 = vrot.slane %v1050_v34, 4  ;;  %v1063_v42 = vshrl.u32 %v932_v31, 16  ;;  %v465_v58 = vld [vmem:[%s13649_s30 + $0x20] sm:$0xf]  ;;  %p13448_p8 = scmp.ne.s32.totalorder %s18253_s16, %s13447_s22 }
  0x50   : > { %v1033_v40 = vrot.slane %v1032_v29, 4  ;;  %v1043_v45 = vrot.slane %v1042_v36, 4  ;;  %v1055_v47 = vrot.slane %v1053_v37, 5  ;;  %v1069_v50 = vshll.u32 %v961_v32, 16  ;;  %v466_v13 = vld [vmem:[%s13649_s30 + $0x24] sm:$0xf] }
  0x51   : > { %v1061_v48 = vrot.slane %v1059_v38, 5  ;;  %12426 = vmatmul.mubr.msk.bf16.vlgmr.msra.gmra.mxu0 %vm1411_vm7, %v11216_v39  ;;  %v1065_v53 = vrot.slane %v1063_v42, 4  ;;  %v11250_v55 = vcombine.low %v931_v26, %v932_v31  ;;  %v558_v56 = vrot.slane %v13720_v44, 4  ;;  %v933_v57 = vld [vmem:[#allocation2 + $0x30] sm:$0xf]  ;;  %p13449_p9 = pnand %p13448_p8, %p13588_p5 }
  0x52   : > { %v1038_v52 = vsel %vm13667_vm11, %v1033_v40, %v1037_v24  ;;  %12492 = vmatpush3.bf16.msra.mxu0 %v2179_v60  ;;  %v1048_v59 = vsel %vm13667_vm11, %v1043_v45, %v1047_v30  ;;  %v1056_v61 = vor.u32 %v1055_v47, %v1052_v41  ;;  %v1071_v62 = vrot.slane %v1069_v50, 5  ;;  %v267_v18 = vld [vmem:[#allocation2 + $0x48] sm:$0x1]  ;;  %v317_v19 = vld [vmem:[#allocation2 + $0x50] sm:$0x1] }
  0x53   : > { %v1074_v63 = vshrl.u32 %v933_v57, 16  ;;  %v11217_v0 = vcombine.low %v1038_v52, %v1048_v59  ;;  %v1066_v1 = vor.u32 %v1065_v53, %v1061_v48  ;;  %12464 = vmatmul.mubr.msk.bf16.gmra.mxu1 %vm1411_vm7, %v11250_v55  ;;  %v839_v2 = vsel %vm13636_vm9, %v558_v56, %v838_v51  ;;  %v841_v24 = vld [vmem:[#allocation2 + $0x3c] sm:$0xf]  ;;  %v467_v25 = vld [vmem:[%s13649_s30 + $0x28] sm:$0xf]  ;;  %p13450_p10 = pneg %p13449_p9 }
  0x54   : > { %v1077_v3 = vshll.u32 %v933_v57, 16  ;;  %v1057_v4 = vrot.slane %v1056_v61, 4  ;;  %840 = vst [vmem:[#allocation2 + $0x38] sm:$0x1] %v839_v2  ;;  %v315_v60 = vsel %vm13642_vm10, 0, %v314_v43  ;;  %v560_v7 = vshrl.u32 %v465_v58, 16 }
  0x55   : > { %v934_v44 = vld [vmem:[#allocation2 + $0x34] sm:$0xf]  ;;  %v1076_v6 = vrot.slane %v1074_v63, 4  ;;  %12429 = vmatprep.mubr.msk.bf16.mxu0 %vm1411_vm7, %v11217_v0  ;;  %v1067_v9 = vrot.slane %v1066_v1, 4  ;;  %316 = vst [vmem:[#allocation2 + $0x44] sm:$0x1] %v315_v60 }
  0x56   : > { %v1079_v10 = vrot.slane %v1077_v3, 5  ;;  %v1083_v11 = vshll.u32 %v934_v44, 16  ;;  %v1087_v12 = vshrl.u32 %v934_v44, 16  ;;  %v1062_v16 = vsel %vm13667_vm11, %v1057_v4, %v1061_v48  ;;  %v468_v30 = vld [vmem:[%s13649_s30 + $0x2c] sm:$0xf] }
  0x57   : > { %v11251_v14 = vcombine.low %v933_v57, %v934_v44  ;;  %v562_v15 = vrot.slane %v560_v7, 7  ;;  %v563_v17 = vshll.u32 %v465_v58, 16  ;;  %v1072_v20 = vsel %vm13667_vm11, %v1067_v9, %v1071_v62  ;;  %v270_v31 = vld [vmem:[#allocation2 + $0x54] sm:$0x1]  ;;  %v320_v37 = vld [vmem:[#allocation2 + $0x5c] sm:$0x1] }
  0x58   : > { %v1080_v21 = vor.u32 %v1079_v10, %v1076_v6  ;;  %v1085_v22 = vrot.slane %v1083_v11, 5  ;;  %v1089_v23 = vrot.slane %v1087_v12, 4  ;;  %v11218_v26 = vcombine.low %v1062_v16, %v1072_v20  ;;  %v469_v42 = vld [vmem:[%s13649_s30 + $0x30] sm:$0xf]  ;;  %v470_v62 = vld [vmem:[%s13649_s30 + $0x34] sm:$0xf] }
  0x59   : > { %12467 = vmatprep.mubr.msk.bf16.mxu1 %vm1411_vm7, %v11251_v14  ;;  %v565_v27 = vor.u32 %v563_v17, %v562_v15  ;;  %v566_v28 = vrot.slane %v562_v15, 4  ;;  %v568_v29 = vshrl.u32 %v466_v13, 16  ;;  %v571_v35 = vshll.u32 %v466_v13, 16  ;;  %v273_v3 = vld [vmem:[#allocation2 + $0x60] sm:$0x1] }
  0x5a   : > { %v1081_v32 = vrot.slane %v1080_v21, 4  ;;  %v1090_v34 = vor.u32 %v1089_v23, %v1085_v22  ;;  %v268_v36 = vsel %vm13636_vm9, 0, %v267_v18  ;;  %12430 = vmatmul.mubr.msk.bf16.gmra.mxu0 %vm1411_vm7, %v11218_v26  ;;  %v318_v40 = vsel %vm13642_vm10, 0, %v317_v19  ;;  %v323_v7 = vld [vmem:[#allocation2 + $0x68] sm:$0x1] }
  0x5b   : > { %v570_v38 = vrot.slane %v568_v29, 7  ;;  %v842_v39 = vsel %vm13689_vm13, %v565_v27, %v841_v24  ;;  %269 = vst [vmem:[#allocation2 + $0x48] sm:$0x1] %v268_v36  ;;  %v577_v41 = vshrl.u32 %v467_v25, 16  ;;  %v962_v43 = vld [vmem:[#allocation2 + $0x38] sm:$0x1] }
  0x5c   : > { %v1086_v45 = vsel %vm13667_vm11, %v1081_v32, %v1085_v22  ;;  %v1091_v47 = vrot.slane %v1090_v34, 4  ;;  %843 = vst [vmem:[#allocation2 + $0x3c] sm:$0xf] %v842_v39  ;;  %319 = vst [vmem:[#allocation2 + $0x50] sm:$0x1] %v318_v40  ;;  %v580_v48 = vshll.u32 %v467_v25, 16 }
  0x5d   : > { %v585_v50 = vshrl.u32 %v468_v30, 16  ;;  %v1093_v51 = vshll.u32 %v962_v43, 16  ;;  %v573_v52 = vor.u32 %v571_v35, %v570_v38  ;;  %v575_v53 = vrot.slane %v570_v38, 4  ;;  %v845_v55 = vld [vmem:[#allocation2 + $0x44] sm:$0x1] }
  0x5e   : > { %v579_v56 = vrot.slane %v577_v41, 7  ;;  %v588_v58 = vshll.u32 %v468_v30, 16  ;;  %v271_v59 = vsel %vm13636_vm9, 0, %v270_v31  ;;  %v321_v61 = vsel %vm13642_vm10, 0, %v320_v37  ;;  %v471_v18 = vld [vmem:[%s13649_s30 + $0x38] sm:$0xf] }
  0x5f   : > { %v587_v57 = vrot.slane %v585_v50, 7  ;;  %v1095_v63 = vrot.slane %v1093_v51, 5  ;;  %v574_v0 = vsel %vm13683_vm12, %v566_v28, %v573_v52  ;;  %v846_v1 = vsel %vm13636_vm9, %v575_v53, %v845_v55  ;;  %272 = vst [vmem:[#allocation2 + $0x54] sm:$0x1] %v271_v59  ;;  %322 = vst [vmem:[#allocation2 + $0x5c] sm:$0x1] %v321_v61 }
  0x60   : > { %v582_v2 = vor.u32 %v580_v48, %v579_v56  ;;  %844 = vst.msk [vmem:[#allocation2 + $0x40] sm:$0xf] %vm239_vm0, %v574_v0  ;;  %847 = vst [vmem:[#allocation2 + $0x44] sm:$0x1] %v846_v1  ;;  %v583_v4 = vrot.slane %v579_v56, 4  ;;  %v594_v60 = vshrl.u32 %v469_v42, 16 }
  0x61   : > { %v590_v44 = vor.u32 %v588_v58, %v587_v57  ;;  %v592_v6 = vrot.slane %v587_v57, 4  ;;  %v1096_v9 = vsel %vm13667_vm11, %v1091_v47, %v1095_v63  ;;  %v597_v10 = vshll.u32 %v469_v42, 16  ;;  %v13807_v31 = vld [vmem:[%s13649_s30 + $0x3c] sm:$0xf] }
  0x62   : > { %v602_v11 = vshrl.u32 %v470_v62, 16  ;;  %v605_v12 = vshll.u32 %v470_v62, 16  ;;  %v11219_v13 = vcombine.low %v1086_v45, %v1096_v9  ;;  %v848_v14 = vld [vmem:[#allocation2 + $0x48] sm:$0xf]  ;;  %v596_v15 = vrot.slane %v594_v60, 7 }
  0x63   : > { %v591_v16 = vsel %vm13683_vm12, %v583_v4, %v590_v44  ;;  %v274_v17 = vsel %vm13636_vm9, 0, %v273_v3  ;;  %v935_v19 = vld [vmem:[#allocation2 + $0x3c] sm:$0xf]  ;;  %v849_v20 = vsel %vm13689_vm13, %v582_v2, %v848_v14  ;;  %v852_v21 = vld [vmem:[#allocation2 + $0x50] sm:$0x1]  ;;  %v324_v23 = vsel %vm13642_vm10, 0, %v323_v7 }
  0x64   : > { %851 = vst.msk [vmem:[#allocation2 + $0x4c] sm:$0xf] %vm239_vm0, %v591_v16  ;;  %v604_v22 = vrot.slane %v602_v11, 7  ;;  %275 = vst [vmem:[#allocation2 + $0x60] sm:$0x1] %v274_v17  ;;  %12433 = vmatprep.mubr.msk.bf16.mxu0 %vm1411_vm7, %v11219_v13  ;;  %v1098_v24 = vshrl.u32 %v935_v19, 16  ;;  %v853_v26 = vsel %vm13636_vm9, %v592_v6, %v852_v21  ;;  %v599_v27 = vor.u32 %v597_v10, %v596_v15 }
  0x65   : > { %v1101_v25 = vshll.u32 %v935_v19, 16  ;;  %850 = vst [vmem:[#allocation2 + $0x48] sm:$0xf] %v849_v20  ;;  %325 = vst [vmem:[#allocation2 + $0x68] sm:$0x1] %v324_v23  ;;  %v600_v28 = vrot.slane %v596_v15, 4 }
  0x66   : > { %854 = vst [vmem:[#allocation2 + $0x50] sm:$0x1] %v853_v26  ;;  %v607_v29 = vor.u32 %v605_v12, %v604_v22  ;;  %v609_v30 = vrot.slane %v604_v22, 4  ;;  %v611_v32 = vshrl.u32 %v471_v18, 16  ;;  %v1100_v34 = vrot.slane %v1098_v24, 4 }
  0x67   : > { %v1103_v35 = vrot.slane %v1101_v25, 5  ;;  %v855_v36 = vld [vmem:[#allocation2 + $0x54] sm:$0xf]  ;;  %v859_v37 = vld [vmem:[#allocation2 + $0x5c] sm:$0x1]  ;;  %v614_v52 = vshll.u32 %v471_v18, 16 }
  0x68   : > { %v936_v38 = vld [vmem:[#allocation2 + $0x40] sm:$0xf]  ;;  %v963_v39 = vld [vmem:[#allocation2 + $0x44] sm:$0x1]  ;;  %v608_v40 = vsel %vm13683_vm12, %v600_v28, %v607_v29  ;;  %v856_v41 = vsel %vm13689_vm13, %v599_v27, %v855_v36  ;;  %v860_v42 = vsel %vm13636_vm9, %v609_v30, %v859_v37  ;;  %v13815_v43 = vrot.slane %v611_v32, 7 }
  0x69   : > { %v1104_v45 = vor.u32 %v1103_v35, %v1100_v34  ;;  %v1107_v47 = vshll.u32 %v936_v38, 16  ;;  %v1111_v48 = vshrl.u32 %v936_v38, 16  ;;  %v1117_v50 = vshll.u32 %v963_v39, 16  ;;  %857 = vst [vmem:[#allocation2 + $0x54] sm:$0xf] %v856_v41 }
  0x6a   : > { %858 = vst.msk [vmem:[#allocation2 + $0x58] sm:$0xf] %vm239_vm0, %v608_v40  ;;  %861 = vst [vmem:[#allocation2 + $0x5c] sm:$0x1] %v860_v42  ;;  %v11252_v51 = vcombine.low %v935_v19, %v936_v38  ;;  %v617_v53 = vrot.slane %v13815_v43, 4  ;;  %v619_v55 = vshrl.u32 %v13807_v31, 16  ;;  %v616_v1 = vor.u32 %v614_v52, %v13815_v43 }
  0x6b   : > { %v1105_v56 = vrot.slane %v1104_v45, 4  ;;  %v1109_v57 = vrot.slane %v1107_v47, 5  ;;  %v1113_v58 = vrot.slane %v1111_v48, 4  ;;  %v1119_v59 = vrot.slane %v1117_v50, 5  ;;  %v938_v61 = vld [vmem:[#allocation2 + $0x4c] sm:$0xf] }
  0x6c   : > { %12468 = vmatmul.mubr.msk.bf16.gmra.mxu1 %vm1411_vm7, %v11252_v51  ;;  %v937_v62 = vld [vmem:[#allocation2 + $0x48] sm:$0xf]  ;;  %v1131_v63 = vshll.u32 %v938_v61, 16  ;;  %v1135_v0 = vshrl.u32 %v938_v61, 16  ;;  %v621_v2 = vrot.slane %v619_v55, 7  ;;  %v622_v15 = vshll.u32 %v13807_v31, 16 }
  0x6d   : > { %v1110_v3 = vsel %vm13667_vm11, %v1105_v56, %v1109_v57  ;;  %v1114_v4 = vor.u32 %v1113_v58, %v1109_v57  ;;  %v13824_v44 = vld [vmem:[#allocation2 + $0x50] sm:$0x1]  ;;  %v1122_v6 = vshrl.u32 %v937_v62, 16  ;;  %v1125_v60 = vshll.u32 %v937_v62, 16  ;;  %v862_v7 = vld [vmem:[#allocation2 + $0x60] sm:$0xf] }
  0x6e   : > { %v1133_v9 = vrot.slane %v1131_v63, 5  ;;  %v1137_v10 = vrot.slane %v1135_v0, 4  ;;  %v1141_v11 = vshll.u32 %v13824_v44, 16  ;;  %v11253_v12 = vcombine.low %v937_v62, %v938_v61  ;;  %v276_v32 = vld [vmem:[#allocation2 + $0x6c] sm:$0x1] }
  0x6f   : > { %v1115_v13 = vrot.slane %v1114_v4, 4  ;;  %v1124_v16 = vrot.slane %v1122_v6, 4  ;;  %v1127_v14 = vrot.slane %v1125_v60, 5  ;;  %v626_v21 = vrot.slane %v621_v2, 4  ;;  %v866_v38 = vld [vmem:[#allocation2 + $0x68] sm:$0x1] }
  0x70   : > { %v1138_v17 = vor.u32 %v1137_v10, %v1133_v9  ;;  %v1143_v18 = vrot.slane %v1141_v11, 5  ;;  %12471 = vmatprep.mubr.msk.bf16.mxu1 %vm1411_vm7, %v11253_v12  ;;  %v939_v19 = vld [vmem:[#allocation2 + $0x54] sm:$0xf]  ;;  %v863_v22 = vsel %vm13689_vm13, %v616_v1, %v862_v7  ;;  %v473_v47 = vld [vmem:[%s13649_s30 + $0x40] sm:$0xf]  ;;  %v624_v52 = vor.u32 %v622_v15, %v621_v2 }
  0x71   : > { %v13829_v20 = vld [vmem:[#allocation2 + $0x58] sm:$0xf]  ;;  %v1120_v23 = vsel %vm13667_vm11, %v1115_v13, %v1119_v59  ;;  %v1128_v24 = vor.u32 %v1127_v14, %v1124_v16  ;;  %v13835_v25 = vld [vmem:[#allocation2 + $0x5c] sm:$0x1]  ;;  %v1146_v26 = vshrl.u32 %v939_v19, 16  ;;  %v1149_v27 = vshll.u32 %v939_v19, 16 }
  0x72   : > { %864 = vst [vmem:[#allocation2 + $0x60] sm:$0xf] %v863_v22  ;;  %v11220_v28 = vcombine.low %v1110_v3, %v1120_v23  ;;  %v1139_v29 = vrot.slane %v1138_v17, 4  ;;  %v1155_v30 = vshll.u32 %v13829_v20, 16  ;;  %v1159_v31 = vshrl.u32 %v13829_v20, 16 }
  0x73   : > { %v1129_v34 = vrot.slane %v1128_v24, 4  ;;  %v1148_v35 = vrot.slane %v1146_v26, 4  ;;  %v1151_v36 = vrot.slane %v1149_v27, 5  ;;  %v1165_v37 = vshll.u32 %v13835_v25, 16  ;;  %v326_v45 = vld [vmem:[#allocation2 + $0x74] sm:$0x1] }
  0x74   : > { %12434 = vmatmul.mubr.msk.bf16.gmra.mxu0 %vm1411_vm7, %v11220_v28  ;;  %v1144_v39 = vsel %vm13667_vm11, %v1139_v29, %v1143_v18  ;;  %v1157_v40 = vrot.slane %v1155_v30, 5  ;;  %v1161_v41 = vrot.slane %v1159_v31, 4  ;;  %v11254_v42 = vcombine.low %v939_v19, %v13829_v20  ;;  %v474_v55 = vld [vmem:[%s13649_s30 + $0x44] sm:$0xf]  ;;  %v279_v56 = vld [vmem:[#allocation2 + $0x78] sm:$0x1] }
  0x75   : > { %v1134_v48 = vsel %vm13667_vm11, %v1129_v34, %v1133_v9  ;;  %v1152_v50 = vor.u32 %v1151_v36, %v1148_v35  ;;  %v1167_v51 = vrot.slane %v1165_v37, 5  ;;  %v867_v59 = vsel %vm13636_vm9, %v626_v21, %v866_v38  ;;  %v329_v62 = vld [vmem:[#allocation2 + $0x80] sm:$0x1]  ;;  %v13856_v63 = vld [vmem:[%s18300_s1 + $0x6] sm:$0x3] }
  0x76   : > { %v11221_v57 = vcombine.low %v1134_v48, %v1144_v39  ;;  %v1162_v58 = vor.u32 %v1161_v41, %v1157_v40  ;;  %12472 = vmatmul.mubr.msk.bf16.gmra.mxu1 %vm1411_vm7, %v11254_v42  ;;  %v277_v61 = vsel %vm13636_vm9, 0, %v276_v32  ;;  %v625_v1 = vsel %vm13683_vm12, %v617_v53, %v624_v52  ;;  %868 = vst [vmem:[#allocation2 + $0x68] sm:$0x1] %v867_v59  ;;  %v475_v4 = vld [vmem:[%s13649_s30 + $0x48] sm:$0xf] }
  0x77   : > { %v1153_v0 = vrot.slane %v1152_v50, 4  ;;  %278 = vst [vmem:[#allocation2 + $0x6c] sm:$0x1] %v277_v61  ;;  %v327_v2 = vsel %vm13642_vm10, 0, %v326_v45  ;;  %v628_v3 = vshrl.u32 %v473_v47, 16  ;;  %13164 = vmatprep.subr.msk.bf16.mxu1 %vm1460_vm2, %v13856_v63  ;;  %v631_v60 = vshll.u32 %v473_v47, 16 }
  0x78   : > { %v13870_v6 = vld [vmem:[%s18300_s1 + $0x8] sm:$0x3]  ;;  %12437 = vmatprep.mubr.msk.bf16.mxu0 %vm1411_vm7, %v11221_v57  ;;  %v1163_v43 = vrot.slane %v1162_v58, 4  ;;  %865 = vst.msk [vmem:[#allocation2 + $0x64] sm:$0xf] %vm239_vm0, %v625_v1  ;;  %v636_v7 = vshrl.u32 %v474_v55, 16 }
  0x79   : > { %v941_v53 = vld [vmem:[#allocation2 + $0x60] sm:$0xf]  ;;  %328 = vst [vmem:[#allocation2 + $0x74] sm:$0x1] %v327_v2  ;;  %v639_v9 = vshll.u32 %v474_v55, 16  ;;  %13165 = vmatprep.subr.msk.bf16.mxu0 %vm1460_vm2, %v13870_v6  ;;  %v1158_v11 = vsel %vm13667_vm11, %v1153_v0, %v1157_v40  ;;  %v630_v16 = vrot.slane %v628_v3, 7 }
  0x7a   : > { %v476_v10 = vld [vmem:[%s13649_s30 + $0x4c] sm:$0xf]  ;;  %v1170_v12 = vshrl.u32 %v941_v53, 16  ;;  %v1173_v13 = vshll.u32 %v941_v53, 16  ;;  %v282_v14 = vld [vmem:[#allocation2 + $0x84] sm:$0x1]  ;;  %v1168_v15 = vsel %vm13667_vm11, %v1163_v43, %v1167_v51 }
  0x7b   : > { %v638_v17 = vrot.slane %v636_v7, 7  ;;  %v280_v18 = vsel %vm13636_vm9, 0, %v279_v56  ;;  %v330_v19 = vsel %vm13642_vm10, 0, %v329_v62  ;;  %v11222_v21 = vcombine.low %v1158_v11, %v1168_v15  ;;  %v332_v39 = vld [vmem:[#allocation2 + $0x8c] sm:$0x1] }
  0x7c   : > { %v1172_v22 = vrot.slane %v1170_v12, 4  ;;  %v1175_v23 = vrot.slane %v1173_v13, 5  ;;  %v633_v24 = vor.u32 %v631_v60, %v630_v16  ;;  %281 = vst [vmem:[#allocation2 + $0x78] sm:$0x1] %v280_v18  ;;  %331 = vst [vmem:[#allocation2 + $0x80] sm:$0x1] %v330_v19 }
  0x7d   : > { %v634_v26 = vrot.slane %v630_v16, 4  ;;  %v641_v27 = vor.u32 %v639_v9, %v638_v17  ;;  %v643_v28 = vrot.slane %v638_v17, 4  ;;  %v645_v29 = vshrl.u32 %v475_v4, 16  ;;  %12438 = vmatmul.mubr.msk.bf16.gmra.mxu0 %vm1411_vm7, %v11222_v21  ;;  %v13886_v34 = vld [vmem:[#allocation2 + $0x68] sm:$0x1] }
  0x7e   : > { %v1176_v30 = vor.u32 %v1175_v23, %v1172_v22  ;;  %v648_v31 = vshll.u32 %v475_v4, 16  ;;  %v653_v32 = vshrl.u32 %v476_v10, 16  ;;  %v869_v36 = vld [vmem:[#allocation2 + $0x6c] sm:$0xf]  ;;  %v283_v38 = vsel %vm13636_vm9, 0, %v282_v14 }
  0x7f   : > { %v642_v35 = vsel %vm13683_vm12, %v634_v26, %v641_v27  ;;  %v647_v37 = vrot.slane %v645_v29, 7  ;;  %v13892_v40 = vld [vmem:[#allocation2 + $0x64] sm:$0xf]  ;;  %v1189_v41 = vshll.u32 %v13886_v34, 16  ;;  %v870_v42 = vsel %vm13689_vm13, %v633_v24, %v869_v36  ;;  %284 = vst [vmem:[#allocation2 + $0x84] sm:$0x1] %v283_v38 }
  0x80   : > { %872 = vst.msk [vmem:[#allocation2 + $0x70] sm:$0xf] %vm239_vm0, %v642_v35  ;;  %v873_v45 = vld [vmem:[#allocation2 + $0x74] sm:$0x1]  ;;  %v656_v47 = vshll.u32 %v476_v10, 16  ;;  %v1179_v50 = vshll.u32 %v13892_v40, 16  ;;  %v11255_v52 = vcombine.low %v941_v53, %v13892_v40 }
  0x81   : > { %v477_v48 = vld [vmem:[%s13649_s30 + $0x50] sm:$0xf]  ;;  %v1183_v51 = vshrl.u32 %v13892_v40, 16  ;;  %871 = vst [vmem:[#allocation2 + $0x6c] sm:$0xf] %v870_v42  ;;  %v874_v55 = vsel %vm13636_vm9, %v643_v28, %v873_v45  ;;  %v1177_v57 = vrot.slane %v1176_v30, 4  ;;  %v650_v58 = vor.u32 %v648_v31, %v647_v37 }
  0x82   : > { %v478_v56 = vld [vmem:[%s13649_s30 + $0x54] sm:$0xf]  ;;  %875 = vst [vmem:[#allocation2 + $0x74] sm:$0x1] %v874_v55  ;;  %v651_v59 = vrot.slane %v647_v37, 4  ;;  %v655_v61 = vrot.slane %v653_v32, 7  ;;  %12475 = vmatprep.mubr.msk.bf16.mxu1 %vm1411_vm7, %v11255_v52 }
  0x83   : > { %v1181_v62 = vrot.slane %v1179_v50, 5  ;;  %v1185_v0 = vrot.slane %v1183_v51, 4  ;;  %v876_v1 = vld [vmem:[#allocation2 + $0x78] sm:$0xf]  ;;  %v880_v2 = vld [vmem:[#allocation2 + $0x80] sm:$0x1] }
  0x84   : > { %v658_v3 = vor.u32 %v656_v47, %v655_v61  ;;  %v660_v4 = vrot.slane %v655_v61, 4  ;;  %v877_v43 = vsel %vm13689_vm13, %v650_v58, %v876_v1  ;;  %v333_v53 = vsel %vm13642_vm10, 0, %v332_v39  ;;  %v285_v11 = vld [vmem:[#allocation2 + $0x90] sm:$0x1] }
  0x85   : > { %v1977_v60 = vrot.slane %v13724_v46, 5  ;;  %v1186_v7 = vor.u32 %v1185_v0, %v1181_v62  ;;  %v1191_v9 = vrot.slane %v1189_v41, 5  ;;  %878 = vst [vmem:[#allocation2 + $0x78] sm:$0xf] %v877_v43  ;;  %334 = vst [vmem:[#allocation2 + $0x8c] sm:$0x1] %v333_v53  ;;  %v1182_v12 = vsel %vm13667_vm11, %v1177_v57, %v1181_v62 }
  0x86   : > { %v662_v10 = vshrl.u32 %v477_v48, 16  ;;  %v659_v13 = vsel %vm13683_vm12, %v651_v59, %v658_v3  ;;  %v881_v16 = vsel %vm13636_vm9, %v660_v4, %v880_v2  ;;  %v670_v14 = vshrl.u32 %v478_v56, 16  ;;  %v883_v27 = vld [vmem:[#allocation2 + $0x84] sm:$0xf]  ;;  %v479_v0 = vld [vmem:[%s13649_s30 + $0x58] sm:$0xf] }
  0x87   : > { %v1187_v15 = vrot.slane %v1186_v7, 4  ;;  %v13917_v17 = vld [vmem:[#allocation2 + $0x70] sm:$0xf]  ;;  %879 = vst.msk [vmem:[#allocation2 + $0x7c] sm:$0xf] %vm239_vm0, %v659_v13  ;;  %v665_v19 = vshll.u32 %v477_v48, 16 }
  0x88   : > { %882 = vst [vmem:[#allocation2 + $0x80] sm:$0x1] %v881_v16  ;;  %v664_v18 = vrot.slane %v662_v10, 7  ;;  %v673_v21 = vshll.u32 %v478_v56, 16  ;;  %v943_v22 = vld [vmem:[#allocation2 + $0x6c] sm:$0xf] }
  0x89   : > { %v1203_v23 = vshll.u32 %v13917_v17, 16  ;;  %v1207_v24 = vshrl.u32 %v13917_v17, 16  ;;  %v672_v26 = vrot.slane %v670_v14, 7  ;;  %v286_v28 = vsel %vm13636_vm9, 0, %v285_v11  ;;  %v13926_v30 = vld [vmem:[#allocation2 + $0x74] sm:$0x1] }
  0x8a   : > { %v1192_v29 = vsel %vm13667_vm11, %v1187_v15, %v1191_v9  ;;  %v1194_v31 = vshrl.u32 %v943_v22, 16  ;;  %v1197_v32 = vshll.u32 %v943_v22, 16  ;;  %v11256_v35 = vcombine.low %v943_v22, %v13917_v17  ;;  %287 = vst [vmem:[#allocation2 + $0x90] sm:$0x1] %v286_v28  ;;  %v335_v48 = vld [vmem:[#allocation2 + $0x98] sm:$0x1] }
  0x8b   : > { %v11223_v36 = vcombine.low %v1182_v12, %v1192_v29  ;;  %v1205_v37 = vrot.slane %v1203_v23, 5  ;;  %v1209_v38 = vrot.slane %v1207_v24, 4  ;;  %v1213_v39 = vshll.u32 %v13926_v30, 16  ;;  %v480_v7 = vld [vmem:[%s13649_s30 + $0x5c] sm:$0xf] }
  0x8c   : > { %v1196_v41 = vrot.slane %v1194_v31, 4  ;;  %v1199_v42 = vrot.slane %v1197_v32, 5  ;;  %12476 = vmatmul.mubr.msk.bf16.gmra.mxu1 %vm1411_vm7, %v11256_v35  ;;  %v667_v45 = vor.u32 %v665_v19, %v664_v18  ;;  %v668_v47 = vrot.slane %v664_v18, 4  ;;  %v945_v52 = vld [vmem:[#allocation2 + $0x78] sm:$0xf] }
  0x8d   : > { %12441 = vmatprep.mubr.msk.bf16.mxu0 %vm1411_vm7, %v11223_v36  ;;  %v1210_v50 = vor.u32 %v1209_v38, %v1205_v37  ;;  %v1215_v51 = vrot.slane %v1213_v39, 5  ;;  %v675_v55 = vor.u32 %v673_v21, %v672_v26  ;;  %v677_v56 = vrot.slane %v672_v26, 4  ;;  %v887_v57 = vld [vmem:[#allocation2 + $0x8c] sm:$0x1]  ;;  %v288_v13 = vld [vmem:[#allocation2 + $0x9c] sm:$0x1] }
  0x8e   : > { %v1200_v58 = vor.u32 %v1199_v42, %v1196_v41  ;;  %v1218_v59 = vshrl.u32 %v945_v52, 16  ;;  %v1221_v61 = vshll.u32 %v945_v52, 16  ;;  %v884_v62 = vsel %vm13689_vm13, %v667_v45, %v883_v27  ;;  %v13935_v2 = vld [vmem:[#allocation2 + $0x7c] sm:$0xf]  ;;  %v338_v19 = vld [vmem:[#allocation2 + $0xa4] sm:$0x1] }
  0x8f   : > { %v1211_v1 = vrot.slane %v1210_v50, 4  ;;  %v13937_v3 = vld [vmem:[#allocation2 + $0x80] sm:$0x1]  ;;  %v676_v4 = vsel %vm13683_vm12, %v668_v47, %v675_v55  ;;  %885 = vst [vmem:[#allocation2 + $0x84] sm:$0xf] %v884_v62  ;;  %v888_v43 = vsel %vm13636_vm9, %v677_v56, %v887_v57  ;;  %v336_v53 = vsel %vm13642_vm10, 0, %v335_v48 }
  0x90   : > { %v1201_v9 = vrot.slane %v1200_v58, 4  ;;  %v1220_v10 = vrot.slane %v1218_v59, 4  ;;  %v1223_v11 = vrot.slane %v1221_v61, 5  ;;  %v1227_v12 = vshll.u32 %v13935_v2, 16  ;;  %886 = vst.msk [vmem:[#allocation2 + $0x88] sm:$0xf] %vm239_vm0, %v676_v4 }
  0x91   : > { %889 = vst [vmem:[#allocation2 + $0x8c] sm:$0x1] %v888_v43  ;;  %337 = vst [vmem:[#allocation2 + $0x98] sm:$0x1] %v336_v53  ;;  %v1216_v16 = vsel %vm13667_vm11, %v1211_v1, %v1215_v51  ;;  %v1231_v14 = vshrl.u32 %v13935_v2, 16  ;;  %v1237_v15 = vshll.u32 %v13937_v3, 16  ;;  %v11257_v18 = vcombine.low %v945_v52, %v13935_v2 }
  0x92   : > { %v1206_v21 = vsel %vm13667_vm11, %v1201_v9, %v1205_v37  ;;  %v1224_v22 = vor.u32 %v1223_v11, %v1220_v10  ;;  %v1229_v23 = vrot.slane %v1227_v12, 5  ;;  %v679_v24 = vshrl.u32 %v479_v0, 16  ;;  %v13956_v26 = vld [vmem:[%s13649_s30 + $0x60] sm:$0xf] }
  0x93   : > { %v11224_v27 = vcombine.low %v1206_v21, %v1216_v16  ;;  %v1233_v28 = vrot.slane %v1231_v14, 4  ;;  %v1239_v29 = vrot.slane %v1237_v15, 5  ;;  %12479 = vmatprep.mubr.msk.bf16.mxu1 %vm1411_vm7, %v11257_v18  ;;  %v682_v31 = vshll.u32 %v479_v0, 16  ;;  %v890_v0 = vld [vmem:[#allocation2 + $0x90] sm:$0xf] }
  0x94   : > { %v1225_v32 = vrot.slane %v1224_v22, 4  ;;  %v681_v35 = vrot.slane %v679_v24, 7  ;;  %v687_v36 = vshrl.u32 %v480_v7, 16  ;;  %v690_v38 = vshll.u32 %v480_v7, 16  ;;  %v482_v7 = vld [vmem:[%s13649_s30 + $0x64] sm:$0xf] }
  0x95   : > { %12442 = vmatmul.mubr.msk.bf16.gmra.mxu0 %vm1411_vm7, %v11224_v27  ;;  %v1234_v39 = vor.u32 %v1233_v28, %v1229_v23  ;;  %v289_v37 = vsel %vm13636_vm9, 0, %v288_v13  ;;  %v339_v41 = vsel %vm13642_vm10, 0, %v338_v19  ;;  %v696_v42 = vshrl.u32 %v13956_v26, 16  ;;  %v291_v16 = vld [vmem:[#allocation2 + $0xa8] sm:$0x1] }
  0x96   : > { %v947_v45 = vld [vmem:[#allocation2 + $0x84] sm:$0xf]  ;;  %v685_v47 = vrot.slane %v681_v35, 4  ;;  %v689_v48 = vrot.slane %v687_v36, 7  ;;  %290 = vst [vmem:[#allocation2 + $0x9c] sm:$0x1] %v289_v37  ;;  %v1230_v50 = vsel %vm13667_vm11, %v1225_v32, %v1229_v23  ;;  %v684_v57 = vor.u32 %v682_v31, %v681_v35 }
  0x97   : > { %340 = vst [vmem:[#allocation2 + $0xa4] sm:$0x1] %v339_v41  ;;  %v1235_v51 = vrot.slane %v1234_v39, 4  ;;  %v13967_v52 = vld [vmem:[#allocation2 + $0x88] sm:$0xf]  ;;  %v1242_v56 = vshrl.u32 %v947_v45, 16 }
  0x98   : > { %v13969_v55 = vld [vmem:[#allocation2 + $0x8c] sm:$0x1]  ;;  %v1245_v58 = vshll.u32 %v947_v45, 16  ;;  %v1251_v59 = vshll.u32 %v13967_v52, 16  ;;  %v1255_v61 = vshrl.u32 %v13967_v52, 16  ;;  %v11258_v43 = vcombine.low %v947_v45, %v13967_v52 }
  0x99   : > { %v1261_v62 = vshll.u32 %v13969_v55, 16  ;;  %v1240_v1 = vsel %vm13667_vm11, %v1235_v51, %v1239_v29  ;;  %v1244_v4 = vrot.slane %v1242_v56, 4  ;;  %v692_v53 = vor.u32 %v690_v38, %v689_v48  ;;  %v894_v13 = vld [vmem:[#allocation2 + $0x98] sm:$0x1]  ;;  %v341_v27 = vld [vmem:[#allocation2 + $0xb0] sm:$0x1] }
  0x9a   : > { %v11225_v9 = vcombine.low %v1230_v50, %v1240_v1  ;;  %v1247_v10 = vrot.slane %v1245_v58, 5  ;;  %v1253_v11 = vrot.slane %v1251_v59, 5  ;;  %v1257_v12 = vrot.slane %v1255_v61, 4  ;;  %12480 = vmatmul.mubr.msk.bf16.gmra.mxu1 %vm1411_vm7, %v11258_v43  ;;  %v483_v28 = vld [vmem:[%s13649_s30 + $0x68] sm:$0xf] }
  0x9b   : > { %v1263_v14 = vrot.slane %v1261_v62, 5  ;;  %v693_v15 = vsel %vm13683_vm12, %v685_v47, %v692_v53  ;;  %v694_v18 = vrot.slane %v689_v48, 4  ;;  %v891_v19 = vsel %vm13689_vm13, %v684_v57, %v890_v0  ;;  %v484_v36 = vld [vmem:[%s13649_s30 + $0x6c] sm:$0xf]  ;;  %v294_v45 = vld [vmem:[#allocation2 + $0xb4] sm:$0x1] }
  0x9c   : > { %12445 = vmatprep.mubr.msk.bf16.mxu0 %vm1411_vm7, %v11225_v9  ;;  %v1248_v21 = vor.u32 %v1247_v10, %v1244_v4  ;;  %v1258_v22 = vor.u32 %v1257_v12, %v1253_v11  ;;  %892 = vst [vmem:[#allocation2 + $0x90] sm:$0xf] %v891_v19  ;;  %893 = vst.msk [vmem:[#allocation2 + $0x94] sm:$0xf] %vm239_vm0, %v693_v15  ;;  %v698_v23 = vrot.slane %v696_v42, 7  ;;  %v699_v24 = vshll.u32 %v13956_v26, 16 }
  0x9d   : > { %v895_v29 = vsel %vm13636_vm9, %v694_v18, %v894_v13  ;;  %v704_v31 = vshrl.u32 %v482_v7, 16  ;;  %v707_v32 = vshll.u32 %v482_v7, 16  ;;  %v897_v35 = vld [vmem:[#allocation2 + $0x9c] sm:$0xf]  ;;  %v292_v42 = vsel %vm13636_vm9, 0, %v291_v16 }
  0x9e   : > { %v1249_v38 = vrot.slane %v1248_v21, 4  ;;  %v1259_v39 = vrot.slane %v1258_v22, 4  ;;  %896 = vst [vmem:[#allocation2 + $0x98] sm:$0x1] %v895_v29  ;;  %v701_v37 = vor.u32 %v699_v24, %v698_v23  ;;  %v702_v41 = vrot.slane %v698_v23, 4 }
  0x9f   : > { %v706_v47 = vrot.slane %v704_v31, 7  ;;  %v342_v26 = vsel %vm13642_vm10, 0, %v341_v27  ;;  %v713_v48 = vshrl.u32 %v483_v28, 16  ;;  %v344_v50 = vld [vmem:[#allocation2 + $0xbc] sm:$0x1]  ;;  %v716_v59 = vshll.u32 %v483_v28, 16 }
  0xa0   : > { %v1254_v51 = vsel %vm13667_vm11, %v1249_v38, %v1253_v11  ;;  %v1264_v56 = vsel %vm13667_vm11, %v1259_v39, %v1263_v14  ;;  %v898_v57 = vsel %vm13689_vm13, %v701_v37, %v897_v35  ;;  %v901_v58 = vld [vmem:[#allocation2 + $0xa4] sm:$0x1]  ;;  %293 = vst [vmem:[#allocation2 + $0xa8] sm:$0x1] %v292_v42  ;;  %343 = vst [vmem:[#allocation2 + $0xb0] sm:$0x1] %v342_v26 }
  0xa1   : > { %v11226_v61 = vcombine.low %v1254_v51, %v1264_v56  ;;  %v709_v62 = vor.u32 %v707_v32, %v706_v47  ;;  %v711_v0 = vrot.slane %v706_v47, 4  ;;  %899 = vst [vmem:[#allocation2 + $0x9c] sm:$0xf] %v898_v57  ;;  %v715_v1 = vrot.slane %v713_v48, 7  ;;  %v485_v9 = vld [vmem:[%s13649_s30 + $0x70] sm:$0xf] }
  0xa2   : > { %v721_v4 = vshrl.u32 %v484_v36, 16  ;;  %v724_v43 = vshll.u32 %v484_v36, 16  ;;  %v295_v53 = vsel %vm13636_vm9, 0, %v294_v45  ;;  %v345_v7 = vsel %vm13642_vm10, 0, %v344_v50 }
  0xa3   : > { %12446 = vmatmul.mubr.msk.bf16.gmra.mxu0 %vm1411_vm7, %v11226_v61  ;;  %v949_v10 = vld [vmem:[#allocation2 + $0x90] sm:$0xf]  ;;  %v14006_v11 = vld [vmem:[#allocation2 + $0x94] sm:$0xf]  ;;  %v710_v12 = vsel %vm13683_vm12, %v702_v41, %v709_v62  ;;  %v902_v13 = vsel %vm13636_vm9, %v711_v0, %v901_v58  ;;  %v718_v16 = vor.u32 %v716_v59, %v715_v1  ;;  %v719_v14 = vrot.slane %v715_v1, 4 }
  0xa4   : > { %296 = vst [vmem:[#allocation2 + $0xb4] sm:$0x1] %v295_v53  ;;  %346 = vst [vmem:[#allocation2 + $0xbc] sm:$0x1] %v345_v7  ;;  %v1266_v15 = vshrl.u32 %v949_v10, 16  ;;  %v1269_v18 = vshll.u32 %v949_v10, 16  ;;  %v11259_v23 = vcombine.low %v949_v10, %v14006_v11 }
  0xa5   : > { %v1275_v19 = vshll.u32 %v14006_v11, 16  ;;  %v1279_v21 = vshrl.u32 %v14006_v11, 16  ;;  %900 = vst.msk [vmem:[#allocation2 + $0xa0] sm:$0xf] %vm239_vm0, %v710_v12  ;;  %903 = vst [vmem:[#allocation2 + $0xa4] sm:$0x1] %v902_v13 }
  0xa6   : > { %v14015_v22 = vld [vmem:[#allocation2 + $0x98] sm:$0x1]  ;;  %v723_v24 = vrot.slane %v721_v4, 7  ;;  %v730_v27 = vshrl.u32 %v485_v9, 16  ;;  %v733_v28 = vshll.u32 %v485_v9, 16  ;;  %v1268_v29 = vrot.slane %v1266_v15, 4  ;;  %12483 = vmatprep.mubr.msk.bf16.mxu1 %vm1411_vm7, %v11259_v23 }
  0xa7   : > { %v1271_v31 = vrot.slane %v1269_v18, 5  ;;  %v1277_v32 = vrot.slane %v1275_v19, 5  ;;  %v1281_v35 = vrot.slane %v1279_v21, 4  ;;  %v1285_v36 = vshll.u32 %v14015_v22, 16  ;;  %v904_v37 = vld [vmem:[#allocation2 + $0xa8] sm:$0xf] }
  0xa8   : > { %v726_v38 = vor.u32 %v724_v43, %v723_v24  ;;  %v728_v39 = vrot.slane %v723_v24, 4  ;;  %v908_v41 = vld [vmem:[#allocation2 + $0xb0] sm:$0x1]  ;;  %v951_v42 = vld [vmem:[#allocation2 + $0x9c] sm:$0xf]  ;;  %v905_v26 = vsel %vm13689_vm13, %v718_v16, %v904_v37  ;;  %v14022_v48 = vrot.slane %v730_v27, 7 }
  0xa9   : > { %v1272_v45 = vor.u32 %v1271_v31, %v1268_v29  ;;  %v1282_v47 = vor.u32 %v1281_v35, %v1277_v32  ;;  %v1287_v50 = vrot.slane %v1285_v36, 5  ;;  %v1290_v51 = vshrl.u32 %v951_v42, 16  ;;  %906 = vst [vmem:[#allocation2 + $0xa8] sm:$0xf] %v905_v26  ;;  %v486_v62 = vld [vmem:[%s13649_s30 + $0x74] sm:$0xf] }
  0xaa   : > { %v1293_v56 = vshll.u32 %v951_v42, 16  ;;  %v727_v57 = vsel %vm13683_vm12, %v719_v14, %v726_v38  ;;  %v909_v61 = vsel %vm13636_vm9, %v728_v39, %v908_v41  ;;  %v735_v7 = vor.u32 %v733_v28, %v14022_v48 }
  0xab   : > { %v1273_v58 = vrot.slane %v1272_v45, 4  ;;  %v1283_v59 = vrot.slane %v1282_v47, 4  ;;  %907 = vst.msk [vmem:[#allocation2 + $0xac] sm:$0xf] %vm239_vm0, %v727_v57  ;;  %v911_v0 = vld [vmem:[#allocation2 + $0xb4] sm:$0xf] }
  0xac   : > { %v14030_v1 = vld [vmem:[#allocation2 + $0xa0] sm:$0xf]  ;;  %v14032_v4 = vld [vmem:[#allocation2 + $0xa4] sm:$0x1]  ;;  %v1292_v43 = vrot.slane %v1290_v51, 4  ;;  %v1295_v53 = vrot.slane %v1293_v56, 5  ;;  %v912_v31 = vsel %vm13689_vm13, %v735_v7, %v911_v0 }
  0xad   : > { %910 = vst [vmem:[#allocation2 + $0xb0] sm:$0x1] %v909_v61  ;;  %v1278_v9 = vsel %vm13667_vm11, %v1273_v58, %v1277_v32  ;;  %v1288_v10 = vsel %vm13667_vm11, %v1283_v59, %v1287_v50  ;;  %v1299_v12 = vshll.u32 %v14030_v1, 16  ;;  %v1303_v13 = vshrl.u32 %v14030_v1, 16  ;;  %v14051_v32 = vld [vmem:[%s18300_s1 + $0xa] sm:$0x3] }
  0xae   : > { %v11227_v16 = vcombine.low %v1278_v9, %v1288_v10  ;;  %v1296_v14 = vor.u32 %v1295_v53, %v1292_v43  ;;  %v1309_v15 = vshll.u32 %v14032_v4, 16  ;;  %v11260_v18 = vcombine.low %v951_v42, %v14030_v1  ;;  %913 = vst [vmem:[#allocation2 + $0xb4] sm:$0xf] %v912_v31  ;;  %v915_v42 = vld [vmem:[#allocation2 + $0xbc] sm:$0x1] }
  0xaf   : > { %v1301_v19 = vrot.slane %v1299_v12, 5  ;;  %v1305_v21 = vrot.slane %v1303_v13, 4  ;;  %v736_v23 = vrot.slane %v14022_v48, 4  ;;  %v738_v24 = vshrl.u32 %v486_v62, 16  ;;  %v1918_v56 = vld [vmem:[#allocation2 + $0xc] sm:$0xe] }
  0xb0   : > { %12449 = vmatprep.mubr.msk.bf16.mxu0 %vm1411_vm7, %v11227_v16  ;;  %v1297_v27 = vrot.slane %v1296_v14, 4  ;;  %v1311_v28 = vrot.slane %v1309_v15, 5  ;;  %12484 = vmatmul.mubr.msk.bf16.gmra.mxu1 %vm1411_vm7, %v11260_v18  ;;  %v741_v29 = vshll.u32 %v486_v62, 16  ;;  %v953_v36 = vld [vmem:[#allocation2 + $0xa8] sm:$0xf]  ;;  %v2537_v39 = vsel %vm1460_vm2, %v13856_v63, 0 }
  0xb1   : > { %v1306_v35 = vor.u32 %v1305_v21, %v1301_v19  ;;  %v740_v38 = vrot.slane %v738_v24, 7  ;;  %vm1965_vm14 = vcmask 1042432   ;;  %v1314_v45 = vshrl.u32 %v953_v36, 16  ;;  %12526 = vmatpush3.bf16.msra.mxu1 %v2537_v39  ;;  %v13392_v7 = vld [vmem:[#allocation2 + $0x14] sm:$0x1] }
  0xb2   : > { %v1302_v37 = vsel %vm13667_vm11, %v1297_v27, %v1301_v19  ;;  %v14057_v41 = vld [vmem:[#allocation2 + $0xac] sm:$0xf]  ;;  %v1317_v47 = vshll.u32 %v953_v36, 16  ;;  %vm1966_vm15 = vcmask 1046532   ;;  %13166 = vmatprep.subr.msk.bf16.mxu1 %vm1460_vm2, %v14051_v32  ;;  %v1980_v9 = vrot.slane %v13392_v7, 5 }
  0xb3   : > { %v1307_v26 = vrot.slane %v1306_v35, 4  ;;  %v1323_v50 = vshll.u32 %v14057_v41, 16  ;;  %v1327_v51 = vshrl.u32 %v14057_v41, 16  ;;  %v11261_v63 = vcombine.low %v953_v36, %v14057_v41  ;;  %v1917_v16 = vld [vmem:[#allocation2] sm:$0xe]  ;;  %vm14077_vm1 = vmor %vm1965_vm14, %vm1966_vm15 }
  0xb4   : > { %v14059_v48 = vld [vmem:[#allocation2 + $0xb0] sm:$0x1]  ;;  %v1316_v57 = vrot.slane %v1314_v45, 4  ;;  %v1319_v58 = vrot.slane %v1317_v47, 5  ;;  %v743_v61 = vor.u32 %v741_v29, %v740_v38  ;;  %v745_v53 = vrot.slane %v740_v38, 4 }
  0xb5   : > { %v1333_v59 = vshll.u32 %v14059_v48, 16  ;;  %v1312_v62 = vsel %vm13667_vm11, %v1307_v26, %v1311_v28  ;;  %v1325_v0 = vrot.slane %v1323_v50, 5  ;;  %v1329_v43 = vrot.slane %v1327_v51, 4  ;;  %12487 = vmatprep.mubr.msk.bf16.mxu1 %vm1411_vm7, %v11261_v63  ;;  %v13393_v21 = vld [vmem:[#allocation2 + $0x4] sm:$0xf] }
  0xb6   : > { %v11228_v10 = vcombine.low %v1302_v37, %v1312_v62  ;;  %v1320_v12 = vor.u32 %v1319_v58, %v1316_v57  ;;  %v744_v13 = vsel %vm13683_vm12, %v736_v23, %v743_v61  ;;  %v916_v18 = vsel %vm13636_vm9, %v745_v53, %v915_v42  ;;  %v13394_v27 = vld [vmem:[#allocation2 + $0x8] sm:$0x1]  ;;  %v955_v29 = vld [vmem:[#allocation2 + $0xb4] sm:$0xf]  ;;  %v1919_v45 = vld [vmem:[#allocation2 + $0x18] sm:$0xe] }
  0xb7   : > { %v1330_v14 = vor.u32 %v1329_v43, %v1325_v0  ;;  %v1335_v15 = vrot.slane %v1333_v59, 5  ;;  %914 = vst.msk [vmem:[#allocation2 + $0xb8] sm:$0xf] %vm239_vm0, %v744_v13  ;;  %v18343_v19 = vmov 0  ;;  %v1970_v24 = vrot.slane %v13393_v21, 5  ;;  %v13240_v53 = vld [vmem:[#allocation2 + $0xc] sm:$0xff]  }
  0xb8   : > { %v18344_v19 = vsel %vm14077_vm1, 4294967295, %v18343_v19  ;;  %v1973_v28 = vrot.slane %v13394_v27, 5  ;;  %12450 = vmatmul.mubr.msk.bf16.gmra.mxu0 %vm1411_vm7, %v11228_v10  ;;  %v1321_v23 = vrot.slane %v1320_v12, 4  ;;  %917 = vst [vmem:[#allocation2 + $0xbc] sm:$0x1] %v916_v18  ;;  %v11280_v31 = vrot.slane %v1918_v56, 9 }
  0xb9   : > { %18345 = vst [vmem:[#allocation12_spill] sm:$0xff] %v18344_v19  ;;  %v1979_v35 = vrot.slane %v1977_v60, 4  ;;  %v1331_v36 = vrot.slane %v1330_v14, 4  ;;  %v1338_v38 = vshrl.u32 %v955_v29, 16  ;;  %v1341_v39 = vshll.u32 %v955_v29, 16 }
  0xba   : > { %v11279_v37 = vrot.slane %v1917_v16, 9  ;;  %v1326_v47 = vsel %vm13667_vm11, %v1321_v23, %v1325_v0  ;;  %v1972_v42 = vrot.slane %v1970_v24, 4  ;;  %v14090_v26 = vsel %vm14077_vm1, %v11280_v31, %v1977_v60  ;;  %v1920_v51 = vld [vmem:[#allocation2 + $0x24] sm:$0xe]  ;;  %v13395_v61 = vld [vmem:[#allocation2 + $0x1c] sm:$0xf] }
  0xbb   : > { %v14094_v50 = vsel %vm14077_vm1, %v1979_v35, %v1980_v9  ;;  %v1336_v63 = vsel %vm13667_vm11, %v1331_v36, %v1335_v15  ;;  %v1340_v56 = vrot.slane %v1338_v38, 4  ;;  %v1343_v57 = vrot.slane %v1341_v39, 5  ;;  %v13396_v7 = vld [vmem:[#allocation2 + $0x20] sm:$0x1]  ;;  %v1921_v12 = vld [vmem:[#allocation2 + $0x30] sm:$0xe] }
  0xbc   : > { %v11297_v58 = vcombine.low %v14090_v26, %v14094_v50  ;;  %v11229_v59 = vcombine.low %v1326_v47, %v1336_v63  ;;  %v14102_v46 = vsel %vm1460_vm2, %v13870_v6, 0  ;;  %v11281_v60 = vrot.slane %v1919_v45, 9  ;;  %v13397_v15 = vld [vmem:[#allocation2 + $0x28] sm:$0xf]  ;;  %v1922_v21 = vld [vmem:[#allocation2 + $0x3c] sm:$0xe] }
  0xbd   : > { %v1984_v62 = vrot.slane %v13395_v61, 5  ;;  %v1344_v0 = vor.u32 %v1343_v57, %v1340_v56  ;;  %v14106_v43 = vsel %vm14077_vm1, %v11279_v37, %v1970_v24  ;;  %v1987_v9 = vrot.slane %v13396_v7, 5  ;;  %v13398_v35 = vld [vmem:[#allocation2 + $0x2c] sm:$0x1]  ;;  %v13399_v57 = vld [vmem:[#allocation2 + $0x34] sm:$0xf] }
  0xbe   : > { %v11282_v10 = vrot.slane %v1920_v51, 9  ;;  %12453 = vmatprep.mubr.msk.bf16.mxu0 %vm1411_vm7, %v11229_v59  ;;  %v14109_v13 = vld [vmem:[#allocation2 + $0xb8] sm:$0xf]  ;;  %v14113_v6 = vsel %vm14077_vm1, %v1972_v42, %v1973_v28  ;;  %v1991_v18 = vrot.slane %v13397_v15, 5  ;;  %v1994_v36 = vrot.slane %v13398_v35, 5 }
  0xbf   : > { %v14117_v16 = vsel %vm14077_vm1, %v11281_v60, %v1984_v62  ;;  %v1986_v14 = vrot.slane %v1984_v62, 4  ;;  %v14119_v24 = vld [vmem:[#allocation2 + $0xbc] sm:$0x1]  ;;  %v1347_v27 = vshll.u32 %v14109_v13, 16  ;;  %v1351_v23 = vshrl.u32 %v14109_v13, 16 }
  0xc0   : > { %v11262_v31 = vcombine.low %v955_v29, %v14109_v13  ;;  %v1345_v28 = vrot.slane %v1344_v0, 4  ;;  %v1357_v38 = vshll.u32 %v14119_v24, 16  ;;  %v1993_v37 = vrot.slane %v1991_v18, 4  ;;  %v1923_v60 = vld [vmem:[#allocation2 + $0x48] sm:$0xe] }
  0xc1   : > { %v14127_v39 = vsel %vm14077_vm1, %v1986_v14, %v1987_v9  ;;  %v1349_v45 = vrot.slane %v1347_v27, 5  ;;  %v1353_v47 = vrot.slane %v1351_v23, 4  ;;  %v11296_v42 = vcombine.low %v14106_v43, %v14113_v6  ;;  %v13400_v0 = vld [vmem:[#allocation2 + $0x38] sm:$0x1]  ;;  %v1924_v9 = vld [vmem:[#allocation2 + $0x54] sm:$0xe] }
  0xc2   : > { %12488 = vmatmul.mubr.msk.bf16.gmra.mxu1 %vm1411_vm7, %v11262_v31  ;;  %v14134_v29 = vsel %vm14077_vm1, %v11282_v10, %v1991_v18  ;;  %v1359_v51 = vrot.slane %v1357_v38, 5  ;;  %v11298_v63 = vcombine.low %v14117_v16, %v14127_v39  ;;  %v11283_v56 = vrot.slane %v1921_v12, 9  ;;  %v13401_v6 = vld [vmem:[#allocation2 + $0x40] sm:$0xf]  ;;  %v13402_v15 = vld [vmem:[#allocation2 + $0x44] sm:$0x1] }
  0xc3   : > { %12527 = vmatprep.mubr.msk.bf16.mxu1 %vm1411_vm7, %v13240_v53  ;;  %v1998_v59 = vrot.slane %v13399_v57, 5  ;;  %v1354_v61 = vor.u32 %v1353_v47, %v1349_v45  ;;  %v14141_v62 = vsel %vm14077_vm1, %v1993_v37, %v1994_v36  ;;  %v2001_v43 = vrot.slane %v13400_v0, 5  ;;  %v13241_v27 = vld [vmem:[#allocation2 + $0x18] sm:$0xff]   ;;  %v13403_v31 = vld [vmem:[#allocation2 + $0x4c] sm:$0xf] }
  0xc4   : > { %v11284_v7 = vrot.slane %v1922_v21, 9  ;;  %v1350_v10 = vsel %vm13667_vm11, %v1345_v28, %v1349_v45  ;;  %v2005_v14 = vrot.slane %v13401_v6, 5  ;;  %v2008_v12 = vrot.slane %v13402_v15, 5  ;;  %v13242_v21 = vld [vmem:[#allocation2 + $0x24] sm:$0xff]   ;;  %v1925_v47 = vld [vmem:[#allocation2 + $0x60] sm:$0xe] }
  0xc5   : > { %v2000_v53 = vrot.slane %v1998_v59, 4  ;;  %v1355_v18 = vrot.slane %v1354_v61, 4  ;;  %v11285_v23 = vrot.slane %v1923_v60, 9  ;;  %v2012_v35 = vrot.slane %v13403_v31, 5  ;;  %v1926_v6 = vld [vmem:[#allocation2 + $0x6c] sm:$0xe] }
  0xc6   : > { %v2015_v36 = vrot.slane %v13824_v44, 5  ;;  %v11299_v38 = vcombine.low %v14134_v29, %v14141_v62  ;;  %v14150_v37 = vsel %vm14077_vm1, %v11283_v56, %v1998_v59  ;;  %v2007_v28 = vrot.slane %v2005_v14, 4 }
  0xc7   : > { %v11286_v45 = vrot.slane %v1924_v9, 9  ;;  %v1360_v57 = vsel %vm13667_vm11, %v1355_v18, %v1359_v51  ;;  %v14156_v60 = vsel %vm14077_vm1, %v2000_v53, %v2001_v43  ;;  %v14160_v44 = vsel %vm14077_vm1, %v11284_v7, %v2005_v14  ;;  %v1927_v53 = vld [vmem:[#allocation2 + $0x78] sm:$0xe] }
  0xc8   : > { %v2014_v61 = vrot.slane %v2012_v35, 4  ;;  %v11230_v0 = vcombine.low %v1350_v10, %v1360_v57  ;;  %v14164_v56 = vsel %vm14077_vm1, %v2007_v28, %v2008_v12  ;;  %v2019_v59 = vrot.slane %v13829_v20, 5  ;;  %v13244_v57 = vld [vmem:[#allocation2 + $0x3c] sm:$0xff]  }
  0xc9   : > { %v2022_v9 = vrot.slane %v13835_v25, 5  ;;  %v14171_v51 = vsel %vm14077_vm1, %v11285_v23, %v2012_v35  ;;  %v11287_v7 = vrot.slane %v1925_v47, 9  ;;  %v2026_v10 = vrot.slane %v13892_v40, 5  ;;  %v1929_v47 = vld [vmem:[#allocation2 + $0x90] sm:$0xe] }
  0xca   : > { %12528 = vmatmul.mubr.msk.bf16.vlgmr.msra.gmra.mxu1 %vm1411_vm7, %v13241_v27  ;;  %v14175_v43 = vsel %vm14077_vm1, %v2014_v61, %v2015_v36  ;;  %12454 = vmatmul.mubr.msk.bf16.gmra.mxu0 %vm1411_vm7, %v11230_v0  ;;  %v11300_v20 = vcombine.low %v14150_v37, %v14156_v60  ;;  %v14184_v25 = vsel %vm14077_vm1, %v11286_v45, %v2019_v59  ;;  %v2021_v14 = vrot.slane %v2019_v59, 4  ;;  %v11476_v37 = vld [vmem:[%s18300_s1 + $0xe] sm:$0x3] }
  0xcb   : > { %12531 = vmatprep.mubr.msk.bf16.mxu1 %vm1411_vm7, %v13242_v21  ;;  %v2029_v15 = vrot.slane %v13886_v34, 5  ;;  %12493 = vmatprep.mubr.msk.bf16.mxu0 %vm1411_vm7, %v11296_v42  ;;  %v11301_v40 = vcombine.low %v14160_v44, %v14164_v56  ;;  %v2028_v12 = vrot.slane %v2026_v10, 4  ;;  %v11288_v18 = vrot.slane %v1926_v6, 9  ;;  %v1928_v34 = vld [vmem:[#allocation2 + $0x84] sm:$0xe]  ;;  %v13243_v21 = vld [vmem:[#allocation2 + $0x30] sm:$0xff]  }
  0xcc   : > { %v2033_v27 = vrot.slane %v13917_v17, 5  ;;  %v11302_v23 = vcombine.low %v14171_v51, %v14175_v43  ;;  %v14195_v31 = vsel %vm14077_vm1, %v2021_v14, %v2022_v9  ;;  %v11289_v35 = vrot.slane %v1927_v53, 9  ;;  %v1930_v53 = vld [vmem:[#allocation2 + $0x9c] sm:$0xe] }
  0xcd   : > { %v2040_v36 = vrot.slane %v13935_v2, 5  ;;  %v11303_v42 = vcombine.low %v14184_v25, %v14195_v31  ;;  %v14202_v28 = vsel %vm14077_vm1, %v11287_v7, %v2026_v10  ;;  %v14206_v17 = vsel %vm14077_vm1, %v2028_v12, %v2029_v15 }
  0xce   : > { %v2036_v45 = vrot.slane %v13926_v30, 5  ;;  %v14211_v2 = vsel %vm14077_vm1, %v11288_v18, %v2033_v27  ;;  %v2043_v59 = vrot.slane %v13937_v3, 5  ;;  %v14218_v9 = vrot.slane %v2033_v27, 4 }
  0xcf   : > { %v14215_v61 = vsel %vm14077_vm1, %v11289_v35, %v2040_v36  ;;  %v2042_v0 = vrot.slane %v2040_v36, 4  ;;  %v11290_v6 = vrot.slane %v1928_v34, 9  ;;  %v2047_v7 = vrot.slane %v13967_v52, 5  ;;  %v1931_v35 = vld [vmem:[#allocation2 + $0xa8] sm:$0xe] }
  0xd0   : > { %v2050_v10 = vrot.slane %v13969_v55, 5  ;;  %v11304_v14 = vcombine.low %v14202_v28, %v14206_v17  ;;  %v11291_v12 = vrot.slane %v1929_v47, 9  ;;  %v2054_v18 = vrot.slane %v14006_v11, 5  ;;  %v14240_v36 = vld [vmem:[%s18300_s1 + $0xc] sm:$0x3]  ;;  %v13252_v28 = vld [vmem:[#allocation2 + $0x9c] sm:$0xff]  }
  0xd1   : > { %v14226_v15 = vsel %vm14077_vm1, %v2042_v0, %v2043_v59  ;;  %v14234_v52 = vsel %vm14077_vm1, %v11290_v6, %v2047_v7  ;;  %v2049_v55 = vrot.slane %v2047_v7, 4  ;;  %v2057_v27 = vrot.slane %v14015_v22, 5  ;;  %v487_v0 = vld [vmem:[%s13649_s30 + $0x78] sm:$0xf] }
  0xd2   : > { %12532 = vmatmul.mubr.msk.bf16.gmra.mxu1 %vm1411_vm7, %v13243_v21  ;;  %v11306_v3 = vcombine.low %v14215_v61, %v14226_v15  ;;  %12494 = vmatmul.mubr.msk.bf16.vlgmr.msra.gmra.mxu0 %vm1411_vm7, %v11297_v58  ;;  %v14249_v11 = vsel %vm14077_vm1, %v11291_v12, %v2054_v18  ;;  %v2056_v34 = vrot.slane %v2054_v18, 4  ;;  %v11292_v21 = vrot.slane %v1930_v53, 9 }
  0xd3   : > { %12535 = vmatprep.mubr.msk.bf16.mxu1 %vm1411_vm7, %v13244_v57  ;;  %v2061_v22 = vrot.slane %v14030_v1, 5  ;;  %12560 = vmatpush3.bf16.msra.mxu0 %v14102_v46  ;;  %v14259_v26 = vsel %vm14077_vm1, %v2049_v55, %v2050_v10  ;;  %v2064_v50 = vrot.slane %v14032_v4, 5  ;;  %v11293_v58 = vrot.slane %v1931_v35, 9  ;;  %v1932_v57 = vld [vmem:[#allocation2 + $0xb4] sm:$0xe]  ;;  %v13245_v4 = vld [vmem:[#allocation2 + $0x48] sm:$0xff]  }
  0xd4   : > { %12497 = vmatprep.mubr.msk.bf16.mxu0 %vm1411_vm7, %v11298_v63  ;;  %v2068_v47 = vrot.slane %v14057_v41, 5  ;;  %v14267_v46 = vsel %vm14077_vm1, %v2056_v34, %v2057_v27  ;;  %v297_v63 = vld [vmem:[#allocation2 + $0xc0] sm:$0x1]  ;;  %13167 = vmatprep.subr.msk.bf16.mxu0 %vm1460_vm2, %v14240_v36  ;;  %v2071_v7 = vrot.slane %v14059_v48, 5  ;;  %v13246_v10 = vld [vmem:[#allocation2 + $0x54] sm:$0xff]   ;;  %v11294_v12 = vrot.slane %v1932_v57, 9 }
  0xd5   : > { %v14271_v16 = vsel %vm14077_vm1, %v11292_v21, %v2061_v22  ;;  %v2063_v39 = vrot.slane %v2061_v22, 4  ;;  %v2075_v18 = vrot.slane %v14109_v13, 5  ;;  %v2078_v35 = vrot.slane %v14119_v24, 5  ;;  %v488_v55 = vld [vmem:[%s13649_s30 + $0x7c] sm:$0xf]  ;;  %s13517_s30 = smov [#allocation7]  }
  0xd6   : > { %v14280_v59 = vsel %vm14077_vm1, %v11293_v58, %v2068_v47  ;;  %v2070_v6 = vrot.slane %v2068_v47, 4  ;;  %v298_v48 = vsel %vm13636_vm9, 0, %v297_v63  ;;  %v747_v21 = vshrl.u32 %v487_v0, 16  ;;  %v2732_v22 = vld [vmem:[#allocation2 + $0xc] sm:$0xf]  ;;  %s13451_s6 = sshll.u32 %s13517_s30, 4  ;;  %s13452_s6 = int_to_ptr.vmem [resolvable:$false] %s13451_s6 }
  0xd7   : > { %v14285_v53 = vsel %vm14077_vm1, %v2063_v39, %v2064_v50  ;;  %v14298_v50 = vld [vmem:[#allocation2 + $0x10] sm:$0xf]  ;;  %v14304_v24 = vsel %vm14077_vm1, %v11294_v12, %v2075_v18  ;;  %v2077_v58 = vrot.slane %v2075_v18, 4  ;;  %299 = vst [vmem:[#allocation2 + $0xc0] sm:$0x1] %v298_v48  ;;  %v750_v47 = vshll.u32 %v487_v0, 16  ;;  %p13454_p11 = scmp.lt.s32.totalorder %s18253_s16, %s13452_s6 }
  0xd8   : > { %v14294_v34 = vsel %vm14077_vm1, %v2070_v6, %v2071_v7  ;;  %v749_v57 = vrot.slane %v747_v21, 7  ;;  %v755_v39 = vshrl.u32 %v488_v55, 16  ;;  %v758_v6 = vshll.u32 %v488_v55, 16  ;;  %v14309_v7 = vld [vmem:[#allocation2 + $0x14] sm:$0x1]  ;;  %s13453_s7 = scalar_lea.vmem %s13452_s6, 4096 }
  0xd9   : > { %v3733_v63 = vsel %vm1460_vm2, %v14051_v32, 0  ;;  %v14318_v0 = vsel %vm14077_vm1, %v2077_v58, %v2078_v35  ;;  %v2784_v12 = vshll.u32 %v2732_v22, 16  ;;  %v2790_v18 = vshll.u32 %v14298_v50, 16  ;;  %v2735_v55 = vld [vmem:[#allocation2 + $0x18] sm:$0xf]  ;;  %v13247_v32 = vld [vmem:[#allocation2 + $0x60] sm:$0xff]   ;;  %p13455_p12 = scmp.lt.s32.totalorder %s13453_s7, %s13447_s22 }
  0xda   : > { %12536 = vmatmul.mubr.msk.bf16.gmra.mxu1 %vm1411_vm7, %v13245_v4  ;;  %12498 = vmatmul.mubr.msk.bf16.gmra.mxu0 %vm1411_vm7, %v11299_v38  ;;  %v2781_v4 = vshrl.u32 %v2732_v22, 16  ;;  %v752_v62 = vor.u32 %v750_v47, %v749_v57  ;;  %v753_v38 = vrot.slane %v749_v57, 4  ;;  %v14329_v35 = vld [vmem:[#allocation2 + $0x1c] sm:$0xf]  ;;  %v2794_v58 = vshrl.u32 %v14298_v50, 16 }
  0xdb   : > { %12539 = vmatprep.mubr.msk.bf16.mxu1 %vm1411_vm7, %v13246_v10  ;;  %12501 = vmatprep.mubr.msk.bf16.mxu0 %vm1411_vm7, %v11300_v20  ;;  %v14327_v10 = vrot.slane %v755_v39, 7  ;;  %v2786_v21 = vrot.slane %v2784_v12, 5  ;;  %v2792_v22 = vrot.slane %v2790_v18, 5  ;;  %v14332_v13 = vld [vmem:[#allocation2 + $0x20] sm:$0x1]  ;;  %v14342_v60 = vsel %vm14077_vm1, %v14218_v9, %v2036_v45  ;;  %p13456_p13 = por %p13455_p12, %p13454_p11 }
  0xdc   : > { %12594 = vmatpush3.bf16.msra.mxu1 %v3733_v63  ;;  %v2783_v48 = vrot.slane %v2781_v4, 4  ;;  %v2800_v47 = vshll.u32 %v14309_v7, 16  ;;  %v2805_v57 = vshrl.u32 %v2735_v55, 16  ;;  %v3458_v39 = vld [vmem:[#allocation2 + $0xc] sm:$0xe]  ;;  %v2796_v12 = vrot.slane %v2794_v58, 4 }
  0xdd   : > { %v760_v20 = vor.u32 %v758_v6, %v14327_v10  ;;  %13168 = vmatprep.subr.msk.bf16.mxu1 %vm1460_vm2, %v11476_v37  ;;  %v13248_v63 = vld [vmem:[#allocation2 + $0x6c] sm:$0xff]   ;;  %v2808_v18 = vshll.u32 %v2735_v55, 16  ;;  %v2814_v29 = vshll.u32 %v14329_v35, 16  ;;  %v2818_v6 = vshrl.u32 %v14329_v35, 16  ;;  %p13457_p0 = pnand %p13456_p13, %p13450_p10 }
  0xde   : > { %v2787_v4 = vor.u32 %v2786_v21, %v2783_v48  ;;  %v918_v27 = vld [vmem:[#allocation2 + $0xc0] sm:$0xf]  ;;  %v2802_v45 = vrot.slane %v2800_v47, 5  ;;  %v2807_v9 = vrot.slane %v2805_v57, 4  ;;  %v2797_v1 = vor.u32 %v2796_v12, %v2792_v22  ;;  %v3459_v21 = vld [vmem:[#allocation2 + $0x18] sm:$0xe] }
  0xdf   : > { %v761_v30 = vsel %vm13683_vm12, %v753_v38, %v760_v20  ;;  %v919_v41 = vsel %vm13689_vm13, %v752_v62, %v918_v27  ;;  %v2810_v48 = vrot.slane %v2808_v18, 5  ;;  %v11305_v55 = vcombine.low %v14211_v2, %v14342_v60  ;;  %v13250_v57 = vld [vmem:[#allocation2 + $0x84] sm:$0xff]   ;;  %v14379_v12 = vld [vmem:[#allocation2 + $0x2c] sm:$0x1] }
  0xe0   : > { %921 = vst.msk [vmem:[#allocation2 + $0xc4] sm:$0xf] %vm239_vm0, %v761_v30  ;;  %v2788_v37 = vrot.slane %v2787_v4, 4  ;;  %920 = vst [vmem:[#allocation2 + $0xc0] sm:$0xf] %v919_v41  ;;  %v2816_v38 = vrot.slane %v2814_v29, 5 }
  0xe1   : > { %v2820_v58 = vrot.slane %v2818_v6, 4  ;;  %v2824_v20 = vshll.u32 %v14332_v13, 16  ;;  %v2798_v27 = vrot.slane %v2797_v1, 4  ;;  %v11394_v62 = vrot.slane %v3458_v39, 9  ;;  %v13249_v41 = vld [vmem:[#allocation2 + $0x78] sm:$0xff]  }
  0xe2   : > { %12540 = vmatmul.mubr.msk.bf16.gmra.mxu1 %vm1411_vm7, %v13247_v32  ;;  %12502 = vmatmul.mubr.msk.bf16.gmra.mxu0 %vm1411_vm7, %v11301_v40  ;;  %v2793_v54 = vsel %vm13667_vm11, %v2788_v37, %v2792_v22  ;;  %v2811_v32 = vor.u32 %v2810_v48, %v2807_v9  ;;  %v3524_v44 = vrot.slane %v14298_v50, 5  ;;  %v3527_v56 = vrot.slane %v14309_v7, 5  ;;  %v2738_v40 = vld [vmem:[#allocation2 + $0x24] sm:$0xf]  ;;  %v2739_v4 = vld [vmem:[#allocation2 + $0x28] sm:$0xf] }
  0xe3   : > { %12543 = vmatprep.mubr.msk.bf16.mxu1 %vm1411_vm7, %v13248_v63  ;;  %12505 = vmatprep.mubr.msk.bf16.mxu0 %vm1411_vm7, %v11302_v23  ;;  %v2821_v29 = vor.u32 %v2820_v58, %v2816_v38  ;;  %v2826_v47 = vrot.slane %v2824_v20, 5  ;;  %v2803_v22 = vsel %vm13667_vm11, %v2798_v27, %v2802_v45  ;;  %v11395_v63 = vrot.slane %v3459_v21, 9  ;;  %v2741_v7 = vld [vmem:[#allocation2 + $0x30] sm:$0xf]  ;;  %v14392_v48 = vld [vmem:[#allocation2 + $0x34] sm:$0xf] }
  0xe4   : > { %v2812_v1 = vrot.slane %v2811_v32, 4  ;;  %v3531_v39 = vrot.slane %v14329_v35, 5  ;;  %v762_v51 = vrot.slane %v14327_v10, 4  ;;  %v14377_v23 = vsel %vm1460_vm2, %v14240_v36, 0  ;;  %v14404_v20 = vld [vmem:[#allocation2 + $0x38] sm:$0x1] }
  0xe5   : > { %v2822_v43 = vrot.slane %v2821_v29, 4  ;;  %v3526_v50 = vrot.slane %v3524_v44, 4  ;;  %v14381_v18 = vcombine.low %v2793_v54, %v2803_v22  ;;  %v3534_v35 = vrot.slane %v14332_v13, 5  ;;  %v3460_v29 = vld [vmem:[#allocation2 + $0x24] sm:$0xe] }
  0xe6   : > { %v2817_v30 = vsel %vm13667_vm11, %v2812_v1, %v2816_v38  ;;  %v3533_v45 = vrot.slane %v3531_v39, 4  ;;  %v14390_v6 = vsel %vm14077_vm1, %v11394_v62, %v3524_v44  ;;  %v2829_v36 = vshrl.u32 %v2738_v40, 16 }
  0xe7   : > { %v2827_v9 = vsel %vm13667_vm11, %v2822_v43, %v2826_v47  ;;  %v2832_v37 = vshll.u32 %v2738_v40, 16  ;;  %v14398_v58 = vsel %vm14077_vm1, %v3526_v50, %v3527_v56  ;;  %v14402_v13 = vsel %vm14077_vm1, %v11395_v63, %v3531_v39  ;;  %v13251_v39 = vld [vmem:[#allocation2 + $0x90] sm:$0xff]  }
  0xe8   : > { %v14394_v21 = vcombine.low %v2817_v30, %v2827_v9  ;;  %v2838_v38 = vshll.u32 %v2739_v4, 16  ;;  %v14409_v54 = vsel %vm14077_vm1, %v3533_v45, %v3534_v35  ;;  %v2831_v27 = vrot.slane %v2829_v36, 4  ;;  %v3461_v45 = vld [vmem:[#allocation2 + $0x30] sm:$0xe] }
  0xe9   : > { %v2834_v32 = vrot.slane %v2832_v37, 5  ;;  %v2842_v62 = vshrl.u32 %v2739_v4, 16  ;;  %v2848_v44 = vshll.u32 %v14379_v12, 16  ;;  %v2853_v56 = vshrl.u32 %v2741_v7, 16 }
  0xea   : > { %12544 = vmatmul.mubr.msk.bf16.gmra.mxu1 %vm1411_vm7, %v13249_v41  ;;  %12506 = vmatmul.mubr.msk.bf16.gmra.mxu0 %vm1411_vm7, %v11303_v42  ;;  %v2840_v47 = vrot.slane %v2838_v38, 5  ;;  %v2856_v41 = vshll.u32 %v2741_v7, 16  ;;  %v2862_v1 = vshll.u32 %v14392_v48, 16  ;;  %v2866_v25 = vshrl.u32 %v14392_v48, 16 }
  0xeb   : > { %12547 = vmatprep.mubr.msk.bf16.mxu1 %vm1411_vm7, %v13250_v57  ;;  %12509 = vmatprep.mubr.msk.bf16.mxu0 %vm1411_vm7, %v11304_v14  ;;  %v2835_v40 = vor.u32 %v2834_v32, %v2831_v27  ;;  %v2844_v22 = vrot.slane %v2842_v62, 4  ;;  %v2850_v31 = vrot.slane %v2848_v44, 5  ;;  %v2855_v42 = vrot.slane %v2853_v56, 4  ;;  %v2744_v32 = vld [vmem:[#allocation2 + $0x3c] sm:$0xf] }
  0xec   : > { %v2858_v63 = vrot.slane %v2856_v41, 5  ;;  %v2872_v57 = vshll.u32 %v14404_v20, 16  ;;  %v2864_v7 = vrot.slane %v2862_v1, 5  ;;  %v2868_v30 = vrot.slane %v2866_v25, 4  ;;  %v14427_v62 = vld [vmem:[#allocation2 + $0x40] sm:$0xf] }
  0xed   : > { %v2836_v43 = vrot.slane %v2835_v40, 4  ;;  %v2845_v50 = vor.u32 %v2844_v22, %v2840_v47  ;;  %v11396_v35 = vrot.slane %v3460_v29, 9  ;;  %v3538_v9 = vrot.slane %v2739_v4, 5  ;;  %v14433_v22 = vld [vmem:[#allocation2 + $0x44] sm:$0x1] }
  0xee   : > { %v2859_v17 = vor.u32 %v2858_v63, %v2855_v42  ;;  %v2874_v14 = vrot.slane %v2872_v57, 5  ;;  %v2869_v38 = vor.u32 %v2868_v30, %v2864_v7  ;;  %v3541_v27 = vrot.slane %v14379_v12, 5  ;;  %v2747_v1 = vld [vmem:[#allocation2 + $0x48] sm:$0xf]  ;;  %v14474_v30 = vld [vmem:[#allocation2 + $0x50] sm:$0x1] }
  0xef   : > { %v2841_v36 = vsel %vm13667_vm11, %v2836_v43, %v2840_v47  ;;  %v2846_v37 = vrot.slane %v2845_v50, 4  ;;  %v14431_v56 = vsel %vm14077_vm1, %v11396_v35, %v3538_v9  ;;  %v3540_v41 = vrot.slane %v3538_v9, 4  ;;  %v13253_v57 = vld [vmem:[#allocation2 + $0xa8] sm:$0xff]  }
  0xf0   : > { %v2860_v44 = vrot.slane %v2859_v17, 4  ;;  %v11397_v40 = vrot.slane %v3461_v45, 9  ;;  %v11411_v4 = vcombine.low %v14390_v6, %v14398_v58  ;;  %v2870_v29 = vrot.slane %v2869_v38, 4 }
  0xf1   : > { %v2851_v12 = vsel %vm13667_vm11, %v2846_v37, %v2850_v31  ;;  %v3545_v47 = vrot.slane %v14392_v48, 5  ;;  %v11412_v25 = vcombine.low %v14402_v13, %v14409_v54  ;;  %v14450_v42 = vsel %vm14077_vm1, %v3540_v41, %v3541_v27 }
  0xf2   : > { %12548 = vmatmul.mubr.msk.bf16.gmra.mxu1 %vm1411_vm7, %v13251_v39  ;;  %12510 = vmatmul.mubr.msk.bf16.gmra.mxu0 %vm1411_vm7, %v11305_v55  ;;  %v3548_v31 = vrot.slane %v14404_v20, 5  ;;  %v2877_v63 = vshrl.u32 %v2744_v32, 16  ;;  %v14457_v2 = vcombine.low %v2841_v36, %v2851_v12  ;;  %v2865_v60 = vsel %vm13667_vm11, %v2860_v44, %v2864_v7  ;;  %v3462_v36 = vld [vmem:[#allocation2 + $0x3c] sm:$0xe] }
  0xf3   : > { %12551 = vmatprep.mubr.msk.bf16.mxu1 %vm1411_vm7, %v13252_v28  ;;  %12513 = vmatprep.mubr.msk.bf16.mxu0 %vm1411_vm7, %v11306_v3  ;;  %v2875_v55 = vsel %vm13667_vm11, %v2870_v29, %v2874_v14  ;;  %v11413_v48 = vcombine.low %v14431_v56, %v14450_v42  ;;  %v14467_v20 = vsel %vm14077_vm1, %v11397_v40, %v3545_v47  ;;  %v2880_v61 = vshll.u32 %v2744_v32, 16  ;;  %v14470_v3 = vld [vmem:[#allocation2 + $0x4c] sm:$0xf]  ;;  %v13254_v28 = vld [vmem:[#allocation2 + $0xb4] sm:$0xff]   ;;  %v3463_v29 = vld [vmem:[#allocation2 + $0x48] sm:$0xe] }
  0xf4   : > { %v2879_v39 = vrot.slane %v2877_v63, 4  ;;  %v2886_v15 = vshll.u32 %v14427_v62, 16  ;;  %v3547_v43 = vrot.slane %v3545_v47, 4  ;;  %v2890_v50 = vshrl.u32 %v14427_v62, 16  ;;  %v2759_v42 = vld [vmem:[#allocation2 + $0x78] sm:$0xf] }
  0xf5   : > { %v2896_v7 = vshll.u32 %v14433_v22, 16  ;;  %v2901_v45 = vshrl.u32 %v2747_v1, 16  ;;  %v14476_v17 = vcombine.low %v2865_v60, %v2875_v55  ;;  %v2882_v14 = vrot.slane %v2880_v61, 5 }
  0xf6   : > { %v2888_v35 = vrot.slane %v2886_v15, 5  ;;  %v2904_v9 = vshll.u32 %v2747_v1, 16  ;;  %v2892_v37 = vrot.slane %v2890_v50, 4  ;;  %v2910_v32 = vshll.u32 %v14470_v3, 16  ;;  %v2750_v50 = vld [vmem:[#allocation2 + $0x54] sm:$0xf] }
  0xf7   : > { %v2898_v38 = vrot.slane %v2896_v7, 5  ;;  %v2903_v27 = vrot.slane %v2901_v45, 4  ;;  %v2883_v44 = vor.u32 %v2882_v14, %v2879_v39  ;;  %v2914_v40 = vshrl.u32 %v14470_v3, 16 }
  0xf8   : > { %v2906_v41 = vrot.slane %v2904_v9, 5  ;;  %v2920_v12 = vshll.u32 %v14474_v30, 16  ;;  %v2893_v47 = vor.u32 %v2892_v37, %v2888_v35  ;;  %v14482_v63 = vrot.slane %v2910_v32, 5  ;;  %v14506_v9 = vld [vmem:[#allocation2 + $0x58] sm:$0xf] }
  0xf9   : > { %v11398_v60 = vrot.slane %v3462_v36, 9  ;;  %v3552_v1 = vrot.slane %v14427_v62, 5  ;;  %v18346_v55 = vcombine.low %v14234_v52, %v14259_v26  ;;  %v14492_v39 = vsel %vm14077_vm1, %v3547_v43, %v3548_v31  ;;  %v14515_v37 = vld [vmem:[#allocation2 + $0x5c] sm:$0x1] }
  0xfa   : > { %12552 = vmatmul.mubr.msk.bf16.gmra.mxu1 %vm1411_vm7, %v13253_v57  ;;  %v2884_v61 = vrot.slane %v2883_v44, 4  ;;  %v2907_v15 = vor.u32 %v2906_v41, %v2903_v27  ;;  %v2916_v57 = vrot.slane %v2914_v40, 4  ;;  %v18347_v7 = vcombine.low %v14249_v11, %v14267_v46  ;;  %v13255_v11 = vld [vmem:[#allocation2 + $0xc0] sm:$0xff]  }
  0xfb   : > { %12514 = vmatmul.mubr.msk.bf16.gmra.mxu0 %vm1411_vm7, %v18346_v55  ;;  %12555 = vmatprep.mubr.msk.bf16.mxu1 %vm1411_vm7, %v13254_v28  ;;  %v2894_v62 = vrot.slane %v2893_v47, 4  ;;  %v2922_v45 = vrot.slane %v2920_v12, 5  ;;  %v3554_v52 = vrot.slane %v3552_v1, 4  ;;  %v3555_v26 = vrot.slane %v14433_v22, 5  ;;  %v2753_v40 = vld [vmem:[#allocation2 + $0x60] sm:$0xf] }
  0xfc   : > { %12517 = vmatprep.mubr.msk.bf16.mxu0 %vm1411_vm7, %v18347_v7  ;;  %v2889_v28 = vsel %vm13667_vm11, %v2884_v61, %v2888_v35  ;;  %v2908_v14 = vrot.slane %v2907_v15, 4  ;;  %v2917_v31 = vor.u32 %v2916_v57, %v14482_v63  ;;  %v14504_v43 = vsel %vm14077_vm1, %v11398_v60, %v3552_v1  ;;  %v14522_v12 = vld [vmem:[#allocation2 + $0x64] sm:$0xf]  ;;  %v14527_v60 = vld [vmem:[#allocation2 + $0x68] sm:$0x1] }
  0xfd   : > { %v2899_v46 = vsel %vm13667_vm11, %v2894_v62, %v2898_v38  ;;  %v14512_v36 = vsel %vm14077_vm1, %v3554_v52, %v3555_v26  ;;  %v11399_v22 = vrot.slane %v3463_v29, 9  ;;  %v3559_v35 = vrot.slane %v14470_v3, 5  ;;  %v3464_v1 = vld [vmem:[#allocation2 + $0x54] sm:$0xe] }
  0xfe   : > { %v11414_v27 = vcombine.low %v14467_v20, %v14492_v39  ;;  %v14519_v32 = vcombine.low %v2889_v28, %v2899_v46  ;;  %v2918_v44 = vrot.slane %v2917_v31, 4  ;;  %v3562_v41 = vrot.slane %v14474_v30, 5 }
  0xff   : > { %v2913_v38 = vsel %vm13667_vm11, %v2908_v14, %v14482_v63  ;;  %v3561_v29 = vrot.slane %v3559_v35, 4  ;;  %v2925_v47 = vshrl.u32 %v2750_v50, 16  ;;  %v2928_v3 = vshll.u32 %v2750_v50, 16 }
 0x100   : > { %v11415_v55 = vcombine.low %v14504_v43, %v14512_v36  ;;  %v2934_v61 = vshll.u32 %v14506_v9, 16  ;;  %v2938_v30 = vshrl.u32 %v14506_v9, 16  ;;  %v2944_v15 = vshll.u32 %v14515_v37, 16 }
 0x101   : > { %v2923_v63 = vsel %vm13667_vm11, %v2918_v44, %v2922_v45  ;;  %v14539_v57 = vsel %vm14077_vm1, %v11399_v22, %v3559_v35  ;;  %v2927_v50 = vrot.slane %v2925_v47, 4  ;;  %v2930_v7 = vrot.slane %v2928_v3, 5  ;;  %v3465_v3 = vld [vmem:[#allocation2 + $0x60] sm:$0xe] }
 0x102   : > { %12556 = vmatmul.mubr.msk.bf16.gmra.mxu1 %vm1411_vm7, %v13255_v11  ;;  %v18348_v62 = vcombine.low %v14271_v16, %v14285_v53  ;;  %v14551_v52 = vsel %vm14077_vm1, %v3561_v29, %v3562_v41  ;;  %v2936_v45 = vrot.slane %v2934_v61, 5  ;;  %v2940_v26 = vrot.slane %v2938_v30, 4 }
 0x103   : > { %12595 = vmatprep.mubr.msk.bf16.mxu1 %vm1411_vm7, %v11411_v4  ;;  %v2946_v28 = vrot.slane %v2944_v15, 5  ;;  %v18349_v14 = vcombine.low %v14280_v59, %v14294_v34  ;;  %v2931_v16 = vor.u32 %v2930_v7, %v2927_v50  ;;  %v2949_v53 = vshrl.u32 %v2753_v40, 16  ;;  %v2756_v50 = vld [vmem:[#allocation2 + $0x6c] sm:$0xf] }
 0x104   : > { %12518 = vmatmul.mubr.msk.bf16.gmra.mxu0 %vm1411_vm7, %v18348_v62  ;;  %v2952_v31 = vshll.u32 %v2753_v40, 16  ;;  %v2958_v11 = vshll.u32 %v14522_v12, 16  ;;  %v2941_v6 = vor.u32 %v2940_v26, %v2936_v45  ;;  %v2962_v58 = vshrl.u32 %v14522_v12, 16 }
 0x105   : > { %12521 = vmatprep.mubr.msk.bf16.mxu0 %vm1411_vm7, %v18349_v14  ;;  %v2968_v4 = vshll.u32 %v14527_v60, 16  ;;  %v11400_v46 = vrot.slane %v3464_v1, 9  ;;  %v2932_v22 = vrot.slane %v2931_v16, 4  ;;  %v2951_v35 = vrot.slane %v2949_v53, 4  ;;  %v14566_v1 = vld [vmem:[#allocation2 + $0x70] sm:$0xf] }
 0x106   : > { %v2954_v44 = vrot.slane %v2952_v31, 5  ;;  %v2960_v41 = vrot.slane %v2958_v11, 5  ;;  %v14560_v29 = vcombine.low %v2913_v38, %v2923_v63  ;;  %v2942_v59 = vrot.slane %v2941_v6, 4  ;;  %v14605_v6 = vld [vmem:[#allocation2 + $0x7c] sm:$0xf] }
 0x107   : > { %v2964_v34 = vrot.slane %v2962_v58, 4  ;;  %v3566_v47 = vrot.slane %v14506_v9, 5  ;;  %v11416_v40 = vcombine.low %v14539_v57, %v14551_v52  ;;  %v2970_v30 = vrot.slane %v2968_v4, 5  ;;  %v14572_v9 = vld [vmem:[#allocation2 + $0x74] sm:$0x1] }
 0x108   : > { %v2955_v61 = vor.u32 %v2954_v44, %v2951_v35  ;;  %v3569_v15 = vrot.slane %v14515_v37, 5  ;;  %v2937_v7 = vsel %vm13667_vm11, %v2932_v22, %v2936_v45  ;;  %v2947_v38 = vsel %vm13667_vm11, %v2942_v59, %v2946_v28  ;;  %v3466_v22 = vld [vmem:[#allocation2 + $0x6c] sm:$0xe] }
 0x109   : > { %v2965_v63 = vor.u32 %v2964_v34, %v2960_v41  ;;  %v3568_v62 = vrot.slane %v3566_v47, 4  ;;  %v14580_v37 = vsel %vm14077_vm1, %v11400_v46, %v3566_v47  ;;  %v11401_v14 = vrot.slane %v3465_v3, 9  ;;  %v14615_v46 = vld [vmem:[#allocation2 + $0x80] sm:$0x1]  ;;  %v3467_v34 = vld [vmem:[#allocation2 + $0x78] sm:$0xe] }
 0x10a   : > { %12596 = vmatmul.mubr.msk.bf16.vlgmr.msra.gmra.mxu1 %vm1411_vm7, %v11412_v25  ;;  %v2956_v26 = vrot.slane %v2955_v61, 4  ;;  %v3573_v45 = vrot.slane %v14522_v12, 5  ;;  %v18350_v28 = vcombine.low %v14304_v24, %v14318_v0  ;;  %v2973_v25 = vshrl.u32 %v2756_v50, 16 }
 0x10b   : > { %12599 = vmatprep.mubr.msk.bf16.mxu1 %vm1411_vm7, %v11413_v48  ;;  %v2966_v13 = vrot.slane %v2965_v63, 4  ;;  %v14593_v54 = vsel %vm14077_vm1, %v3568_v62, %v3569_v15  ;;  %v2976_v16 = vshll.u32 %v2756_v50, 16  ;;  %v14597_v12 = vcombine.low %v2937_v7, %v2947_v38  ;;  %v14627_v15 = vld [vmem:[%s18300_s1 + $0x10] sm:$0x3] }
 0x10c   : > { %12522 = vmatmul.mubr.msk.bf16.gmra.mxu0 %vm1411_vm7, %v18350_v28  ;;  %v2961_v24 = vsel %vm13667_vm11, %v2956_v26, %v2960_v41  ;;  %v3575_v0 = vrot.slane %v3573_v45, 4  ;;  %v3576_v56 = vrot.slane %v14527_v60, 5  ;;  %v2975_v53 = vrot.slane %v2973_v25, 4  ;;  %v14635_v28 = vpop.f32.mrf.mxu1  ;;  %v2762_v25 = vld [vmem:[#allocation2 + $0x84] sm:$0xf] }
 0x10d   : > { %12561 = vmatprep.mubr.msk.bf16.mxu0 %vm1411_vm7, %v14381_v18  ;;  %v2971_v48 = vsel %vm13667_vm11, %v2966_v13, %v2970_v30  ;;  %v2978_v31 = vrot.slane %v2976_v16, 5  ;;  %v2982_v11 = vshll.u32 %v14566_v1, 16  ;;  %v11417_v18 = vcombine.low %v14580_v37, %v14593_v54 }
 0x10e   : > { %v14611_v58 = vsel %vm14077_vm1, %v11401_v14, %v3573_v45  ;;  %v2986_v4 = vshrl.u32 %v14566_v1, 16  ;;  %v2992_v60 = vshll.u32 %v14572_v9, 16  ;;  %v14617_v35 = vcombine.low %v2961_v24, %v2971_v48 }
 0x10f   : > { %v2979_v44 = vor.u32 %v2978_v31, %v2975_v53  ;;  %v2984_v41 = vrot.slane %v2982_v11, 5  ;;  %v2997_v59 = vshrl.u32 %v2759_v42, 16  ;;  %v14621_v47 = vsel %vm14077_vm1, %v3575_v0, %v3576_v56  ;;  %v2765_v53 = vld [vmem:[#allocation2 + $0x90] sm:$0xf]  ;;  %v14661_v31 = vpop.f32.mrf.mxu1 }
 0x110   : > { %v2988_v3 = vrot.slane %v2986_v4, 4  ;;  %v3000_v61 = vshll.u32 %v2759_v42, 16  ;;  %v3006_v30 = vshll.u32 %v14605_v6, 16  ;;  %v3010_v38 = vshrl.u32 %v14605_v6, 16  ;;  %v14652_v42 = vld [vmem:[#allocation2 + $0x88] sm:$0xf] }
 0x111   : > { %v2980_v50 = vrot.slane %v2979_v44, 4  ;;  %v2999_v7 = vrot.slane %v2997_v59, 4  ;;  %v3016_v63 = vshll.u32 %v14615_v46, 16  ;;  %v2994_v26 = vrot.slane %v2992_v60, 5  ;;  %v14672_v44 = vld [vmem:[#allocation2 + $0x94] sm:$0xf] }
 0x112   : > { %12600 = vmatmul.mubr.msk.bf16.gmra.mxu1 %vm1411_vm7, %v11414_v27  ;;  %v2989_v62 = vor.u32 %v2988_v3, %v2984_v41  ;;  %v3002_v14 = vrot.slane %v3000_v61, 5  ;;  %v3008_v45 = vrot.slane %v3006_v30, 5  ;;  %v11418_v13 = vcombine.low %v14611_v58, %v14621_v47 }
 0x113   : > { %12603 = vmatprep.mubr.msk.bf16.mxu1 %vm1411_vm7, %v11415_v55  ;;  %v3012_v20 = vrot.slane %v3010_v38, 4  ;;  %v11402_v39 = vrot.slane %v3466_v22, 9  ;;  %v3580_v27 = vrot.slane %v14566_v1, 5  ;;  %v3583_v24 = vrot.slane %v14572_v9, 5  ;;  %v14654_v1 = vld [vmem:[#allocation2 + $0x8c] sm:$0x1] }
 0x114   : > { %12562 = vmatmul.mubr.msk.bf16.vlgmr.msra.gmra.mxu0 %vm1411_vm7, %v14394_v21  ;;  %v2990_v16 = vrot.slane %v2989_v62, 4  ;;  %v3003_v21 = vor.u32 %v3002_v14, %v2999_v7  ;;  %v11403_v43 = vrot.slane %v3467_v34, 9  ;;  %v2985_v36 = vsel %vm13667_vm11, %v2980_v50, %v2984_v41  ;;  %v14686_v50 = vpop.f32.mrf.mxu0  ;;  %v14695_v62 = vld [vmem:[#allocation2 + $0x98] sm:$0x1]  ;;  %v14697_v14 = vpop.f32.mrf.mxu1 }
 0x115   : > { %12628 = vmatpush3.bf16.msra.mxu0 %v14377_v23  ;;  %12565 = vmatprep.mubr.msk.bf16.mxu0 %vm1411_vm7, %v14457_v2  ;;  %v3013_v55 = vor.u32 %v3012_v20, %v3008_v45  ;;  %v3018_v0 = vrot.slane %v3016_v63, 5  ;;  %v3582_v56 = vrot.slane %v3580_v27, 4  ;;  %v3587_v9 = vrot.slane %v14605_v6, 5  ;;  %v3468_v20 = vld [vmem:[#allocation2 + $0x84] sm:$0xe] }
 0x116   : > { %13169 = vmatprep.subr.msk.bf16.mxu0 %vm1460_vm2, %v14627_v15  ;;  %v2995_v23 = vsel %vm13667_vm11, %v2990_v16, %v2994_v26  ;;  %v3004_v2 = vrot.slane %v3003_v21, 4  ;;  %v3021_v48 = vshrl.u32 %v2762_v25, 16  ;;  %v14665_v4 = vsel %vm14077_vm1, %v11402_v39, %v3580_v27 }
 0x117   : > { %v3014_v11 = vrot.slane %v3013_v55, 4  ;;  %v14669_v60 = vsel %vm14077_vm1, %v3582_v56, %v3583_v24  ;;  %v3590_v22 = vrot.slane %v14615_v46, 5  ;;  %v14674_v41 = vcombine.low %v2985_v36, %v2995_v23 }
 0x118   : > { %v3009_v6 = vsel %vm13667_vm11, %v3004_v2, %v3008_v45  ;;  %v14680_v59 = vsel %vm14077_vm1, %v11403_v43, %v3587_v9  ;;  %v3023_v34 = vrot.slane %v3021_v48, 4  ;;  %v3024_v61 = vshll.u32 %v2762_v25, 16  ;;  %v2768_v48 = vld [vmem:[#allocation2 + $0x9c] sm:$0xf] }
 0x119   : > { %v3019_v3 = vsel %vm13667_vm11, %v3014_v11, %v3018_v0  ;;  %v3030_v30 = vshll.u32 %v14652_v42, 16  ;;  %v3034_v46 = vshrl.u32 %v14652_v42, 16  ;;  %v11419_v7 = vcombine.low %v14665_v4, %v14669_v60  ;;  %v3469_v0 = vld [vmem:[#allocation2 + $0x90] sm:$0xe] }
 0x11a   : > { %12604 = vmatmul.mubr.msk.bf16.gmra.mxu1 %vm1411_vm7, %v11416_v40  ;;  %v3589_v38 = vrot.slane %v3587_v9, 4  ;;  %v3040_v63 = vshll.u32 %v14654_v1, 16  ;;  %v3045_v26 = vshrl.u32 %v2765_v53, 16  ;;  %v14705_v57 = vcombine.low %v3009_v6, %v3019_v3  ;;  %v14720_v6 = vld [vmem:[#allocation2 + $0xa0] sm:$0xf] }
 0x11b   : > { %12607 = vmatprep.mubr.msk.bf16.mxu1 %vm1411_vm7, %v11417_v18  ;;  %v3026_v52 = vrot.slane %v3024_v61, 5  ;;  %v3032_v40 = vrot.slane %v3030_v30, 5  ;;  %v3036_v45 = vrot.slane %v3034_v46, 4  ;;  %v3048_v25 = vshll.u32 %v2765_v53, 16  ;;  %v14712_v18 = vpop.f32.mrf.mxu0 }
 0x11c   : > { %12566 = vmatmul.mubr.msk.bf16.gmra.mxu0 %vm1411_vm7, %v14476_v17  ;;  %v3042_v39 = vrot.slane %v3040_v63, 5  ;;  %v3047_v27 = vrot.slane %v3045_v26, 4  ;;  %v3054_v16 = vshll.u32 %v14672_v44, 16  ;;  %v3058_v37 = vshrl.u32 %v14672_v44, 16  ;;  %v2771_v26 = vld [vmem:[#allocation2 + $0xa8] sm:$0xf] }
 0x11d   : > { %12569 = vmatprep.mubr.msk.bf16.mxu0 %vm1411_vm7, %v14519_v32  ;;  %v3027_v17 = vor.u32 %v3026_v52, %v3023_v34  ;;  %v3037_v21 = vor.u32 %v3036_v45, %v3032_v40  ;;  %v3064_v54 = vshll.u32 %v14695_v62, 16  ;;  %v3050_v24 = vrot.slane %v3048_v25, 5  ;;  %v14715_v32 = vpop.f32.mrf.mxu1  ;;  %v14728_v30 = vpop.f32.mrf.mxu0  ;;  %v3470_v25 = vld [vmem:[#allocation2 + $0x9c] sm:$0xe] }
 0x11e   : > { %v3056_v43 = vrot.slane %v3054_v16, 5  ;;  %v11404_v36 = vrot.slane %v3468_v20, 9  ;;  %v3594_v55 = vrot.slane %v14652_v42, 5  ;;  %18351 = vst [vmem:[#allocation13_spill] sm:$0xff] %v14715_v32  ;;  %v3591_v56 = vsel %vm14077_vm1, %v3589_v38, %v3590_v22  ;;  %v14726_v22 = vld [vmem:[#allocation2 + $0xa4] sm:$0x1] }
 0x11f   : > { %v3028_v23 = vrot.slane %v3027_v17, 4  ;;  %v3038_v2 = vrot.slane %v3037_v21, 4  ;;  %v3060_v9 = vrot.slane %v3058_v37, 4  ;;  %v3051_v53 = vor.u32 %v3050_v24, %v3047_v27  ;;  %v14738_v52 = vpop.f32.mrf.mxu1  ;;  %v14758_v16 = vpop.f32.mrf.mxu0 }
 0x120   : > { %v3066_v11 = vrot.slane %v3064_v54, 5  ;;  %v3596_v4 = vrot.slane %v3594_v55, 4  ;;  %v3597_v60 = vrot.slane %v14654_v1, 5  ;;  %v11405_v61 = vrot.slane %v3469_v0, 9  ;;  %18352 = vst [vmem:[#allocation14_spill] sm:$0xff] %v14758_v16 }
 0x121   : > { %v3033_v42 = vsel %vm13667_vm11, %v3028_v23, %v3032_v40  ;;  %v3043_v34 = vsel %vm13667_vm11, %v3038_v2, %v3042_v39  ;;  %v3061_v3 = vor.u32 %v3060_v9, %v3056_v43  ;;  %v11420_v1 = vcombine.low %v14680_v59, %v3591_v56  ;;  %v14746_v59 = vld [vmem:[#allocation2 + $0xac] sm:$0xf]  ;;  %v14765_v54 = vpop.f32.mrf.mxu1  ;;  %v2773_v23 = vld [vmem:[#allocation2 + $0xb0] sm:$0x1] }
 0x122   : > { %12608 = vmatmul.mubr.msk.bf16.gmra.mxu1 %vm1411_vm7, %v11418_v13  ;;  %v3052_v46 = vrot.slane %v3051_v53, 4  ;;  %v3595_v38 = vsel %vm14077_vm1, %v11404_v36, %v3594_v55  ;;  %v3601_v63 = vrot.slane %v14672_v44, 5  ;;  %v3598_v58 = vsel %vm14077_vm1, %v3596_v4, %v3597_v60  ;;  %v3471_v60 = vld [vmem:[#allocation2 + $0xa8] sm:$0xe] }
 0x123   : > { %12611 = vmatprep.mubr.msk.bf16.mxu1 %vm1411_vm7, %v11419_v7  ;;  %v3062_v40 = vrot.slane %v3061_v3, 4  ;;  %v3604_v47 = vrot.slane %v14695_v62, 5  ;;  %v3069_v13 = vshrl.u32 %v2768_v48, 16  ;;  %v14750_v44 = vcombine.low %v3033_v42, %v3043_v34  ;;  %v14773_v42 = vpop.f32.mrf.mxu0 }
 0x124   : > { %12570 = vmatmul.mubr.msk.bf16.gmra.mxu0 %vm1411_vm7, %v14560_v29  ;;  %v3057_v45 = vsel %vm13667_vm11, %v3052_v46, %v3056_v43  ;;  %v3603_v29 = vrot.slane %v3601_v63, 4  ;;  %v3072_v20 = vshll.u32 %v2768_v48, 16  ;;  %v3078_v27 = vshll.u32 %v14720_v6, 16 }
 0x125   : > { %12573 = vmatprep.mubr.msk.bf16.mxu0 %vm1411_vm7, %v14597_v12  ;;  %v3067_v7 = vsel %vm13667_vm11, %v3062_v40, %v3066_v11  ;;  %v3071_v39 = vrot.slane %v3069_v13, 4  ;;  %v3082_v62 = vshrl.u32 %v14720_v6, 16  ;;  %v11421_v17 = vcombine.low %v3595_v38, %v3598_v58  ;;  %v2774_v38 = vld [vmem:[#allocation2 + $0xb4] sm:$0xf] }
 0x126   : > { %v14762_v12 = vsel %vm14077_vm1, %v11405_v61, %v3601_v63  ;;  %v3074_v21 = vrot.slane %v3072_v20, 5  ;;  %v3088_v37 = vshll.u32 %v14726_v22, 16  ;;  %v14767_v24 = vcombine.low %v3057_v45, %v3067_v7  ;;  %v14778_v63 = vpop.f32.mrf.mxu1  ;;  %v14789_v20 = vld [vmem:[#allocation2 + $0xb8] sm:$0xf] }
 0x127   : > { %v3080_v43 = vrot.slane %v3078_v27, 5  ;;  %v3084_v36 = vrot.slane %v3082_v62, 4  ;;  %v3093_v55 = vshrl.u32 %v2771_v26, 16  ;;  %v3605_v0 = vsel %vm14077_vm1, %v3603_v29, %v3604_v47  ;;  %v14796_v27 = vld [vmem:[#allocation2 + $0xbc] sm:$0x1] }
 0x128   : > { %v3075_v56 = vor.u32 %v3074_v21, %v3071_v39  ;;  %v3096_v2 = vshll.u32 %v2771_v26, 16  ;;  %v3102_v9 = vshll.u32 %v14746_v59, 16  ;;  %v3090_v53 = vrot.slane %v3088_v37, 5  ;;  %v347_v21 = vld [vmem:[#allocation2 + $0xc8] sm:$0x1]  ;;  %v14804_v37 = vpop.f32.mrf.mxu1 }
 0x129   : > { %v3085_v48 = vor.u32 %v3084_v36, %v3080_v43  ;;  %v3095_v11 = vrot.slane %v3093_v55, 4  ;;  %v3106_v4 = vshrl.u32 %v14746_v59, 16  ;;  %v11406_v46 = vrot.slane %v3470_v25, 9  ;;  %18353 = vst [vmem:[#allocation15_spill] sm:$0xff] %v14804_v37 }
 0x12a   : > { %12612 = vmatmul.mubr.msk.bf16.gmra.mxu1 %vm1411_vm7, %v11420_v1  ;;  %v3076_v34 = vrot.slane %v3075_v56, 4  ;;  %v3098_v3 = vrot.slane %v3096_v2, 5  ;;  %v14776_v61 = vrot.slane %v3102_v9, 5  ;;  %v3112_v58 = vshll.u32 %v2773_v23, 16 }
 0x12b   : > { %12615 = vmatprep.mubr.msk.bf16.mxu1 %vm1411_vm7, %v11421_v17  ;;  %v3086_v26 = vrot.slane %v3085_v48, 4  ;;  %v3108_v40 = vrot.slane %v3106_v4, 4  ;;  %v3608_v47 = vrot.slane %v14720_v6, 5  ;;  %v3611_v45 = vrot.slane %v14726_v22, 5  ;;  %v14814_v48 = vld [vmem:[#allocation2 + $0xc4] sm:$0xf] }
 0x12c   : > { %12574 = vmatmul.mubr.msk.bf16.gmra.mxu0 %vm1411_vm7, %v14617_v35  ;;  %v3081_v1 = vsel %vm13667_vm11, %v3076_v34, %v3080_v43  ;;  %v3099_v13 = vor.u32 %v3098_v3, %v3095_v11  ;;  %v11407_v29 = vrot.slane %v3471_v60, 9  ;;  %v11422_v62 = vcombine.low %v14762_v12, %v3605_v0  ;;  %v2777_v60 = vld [vmem:[#allocation2 + $0xc0] sm:$0xf] }
 0x12d   : > { %12577 = vmatprep.mubr.msk.bf16.mxu0 %vm1411_vm7, %v14674_v41  ;;  %v3091_v35 = vsel %vm13667_vm11, %v3086_v26, %v3090_v53  ;;  %v3109_v7 = vor.u32 %v3108_v40, %v14776_v61  ;;  %v3609_v6 = vsel %vm14077_vm1, %v11406_v46, %v3608_v47  ;;  %v3610_v39 = vrot.slane %v3608_v47, 4  ;;  %v14798_v41 = vpop.f32.mrf.mxu0  ;;  %v14828_v40 = vpop.f32.mrf.mxu1 }
 0x12e   : > { %v14801_v25 = vrot.slane %v3099_v13, 4  ;;  %v3615_v22 = vrot.slane %v14746_v59, 5  ;;  %v3618_v17 = vrot.slane %v2773_v23, 5  ;;  %v14806_v43 = vrot.slane %v3112_v58, 5  ;;  %v3472_v59 = vld [vmem:[#allocation2 + $0xb4] sm:$0xe] }
 0x12f   : > { %v3612_v36 = vsel %vm14077_vm1, %v3610_v39, %v3611_v45  ;;  %v3117_v55 = vshrl.u32 %v2774_v38, 16  ;;  %v3120_v56 = vshll.u32 %v2774_v38, 16  ;;  %v14810_v2 = vcombine.low %v3081_v1, %v3091_v35  ;;  %v14817_v34 = vpop.f32.mrf.mxu0 }
 0x130   : > { %v11423_v9 = vcombine.low %v3609_v6, %v3612_v36  ;;  %v3616_v12 = vsel %vm14077_vm1, %v11407_v29, %v3615_v22  ;;  %v3617_v0 = vrot.slane %v3615_v22, 4  ;;  %v3110_v23 = vrot.slane %v3109_v7, 4  ;;  %v3473_v7 = vld [vmem:[#allocation2 + $0xc0] sm:$0xe] }
 0x131   : > { %v3119_v53 = vrot.slane %v3117_v55, 4  ;;  %v3122_v11 = vrot.slane %v3120_v56, 5  ;;  %v3126_v4 = vshll.u32 %v14789_v20, 16  ;;  %v3105_v3 = vsel %vm13667_vm11, %v14801_v25, %v14776_v61  ;;  %v14839_v25 = vpop.f32.mrf.mxu0 }
 0x132   : > { %12616 = vmatmul.mubr.msk.bf16.gmra.mxu1 %vm1411_vm7, %v11422_v62  ;;  %v3619_v46 = vsel %vm14077_vm1, %v3617_v0, %v3618_v17  ;;  %v3130_v38 = vshrl.u32 %v14789_v20, 16  ;;  %v3136_v26 = vshll.u32 %v14796_v27, 16  ;;  %v348_v61 = vsel %vm13642_vm10, 0, %v347_v21  ;;  %18354 = vst [vmem:[#allocation16_spill] sm:$0xff] %v14839_v25 }
 0x133   : > { %12619 = vmatprep.mubr.msk.bf16.mxu1 %vm1411_vm7, %v11423_v9  ;;  %v11424_v58 = vcombine.low %v3616_v12, %v3619_v46  ;;  %v3123_v47 = vor.u32 %v3122_v11, %v3119_v53  ;;  %v3128_v1 = vrot.slane %v3126_v4, 5  ;;  %349 = vst [vmem:[#allocation2 + $0xc8] sm:$0x1] %v348_v61  ;;  %v3141_v29 = vshrl.u32 %v2777_v60, 16  ;;  %v4287_v11 = vld [vmem:[#allocation2 + $0x18] sm:$0xf] }
 0x134   : > { %12578 = vmatmul.mubr.msk.bf16.gmra.mxu0 %vm1411_vm7, %v14705_v57  ;;  %v3132_v13 = vrot.slane %v3130_v38, 4  ;;  %v3138_v45 = vrot.slane %v3136_v26, 5  ;;  %v3144_v35 = vshll.u32 %v2777_v60, 16  ;;  %v3150_v57 = vshll.u32 %v14814_v48, 16  ;;  %v4288_v4 = vld [vmem:[#allocation2 + $0x1c] sm:$0xf]  ;;  %v14859_v26 = vpop.f32.mrf.mxu0 }
 0x135   : > { %12581 = vmatprep.mubr.msk.bf16.mxu0 %vm1411_vm7, %v14750_v44  ;;  %v3124_v6 = vrot.slane %v3123_v47, 4  ;;  %v3154_v39 = vshrl.u32 %v14814_v48, 16  ;;  %v11408_v62 = vrot.slane %v3472_v59, 9  ;;  %v3143_v8 = vrot.slane %v3141_v29, 4  ;;  %v14842_v44 = vpop.f32.mrf.mxu1  ;;  %v4290_v38 = vld [vmem:[#allocation2 + $0x24] sm:$0xf] }
 0x136   : > { %v3133_v22 = vor.u32 %v3132_v13, %v3128_v1  ;;  %v3146_v17 = vrot.slane %v3144_v35, 5  ;;  %v3622_v21 = vrot.slane %v14789_v20, 5  ;;  %v3115_v36 = vsel %vm13667_vm11, %v3110_v23, %v14806_v43  ;;  %v13404_v43 = vld [vmem:[%s18300_s1 + $0xe] sm:$0x3]  ;;  %v4289_v23 = vld [vmem:[#allocation2 + $0x20] sm:$0x1] }
 0x137   : > { %v14847_v55 = vrot.slane %v3150_v57, 5  ;;  %v3156_v56 = vrot.slane %v3154_v39, 4  ;;  %v3625_v9 = vrot.slane %v14796_v27, 5  ;;  %v3129_v20 = vsel %vm13667_vm11, %v3124_v6, %v3128_v1  ;;  %v14871_v29 = vpop.f32.mrf.mxu1 }
 0x138   : > { %v3134_v12 = vrot.slane %v3133_v22, 4  ;;  %v3147_v0 = vor.u32 %v3146_v17, %v3143_v8  ;;  %v3623_v59 = vsel %vm14077_vm1, %v11408_v62, %v3622_v21  ;;  %v3624_v53 = vrot.slane %v3622_v21, 4  ;;  %v14894_v22 = vpop.f32.mrf.mxu0 }
 0x139   : > { %v3157_v60 = vor.u32 %v3156_v56, %v14847_v55  ;;  %v11409_v46 = vrot.slane %v3473_v7, 9  ;;  %v4818_v27 = vsel %vm1460_vm2, %v13404_v43, 0  ;;  %v3629_v61 = vrot.slane %v14814_v48, 5  ;;  %v14900_v17 = vpop.f32.mrf.mxu1 }
 0x13a   : > { %12620 = vmatmul.mubr.msk.bf16.gmra.mxu1 %vm1411_vm7, %v11424_v58  ;;  %v3139_v47 = vsel %vm13667_vm11, %v3134_v12, %v3138_v45  ;;  %v3626_v1 = vsel %vm14077_vm1, %v3624_v53, %v3625_v9  ;;  %v14869_v13 = vadd.f32 %v14635_v28, %v14686_v50  ;;  %v11375_v35 = vcombine.low %v3105_v3, %v3115_v36  ;;  %v922_v7 = vld [vmem:[#allocation2 + $0xc8] sm:$0x1]  ;;  %v14891_v3 = vld [vmem:[#allocation2 + $0x2c] sm:$0x1] }
 0x13b   : > { %v14875_v58 = vrot.slane %v3147_v0, 4  ;;  %v11425_v6 = vcombine.low %v3623_v59, %v3626_v1  ;;  %12662 = vmatpush3.bf16.msra.mxu1 %v4818_v27  ;;  %v14877_v45 = vld [vmem:[#allocation2 + $0x28] sm:$0xf]  ;;  %v11376_v48 = vcombine.low %v3129_v20, %v3139_v47  ;;  %v923_v28 = vsel %vm13636_vm9, %v762_v51, %v922_v7  ;;  %18355 = vst [vmem:[#allocation17_spill] sm:$0xff] %v14900_v17  ;;  %v14911_v47 = vpop.f32.mrf.mxu1  ;;  %v15055_v17 = vld [vmem:[#allocation2 + $0x7c] sm:$0xf] }
 0x13c   : > { %12582 = vmatmul.mubr.msk.bf16.gmra.mxu0 %vm1411_vm7, %v14767_v24  ;;  %v14885_v50 = vrot.slane %v3157_v60, 4  ;;  %v14889_v24 = vsel %vm14077_vm1, %v11409_v46, %v3629_v61  ;;  %924 = vst [vmem:[#allocation2 + $0xc8] sm:$0x1] %v923_v28  ;;  %v4336_v57 = vshrl.u32 %v4287_v11, 16  ;;  %v4339_v39 = vshll.u32 %v4287_v11, 16  ;;  %v14905_v60 = vpop.f32.mrf.mxu0 }
 0x13d   : > { %12585 = vmatprep.mubr.msk.bf16.mxu0 %vm1411_vm7, %v14810_v2  ;;  %12623 = vmatprep.mubr.msk.bf16.mxu1 %vm1411_vm7, %v11425_v6  ;;  %v4345_v2 = vshll.u32 %v4288_v4, 16  ;;  %v4349_v62 = vshrl.u32 %v4288_v4, 16  ;;  %v4355_v10 = vshll.u32 %v4289_v23, 16  ;;  %v14898_v5 = vadd.f32 %v14661_v31, %v14712_v18  ;;  %v4293_v18 = vld [vmem:[#allocation2 + $0x30] sm:$0xf] }
 0x13e   : > { %v4360_v51 = vshrl.u32 %v4290_v38, 16  ;;  %v4363_v8 = vshll.u32 %v4290_v38, 16  ;;  %v4338_v21 = vrot.slane %v4336_v57, 4  ;;  %v4341_v36 = vrot.slane %v4339_v39, 5  ;;  %v4294_v38 = vld [vmem:[#allocation2 + $0x34] sm:$0xf] }
 0x13f   : > { %v4347_v56 = vrot.slane %v4345_v2, 5  ;;  %v4351_v9 = vrot.slane %v4349_v62, 4  ;;  %v4357_v12 = vrot.slane %v4355_v10, 5  ;;  %v4369_v53 = vshll.u32 %v14877_v45, 16  ;;  %v14931_v10 = vpop.f32.mrf.mxu0 }
 0x140   : > { %v4362_v0 = vrot.slane %v4360_v51, 4  ;;  %v4365_v59 = vrot.slane %v4363_v8, 5  ;;  %v4342_v11 = vor.u32 %v4341_v36, %v4338_v21  ;;  %v4373_v20 = vshrl.u32 %v14877_v45, 16  ;;  %18356 = vst [vmem:[#allocation18_spill] sm:$0xff] %v14931_v10  ;;  %v4296_v21 = vld [vmem:[#allocation2 + $0x3c] sm:$0xf] }
 0x141   : > { %v4352_v4 = vor.u32 %v4351_v9, %v4347_v56  ;;  %v4379_v31 = vshll.u32 %v14891_v3, 16  ;;  %v3153_v46 = vsel %vm13667_vm11, %v14875_v58, %v14847_v55  ;;  %v3631_v43 = vrot.slane %v3629_v61, 4  ;;  %v4317_v10 = vld [vmem:[#allocation2 + $0x90] sm:$0xf] }
 0x142   : > { %v4366_v27 = vor.u32 %v4365_v59, %v4362_v0  ;;  %v4371_v23 = vrot.slane %v4369_v53, 5  ;;  %v14916_v1 = vsel %vm1460_vm2, %v14627_v15, 0  ;;  %v4343_v7 = vrot.slane %v4342_v11, 4  ;;  %v4297_v11 = vld [vmem:[#allocation2 + $0x40] sm:$0xf] }
 0x143   : > { %v4353_v6 = vrot.slane %v4352_v4, 4  ;;  %v4375_v28 = vrot.slane %v4373_v20, 4  ;;  %v2779_v57 = vld [vmem:[#allocation2 + $0xc8] sm:$0x1]  ;;  %v4381_v55 = vrot.slane %v4379_v31, 5  ;;  %v14921_v61 = vadd.f32 %v14697_v14, %v14728_v30  ;;  %v13256_v20 = vld [vmem:[#allocation2 + $0x18] sm:$0xff]  }
 0x144   : > { %12586 = vmatmul.mubr.msk.bf16.gmra.mxu0 %vm1411_vm7, %v11375_v35  ;;  %v4367_v39 = vrot.slane %v4366_v27, 4  ;;  %v14925_v58 = vadd.f32 %v14738_v52, %v14773_v42  ;;  %v4295_v35 = vld [vmem:[#allocation2 + $0x38] sm:$0x1]  ;;  %v3160_v2 = vshll.u32 %v2779_v57, 16  ;;  %v3632_v15 = vrot.slane %v2779_v57, 5  ;;  %v14935_v52 = vpop.f32.mrf.mxu1 }
 0x145   : > { %12589 = vmatprep.mubr.msk.bf16.mxu0 %vm1411_vm7, %v11376_v48  ;;  %v4348_v62 = vsel %vm13667_vm11, %v4343_v7, %v4347_v56  ;;  %v4358_v48 = vsel %vm13667_vm11, %v4353_v6, %v4357_v12  ;;  %v4376_v30 = vor.u32 %v4375_v28, %v4371_v23  ;;  %v4384_v8 = vshrl.u32 %v4293_v18, 16  ;;  %v14943_v7 = vld [vmem:[#allocation2 + $0x44] sm:$0x1]  ;;  %v14945_v6 = vpop.f32.mrf.mxu0 }
 0x146   : > { %v11477_v51 = vcombine.low %v4348_v62, %v4358_v48  ;;  %v4372_v14 = vsel %vm13667_vm11, %v4367_v39, %v4371_v23  ;;  %v3162_v42 = vrot.slane %v3160_v2, 5  ;;  %v3633_v36 = vsel %vm14077_vm1, %v3631_v43, %v3632_v15  ;;  %v4299_v62 = vld [vmem:[#allocation2 + $0x48] sm:$0xf] }
 0x147   : > { %v4387_v9 = vshll.u32 %v4293_v18, 16  ;;  %v4393_v56 = vshll.u32 %v4294_v38, 16  ;;  %v11426_v0 = vcombine.low %v14889_v24, %v3633_v36  ;;  %v4377_v12 = vrot.slane %v4376_v30, 4 }
 0x148   : > { %v4386_v59 = vrot.slane %v4384_v8, 4  ;;  %v4397_v53 = vshrl.u32 %v4294_v38, 16  ;;  %v3163_v4 = vsel %vm13667_vm11, %v14885_v50, %v3162_v42  ;;  %v4403_v23 = vshll.u32 %v4295_v35, 16  ;;  %v14954_v50 = vpop.f32.mrf.mxu1  ;;  %v14964_v8 = vpop.f32.mrf.mxu0  ;;  %v13257_v42 = vld [vmem:[#allocation2 + $0x24] sm:$0xff]  }
 0x149   : > { %v4389_v31 = vrot.slane %v4387_v9, 5  ;;  %v4395_v27 = vrot.slane %v4393_v56, 5  ;;  %v11377_v18 = vcombine.low %v3153_v46, %v3163_v4  ;;  %12624 = vmatmul.mubr.msk.bf16.gmra.mxu1 %vm1411_vm7, %v11426_v0  ;;  %v4382_v24 = vsel %vm13667_vm11, %v4377_v12, %v4381_v55  ;;  %v14958_v55 = vld [vmem:[#allocation2 + $0x4c] sm:$0xf] }
 0x14a   : > { %v4399_v43 = vrot.slane %v4397_v53, 4  ;;  %v14952_v38 = vadd.f32 %v14765_v54, %v14798_v41  ;;  %12663 = vmatprep.mubr.msk.bf16.mxu1 %vm1411_vm7, %v11477_v51  ;;  %v4405_v57 = vrot.slane %v4403_v23, 5  ;;  %v4408_v39 = vshrl.u32 %v4296_v21, 16  ;;  %v14962_v51 = vld [vmem:[#allocation2 + $0x50] sm:$0x1]  ;;  %v14966_v0 = vpop.f32.mrf.mxu1 }
 0x14b   : > { %v4390_v28 = vor.u32 %v4389_v31, %v4386_v59  ;;  %v4411_v35 = vshll.u32 %v4296_v21, 16  ;;  %v4417_v2 = vshll.u32 %v4297_v11, 16  ;;  %v4421_v15 = vshrl.u32 %v4297_v11, 16  ;;  %18357 = vst [vmem:[#allocation19_spill] sm:$0xff] %v14966_v0  ;;  %v4302_v23 = vld [vmem:[#allocation2 + $0x54] sm:$0xf] }
 0x14c   : > { %12590 = vmatmul.mubr.msk.bf16.gmra.mxu0 %vm1411_vm7, %v11377_v18  ;;  %v4400_v46 = vor.u32 %v4399_v43, %v4395_v27  ;;  %v11478_v54 = vcombine.low %v4372_v14, %v4382_v24  ;;  %v4410_v48 = vrot.slane %v4408_v39, 4  ;;  %v4427_v30 = vshll.u32 %v14943_v7, 16  ;;  %v13258_v18 = vld [vmem:[#allocation2 + $0x30] sm:$0xff]   ;;  %v14982_v39 = vld [vmem:[#allocation2 + $0x58] sm:$0xf] }
 0x14d   : > { %12629 = vmatprep.mubr.msk.bf16.mxu0 %vm1411_vm7, %v13256_v20  ;;  %v4391_v41 = vrot.slane %v4390_v28, 4  ;;  %v4413_v9 = vrot.slane %v4411_v35, 5  ;;  %v4419_v21 = vrot.slane %v4417_v2, 5  ;;  %v4423_v56 = vrot.slane %v4421_v15, 4  ;;  %v14991_v35 = vpop.f32.mrf.mxu1  ;;  %v15149_v0 = vld [vmem:[#allocation2 + $0xbc] sm:$0x1] }
 0x14e   : > { %v4401_v36 = vrot.slane %v4400_v46, 4  ;;  %v4429_v59 = vrot.slane %v4427_v30, 5  ;;  %v14973_v53 = vadd.f32 %v14778_v63, %v14817_v34  ;;  %v14979_v31 = vadd.f32 %v14828_v40, %v14859_v26  ;;  %v14984_v63 = vld [vmem:[#allocation2 + $0x5c] sm:$0x1]  ;;  %v14986_v34 = vpop.f32.mrf.mxu0  ;;  %18372 = vst [vmem:[#allocation34_spill] sm:$0xff] %v15149_v0 }
 0x14f   : > { %v4396_v14 = vsel %vm13667_vm11, %v4391_v41, %v4395_v27  ;;  %v4414_v4 = vor.u32 %v4413_v9, %v4410_v48  ;;  %v4424_v20 = vor.u32 %v4423_v56, %v4419_v21  ;;  %v4432_v43 = vshrl.u32 %v4299_v62, 16 }
 0x150   : > { %v4406_v11 = vsel %vm13667_vm11, %v4401_v36, %v4405_v57  ;;  %v4435_v28 = vshll.u32 %v4299_v62, 16  ;;  %v4441_v27 = vshll.u32 %v14958_v55, 16  ;;  %v4445_v40 = vshrl.u32 %v14958_v55, 16 }
 0x151   : > { %v11479_v24 = vcombine.low %v4396_v14, %v4406_v11  ;;  %12664 = vmatmul.mubr.msk.bf16.vlgmr.msra.gmra.mxu1 %vm1411_vm7, %v11478_v54  ;;  %v4415_v57 = vrot.slane %v4414_v4, 4  ;;  %v4425_v46 = vrot.slane %v4424_v20, 4  ;;  %v4451_v26 = vshll.u32 %v14962_v51, 16 }
 0x152   : > { %v4434_v2 = vrot.slane %v4432_v43, 4  ;;  %v4437_v15 = vrot.slane %v4435_v28, 5  ;;  %v4443_v62 = vrot.slane %v4441_v27, 5  ;;  %v14996_v41 = vadd.f32 %v14842_v44, %v14894_v22  ;;  %v4305_v44 = vld [vmem:[#allocation2 + $0x60] sm:$0xf]  ;;  %v15005_v22 = vpop.f32.mrf.mxu0  ;;  %v13260_v43 = vld [vmem:[#allocation2 + $0x48] sm:$0xff]  }
 0x153   : > { %12667 = vmatprep.mubr.msk.bf16.mxu1 %vm1411_vm7, %v11479_v24  ;;  %v4420_v54 = vsel %vm13667_vm11, %v4415_v57, %v4419_v21  ;;  %v4430_v48 = vsel %vm13667_vm11, %v4425_v46, %v4429_v59  ;;  %v4447_v30 = vrot.slane %v4445_v40, 4  ;;  %v4453_v36 = vrot.slane %v4451_v26, 5  ;;  %18358 = vst [vmem:[#allocation20_spill] sm:$0xff] %v15005_v22  ;;  %v15010_v24 = vld [vmem:[#allocation2 + $0x64] sm:$0xf] }
 0x154   : > { %12630 = vmatmul.mubr.msk.bf16.vlgmr.msra.gmra.mxu0 %vm1411_vm7, %v13257_v42  ;;  %v11480_v9 = vcombine.low %v4420_v54, %v4430_v48  ;;  %v4438_v56 = vor.u32 %v4437_v15, %v4434_v2  ;;  %v4456_v14 = vshrl.u32 %v4302_v23, 16  ;;  %v4459_v11 = vshll.u32 %v4302_v23, 16  ;;  %v13259_v42 = vld [vmem:[#allocation2 + $0x3c] sm:$0xff]   ;;  %v15015_v57 = vld [vmem:[#allocation2 + $0x68] sm:$0x1] }
 0x155   : > { %12696 = vmatpush3.bf16.msra.mxu0 %v14916_v1  ;;  %12633 = vmatprep.mubr.msk.bf16.mxu0 %vm1411_vm7, %v13258_v18  ;;  %v4448_v4 = vor.u32 %v4447_v30, %v4443_v62  ;;  %v4465_v21 = vshll.u32 %v14982_v39, 16  ;;  %v4469_v20 = vshrl.u32 %v14982_v39, 16  ;;  %v4475_v59 = vshll.u32 %v14984_v63, 16  ;;  %v15012_v1 = vpop.f32.mrf.mxu1  ;;  %v4308_v30 = vld [vmem:[#allocation2 + $0x6c] sm:$0xf]  ;;  %v12443_v18 = vpop.f32.mrf.mxu0 }
 0x156   : > { %v4439_v28 = vrot.slane %v4438_v56, 4  ;;  %v4458_v23 = vrot.slane %v4456_v14, 4  ;;  %v4461_v27 = vrot.slane %v4459_v11, 5  ;;  %v15021_v48 = vadd.f32 %v14871_v29, %v14905_v60 }
 0x157   : > { %v4449_v46 = vrot.slane %v4448_v4, 4  ;;  %v4467_v40 = vrot.slane %v4465_v21, 5  ;;  %v4471_v26 = vrot.slane %v4469_v20, 4  ;;  %v4477_v2 = vrot.slane %v4475_v59, 5  ;;  %v15030_v21 = vld [vmem:[#allocation2 + $0x70] sm:$0xf] }
 0x158   : > { %v4444_v15 = vsel %vm13667_vm11, %v4439_v28, %v4443_v62  ;;  %v4462_v54 = vor.u32 %v4461_v27, %v4458_v23  ;;  %v15028_v11 = vadd.f32 %v14911_v47, %v14945_v6  ;;  %v4480_v4 = vshrl.u32 %v4305_v44, 16  ;;  %v15032_v62 = vpop.f32.mrf.mxu1  ;;  %v15035_v28 = vld [vmem:[#allocation2 + $0x74] sm:$0x1] }
 0x159   : > { %12668 = vmatmul.mubr.msk.bf16.gmra.mxu1 %vm1411_vm7, %v11480_v9  ;;  %v4454_v56 = vsel %vm13667_vm11, %v4449_v46, %v4453_v36  ;;  %v4472_v14 = vor.u32 %v4471_v26, %v4467_v40  ;;  %v4483_v60 = vshll.u32 %v4305_v44, 16  ;;  %v4489_v59 = vshll.u32 %v15010_v24, 16  ;;  %v13261_v26 = vld [vmem:[#allocation2 + $0x54] sm:$0xff]  }
 0x15a   : > { %v11481_v20 = vcombine.low %v4444_v15, %v4454_v56  ;;  %v4463_v29 = vrot.slane %v4462_v54, 4  ;;  %v4482_v9 = vrot.slane %v4480_v4, 4  ;;  %v4493_v23 = vshrl.u32 %v15010_v24, 16 }
 0x15b   : > { %v4473_v36 = vrot.slane %v4472_v14, 4  ;;  %v4499_v47 = vshll.u32 %v15015_v57, 16  ;;  %v4485_v44 = vrot.slane %v4483_v60, 5  ;;  %v4491_v27 = vrot.slane %v4489_v59, 5  ;;  %v13262_v60 = vld [vmem:[#allocation2 + $0x60] sm:$0xff]  }
 0x15c   : > { %12634 = vmatmul.mubr.msk.bf16.gmra.mxu0 %vm1411_vm7, %v13259_v42  ;;  %12671 = vmatprep.mubr.msk.bf16.mxu1 %vm1411_vm7, %v11481_v20  ;;  %v4468_v6 = vsel %vm13667_vm11, %v4463_v29, %v4467_v40  ;;  %v15046_v46 = vadd.f32 %v14935_v52, %v14964_v8  ;;  %v1562_v42 = vpop.f32.mrf.mxu0  ;;  %v4495_v54 = vrot.slane %v4493_v23, 4  ;;  %v4504_v14 = vshrl.u32 %v4308_v30, 16  ;;  %v4311_v29 = vld [vmem:[#allocation2 + $0x78] sm:$0xf] }
 0x15d   : > { %12637 = vmatprep.mubr.msk.bf16.mxu0 %vm1411_vm7, %v13260_v43  ;;  %v4478_v15 = vsel %vm13667_vm11, %v4473_v36, %v4477_v2  ;;  %v4501_v56 = vrot.slane %v4499_v47, 5  ;;  %v15050_v43 = vpop.f32.mrf.mxu1  ;;  %v4486_v20 = vor.u32 %v4485_v44, %v4482_v9  ;;  %v4507_v12 = vshll.u32 %v4308_v30, 16 }
 0x15e   : > { %18359 = vst [vmem:[#allocation21_spill] sm:$0xff] %v15050_v43  ;;  %v11482_v4 = vcombine.low %v4468_v6, %v4478_v15  ;;  %v4513_v40 = vshll.u32 %v15030_v21, 16  ;;  %v4496_v59 = vor.u32 %v4495_v54, %v4491_v27  ;;  %v4506_v52 = vrot.slane %v4504_v14, 4  ;;  %v15058_v6 = vld [vmem:[#allocation2 + $0x80] sm:$0x1]  ;;  %v12444_v30 = vpop.f32.mrf.mxu0 }
 0x15f   : > { %v4517_v8 = vshrl.u32 %v15030_v21, 16  ;;  %v4523_v49 = vshll.u32 %v15035_v28, 16  ;;  %v4487_v36 = vrot.slane %v4486_v20, 4  ;;  %v4509_v23 = vrot.slane %v4507_v12, 5  ;;  %v12481_v14 = vpop.f32.mrf.mxu1  ;;  %v4314_v20 = vld [vmem:[#allocation2 + $0x84] sm:$0xf] }
 0x160   : > { %v4515_v47 = vrot.slane %v4513_v40, 5  ;;  %v4497_v9 = vrot.slane %v4496_v59, 4  ;;  %v15063_v54 = vadd.f32 %v14954_v50, %v14986_v34  ;;  %v15068_v12 = vadd.f32 %v14991_v35, %v12443_v18  ;;  %v15078_v18 = vld [vmem:[#allocation2 + $0x8c] sm:$0x1] }
 0x161   : > { %12672 = vmatmul.mubr.msk.bf16.gmra.mxu1 %vm1411_vm7, %v11482_v4  ;;  %v4519_v44 = vrot.slane %v4517_v8, 4  ;;  %v4525_v15 = vrot.slane %v4523_v49, 5  ;;  %v4492_v43 = vsel %vm13667_vm11, %v4487_v36, %v4491_v27  ;;  %v4510_v2 = vor.u32 %v4509_v23, %v4506_v52  ;;  %v15073_v8 = vld [vmem:[#allocation2 + $0x88] sm:$0xf]  ;;  %v15080_v52 = vpop.f32.mrf.mxu0 }
 0x162   : > { %18360 = vst [vmem:[#allocation22_spill] sm:$0xff] %v15063_v54  ;;  %18361 = vst [vmem:[#allocation23_spill] sm:$0xff] %v15068_v12  ;;  %v4502_v4 = vsel %vm13667_vm11, %v4497_v9, %v4501_v56  ;;  %v4528_v49 = vshrl.u32 %v4311_v29, 16  ;;  %v4531_v59 = vshll.u32 %v4311_v29, 16  ;;  %v4537_v27 = vshll.u32 %v15055_v17, 16  ;;  %v1870_v9 = vpop.f32.mrf.mxu1 }
 0x163   : > { %v4520_v40 = vor.u32 %v4519_v44, %v4515_v47  ;;  %v11483_v50 = vcombine.low %v4492_v43, %v4502_v4  ;;  %v4511_v34 = vrot.slane %v4510_v2, 4  ;;  %v4541_v35 = vshrl.u32 %v15055_v17, 16  ;;  %18362 = vst [vmem:[#allocation24_spill] sm:$0xff] %v15080_v52  ;;  %v12447_v16 = vpop.f32.mrf.mxu0  ;;  %v15146_v54 = vld [vmem:[#allocation2 + $0xb8] sm:$0xf] }
 0x164   : > { %12638 = vmatmul.mubr.msk.bf16.gmra.mxu0 %vm1411_vm7, %v13261_v26  ;;  %v13263_v26 = vld [vmem:[#allocation2 + $0x6c] sm:$0xff]   ;;  %v4530_v56 = vrot.slane %v4528_v49, 4  ;;  %v4533_v23 = vrot.slane %v4531_v59, 5  ;;  %v4547_v29 = vshll.u32 %v15058_v6, 16  ;;  %v4539_v2 = vrot.slane %v4537_v27, 5 }
 0x165   : > { %12641 = vmatprep.mubr.msk.bf16.mxu0 %vm1411_vm7, %v13262_v60  ;;  %v4521_v36 = vrot.slane %v4520_v40, 4  ;;  %12675 = vmatprep.mubr.msk.bf16.mxu1 %vm1411_vm7, %v11483_v50  ;;  %v4516_v43 = vsel %vm13667_vm11, %v4511_v34, %v4515_v47  ;;  %v13264_v60 = vld [vmem:[#allocation2 + $0x78] sm:$0xff]   ;;  %v4543_v44 = vrot.slane %v4541_v35, 4  ;;  %v15087_v4 = vadd.f32 %v15012_v1, %v1562_v42  ;;  %v15092_v47 = vld [vmem:[#allocation2 + $0x94] sm:$0xf] }
 0x166   : > { %v4534_v40 = vor.u32 %v4533_v23, %v4530_v56  ;;  %v4549_v49 = vrot.slane %v4547_v29, 5  ;;  %v4552_v59 = vshrl.u32 %v4314_v20, 16  ;;  %v4555_v32 = vshll.u32 %v4314_v20, 16  ;;  %v15096_v35 = vld [vmem:[#allocation2 + $0x98] sm:$0x1] }
 0x167   : > { %18363 = vst [vmem:[#allocation25_spill] sm:$0xff] %v15087_v4  ;;  %v4526_v52 = vsel %vm13667_vm11, %v4521_v36, %v4525_v15  ;;  %v4544_v25 = vor.u32 %v4543_v44, %v4539_v2  ;;  %v4561_v50 = vshll.u32 %v15073_v8, 16  ;;  %v4565_v1 = vshrl.u32 %v15073_v8, 16  ;;  %v12482_v15 = vpop.f32.mrf.mxu1  ;;  %v4320_v44 = vld [vmem:[#allocation2 + $0x9c] sm:$0xf] }
 0x168   : > { %v11484_v37 = vcombine.low %v4516_v43, %v4526_v52  ;;  %v4535_v34 = vrot.slane %v4534_v40, 4  ;;  %v4554_v27 = vrot.slane %v4552_v59, 4  ;;  %v4571_v42 = vshll.u32 %v15078_v18, 16  ;;  %v1578_v59 = vpop.f32.mrf.mxu0 }
 0x169   : > { %v4545_v36 = vrot.slane %v4544_v25, 4  ;;  %v4557_v52 = vrot.slane %v4555_v32, 5  ;;  %v4563_v56 = vrot.slane %v4561_v50, 5  ;;  %v15100_v20 = vadd.f32 %v15032_v62, %v12444_v30  ;;  %v15110_v62 = vld [vmem:[#allocation2 + $0xa0] sm:$0xf] }
 0x16a   : > { %12676 = vmatmul.mubr.msk.bf16.gmra.mxu1 %vm1411_vm7, %v11484_v37  ;;  %v4540_v23 = vsel %vm13667_vm11, %v4535_v34, %v4539_v2  ;;  %v4567_v29 = vrot.slane %v4565_v1, 4  ;;  %v4573_v43 = vrot.slane %v4571_v42, 5  ;;  %v15108_v25 = vadd.f32 %v12481_v14, %v12447_v16  ;;  %v15113_v34 = vpop.f32.mrf.mxu1  ;;  %v13265_v16 = vld [vmem:[#allocation2 + $0x84] sm:$0xff]  }
 0x16b   : > { %18364 = vst [vmem:[#allocation26_spill] sm:$0xff] %v15100_v20  ;;  %v4550_v40 = vsel %vm13667_vm11, %v4545_v36, %v4549_v49  ;;  %v4558_v37 = vor.u32 %v4557_v52, %v4554_v27  ;;  %v4576_v32 = vshrl.u32 %v4317_v10, 16  ;;  %v4579_v50 = vshll.u32 %v4317_v10, 16  ;;  %18366 = vst [vmem:[#allocation28_spill] sm:$0xff] %v15113_v34  ;;  %v15117_v27 = vld [vmem:[#allocation2 + $0xa4] sm:$0x1]  ;;  %v12448_v34 = vpop.f32.mrf.mxu0 }
 0x16c   : > { %12642 = vmatmul.mubr.msk.bf16.gmra.mxu0 %vm1411_vm7, %v13263_v26  ;;  %18365 = vst [vmem:[#allocation27_spill] sm:$0xff] %v15108_v25  ;;  %v11485_v30 = vcombine.low %v4540_v23, %v4550_v40  ;;  %v4568_v26 = vor.u32 %v4567_v29, %v4563_v56  ;;  %v4585_v2 = vshll.u32 %v15092_v47, 16  ;;  %v4595_v49 = vshll.u32 %v15096_v35, 16  ;;  %v13266_v29 = vld [vmem:[#allocation2 + $0x90] sm:$0xff]   ;;  %v4323_v25 = vld [vmem:[#allocation2 + $0xa8] sm:$0xf] }
 0x16d   : > { %12645 = vmatprep.mubr.msk.bf16.mxu0 %vm1411_vm7, %v13264_v60  ;;  %v4559_v1 = vrot.slane %v4558_v37, 4  ;;  %v4578_v42 = vrot.slane %v4576_v32, 4  ;;  %v4589_v60 = vshrl.u32 %v15092_v47, 16  ;;  %v4581_v36 = vrot.slane %v4579_v50, 5  ;;  %v15127_v50 = vld [vmem:[#allocation2 + $0xac] sm:$0xf] }
 0x16e   : > { %12679 = vmatprep.mubr.msk.bf16.mxu1 %vm1411_vm7, %v11485_v30  ;;  %v4569_v14 = vrot.slane %v4568_v26, 4  ;;  %v4587_v52 = vrot.slane %v4585_v2, 5  ;;  %v15120_v23 = vadd.f32 %v1870_v9, %v1578_v59  ;;  %v4597_v37 = vrot.slane %v4595_v49, 5  ;;  %18368 = vst [vmem:[#allocation30_spill] sm:$0xff] %v15127_v50 }
 0x16f   : > { %v4564_v10 = vsel %vm13667_vm11, %v4559_v1, %v4563_v56  ;;  %v4591_v40 = vrot.slane %v4589_v60, 4  ;;  %v4600_v32 = vshrl.u32 %v4320_v44, 16  ;;  %v4582_v4 = vor.u32 %v4581_v36, %v4578_v42  ;;  %v4326_v36 = vld [vmem:[#allocation2 + $0xb4] sm:$0xf] }
 0x170   : > { %18367 = vst [vmem:[#allocation29_spill] sm:$0xff] %v15120_v23  ;;  %v4574_v20 = vsel %vm13667_vm11, %v4569_v14, %v4573_v43  ;;  %v4603_v12 = vshll.u32 %v4320_v44, 16  ;;  %v4609_v30 = vshll.u32 %v15110_v62, 16  ;;  %v12485_v26 = vpop.f32.mrf.mxu1  ;;  %v4613_v56 = vshrl.u32 %v15110_v62, 16  ;;  %v15132_v43 = vld [vmem:[#allocation2 + $0xb0] sm:$0x1]  ;;  %v15138_v14 = vpop.f32.mrf.mxu0 }
 0x171   : > { %v11486_v9 = vcombine.low %v4564_v10, %v4574_v20  ;;  %v4592_v59 = vor.u32 %v4591_v40, %v4587_v52  ;;  %v4602_v2 = vrot.slane %v4600_v32, 4  ;;  %v4583_v1 = vrot.slane %v4582_v4, 4  ;;  %18369 = vst [vmem:[#allocation31_spill] sm:$0xff] %v15132_v43  ;;  %18371 = vst [vmem:[#allocation33_spill] sm:$0xff] %v15138_v14  ;;  %v13267_v10 = vld [vmem:[#allocation2 + $0x9c] sm:$0xff]  }
 0x172   : > { %v4605_v60 = vrot.slane %v4603_v12, 5  ;;  %v4611_v49 = vrot.slane %v4609_v30, 5  ;;  %v4619_v23 = vshll.u32 %v15117_v27, 16  ;;  %v4615_v42 = vrot.slane %v4613_v56, 4  ;;  %v1886_v32 = vpop.f32.mrf.mxu1  ;;  %v13268_v56 = vld [vmem:[#allocation2 + $0xa8] sm:$0xff]  }
 0x173   : > { %12680 = vmatmul.mubr.msk.bf16.gmra.mxu1 %vm1411_vm7, %v11486_v9  ;;  %v4593_v44 = vrot.slane %v4592_v59, 4  ;;  %v15136_v20 = vadd.f32 %v12482_v15, %v12448_v34  ;;  %v4588_v12 = vsel %vm13667_vm11, %v4583_v1, %v4587_v52  ;;  %v4624_v40 = vshrl.u32 %v4323_v25, 16 }
 0x174   : > { %12646 = vmatmul.mubr.msk.bf16.gmra.mxu0 %vm1411_vm7, %v13265_v16  ;;  %v4606_v4 = vor.u32 %v4605_v60, %v4602_v2  ;;  %v4621_v16 = vrot.slane %v4619_v23, 5  ;;  %v4616_v9 = vor.u32 %v4615_v42, %v4611_v49  ;;  %v4633_v59 = vshll.u32 %v15127_v50, 16 }
 0x175   : > { %12649 = vmatprep.mubr.msk.bf16.mxu0 %vm1411_vm7, %v13266_v29  ;;  %18370 = vst [vmem:[#allocation32_spill] sm:$0xff] %v15136_v20  ;;  %v4598_v30 = vsel %vm13667_vm11, %v4593_v44, %v4597_v37  ;;  %v4627_v29 = vshll.u32 %v4323_v25, 16  ;;  %v4626_v14 = vrot.slane %v4624_v40, 4  ;;  %v4637_v20 = vshrl.u32 %v15127_v50, 16  ;;  %v4329_v37 = vld [vmem:[#allocation2 + $0xc0] sm:$0xf] }
 0x176   : > { %v11487_v15 = vcombine.low %v4588_v12, %v4598_v30  ;;  %v4607_v34 = vrot.slane %v4606_v4, 4  ;;  %v4617_v52 = vrot.slane %v4616_v9, 4  ;;  %v4635_v1 = vrot.slane %v4633_v59, 5  ;;  %v12486_v4 = vpop.f32.mrf.mxu1 }
 0x177   : > { %v4629_v23 = vrot.slane %v4627_v29, 5  ;;  %v4643_v60 = vshll.u32 %v15132_v43, 16  ;;  %v4639_v42 = vrot.slane %v4637_v20, 4  ;;  %v4648_v12 = vshrl.u32 %v4326_v36, 16 }
 0x178   : > { %v12451_v2 = vpop.f32.mrf.mxu0  ;;  %12683 = vmatprep.mubr.msk.bf16.mxu1 %vm1411_vm7, %v11487_v15  ;;  %v4612_v25 = vsel %vm13667_vm11, %v4607_v34, %v4611_v49  ;;  %v4622_v40 = vsel %vm13667_vm11, %v4617_v52, %v4621_v16  ;;  %v4651_v59 = vshll.u32 %v4326_v36, 16  ;;  %v4657_v20 = vshll.u32 %v15146_v54, 16  ;;  %v15166_v52 = vld [vmem:[#allocation2 + $0xc8] sm:$0x1]  ;;  %v4332_v36 = vld [vmem:[#allocation2 + $0xcc] sm:$0xf] }
 0x179   : > { %v15154_v44 = vadd.f32 %v12485_v26, %v12451_v2  ;;  %v4630_v30 = vor.u32 %v4629_v23, %v4626_v14  ;;  %v4645_v9 = vrot.slane %v4643_v60, 5  ;;  %v11488_v43 = vcombine.low %v4612_v25, %v4622_v40  ;;  %v15164_v14 = vld [vmem:[#allocation2 + $0xc4] sm:$0xf]  ;;  %18376 = vst [vmem:[#allocation38_spill] sm:$0xff] %v15166_v52 }
 0x17a   : > { %v1594_v29 = vpop.f32.mrf.mxu0  ;;  %v4640_v22 = vor.u32 %v4639_v42, %v4635_v1  ;;  %v4650_v50 = vrot.slane %v4648_v12, 4  ;;  %v4653_v49 = vrot.slane %v4651_v59, 5  ;;  %v4661_v34 = vshrl.u32 %v15146_v54, 16  ;;  %18375 = vst [vmem:[#allocation37_spill] sm:$0xff] %v15164_v14 }
 0x17b   : > { %18373 = vst [vmem:[#allocation35_spill] sm:$0xff] %v15154_v44  ;;  %v15159_v15 = vadd.f32 %v1886_v32, %v1594_v29  ;;  %v4631_v26 = vrot.slane %v4630_v30, 4  ;;  %12684 = vmatmul.mubr.msk.bf16.gmra.mxu1 %vm1411_vm7, %v11488_v43  ;;  %v4667_v2 = vshll.u32 %v15149_v0, 16  ;;  %v4672_v60 = vshrl.u32 %v4329_v37, 16  ;;  %v13270_v30 = vld [vmem:[#allocation2 + $0xc0] sm:$0xff]  }
 0x17c   : > { %12650 = vmatmul.mubr.msk.bf16.gmra.mxu0 %vm1411_vm7, %v13267_v10  ;;  %v12452_v16 = vpop.f32.mrf.mxu0  ;;  %v13269_v10 = vld [vmem:[#allocation2 + $0xb4] sm:$0xff]   ;;  %v4641_v32 = vrot.slane %v4640_v22, 4  ;;  %v4654_v42 = vor.u32 %v4653_v49, %v4650_v50  ;;  %v4659_v12 = vrot.slane %v4657_v20, 5  ;;  %v4663_v40 = vrot.slane %v4661_v34, 4  ;;  %v15178_v22 = vld [vmem:[#allocation2 + $0xd0] sm:$0xf] }
 0x17d   : > { %18374 = vst [vmem:[#allocation36_spill] sm:$0xff] %v15159_v15  ;;  %12653 = vmatprep.mubr.msk.bf16.mxu0 %vm1411_vm7, %v13268_v56  ;;  %v15170_v23 = vadd.f32 %v12486_v4, %v12452_v16  ;;  %v15172_v56 = vpop.f32.mrf.mxu1  ;;  %v4636_v25 = vsel %vm13667_vm11, %v4631_v26, %v4635_v1  ;;  %v4669_v43 = vrot.slane %v4667_v2, 5  ;;  %v4674_v59 = vrot.slane %v4672_v60, 4  ;;  %18379 = vst [vmem:[#allocation41_spill] sm:$0xff] %v15178_v22  ;;  %v5013_v20 = vld [vmem:[#allocation2 + $0x18] sm:$0xe] }
 0x17e   : > { %18378 = vst [vmem:[#allocation40_spill] sm:$0xff] %v15172_v56  ;;  %v4646_v29 = vsel %vm13667_vm11, %v4641_v32, %v4645_v9  ;;  %v4655_v4 = vrot.slane %v4654_v42, 4  ;;  %v4664_v16 = vor.u32 %v4663_v40, %v4659_v12  ;;  %v15180_v56 = vld [vmem:[#allocation2 + $0xd4] sm:$0x1]  ;;  %v4681_v1 = vshll.u32 %v15164_v14, 16 }
 0x17f   : > { %18377 = vst [vmem:[#allocation39_spill] sm:$0xff] %v15170_v23  ;;  %v11489_v15 = vcombine.low %v4636_v25, %v4646_v29  ;;  %v4675_v23 = vshll.u32 %v4329_v37, 16  ;;  %18380 = vst [vmem:[#allocation42_spill] sm:$0xff] %v15180_v56  ;;  %v4685_v50 = vshrl.u32 %v15164_v14, 16  ;;  %v4691_v26 = vshll.u32 %v15166_v52, 16 }
 0x180   : > { %v4696_v49 = vshrl.u32 %v4332_v36, 16  ;;  %v4660_v9 = vsel %vm13667_vm11, %v4655_v4, %v4659_v12  ;;  %v4665_v34 = vrot.slane %v4664_v16, 4  ;;  %v4699_v2 = vshll.u32 %v4332_v36, 16  ;;  %v5014_v29 = vld [vmem:[#allocation2 + $0x24] sm:$0xe] }
 0x181   : > { %12687 = vmatprep.mubr.msk.bf16.mxu1 %vm1411_vm7, %v11489_v15  ;;  %v4677_v32 = vrot.slane %v4675_v23, 5  ;;  %v4683_v37 = vrot.slane %v4681_v1, 5  ;;  %v4687_v60 = vrot.slane %v4685_v50, 4  ;;  %v4693_v25 = vrot.slane %v4691_v26, 5  ;;  %v15195_v1 = vpop.f32.mrf.mxu0  ;;  %v13271_v50 = vld [vmem:[#allocation2 + $0xcc] sm:$0xff]  }
 0x182   : > { %v12489_v44 = vpop.f32.mrf.mxu1  ;;  %v4698_v40 = vrot.slane %v4696_v49, 4  ;;  %v4670_v52 = vsel %vm13667_vm11, %v4665_v34, %v4669_v43  ;;  %v4701_v0 = vrot.slane %v4699_v2, 5  ;;  %v4705_v12 = vshll.u32 %v15178_v22, 16  ;;  %18381 = vst [vmem:[#allocation43_spill] sm:$0xff] %v15195_v1  ;;  %v5015_v34 = vld [vmem:[#allocation2 + $0x30] sm:$0xe] }
 0x183   : > { %v4678_v15 = vor.u32 %v4677_v32, %v4674_v59  ;;  %v11490_v4 = vcombine.low %v4660_v9, %v4670_v52  ;;  %v4688_v23 = vor.u32 %v4687_v60, %v4683_v37  ;;  %v4709_v36 = vshrl.u32 %v15178_v22, 16  ;;  %v13405_v9 = vld [vmem:[#allocation2 + $0x1c] sm:$0xf]  ;;  %v13406_v1 = vld [vmem:[#allocation2 + $0x20] sm:$0x1] }
 0x184   : > { %12654 = vmatmul.mubr.msk.bf16.gmra.mxu0 %vm1411_vm7, %v13269_v10  ;;  %v1902_v42 = vpop.f32.mrf.mxu1  ;;  %v4715_v10 = vshll.u32 %v15180_v56, 16  ;;  %v4702_v49 = vor.u32 %v4701_v0, %v4698_v40  ;;  %v4707_v14 = vrot.slane %v4705_v12, 5  ;;  %v11509_v43 = vrot.slane %v5013_v20, 9  ;;  %v5016_v0 = vld [vmem:[#allocation2 + $0x3c] sm:$0xe] }
 0x185   : > { %12657 = vmatprep.mubr.msk.bf16.mxu0 %vm1411_vm7, %v13270_v30  ;;  %v4679_v26 = vrot.slane %v4678_v15, 4  ;;  %12688 = vmatmul.mubr.msk.bf16.gmra.mxu1 %vm1411_vm7, %v11490_v4  ;;  %v4689_v30 = vrot.slane %v4688_v23, 4  ;;  %v4711_v59 = vrot.slane %v4709_v36, 4  ;;  %v5079_v2 = vrot.slane %v13405_v9, 5 }
 0x186   : > { %v12490_v16 = vpop.f32.mrf.mxu1  ;;  %v4717_v32 = vrot.slane %v4715_v10, 5  ;;  %v4703_v56 = vrot.slane %v4702_v49, 4  ;;  %v5082_v22 = vrot.slane %v13406_v1, 5  ;;  %v11510_v15 = vrot.slane %v5014_v29, 9 }
 0x187   : > { %v4684_v60 = vsel %vm13667_vm11, %v4679_v26, %v4683_v37  ;;  %v4694_v20 = vsel %vm13667_vm11, %v4689_v30, %v4693_v25  ;;  %v4712_v40 = vor.u32 %v4711_v59, %v4707_v14  ;;  %v5080_v12 = vsel %vm14077_vm1, %v11509_v43, %v5079_v2 }
 0x188   : > { %v15198_v52 = vpop.f32.mrf.mxu1  ;;  %v5081_v4 = vrot.slane %v5079_v2, 4  ;;  %v11491_v10 = vcombine.low %v4684_v60, %v4694_v20  ;;  %v4708_v37 = vsel %vm13667_vm11, %v4703_v56, %v4707_v14  ;;  %v18382_v26 = vrot.slane %v14877_v45, 5  ;;  %v5017_v20 = vld [vmem:[#allocation2 + $0x48] sm:$0xe] }
 0x189   : > { %v4713_v43 = vrot.slane %v4712_v40, 4  ;;  %v11511_v9 = vrot.slane %v5015_v34, 9  ;;  %v18384_v2 = vrot.slane %v14891_v3, 5  ;;  %vm358_vm0 = vcmask 1040384  }
 0x18a   : > { %v15206_v23 = vpop.f32.mrf.mxu1  ;;  %v12455_v36 = vpop.f32.mrf.mxu0  ;;  %v5087_v29 = vsel %vm14077_vm1, %v11510_v15, %v18382_v26  ;;  %v18383_v1 = vmov %v18382_v26  ;;  %v5083_v30 = vsel %vm14077_vm1, %v5081_v4, %v5082_v22  ;;  %12691 = vmatprep.mubr.msk.bf16.mxu1 %vm1411_vm7, %v11491_v10  ;;  %v13408_v15 = vld [vmem:[#allocation2 + $0x38] sm:$0x1]  ;;  %vm15501_vm2 = vmand %vm358_vm0, %vm250_vm3  ;;  %vm5970_vm5 = vcmask 1043456  }
 0x18b   : > { %v5088_v25 = vrot.slane %v18383_v1, 4  ;;  %v15216_v49 = vadd.f32 %v12489_v44, %v12455_v36  ;;  %v11526_v56 = vcombine.low %v5080_v12, %v5083_v30  ;;  %v13407_v44 = vld [vmem:[#allocation2 + $0x34] sm:$0xf]  ;;  %v4718_v22 = vsel %vm13667_vm11, %v4713_v43, %v4717_v32  ;;  %v5019_v43 = vld [vmem:[#allocation2 + $0x60] sm:$0xe]  ;;  %vm15514_vm3 = vmand %vm358_vm0, %vm300_vm4 }
 0x18c   : > { %12658 = vmatmul.mubr.msk.bf16.gmra.mxu0 %vm1411_vm7, %v13271_v50  ;;  %v15221_v59 = vpop.f32.mrf.mxu1  ;;  %v1610_v14 = vpop.f32.mrf.mxu0  ;;  %v5093_v60 = vrot.slane %v13407_v44, 5  ;;  %v5096_v50 = vrot.slane %v13408_v15, 5  ;;  %v11512_v36 = vrot.slane %v5016_v0, 9  ;;  %v5018_v12 = vld [vmem:[#allocation2 + $0x54] sm:$0xe]  ;;  %v11492_v10 = vcombine.low %v4708_v37, %v4718_v22  ;;  %vm15990_vm6 = vmand %vm5970_vm5, %vm300_vm4 }
 0x18d   : > { %v5090_v45 = vsel %vm14077_vm1, %v5088_v25, %v18384_v2  ;;  %v15228_v40 = vadd.f32 %v1902_v42, %v1610_v14  ;;  %12697 = vmatprep.mubr.msk.bf16.mxu0 %vm1411_vm7, %v11526_v56  ;;  %v13409_v25 = vld [vmem:[#allocation2 + $0x40] sm:$0xf]  ;;  %v11513_v32 = vrot.slane %v5017_v20, 9  ;;  %v5110_v0 = vrot.slane %v14962_v51, 5 }
 0x18e   : > { %v11527_v34 = vcombine.low %v5087_v29, %v5090_v45  ;;  %v15232_v4 = vpop.f32.mrf.mxu1  ;;  %v12456_v3 = vpop.f32.mrf.mxu0  ;;  %v5094_v26 = vsel %vm14077_vm1, %v11511_v9, %v5093_v60  ;;  %v5095_v1 = vrot.slane %v5093_v60, 4  ;;  %v5100_v30 = vrot.slane %v13409_v25, 5  ;;  %12692 = vmatmul.mubr.msk.bf16.gmra.mxu1 %vm1411_vm7, %v11492_v10 }
 0x18f   : > { %v15237_v42 = vadd.f32 %v12490_v16, %v12456_v3  ;;  %v5107_v29 = vrot.slane %v14958_v55, 5  ;;  %v11514_v2 = vrot.slane %v5018_v12, 9  ;;  %v5117_v16 = vrot.slane %v14984_v63, 5 }
 0x190   : > { %v15239_v14 = vpop.f32.mrf.mxu1  ;;  %v15244_v37 = vpop.f32.mrf.mxu0  ;;  %v5097_v9 = vsel %vm14077_vm1, %v5095_v1, %v5096_v50  ;;  %v5102_v56 = vrot.slane %v5100_v30, 4  ;;  %v5101_v51 = vsel %vm14077_vm1, %v11512_v36, %v5100_v30  ;;  %v5114_v20 = vrot.slane %v14982_v39, 5  ;;  %v5020_v50 = vld [vmem:[#allocation2 + $0x6c] sm:$0xe] }
 0x191   : > { %v11528_v45 = vcombine.low %v5094_v26, %v5097_v9  ;;  %v5108_v60 = vsel %vm14077_vm1, %v11513_v32, %v5107_v29  ;;  %v5109_v55 = vrot.slane %v5107_v29, 4  ;;  %v11515_v22 = vrot.slane %v5019_v43, 9 }
 0x192   : > { %v12533_v44 = vpop.f32.mrf.mxu1  ;;  %v12495_v15 = vpop.f32.mrf.mxu0  ;;  %v5121_v10 = vrot.slane %v15010_v24, 5  ;;  %v18385_v63 = vrot.slane %v14943_v7, 5  ;;  %v5124_v36 = vrot.slane %v15015_v57, 5  ;;  %v11516_v29 = vrot.slane %v5020_v50, 9 }
 0x193   : > { %v2344_v12 = vadd.f32 %v12495_v15, %v14869_v13  ;;  %v5111_v1 = vsel %vm14077_vm1, %v5109_v55, %v5110_v0  ;;  %v15267_v13 = vsel %vm14077_vm1, %v11514_v2, %v5114_v20  ;;  %v5131_v0 = vrot.slane %v15035_v28, 5  ;;  %v5022_v28 = vld [vmem:[#allocation2 + $0x84] sm:$0xe] }
 0x194   : > { %12698 = vmatmul.mubr.msk.bf16.vlgmr.msra.gmra.mxu0 %vm1411_vm7, %v11527_v34  ;;  %v5104_v3 = vsel %vm14077_vm1, %v5102_v56, %v18385_v63  ;;  %v2589_v26 = vpop.f32.mrf.mxu1  ;;  %v2215_v39 = vpop.f32.mrf.mxu0  ;;  %v11530_v24 = vcombine.low %v5108_v60, %v5111_v1  ;;  %v5116_v34 = vrot.slane %v5114_v20, 4  ;;  %v15271_v7 = vsel %vm14077_vm1, %v11515_v22, %v5121_v10  ;;  %v5024_v1 = vld [vmem:[#allocation2 + $0x9c] sm:$0xe] }
 0x195   : > { %12701 = vmatprep.mubr.msk.bf16.mxu0 %vm1411_vm7, %v11528_v45  ;;  %v2342_v25 = vadd.f32 %v2215_v39, %v14898_v5  ;;  %v15275_v30 = vadd.f32 %v15206_v23, %v2344_v12  ;;  %v5123_v57 = vrot.slane %v5121_v10, 4  ;;  %v11529_v9 = vcombine.low %v5101_v51, %v5104_v3 }
 0x196   : > { %v12534_v32 = vpop.f32.mrf.mxu1  ;;  %v12496_v43 = vpop.f32.mrf.mxu0  ;;  %v5118_v56 = vsel %vm14077_vm1, %v5116_v34, %v5117_v16  ;;  %v5128_v2 = vrot.slane %v15030_v21, 5  ;;  %v11518_v10 = vrot.slane %v5022_v28, 9  ;;  %v5142_v50 = vrot.slane %v15073_v8, 5  ;;  %v5021_v34 = vld [vmem:[#allocation2 + $0x78] sm:$0xe] }
 0x197   : > { %v2345_v45 = vadd.f32 %v12496_v43, %v14921_v61  ;;  %v15283_v60 = vadd.f32 %v15221_v59, %v2342_v25  ;;  %v11531_v23 = vcombine.low %v15267_v13, %v5118_v56  ;;  %v5125_v55 = vsel %vm14077_vm1, %v5123_v57, %v5124_v36 }
 0x198   : > { %v15285_v5 = vpop.f32.mrf.mxu1  ;;  %v15290_v15 = vpop.f32.mrf.mxu0  ;;  %v11532_v51 = vcombine.low %v15271_v7, %v5125_v55  ;;  %v15295_v21 = vsel %vm14077_vm1, %v11516_v29, %v5128_v2  ;;  %v5130_v61 = vrot.slane %v5128_v2, 4  ;;  %v5145_v12 = vrot.slane %v15078_v18, 5 }
 0x199   : > { %v15298_v59 = vadd.f32 %v15232_v4, %v2345_v45  ;;  %v15313_v39 = vsel %vm14077_vm1, %v11518_v10, %v5142_v50  ;;  %v5144_v13 = vrot.slane %v5142_v50, 4  ;;  %v5135_v7 = vrot.slane %v15055_v17, 5 }
 0x19a   : > { %v12537_v16 = vpop.f32.mrf.mxu1  ;;  %v12499_v20 = vpop.f32.mrf.mxu0  ;;  %v15302_v22 = vsel %vm14077_vm1, %v5130_v61, %v5131_v0  ;;  %v11520_v29 = vrot.slane %v5024_v1, 9  ;;  %v5159_v0 = vrot.slane %v15117_v27, 5  ;;  %v11517_v56 = vrot.slane %v5021_v34, 9 }
 0x19b   : > { %v2348_v63 = vadd.f32 %v12499_v20, %v14925_v58  ;;  %v11533_v4 = vcombine.low %v15295_v21, %v15302_v22  ;;  %v15321_v57 = vsel %vm14077_vm1, %v5144_v13, %v5145_v12  ;;  %v5137_v55 = vrot.slane %v5135_v7, 4  ;;  %v5023_v12 = vld [vmem:[#allocation2 + $0x90] sm:$0xe] }
 0x19c   : > { %12702 = vmatmul.mubr.msk.bf16.gmra.mxu0 %vm1411_vm7, %v11529_v9  ;;  %v2605_v3 = vpop.f32.mrf.mxu1  ;;  %v2231_v36 = vpop.f32.mrf.mxu0 }
 0x19d   : > { %12705 = vmatprep.mubr.msk.bf16.mxu0 %vm1411_vm7, %v11530_v24  ;;  %v2346_v8 = vadd.f32 %v2231_v36, %v14952_v38  ;;  %v15316_v18 = vadd.f32 %v12533_v44, %v2348_v63  ;;  %v5156_v24 = vrot.slane %v15110_v62, 5  ;;  %v11535_v44 = vcombine.low %v15313_v39, %v15321_v57  ;;  %v5026_v39 = vld [vmem:[#allocation2 + $0xb4] sm:$0xe]  ;;  %v18393_v57 = vld [vmem:[#allocation37_spill] sm:$0xff] }
 0x19e   : > { %v12538_v58 = vpop.f32.mrf.mxu1  ;;  %v12500_v25 = vpop.f32.mrf.mxu0 }
 0x19f   : > { %v2349_v43 = vadd.f32 %v12500_v25, %v14973_v53  ;;  %v15326_v9 = vadd.f32 %v2589_v26, %v2346_v8  ;;  %v15336_v2 = vsel %vm14077_vm1, %v11520_v29, %v5156_v24  ;;  %v5158_v45 = vrot.slane %v5156_v24, 4 }
 0x1a0   : > { %v15328_v38 = vpop.f32.mrf.mxu1  ;;  %v15332_v17 = vpop.f32.mrf.mxu0  ;;  %v5138_v53 = vrot.slane %v15058_v6, 5  ;;  %v5152_v25 = vrot.slane %v15096_v35, 5 }
 0x1a1   : > { %v15338_v62 = vadd.f32 %v12534_v32, %v2349_v43  ;;  %v15343_v28 = vsel %vm14077_vm1, %v5158_v45, %v5159_v0  ;;  %v5136_v32 = vsel %vm14077_vm1, %v11517_v56, %v5135_v7  ;;  %v5025_v56 = vld [vmem:[#allocation2 + $0xa8] sm:$0xe]  ;;  %v18386_v45 = vld [vmem:[#allocation30_spill] sm:$0xff] }
 0x1a2   : > { %v12541_v27 = vpop.f32.mrf.mxu1  ;;  %v12503_v26 = vpop.f32.mrf.mxu0  ;;  %v11537_v20 = vcombine.low %v15336_v2, %v15343_v28 }
 0x1a3   : > { %v2352_v21 = vadd.f32 %v12503_v26, %v14979_v31  ;;  %v5139_v31 = vsel %vm14077_vm1, %v5137_v55, %v5138_v53  ;;  %v18388_v53 = vld [vmem:[#allocation19_spill] sm:$0xff] }
 0x1a4   : > { %12706 = vmatmul.mubr.msk.bf16.gmra.mxu0 %vm1411_vm7, %v11531_v23  ;;  %v2621_v61 = vpop.f32.mrf.mxu1  ;;  %v2247_v22 = vpop.f32.mrf.mxu0  ;;  %v5149_v23 = vrot.slane %v15092_v47, 5  ;;  %v11534_v8 = vcombine.low %v5136_v32, %v5139_v31  ;;  %v11521_v31 = vrot.slane %v5025_v56, 9 }
 0x1a5   : > { %12709 = vmatprep.mubr.msk.bf16.mxu0 %vm1411_vm7, %v11532_v51  ;;  %v2350_v6 = vadd.f32 %v2247_v22, %v14996_v41  ;;  %v15353_v10 = vadd.f32 %v12537_v16, %v2352_v21  ;;  %v11519_v41 = vrot.slane %v5023_v12, 9  ;;  %v18389_v21 = vld [vmem:[#allocation22_spill] sm:$0xff] }
 0x1a6   : > { %v12542_v50 = vpop.f32.mrf.mxu1  ;;  %v12504_v63 = vpop.f32.mrf.mxu0  ;;  %v5151_v7 = vrot.slane %v5149_v23, 4 }
 0x1a7   : > { %v2353_v1 = vadd.f32 %v12504_v63, %v15021_v48  ;;  %v15359_v36 = vadd.f32 %v2605_v3, %v2350_v6  ;;  %v5150_v24 = vsel %vm14077_vm1, %v11519_v41, %v5149_v23 }
 0x1a8   : > { %v15361_v51 = vpop.f32.mrf.mxu1  ;;  %v15363_v13 = vpop.f32.mrf.mxu0  ;;  %v5153_v35 = vsel %vm14077_vm1, %v5151_v7, %v5152_v25  ;;  %v18391_v25 = vld [vmem:[#allocation23_spill] sm:$0xff] }
 0x1a9   : > { %v15365_v16 = vadd.f32 %v12538_v58, %v2353_v1 }
 0x1aa   : > { %v12545_v34 = vpop.f32.mrf.mxu1  ;;  %v12507_v29 = vpop.f32.mrf.mxu0 }
 0x1ab   : > { %v2356_v47 = vadd.f32 %v12507_v29, %v15028_v11  ;;  %v5163_v11 = vrot.slane %v18386_v45, 5 }
 0x1ac   : > { %12710 = vmatmul.mubr.msk.bf16.gmra.mxu0 %vm1411_vm7, %v11533_v4  ;;  %v2637_v48 = vpop.f32.mrf.mxu1  ;;  %v2263_v3 = vpop.f32.mrf.mxu0  ;;  %v18387_v4 = vld [vmem:[#allocation20_spill] sm:$0xff] }
 0x1ad   : > { %12713 = vmatprep.mubr.msk.bf16.mxu0 %vm1411_vm7, %v11534_v8  ;;  %v2354_v0 = vadd.f32 %v2263_v3, %v15046_v46  ;;  %v15374_v58 = vadd.f32 %v12541_v27, %v2356_v47  ;;  %v1842_v26 = vadd.f32 %v18388_v53, %v18387_v4  ;;  %v11536_v27 = vcombine.low %v5150_v24, %v5153_v35  ;;  %v18390_v8 = vld [vmem:[#allocation31_spill] sm:$0xff]  ;;  %v18392_v24 = vld [vmem:[#allocation25_spill] sm:$0xff]  ;;  %v5027_v4 = vld [vmem:[#allocation2 + $0xc0] sm:$0xe] }
 0x1ae   : > { %v12546_v43 = vpop.f32.mrf.mxu1  ;;  %v12508_v55 = vpop.f32.mrf.mxu0  ;;  %v5165_v1 = vrot.slane %v5163_v11, 4  ;;  %v5166_v41 = vrot.slane %v18390_v8, 5  ;;  %v5170_v3 = vrot.slane %v15146_v54, 5  ;;  %v18394_v53 = vld [vmem:[#allocation26_spill] sm:$0xff] }
 0x1af   : > { %v2357_v22 = vadd.f32 %v12508_v55, %v18389_v21  ;;  %v15382_v32 = vadd.f32 %v2621_v61, %v2354_v0 }
 0x1b0   : > { %v15384_v6 = vpop.f32.mrf.mxu1  ;;  %v2266_v46 = vpop.f32.mrf.mxu0  ;;  %v5167_v45 = vsel %vm14077_vm1, %v5165_v1, %v5166_v41  ;;  %v11523_v41 = vrot.slane %v5027_v4, 9  ;;  %v18399_v4 = vld [vmem:[#allocation29_spill] sm:$0xff] }
 0x1b1   : > { %v15386_v12 = vadd.f32 %v2266_v46, %v1842_v26  ;;  %v15388_v23 = vadd.f32 %v12542_v50, %v2357_v22  ;;  %v5164_v50 = vsel %vm14077_vm1, %v11521_v31, %v5163_v11  ;;  %v5172_v46 = vrot.slane %v5170_v3, 4 }
 0x1b2   : > { %v12549_v63 = vpop.f32.mrf.mxu1  ;;  %v12511_v7 = vpop.f32.mrf.mxu0  ;;  %v11538_v22 = vcombine.low %v5164_v50, %v5167_v45 }
 0x1b3   : > { %v2360_v29 = vadd.f32 %v12511_v7, %v18391_v25  ;;  %v18396_v25 = vld [vmem:[#allocation38_spill] sm:$0xff] }
 0x1b4   : > { %12714 = vmatmul.mubr.msk.bf16.gmra.mxu0 %vm1411_vm7, %v11535_v44  ;;  %v2653_v61 = vpop.f32.mrf.mxu1  ;;  %v2279_v47 = vpop.f32.mrf.mxu0  ;;  %v5177_v44 = vrot.slane %v18393_v57, 5 }
 0x1b5   : > { %12717 = vmatprep.mubr.msk.bf16.mxu0 %vm1411_vm7, %v11536_v27  ;;  %v2358_v0 = vadd.f32 %v2279_v47, %v18392_v24  ;;  %v15401_v35 = vadd.f32 %v12545_v34, %v2360_v29  ;;  %v11522_v34 = vrot.slane %v5026_v39, 9  ;;  %v18395_v27 = vld [vmem:[#allocation34_spill] sm:$0xff]  ;;  %v5180_v29 = vrot.slane %v18396_v25, 5  ;;  %v18397_v24 = vld [vmem:[#allocation27_spill] sm:$0xff]  ;;  %v18398_v39 = vld [vmem:[#allocation41_spill] sm:$0xff] }
 0x1b6   : > { %v12550_v56 = vpop.f32.mrf.mxu1  ;;  %v12512_v55 = vpop.f32.mrf.mxu0  ;;  %v5173_v31 = vrot.slane %v18395_v27, 5  ;;  %v5179_v7 = vrot.slane %v5177_v44, 4  ;;  %v5184_v57 = vrot.slane %v18398_v39, 5  ;;  %v5178_v28 = vsel %vm14077_vm1, %v11523_v41, %v5177_v44  ;;  %v18401_v44 = vld [vmem:[#allocation42_spill] sm:$0xff]  ;;  %v18402_v39 = vld [vmem:[#allocation35_spill] sm:$0xff] }
 0x1b7   : > { %v2361_v26 = vadd.f32 %v12512_v55, %v18394_v53  ;;  %v15407_v21 = vadd.f32 %v2637_v48, %v2358_v0  ;;  %v13272_v55 = vld [vmem:[#allocation4 + $0x78] sm:$0xff]   ;;  %v5187_v41 = vrot.slane %v18401_v44, 5 }
 0x1b8   : > { %v15409_v11 = vpop.f32.mrf.mxu1  ;;  %v15411_v54 = vpop.f32.mrf.mxu0  ;;  %v5174_v45 = vsel %vm14077_vm1, %v5172_v46, %v5173_v31  ;;  %12729 = vmatprep.subr.bf16.mxu1 %v13272_v55 }
 0x1b9   : > { %v15414_v8 = vadd.f32 %v12546_v43, %v2361_v26  ;;  %v5171_v43 = vsel %vm14077_vm1, %v11522_v34, %v5170_v3  ;;  %v18400_v3 = vld [vmem:[#allocation32_spill] sm:$0xff]  ;;  %12730 = vmatpush3.bf16.msra.mxu1 %v13272_v55 }
 0x1ba   : > { %v12553_v1 = vpop.f32.mrf.mxu1  ;;  %v11539_v31 = vcombine.low %v5171_v43, %v5174_v45 }
 0x1bb   : > { %v12515_v47 = vpop.f32.mrf.mxu0 }
 0x1bc   : > { %v2364_v48 = vadd.f32 %v12515_v47, %v18397_v24  ;;  %12718 = vmatmul.mubr.msk.bf16.gmra.mxu0 %vm1411_vm7, %v11537_v20  ;;  %v2669_v50 = vpop.f32.mrf.mxu1  ;;  %v5181_v20 = vsel %vm14077_vm1, %v5179_v7, %v5180_v29 }
 0x1bd   : > { %v2295_v0 = vpop.f32.mrf.mxu0  ;;  %12721 = vmatprep.mubr.msk.bf16.mxu0 %vm1411_vm7, %v11538_v22  ;;  %v5028_v22 = vld [vmem:[#allocation2 + $0xcc] sm:$0xe]  ;;  %v11540_v47 = vcombine.low %v5178_v28, %v5181_v20  ;;  %v18403_v28 = vld [vmem:[#allocation36_spill] sm:$0xff] }
 0x1be   : > { %v2362_v53 = vadd.f32 %v2295_v0, %v18399_v4  ;;  %v15429_v26 = vadd.f32 %v12549_v63, %v2364_v48  ;;  %v12554_v2 = vpop.f32.mrf.mxu1  ;;  %v11524_v24 = vrot.slane %v5028_v22, 9  ;;  %v5186_v48 = vrot.slane %v5184_v57, 4 }
 0x1bf   : > { %v12516_v27 = vpop.f32.mrf.mxu0 }
 0x1c0   : > { %v2365_v34 = vadd.f32 %v12516_v27, %v18400_v3  ;;  %v15436_v46 = vadd.f32 %v2653_v61, %v2362_v53  ;;  %v15438_v25 = vpop.f32.mrf.mxu1  ;;  %v5185_v45 = vsel %vm14077_vm1, %v11524_v24, %v5184_v57  ;;  %v5188_v55 = vsel %vm14077_vm1, %v5186_v48, %v5187_v41  ;;  %v13273_v53 = vld [vmem:[#allocation4 + $0x70] sm:$0xff]   ;;  %v18404_v3 = vld [vmem:[#allocation39_spill] sm:$0xff] }
 0x1c1   : > { %v15440_v63 = vpop.f32.mrf.mxu0  ;;  %12731 = vmatprep.subr.bf16.mxu1 %v13273_v53  ;;  %v11541_v44 = vcombine.low %v5185_v45, %v5188_v55  ;;  %v13274_v55 = vld [vmem:[#allocation4 + $0x68] sm:$0xff]  }
 0x1c2   : > { %v15443_v0 = vadd.f32 %v12550_v56, %v2365_v34  ;;  %v12557_v7 = vpop.f32.mrf.mxu1  ;;  %12732 = vmatpush3.bf16.msra.mxu1 %v13273_v53 }
 0x1c3   : > { %12733 = vmatprep.subr.bf16.mxu1 %v13274_v55 }
 0x1c4   : > { %v12519_v29 = vpop.f32.mrf.mxu0  ;;  %12722 = vmatmul.mubr.msk.bf16.gmra.mxu0 %vm1411_vm7, %v11539_v31  ;;  %v2685_v61 = vpop.f32.mrf.mxu1 }
 0x1c5   : > { %v2368_v4 = vadd.f32 %v12519_v29, %v18402_v39  ;;  %12725 = vmatprep.mubr.msk.bf16.mxu0 %vm1411_vm7, %v11540_v47 }
 0x1c6   : > { %v2311_v43 = vpop.f32.mrf.mxu0  ;;  %v12558_v22 = vpop.f32.mrf.mxu1  ;;  %12734 = vmatpush3.bf16.msra.mxu1 %v13274_v55 }
 0x1c7   : > { %v2366_v56 = vadd.f32 %v2311_v43, %v18403_v28  ;;  %v15453_v20 = vadd.f32 %v12553_v1, %v2368_v4 }
 0x1c8   : > { %v12520_v27 = vpop.f32.mrf.mxu0  ;;  %v15458_v47 = vpop.f32.mrf.mxu1 }
 0x1c9   : > { %v2369_v34 = vadd.f32 %v12520_v27, %v18404_v3  ;;  %v15456_v31 = vadd.f32 %v2669_v50, %v2366_v56  ;;  %18405 = vst [vmem:[#allocation30_spill] sm:$0xff] %v15458_v47 }
 0x1ca   : > { %v15460_v57 = vpop.f32.mrf.mxu0  ;;  %v15464_v48 = vpop.f32.mrf.mxu1 }
 0x1cb   : > { %v15462_v24 = vadd.f32 %v12554_v2, %v2369_v34  ;;  %18406 = vst [vmem:[#allocation20_spill] sm:$0xff] %v15464_v48 }
 0x1cc   : > { %v12523_v41 = vpop.f32.mrf.mxu0  ;;  %12726 = vmatmul.mubr.msk.bf16.gmra.mxu0 %vm1411_vm7, %v11541_v44  ;;  %v15468_v29 = vpop.f32.mrf.mxu1 }
 0x1cd   : > { %v2372_v1 = vadd.f32 %v12523_v41, %v15216_v49  ;;  %18407 = vst [vmem:[#allocation19_spill] sm:$0xff] %v15468_v29 }
 0x1ce   : > { %v2327_v39 = vpop.f32.mrf.mxu0  ;;  %v15473_v43 = vpop.f32.mrf.mxu1 }
 0x1cf   : > { %v2370_v50 = vadd.f32 %v2327_v39, %v15228_v40  ;;  %v15471_v4 = vadd.f32 %v12557_v7, %v2372_v1  ;;  %18408 = vst [vmem:[#allocation22_spill] sm:$0xff] %v15473_v43  ;;  %v363_v39 = vld [vmem:[#allocation3 + $0x18] sm:$0x1] }
 0x1d0   : > { %v12524_v45 = vpop.f32.mrf.mxu0  ;;  %v15478_v28 = vpop.f32.mrf.mxu1 }
 0x1d1   : > { %v2373_v2 = vadd.f32 %v12524_v45, %v15237_v42  ;;  %v15476_v53 = vadd.f32 %v2685_v61, %v2370_v50  ;;  %18409 = vst [vmem:[#allocation31_spill] sm:$0xff] %v15478_v28  ;;  %v13276_v61 = vld [vmem:[#allocation4 + $0x38] sm:$0xff]   ;;  %v13277_v45 = vld [vmem:[#allocation4 + $0x30] sm:$0xff]   ;;  %v13280_v28 = vld [vmem:[#allocation4 + $0x20] sm:$0xff]  }
 0x1d2   : > { %v15480_v49 = vpop.f32.mrf.mxu0  ;;  %v15484_v27 = vpop.f32.mrf.mxu1  ;;  %12777 = vmatprep.subr.bf16.mxu0 %v13276_v61 }
 0x1d3   : > { %v15482_v56 = vadd.f32 %v12558_v22, %v2373_v2  ;;  %18410 = vst [vmem:[#allocation23_spill] sm:$0xff] %v15484_v27  ;;  %12778 = vmatpush3.bf16.msra.mxu0 %v13276_v61 }
 0x1d4   : > { %v12563_v40 = vpop.f32.mrf.mxu0  ;;  %v15489_v3 = vpop.f32.mrf.mxu1  ;;  %12779 = vmatprep.subr.bf16.mxu0 %v13277_v45 }
 0x1d5   : > { %v15487_v7 = vadd.f32 %v12563_v40, %v15275_v30  ;;  %18412 = vst [vmem:[#allocation37_spill] sm:$0xff] %v15489_v3  ;;  %v412_v3 = vld [vmem:[#allocation3 + $0x20] sm:$0x1] }
 0x1d6   : > { %v3299_v42 = vpop.f32.mrf.mxu0  ;;  %v12602_v44 = vpop.f32.mrf.mxu1 }
 0x1d7   : > { %18411 = vst [vmem:[#allocation25_spill] sm:$0xff] %v15487_v7  ;;  %v15492_v34 = vadd.f32 %v3299_v42, %v15283_v60  ;;  %v364_v60 = vsel %vm15501_vm2, 0, %v363_v39  ;;  %12780 = vmatpush3.bf16.msra.mxu0 %v13277_v45 }
 0x1d8   : > { %v12564_v41 = vpop.f32.mrf.mxu0  ;;  %v15497_v1 = vpop.f32.mrf.mxu1  ;;  %365 = vst [vmem:[#allocation3 + $0x18] sm:$0x1] %v364_v60  ;;  %v360_v60 = vld [vmem:[#allocation3 + $0xc] sm:$0x1] }
 0x1d9   : > { %18413 = vst [vmem:[#allocation26_spill] sm:$0xff] %v15492_v34  ;;  %v15495_v22 = vadd.f32 %v12564_v41, %v15298_v59  ;;  %18415 = vst [vmem:[#allocation38_spill] sm:$0xff] %v15497_v1  ;;  %v13279_v41 = vld [vmem:[#allocation4 + $0x28] sm:$0xff]  }
 0x1da   : > { %v15505_v50 = vpop.f32.mrf.mxu0  ;;  %v12605_v55 = vpop.f32.mrf.mxu1  ;;  %12781 = vmatprep.subr.bf16.mxu0 %v13279_v41  ;;  %v13285_v34 = vld [vmem:[#allocation4 + $0x8] sm:$0xff]  }
 0x1db   : > { %18414 = vst [vmem:[#allocation34_spill] sm:$0xff] %v15495_v22  ;;  %12782 = vmatpush3.bf16.msra.mxu0 %v13279_v41  ;;  %v369_v41 = vld [vmem:[#allocation3 + $0x30] sm:$0x1] }
 0x1dc   : > { %v12567_v59 = vpop.f32.mrf.mxu0  ;;  %v3801_v40 = vpop.f32.mrf.mxu1  ;;  %12783 = vmatprep.subr.bf16.mxu0 %v13280_v28 }
 0x1dd   : > { %v15510_v2 = vadd.f32 %v12567_v59, %v15316_v18  ;;  %v361_v18 = vsel %vm15501_vm2, 0, %v360_v60 }
 0x1de   : > { %v3315_v42 = vpop.f32.mrf.mxu0  ;;  %v12606_v19 = vpop.f32.mrf.mxu1  ;;  %362 = vst [vmem:[#allocation3 + $0xc] sm:$0x1] %v361_v18 }
 0x1df   : > { %18418 = vst [vmem:[#allocation27_spill] sm:$0xff] %v15510_v2  ;;  %v15519_v39 = vadd.f32 %v3315_v42, %v15326_v9  ;;  %v413_v9 = vsel %vm15514_vm3, 0, %v412_v3  ;;  %v409_v2 = vld [vmem:[#allocation3 + $0x14] sm:$0x1]  ;;  %v370_v3 = vsel %vm15501_vm2, 0, %v369_v41  ;;  %12784 = vmatpush3.bf16.msra.mxu0 %v13280_v28 }
 0x1e0   : > { %v12568_v1 = vpop.f32.mrf.mxu0  ;;  %v15524_v59 = vpop.f32.mrf.mxu1  ;;  %414 = vst [vmem:[#allocation3 + $0x20] sm:$0x1] %v413_v9  ;;  %371 = vst [vmem:[#allocation3 + $0x30] sm:$0x1] %v370_v3  ;;  %v415_v3 = vld [vmem:[#allocation3 + $0x2c] sm:$0x1] }
 0x1e1   : > { %18421 = vst [vmem:[#allocation41_spill] sm:$0xff] %v15519_v39  ;;  %v3433_v45 = vadd.f32 %v12568_v1, %v15338_v62  ;;  %18422 = vst [vmem:[#allocation29_spill] sm:$0xff] %v15524_v59  ;;  %v410_v62 = vsel %vm15514_vm3, 0, %v409_v2  ;;  %v13275_v59 = vld [vmem:[#allocation4 + $0x60] sm:$0xff]   ;;  %v366_v2 = vld [vmem:[#allocation3 + $0x24] sm:$0x1] }
 0x1e2   : > { %v15526_v27 = vpop.f32.mrf.mxu0  ;;  %v12609_v39 = vpop.f32.mrf.mxu1  ;;  %411 = vst [vmem:[#allocation3 + $0x14] sm:$0x1] %v410_v62  ;;  %12735 = vmatprep.subr.bf16.mxu1 %v13275_v59 }
 0x1e3   : > { %v15530_v42 = vadd.f32 %v12602_v44, %v3433_v45  ;;  %12736 = vmatpush3.bf16.msra.mxu1 %v13275_v59 }
 0x1e4   : > { %v12571_v60 = vpop.f32.mrf.mxu0  ;;  %v3817_v18 = vpop.f32.mrf.mxu1 }
 0x1e5   : > { %v3436_v1 = vadd.f32 %v12571_v60, %v15353_v10  ;;  %v367_v10 = vsel %vm15501_vm2, 0, %v366_v2  ;;  %v13282_v60 = vld [vmem:[#allocation4 + $0x18] sm:$0xff]  }
 0x1e6   : > { %v3331_v43 = vpop.f32.mrf.mxu0  ;;  %v12610_v9 = vpop.f32.mrf.mxu1  ;;  %368 = vst [vmem:[#allocation3 + $0x24] sm:$0x1] %v367_v10  ;;  %12785 = vmatprep.subr.bf16.mxu0 %v13282_v60  ;;  %v13278_v10 = vld [vmem:[#allocation4 + $0x58] sm:$0xff]  }
 0x1e7   : > { %v3434_v44 = vadd.f32 %v3331_v43, %v15359_v36  ;;  %v15538_v45 = vadd.f32 %v12605_v55, %v3436_v1  ;;  %v418_v36 = vld [vmem:[#allocation3 + $0x38] sm:$0x1]  ;;  %12786 = vmatpush3.bf16.msra.mxu0 %v13282_v60  ;;  %12737 = vmatprep.subr.bf16.mxu1 %v13278_v10 }
 0x1e8   : > { %v12572_v22 = vpop.f32.mrf.mxu0  ;;  %v15545_v41 = vpop.f32.mrf.mxu1  ;;  %v419_v28 = vsel %vm15514_vm3, 0, %v418_v36  ;;  %12738 = vmatpush3.bf16.msra.mxu1 %v13278_v10 }
 0x1e9   : > { %v3437_v62 = vadd.f32 %v12572_v22, %v15365_v16  ;;  %v15543_v29 = vadd.f32 %v3801_v40, %v3434_v44  ;;  %18423 = vst [vmem:[#allocation32_spill] sm:$0xff] %v15545_v41  ;;  %420 = vst [vmem:[#allocation3 + $0x38] sm:$0x1] %v419_v28  ;;  %v416_v40 = vsel %vm15514_vm3, 0, %v415_v3  ;;  %v13283_v44 = vld [vmem:[#allocation4 + $0x10] sm:$0xff]  }
 0x1ea   : > { %v15547_v43 = vpop.f32.mrf.mxu0  ;;  %v12613_v59 = vpop.f32.mrf.mxu1  ;;  %417 = vst [vmem:[#allocation3 + $0x2c] sm:$0x1] %v416_v40  ;;  %12787 = vmatprep.subr.bf16.mxu0 %v13283_v44 }
 0x1eb   : > { %v15551_v55 = vadd.f32 %v12606_v19, %v3437_v62  ;;  %v375_v62 = vld [vmem:[#allocation3 + $0x48] sm:$0x1]  ;;  %12788 = vmatpush3.bf16.msra.mxu0 %v13283_v44  ;;  %v424_v44 = vld [vmem:[#allocation3 + $0x50] sm:$0x1] }
 0x1ec   : > { %v12575_v1 = vpop.f32.mrf.mxu0  ;;  %v3833_v22 = vpop.f32.mrf.mxu1  ;;  %v425_v10 = vsel %vm15514_vm3, 0, %v424_v44  ;;  %12789 = vmatprep.subr.bf16.mxu0 %v13285_v34 }
 0x1ed   : > { %v3440_v16 = vadd.f32 %v12575_v1, %v15374_v58  ;;  %v376_v58 = vsel %vm15501_vm2, 0, %v375_v62  ;;  %426 = vst [vmem:[#allocation3 + $0x50] sm:$0x1] %v425_v10 }
 0x1ee   : > { %v3347_v2 = vpop.f32.mrf.mxu0  ;;  %v12614_v19 = vpop.f32.mrf.mxu1  ;;  %377 = vst [vmem:[#allocation3 + $0x48] sm:$0x1] %v376_v58  ;;  %v421_v58 = vld [vmem:[#allocation3 + $0x44] sm:$0x1] }
 0x1ef   : > { %v3438_v36 = vadd.f32 %v3347_v2, %v15382_v32  ;;  %v15557_v41 = vadd.f32 %v12609_v39, %v3440_v16  ;;  %v372_v32 = vld [vmem:[#allocation3 + $0x3c] sm:$0x1]  ;;  %12790 = vmatpush3.bf16.msra.mxu0 %v13285_v34 }
 0x1f0   : > { %v12576_v60 = vpop.f32.mrf.mxu0  ;;  %v15564_v3 = vpop.f32.mrf.mxu1  ;;  %v373_v16 = vsel %vm15501_vm2, 0, %v372_v32 }
 0x1f1   : > { %v3441_v28 = vadd.f32 %v12576_v60, %v15388_v23  ;;  %v15562_v1 = vadd.f32 %v3817_v18, %v3438_v36  ;;  %18424 = vst [vmem:[#allocation42_spill] sm:$0xff] %v15564_v3  ;;  %374 = vst [vmem:[#allocation3 + $0x3c] sm:$0x1] %v373_v16  ;;  %v13281_v36 = vld [vmem:[#allocation4 + $0x50] sm:$0xff]   ;;  %v422_v16 = vsel %vm15514_vm3, 0, %v421_v58  ;;  %v13286_v3 = vld [vmem:[#allocation4] sm:$0xff]  }
 0x1f2   : > { %v15566_v39 = vpop.f32.mrf.mxu0  ;;  %v12617_v2 = vpop.f32.mrf.mxu1  ;;  %12739 = vmatprep.subr.bf16.mxu1 %v13281_v36  ;;  %423 = vst [vmem:[#allocation3 + $0x44] sm:$0x1] %v422_v16  ;;  %12791 = vmatprep.subr.bf16.mxu0 %v13286_v3 }
 0x1f3   : > { %18425 = vst [vmem:[#allocation35_spill] sm:$0xff] %v15566_v39  ;;  %v15570_v40 = vadd.f32 %v12610_v9, %v3441_v28  ;;  %12740 = vmatpush3.bf16.msra.mxu1 %v13281_v36  ;;  %12792 = vmatpush3.bf16.msra.mxu0 %v13286_v3  ;;  %v6084_v36 = vld [vmem:[#allocation3] sm:$0xf]  ;;  %v430_v3 = vld [vmem:[#allocation3 + $0x68] sm:$0x1] }
 0x1f4   : > { %v12579_v62 = vpop.f32.mrf.mxu0  ;;  %v3849_v18 = vpop.f32.mrf.mxu1 }
 0x1f5   : > { %v3444_v23 = vadd.f32 %v12579_v62, %v15401_v35  ;;  %v381_v62 = vld [vmem:[#allocation3 + $0x60] sm:$0x1] }
 0x1f6   : > { %v3363_v60 = vpop.f32.mrf.mxu0  ;;  %v12618_v28 = vpop.f32.mrf.mxu1 }
 0x1f7   : > { %v3442_v32 = vadd.f32 %v3363_v60, %v15407_v21  ;;  %v15576_v9 = vadd.f32 %v12613_v59, %v3444_v23  ;;  %v382_v21 = vsel %vm15501_vm2, 0, %v381_v62  ;;  %v6085_v60 = vld [vmem:[#allocation3 + $0x4] sm:$0xf] }
 0x1f8   : > { %v12580_v35 = vpop.f32.mrf.mxu0  ;;  %v15583_v39 = vpop.f32.mrf.mxu1  ;;  %383 = vst [vmem:[#allocation3 + $0x60] sm:$0x1] %v382_v21  ;;  %v11615_v16 = vcombine.low %v6084_v36, %v6085_v60 }
 0x1f9   : > { %v3445_v44 = vadd.f32 %v12580_v35, %v15414_v8  ;;  %v15581_v10 = vadd.f32 %v3833_v22, %v3442_v32  ;;  %18426 = vst [vmem:[#allocation36_spill] sm:$0xff] %v15583_v39  ;;  %v13284_v22 = vld [vmem:[#allocation4 + $0x48] sm:$0xff]   ;;  %v378_v32 = vld [vmem:[#allocation3 + $0x54] sm:$0x1] }
 0x1fa   : > { %v15587_v59 = vpop.f32.mrf.mxu0  ;;  %v12621_v34 = vpop.f32.mrf.mxu1  ;;  %v379_v62 = vsel %vm15501_vm2, 0, %v378_v32  ;;  %12793 = vmatprep.mubr.bf16.mxu0 %v11615_v16  ;;  %12741 = vmatprep.subr.bf16.mxu1 %v13284_v22  ;;  %v427_v32 = vld [vmem:[#allocation3 + $0x5c] sm:$0x1] }
 0x1fb   : > { %18427 = vst [vmem:[#allocation39_spill] sm:$0xff] %v15587_v59  ;;  %v15589_v23 = vadd.f32 %v12614_v19, %v3445_v44  ;;  %380 = vst [vmem:[#allocation3 + $0x54] sm:$0x1] %v379_v62  ;;  %12742 = vmatpush3.bf16.msra.mxu1 %v13284_v22  ;;  %v387_v62 = vld [vmem:[#allocation3 + $0x78] sm:$0x1] }
 0x1fc   : > { %v12583_v58 = vpop.f32.mrf.mxu0  ;;  %v3865_v19 = vpop.f32.mrf.mxu1 }
 0x1fd   : > { %v3448_v8 = vadd.f32 %v12583_v58, %v15429_v26  ;;  %v431_v26 = vsel %vm15514_vm3, 0, %v430_v3 }
 0x1fe   : > { %v3379_v35 = vpop.f32.mrf.mxu0  ;;  %432 = vst [vmem:[#allocation3 + $0x68] sm:$0x1] %v431_v26 }
 0x1ff   : > { %v3446_v21 = vadd.f32 %v3379_v35, %v15436_v46  ;;  %v15595_v39 = vadd.f32 %v12617_v2, %v3448_v8  ;;  %v428_v46 = vsel %vm15514_vm3, 0, %v427_v32  ;;  %v13288_v2 = vld [vmem:[#allocation4 + $0x40] sm:$0xff]   ;;  %v12622_v35 = vpop.f32.mrf.mxu1 }
 0x200   : > { %v12584_v44 = vpop.f32.mrf.mxu0  ;;  %429 = vst [vmem:[#allocation3 + $0x5c] sm:$0x1] %v428_v46  ;;  %12743 = vmatprep.subr.bf16.mxu1 %v13288_v2  ;;  %v6149_v46 = vshrl.u32 %v6084_v36, 16 }
 0x201   : > { %v3449_v58 = vadd.f32 %v12584_v44, %v15443_v0  ;;  %v15600_v59 = vadd.f32 %v3849_v18, %v3446_v21  ;;  %v388_v0 = vsel %vm15501_vm2, 0, %v387_v62  ;;  %12744 = vmatpush3.bf16.msra.mxu1 %v13288_v2  ;;  %v15614_v26 = vpop.f32.mrf.mxu1  ;;  %v6162_v62 = vshrl.u32 %v6085_v60, 16 }
 0x202   : > { %v15602_v16 = vpop.f32.mrf.mxu0  ;;  %389 = vst [vmem:[#allocation3 + $0x78] sm:$0x1] %v388_v0  ;;  %18429 = vst [vmem:[#allocation45_spill] sm:$0xff] %v15614_v26  ;;  %v384_v26 = vld [vmem:[#allocation3 + $0x6c] sm:$0x1] }
 0x203   : > { %18428 = vst [vmem:[#allocation44_spill] sm:$0xff] %v15602_v16  ;;  %v15606_v8 = vadd.f32 %v12618_v28, %v3449_v58  ;;  %v6152_v16 = vshll.u32 %v6084_v36, 16 }
 0x204   : > { %v12587_v22 = vpop.f32.mrf.mxu0 }
 0x205   : > { %v3452_v3 = vadd.f32 %v12587_v22, %v15453_v20 }
 0x206   : > { %v3395_v18 = vpop.f32.mrf.mxu0 }
 0x207   : > { %v3450_v21 = vadd.f32 %v3395_v18, %v15456_v31  ;;  %v15612_v44 = vadd.f32 %v12621_v34, %v3452_v3  ;;  %v6151_v31 = vrot.slane %v6149_v46, 4  ;;  %v6154_v34 = vrot.slane %v6152_v16, 5 }
 0x208   : > { %v12588_v28 = vpop.f32.mrf.mxu0  ;;  %v6158_v3 = vshll.u32 %v6085_v60, 16 }
 0x209   : > { %v3453_v58 = vadd.f32 %v12588_v28, %v15462_v24  ;;  %v15617_v32 = vadd.f32 %v3865_v19, %v3450_v21  ;;  %v12625_v2 = vpop.f32.mrf.mxu1  ;;  %v385_v19 = vsel %vm15501_vm2, 0, %v384_v26  ;;  %v6164_v21 = vrot.slane %v6162_v62, 4 }
 0x20a   : > { %v15619_v20 = vpop.f32.mrf.mxu0  ;;  %v6160_v36 = vrot.slane %v6158_v3, 5  ;;  %386 = vst [vmem:[#allocation3 + $0x6c] sm:$0x1] %v385_v19  ;;  %v6155_v60 = vor.u32 %v6154_v34, %v6151_v31  ;;  %v436_v19 = vld [vmem:[#allocation3 + $0x80] sm:$0x1] }
 0x20b   : > { %18430 = vst [vmem:[#allocation46_spill] sm:$0xff] %v15619_v20  ;;  %v15621_v22 = vadd.f32 %v12622_v35, %v3453_v58  ;;  %v3881_v48 = vpop.f32.mrf.mxu1  ;;  %v6132_v58 = vld [vmem:[#allocation3 + $0x8] sm:$0x1] }
 0x20c   : > { %v12591_v0 = vpop.f32.mrf.mxu0  ;;  %v6165_v16 = vor.u32 %v6164_v21, %v6160_v36  ;;  %v6156_v62 = vrot.slane %v6155_v60, 4  ;;  %v393_v60 = vld [vmem:[#allocation3 + $0x90] sm:$0x1] }
 0x20d   : > { %18431 = vst [vmem:[#allocation47_spill] sm:$0xff] %v15621_v22  ;;  %v3456_v18 = vadd.f32 %v12591_v0, %v15471_v4  ;;  %v12626_v24 = vpop.f32.mrf.mxu1  ;;  %v6168_v4 = vshll.u32 %v6132_v58, 16  ;;  %v433_v58 = vld [vmem:[#allocation3 + $0x74] sm:$0x1] }
 0x20e   : > { %v3411_v7 = vpop.f32.mrf.mxu0  ;;  %v6161_v31 = vsel %vm13667_vm11, %v6156_v62, %v6160_v36  ;;  %v434_v36 = vsel %vm15514_vm3, 0, %v433_v58  ;;  %v13292_v62 = vld [vmem:[#allocation4 + $0xb8] sm:$0xff]  }
 0x20f   : > { %v3454_v35 = vadd.f32 %v3411_v7, %v15476_v53  ;;  %v15627_v28 = vadd.f32 %v12625_v2, %v3456_v18  ;;  %v15629_v46 = vpop.f32.mrf.mxu1  ;;  %v6166_v53 = vrot.slane %v6165_v16, 4  ;;  %v6170_v7 = vrot.slane %v6168_v4, 5  ;;  %435 = vst [vmem:[#allocation3 + $0x74] sm:$0x1] %v434_v36  ;;  %12825 = vmatprep.subr.bf16.mxu1 %v13292_v62 }
 0x210   : > { %v12592_v20 = vpop.f32.mrf.mxu0 }
 0x211   : > { %v3457_v0 = vadd.f32 %v12592_v20, %v15482_v56  ;;  %v15632_v47 = vadd.f32 %v3881_v48, %v3454_v35  ;;  %v15636_v26 = vpop.f32.mrf.mxu1  ;;  %v6171_v48 = vsel %vm13667_vm11, %v6166_v53, %v6170_v7  ;;  %v437_v35 = vsel %vm15514_vm3, 0, %v436_v19 }
 0x212   : > { %v15634_v22 = vpop.f32.mrf.mxu0  ;;  %v11591_v56 = vcombine.low %v6161_v31, %v6171_v48  ;;  %438 = vst [vmem:[#allocation3 + $0x80] sm:$0x1] %v437_v35 }
 0x213   : > { %v15638_v2 = vadd.f32 %v12626_v24, %v3457_v0  ;;  %v15642_v18 = vpop.f32.mrf.mxu1  ;;  %v394_v0 = vsel %vm15501_vm2, 0, %v393_v60 }
 0x214   : > { %v15640_v3 = vpop.f32.mrf.mxu0  ;;  %12745 = vmatprep.mubr.bf16.mxu1 %v11591_v56  ;;  %395 = vst [vmem:[#allocation3 + $0x90] sm:$0x1] %v394_v0  ;;  %v390_v56 = vld [vmem:[#allocation3 + $0x84] sm:$0x1] }
 0x215   : > { %v15650_v34 = vpop.f32.mrf.mxu1  ;;  %v391_v19 = vsel %vm15501_vm2, 0, %v390_v56 }
 0x216   : > { %v15648_v20 = vpop.f32.mrf.mxu0  ;;  %392 = vst [vmem:[#allocation3 + $0x84] sm:$0x1] %v391_v19 }
 0x217   : > { %v15654_v24 = vpop.f32.mrf.mxu1 }
 0x218   : > { %v15652_v21 = vpop.f32.mrf.mxu0 }
 0x219   : > { %v15662_v4 = vpop.f32.mrf.mxu1 }
 0x21a   : > { %v15660_v16 = vpop.f32.mrf.mxu0  ;;  %18432 = vst [vmem:[#allocation48_spill] sm:$0xff] %v15662_v4 }
 0x21b   : > { %v15668_v7 = vpop.f32.mrf.mxu1 }
 0x21c   : > { %v15666_v53 = vpop.f32.mrf.mxu0  ;;  %18433 = vst [vmem:[#allocation49_spill] sm:$0xff] %v15668_v7 }
 0x21d   : > { %v15672_v48 = vpop.f32.mrf.mxu1 }
 0x21e   : > { %v15670_v31 = vpop.f32.mrf.mxu0  ;;  %18434 = vst [vmem:[#allocation50_spill] sm:$0xff] %v15672_v48 }
 0x21f   : > { %v15676_v58 = vpop.f32.mrf.mxu1 }
 0x220   : > { %v12636_v35 = vpop.f32.mrf.mxu0  ;;  %18435 = vst [vmem:[#allocation51_spill] sm:$0xff] %v15676_v58 }
 0x221   : > { %v15679_v36 = vadd.f32 %v12636_v35, %v15530_v42  ;;  %v15683_v0 = vpop.f32.mrf.mxu1  ;;  %v442_v35 = vld [vmem:[#allocation3 + $0x98] sm:$0x1] }
 0x222   : > { %v15681_v60 = vpop.f32.mrf.mxu0  ;;  %18436 = vst [vmem:[#allocation52_spill] sm:$0xff] %v15683_v0 }
 0x223   : > { %v15685_v33 = vpop.f32.mrf.mxu1 }
 0x224   : > { %v12639_v62 = vpop.f32.mrf.mxu0  ;;  %18437 = vst [vmem:[#allocation53_spill] sm:$0xff] %v15685_v33  ;;  %v443_v33 = vsel %vm15514_vm3, 0, %v442_v35 }
 0x225   : > { %v15688_v48 = vadd.f32 %v12639_v62, %v15538_v45  ;;  %v15690_v4 = vpop.f32.mrf.mxu1  ;;  %444 = vst [vmem:[#allocation3 + $0x98] sm:$0x1] %v443_v33 }
 0x226   : > { %v4160_v7 = vpop.f32.mrf.mxu0  ;;  %18439 = vst [vmem:[#allocation55_spill] sm:$0xff] %v15690_v4  ;;  %v439_v4 = vld [vmem:[#allocation3 + $0x8c] sm:$0x1] }
 0x227   : > { %18438 = vst [vmem:[#allocation54_spill] sm:$0xff] %v15688_v48  ;;  %v15693_v56 = vadd.f32 %v4160_v7, %v15543_v29  ;;  %v15695_v58 = vpop.f32.mrf.mxu1  ;;  %v399_v48 = vld [vmem:[#allocation3 + $0xa8] sm:$0x1] }
 0x228   : > { %v12640_v19 = vpop.f32.mrf.mxu0  ;;  %18440 = vst [vmem:[#allocation56_spill] sm:$0xff] %v15695_v58 }
 0x229   : > { %v15698_v42 = vadd.f32 %v12640_v19, %v15551_v55  ;;  %v440_v55 = vsel %vm15514_vm3, 0, %v439_v4  ;;  %v400_v19 = vsel %vm15501_vm2, 0, %v399_v48 }
 0x22a   : > { %v15700_v0 = vpop.f32.mrf.mxu0  ;;  %v15704_v45 = vpop.f32.mrf.mxu1  ;;  %441 = vst [vmem:[#allocation3 + $0x8c] sm:$0x1] %v440_v55  ;;  %401 = vst [vmem:[#allocation3 + $0xa8] sm:$0x1] %v400_v19 }
 0x22b   : > { %18441 = vst [vmem:[#allocation57_spill] sm:$0xff] %v15698_v42  ;;  %18442 = vst [vmem:[#allocation58_spill] sm:$0xff] %v15704_v45 }
 0x22c   : > { %v12643_v62 = vpop.f32.mrf.mxu0  ;;  %v15709_v7 = vpop.f32.mrf.mxu1 }
 0x22d   : > { %v15707_v29 = vadd.f32 %v12643_v62, %v15557_v41  ;;  %18444 = vst [vmem:[#allocation60_spill] sm:$0xff] %v15709_v7  ;;  %v396_v7 = vld [vmem:[#allocation3 + $0x9c] sm:$0x1] }
 0x22e   : > { %v4176_v58 = vpop.f32.mrf.mxu0  ;;  %v15718_v33 = vpop.f32.mrf.mxu1  ;;  %v397_v4 = vsel %vm15501_vm2, 0, %v396_v7 }
 0x22f   : > { %18443 = vst [vmem:[#allocation59_spill] sm:$0xff] %v15707_v29  ;;  %v15716_v35 = vadd.f32 %v4176_v58, %v15562_v1  ;;  %18446 = vst [vmem:[#allocation62_spill] sm:$0xff] %v15718_v33 }
 0x230   : > { %v12644_v45 = vpop.f32.mrf.mxu0  ;;  %v15723_v62 = vpop.f32.mrf.mxu1  ;;  %398 = vst [vmem:[#allocation3 + $0x9c] sm:$0x1] %v397_v4 }
 0x231   : > { %18445 = vst [vmem:[#allocation61_spill] sm:$0xff] %v15716_v35  ;;  %v15721_v41 = vadd.f32 %v12644_v45, %v15570_v40  ;;  %18448 = vst [vmem:[#allocation64_spill] sm:$0xff] %v15723_v62 }
 0x232   : > { %v15725_v29 = vpop.f32.mrf.mxu0 }
 0x233   : > { %18447 = vst [vmem:[#allocation63_spill] sm:$0xff] %v15721_v41  ;;  %v15732_v1 = vpop.f32.mrf.mxu1 }
 0x234   : > { %v12647_v48 = vpop.f32.mrf.mxu0  ;;  %18450 = vst [vmem:[#allocation66_spill] sm:$0xff] %v15732_v1 }
 0x235   : > { %v15730_v55 = vadd.f32 %v12647_v48, %v15576_v9  ;;  %v15737_v40 = vpop.f32.mrf.mxu1  ;;  %v448_v48 = vld [vmem:[#allocation3 + $0xb0] sm:$0x1] }
 0x236   : > { %v4192_v58 = vpop.f32.mrf.mxu0  ;;  %18452 = vst [vmem:[#allocation68_spill] sm:$0xff] %v15737_v40 }
 0x237   : > { %18449 = vst [vmem:[#allocation65_spill] sm:$0xff] %v15730_v55  ;;  %v15735_v19 = vadd.f32 %v4192_v58, %v15581_v10  ;;  %v15742_v33 = vpop.f32.mrf.mxu1  ;;  %v449_v10 = vsel %vm15514_vm3, 0, %v448_v48  ;;  %v18463_v55 = vld [vmem:[#allocation15_spill] sm:$0xff] }
 0x238   : > { %v12648_v45 = vpop.f32.mrf.mxu0  ;;  %18454 = vst [vmem:[#allocation70_spill] sm:$0xff] %v15742_v33  ;;  %450 = vst [vmem:[#allocation3 + $0xb0] sm:$0x1] %v449_v10  ;;  %v405_v48 = vld [vmem:[#allocation3 + $0xc0] sm:$0x1] }
 0x239   : > { %18451 = vst [vmem:[#allocation67_spill] sm:$0xff] %v15735_v19  ;;  %v15740_v62 = vadd.f32 %v12648_v45, %v15589_v23  ;;  %v15746_v4 = vpop.f32.mrf.mxu1  ;;  %v18459_v23 = vld [vmem:[#allocation14_spill] sm:$0xff]  ;;  %v18460_v45 = vld [vmem:[#allocation13_spill] sm:$0xff]  ;;  %v445_v19 = vld [vmem:[#allocation3 + $0xa4] sm:$0x1] }
 0x23a   : > { %v15744_v7 = vpop.f32.mrf.mxu0  ;;  %18456 = vst [vmem:[#allocation72_spill] sm:$0xff] %v15746_v4  ;;  %v18462_v4 = vld [vmem:[#allocation16_spill] sm:$0xff] }
 0x23b   : > { %18453 = vst [vmem:[#allocation69_spill] sm:$0xff] %v15740_v62  ;;  %18455 = vst [vmem:[#allocation71_spill] sm:$0xff] %v15744_v7  ;;  %v15753_v40 = vpop.f32.mrf.mxu1  ;;  %v1794_v62 = vadd.f32 %v18460_v45, %v18459_v23  ;;  %v1810_v41 = vadd.f32 %v18463_v55, %v18462_v4  ;;  %v18467_v55 = vld [vmem:[#allocation24_spill] sm:$0xff]  ;;  %v18468_v4 = vld [vmem:[#allocation21_spill] sm:$0xff] }
 0x23c   : > { %v12651_v9 = vpop.f32.mrf.mxu0  ;;  %18458 = vst [vmem:[#allocation74_spill] sm:$0xff] %v15753_v40  ;;  %v18466_v40 = vld [vmem:[#allocation17_spill] sm:$0xff] }
 0x23d   : > { %v15749_v1 = vadd.f32 %v12651_v9, %v15595_v39  ;;  %v15762_v39 = vpop.f32.mrf.mxu1  ;;  %v446_v9 = vsel %vm15514_vm3, 0, %v445_v19  ;;  %v2343_v42 = vadd.f32 %v15290_v15, %v1794_v62  ;;  %v18469_v45 = vld [vmem:[#allocation33_spill] sm:$0xff]  ;;  %v18472_v15 = vld [vmem:[#allocation40_spill] sm:$0xff] }
 0x23e   : > { %v4208_v58 = vpop.f32.mrf.mxu0  ;;  %18464 = vst [vmem:[#allocation13_spill] sm:$0xff] %v15762_v39  ;;  %447 = vst [vmem:[#allocation3 + $0xa4] sm:$0x1] %v446_v9  ;;  %v18470_v39 = vld [vmem:[#allocation28_spill] sm:$0xff] }
 0x23f   : > { %18457 = vst [vmem:[#allocation73_spill] sm:$0xff] %v15749_v1  ;;  %v15758_v33 = vadd.f32 %v4208_v58, %v15600_v59  ;;  %v18465_v1 = vld [vmem:[#allocation18_spill] sm:$0xff]  ;;  %v406_v59 = vsel %vm15501_vm2, 0, %v405_v48  ;;  %v1858_v58 = vadd.f32 %v18468_v4, %v18467_v55  ;;  %v15780_v7 = vpop.f32.mrf.mxu1  ;;  %v402_v4 = vld [vmem:[#allocation3 + $0xb4] sm:$0x1] }
 0x240   : > { %v12652_v35 = vpop.f32.mrf.mxu0  ;;  %v1826_v10 = vadd.f32 %v18466_v40, %v18465_v1  ;;  %407 = vst [vmem:[#allocation3 + $0xc0] sm:$0x1] %v406_v59  ;;  %v18471_v1 = vld [vmem:[#allocation43_spill] sm:$0xff]  ;;  %v1906_v40 = vadd.f32 %v15198_v52, %v15244_v37  ;;  %v2701_v59 = vadd.f32 %v15239_v14, %v2343_v42 }
 0x241   : > { %18461 = vst [vmem:[#allocation14_spill] sm:$0xff] %v15758_v33  ;;  %v15770_v23 = vadd.f32 %v12652_v35, %v15606_v8  ;;  %v1874_v33 = vadd.f32 %v18470_v39, %v18469_v45  ;;  %v1890_v62 = vadd.f32 %v18472_v15, %v18471_v1  ;;  %v2347_v8 = vadd.f32 %v15332_v17, %v1810_v41  ;;  %v15790_v55 = vpop.f32.mrf.mxu1  ;;  %v18475_v15 = vld [vmem:[#allocation25_spill] sm:$0xff] }
 0x242   : > { %v15778_v19 = vpop.f32.mrf.mxu0  ;;  %v2351_v35 = vadd.f32 %v15363_v13, %v1826_v10  ;;  %v2359_v9 = vadd.f32 %v15411_v54, %v1858_v58  ;;  %v403_v17 = vsel %vm15501_vm2, 0, %v402_v4  ;;  %v2371_v52 = vadd.f32 %v15480_v49, %v1906_v40  ;;  %v18483_v4 = vld [vmem:[#allocation27_spill] sm:$0xff] }
 0x243   : > { %v2363_v48 = vadd.f32 %v15440_v63, %v1874_v33  ;;  %v2367_v45 = vadd.f32 %v15460_v57, %v1890_v62  ;;  %404 = vst [vmem:[#allocation3 + $0xb4] sm:$0x1] %v403_v17  ;;  %v2705_v13 = vadd.f32 %v15285_v5, %v2347_v8  ;;  %v3427_v63 = vadd.f32 %v15505_v50, %v2701_v59  ;;  %v18473_v50 = vld [vmem:[#allocation47_spill] sm:$0xff]  ;;  %v18485_v17 = vld [vmem:[#allocation41_spill] sm:$0xff] }
 0x244   : > { %v12655_v39 = vpop.f32.mrf.mxu0  ;;  %v2709_v54 = vadd.f32 %v15328_v38, %v2351_v35  ;;  %v2713_v57 = vadd.f32 %v15361_v51, %v15386_v12  ;;  %v18476_v51 = vld [vmem:[#allocation20_spill] sm:$0xff]  ;;  %v18478_v62 = vld [vmem:[#allocation19_spill] sm:$0xff] }
 0x245   : > { %v15795_v1 = vadd.f32 %v12655_v39, %v15612_v44  ;;  %v2717_v44 = vadd.f32 %v15384_v6, %v2359_v9  ;;  %v2721_v42 = vadd.f32 %v15409_v11, %v2363_v48  ;;  %v15810_v33 = vpop.f32.mrf.mxu1  ;;  %v2725_v41 = vadd.f32 %v15438_v25, %v2367_v45  ;;  %v18477_v6 = vld [vmem:[#allocation26_spill] sm:$0xff]  ;;  %v18479_v8 = vld [vmem:[#allocation35_spill] sm:$0xff] }
 0x246   : > { %v4224_v37 = vpop.f32.mrf.mxu0  ;;  %v3431_v5 = vadd.f32 %v15526_v27, %v2705_v13  ;;  %v3435_v38 = vadd.f32 %v15547_v43, %v2709_v54  ;;  %v3898_v12 = vadd.f32 %v18476_v51, %v18475_v15  ;;  %v3896_v11 = vadd.f32 %v18478_v62, %v18477_v6  ;;  %v18480_v27 = vld [vmem:[#allocation34_spill] sm:$0xff]  ;;  %v18482_v48 = vld [vmem:[#allocation31_spill] sm:$0xff] }
 0x247   : > { %v15804_v14 = vadd.f32 %v4224_v37, %v15617_v32  ;;  %v18474_v32 = vld [vmem:[#allocation30_spill] sm:$0xff]  ;;  %v3439_v35 = vadd.f32 %v18479_v8, %v2713_v57  ;;  %v15824_v40 = vpop.f32.mrf.mxu1  ;;  %v3897_v39 = vadd.f32 %v18482_v48, %v3427_v63  ;;  %v18484_v59 = vld [vmem:[#allocation23_spill] sm:$0xff]  ;;  %v18491_v63 = vld [vmem:[#allocation29_spill] sm:$0xff] }
 0x248   : > { %v12656_v49 = vpop.f32.mrf.mxu0  ;;  %v2729_v58 = vadd.f32 %v18474_v32, %v2371_v52  ;;  %v18481_v9 = vld [vmem:[#allocation22_spill] sm:$0xff]  ;;  %v3902_v45 = vadd.f32 %v18484_v59, %v18483_v4  ;;  %v18486_v52 = vld [vmem:[#allocation37_spill] sm:$0xff]  ;;  %v18487_v13 = vld [vmem:[#allocation39_spill] sm:$0xff] }
 0x249   : > { %v15816_v10 = vadd.f32 %v12656_v49, %v18473_v50  ;;  %v3899_v43 = vadd.f32 %v18481_v9, %v18480_v27  ;;  %v3900_v37 = vadd.f32 %v18486_v52, %v18485_v17  ;;  %v3443_v54 = vadd.f32 %v18487_v13, %v2717_v44  ;;  %v18488_v49 = vld [vmem:[#allocation44_spill] sm:$0xff]  ;;  %v18489_v57 = vld [vmem:[#allocation46_spill] sm:$0xff]  ;;  %v15839_v51 = vpop.f32.mrf.mxu1 }
 0x24a   : > { %v15826_v25 = vpop.f32.mrf.mxu0  ;;  %v3447_v50 = vadd.f32 %v18488_v49, %v2721_v42  ;;  %v3451_v32 = vadd.f32 %v18489_v57, %v2725_v41  ;;  %v3455_v15 = vadd.f32 %v15634_v22, %v2729_v58  ;;  %v18490_v62 = vld [vmem:[#allocation38_spill] sm:$0xff]  ;;  %v3905_v27 = vadd.f32 %v18491_v63, %v3435_v38  ;;  %v18492_v4 = vld [vmem:[#allocation32_spill] sm:$0xff] }
 0x24b   : > { %v3901_v8 = vadd.f32 %v18490_v62, %v3431_v5  ;;  %v4257_v9 = vadd.f32 %v15640_v3, %v3898_v12  ;;  %v3909_v44 = vadd.f32 %v18492_v4, %v3439_v35  ;;  %v4255_v42 = vadd.f32 %v15648_v20, %v3896_v11  ;;  %v15851_v58 = vpop.f32.mrf.mxu1  ;;  %v18493_v12 = vld [vmem:[#allocation42_spill] sm:$0xff]  ;;  %v18494_v17 = vld [vmem:[#allocation36_spill] sm:$0xff]  ;;  %v18495_v11 = vld [vmem:[#allocation45_spill] sm:$0xff] }
 0x24c   : > { %v12659_v6 = vpop.f32.mrf.mxu0  ;;  %v4258_v41 = vadd.f32 %v15652_v21, %v3899_v43  ;;  %v4256_v22 = vadd.f32 %v15660_v16, %v3897_v39  ;;  %v4261_v5 = vadd.f32 %v15666_v53, %v3902_v45  ;;  %v4259_v38 = vadd.f32 %v15670_v31, %v3900_v37  ;;  %v454_v39 = vld [vmem:[#allocation3 + $0xc8] sm:$0x1] }
 0x24d   : > { %v15845_v48 = vadd.f32 %v12659_v6, %v15627_v28  ;;  %v4260_v3 = vadd.f32 %v15681_v60, %v3901_v8  ;;  %v3913_v35 = vadd.f32 %v18493_v12, %v3443_v54  ;;  %v3917_v20 = vadd.f32 %v18494_v17, %v3447_v50  ;;  %v15885_v6 = vld [vmem:[#allocation4 + $0xf8] sm:$0xff]   ;;  %v18510_v17 = vld [vmem:[#allocation60_spill] sm:$0xff] }
 0x24e   : > { %v4240_v59 = vpop.f32.mrf.mxu0  ;;  %v3921_v21 = vadd.f32 %v18495_v11, %v3451_v32  ;;  %v3925_v16 = vadd.f32 %v15629_v46, %v3455_v15  ;;  %v4983_v52 = vadd.f32 %v15636_v26, %v4257_v9  ;;  %v4264_v53 = vadd.f32 %v15700_v0, %v3905_v27  ;;  %v12693_v31 = vpop.f32.mrf.mxu1  ;;  %v18496_v26 = vld [vmem:[#allocation48_spill] sm:$0xff]  ;;  %v18497_v0 = vld [vmem:[#allocation49_spill] sm:$0xff]  ;;  %v18499_v32 = vld [vmem:[#allocation51_spill] sm:$0xff]  ;;  %12873 = vmatprep.subr.bf16.mxu0 %v15885_v6 }
 0x24f   : > { %v15857_v28 = vadd.f32 %v4240_v59, %v15632_v47  ;;  %v455_v47 = vsel %vm15514_vm3, 0, %v454_v39  ;;  %v4981_v45 = vadd.f32 %v15642_v18, %v4255_v42  ;;  %v4984_v37 = vadd.f32 %v15650_v34, %v4258_v41  ;;  %v451_v34 = vld [vmem:[#allocation3 + $0xbc] sm:$0x1]  ;;  %v18502_v8 = vld [vmem:[#allocation53_spill] sm:$0xff]  ;;  %v18503_v27 = vld [vmem:[#allocation71_spill] sm:$0xff] }
 0x250   : > { %v12660_v43 = vpop.f32.mrf.mxu0  ;;  %v4982_v13 = vadd.f32 %v15654_v24, %v4256_v22  ;;  %v4268_v46 = vadd.f32 %v15725_v29, %v3909_v44  ;;  %456 = vst [vmem:[#allocation3 + $0xc8] sm:$0x1] %v455_v47  ;;  %v4987_v49 = vadd.f32 %v18496_v26, %v4261_v5  ;;  %v15876_v50 = vadd.f32 %v18497_v0, %v4259_v38  ;;  %v4966_v18 = vpop.f32.mrf.mxu1  ;;  %v18500_v24 = vld [vmem:[#allocation54_spill] sm:$0xff]  ;;  %v18501_v29 = vld [vmem:[#allocation52_spill] sm:$0xff]  ;;  %v18504_v42 = vld [vmem:[#allocation57_spill] sm:$0xff] }
 0x251   : > { %v15866_v60 = vadd.f32 %v12660_v43, %v15638_v2  ;;  %v18498_v2 = vld [vmem:[#allocation50_spill] sm:$0xff]  ;;  %v15883_v15 = vadd.f32 %v18499_v32, %v4260_v3  ;;  %v15889_v62 = vadd.f32 %v18501_v29, %v18500_v24  ;;  %v15893_v63 = vadd.f32 %v18502_v8, %v15693_v56  ;;  %v18505_v41 = vld [vmem:[#allocation55_spill] sm:$0xff]  ;;  %v18506_v59 = vld [vmem:[#allocation56_spill] sm:$0xff] }
 0x252   : > { %v4243_v54 = vpop.f32.mrf.mxu0  ;;  %v15880_v57 = vadd.f32 %v18498_v2, %v15679_v36  ;;  %v4272_v9 = vadd.f32 %v18503_v27, %v3913_v35  ;;  %v15899_v36 = vld [vmem:[%s18301_s2] ss:$0 sm:$0xff]  ;;  %v452_v44 = vsel %vm15514_vm3, 0, %v451_v34  ;;  %v15905_v22 = vadd.f32 %v18505_v41, %v18504_v42  ;;  %v18507_v56 = vld [vmem:[#allocation59_spill] sm:$0xff]  ;;  %v18508_v38 = vld [vmem:[#allocation58_spill] sm:$0xff]  ;;  %v12694_v8 = vpop.f32.mrf.mxu1 }
 0x253   : > { %v15908_v5 = vadd.f32 %v18506_v59, %v4264_v53  ;;  %v15912_v3 = vadd.f32 %v18508_v38, %v18507_v56  ;;  %453 = vst [vmem:[#allocation3 + $0xbc] sm:$0x1] %v452_v44  ;;  %v18509_v35 = vld [vmem:[#allocation61_spill] sm:$0xff]  ;;  %v18511_v11 = vld [vmem:[#allocation63_spill] sm:$0xff]  ;;  %v18512_v43 = vld [vmem:[#allocation62_spill] sm:$0xff]  ;;  %v4276_v53 = vadd.f32 %v15778_v19, %v3917_v20  ;;  %v4280_v38 = vadd.f32 %v15826_v25, %v3921_v21 }
 0x254   : > { %v12699_v4 = vpop.f32.mrf.mxu0  ;;  %v15917_v61 = vadd.f32 %v18510_v17, %v18509_v35  ;;  %v15921_v39 = vadd.f32 %v18512_v43, %v18511_v11  ;;  %v18513_v47 = vld [vmem:[#allocation64_spill] sm:$0xff]  ;;  %v18514_v2 = vld [vmem:[#allocation65_spill] sm:$0xff]  ;;  %v18515_v32 = vld [vmem:[#allocation66_spill] sm:$0xff]  ;;  %v4284_v25 = vadd.f32 %v4243_v54, %v3925_v16 }
 0x255   : > { %v5453_v12 = vadd.f32 %v12699_v4, %v4983_v52  ;;  %v15924_v26 = vadd.f32 %v18513_v47, %v4268_v46  ;;  %v15929_v52 = vadd.f32 %v18515_v32, %v18514_v2  ;;  %v18516_v34 = vld [vmem:[#allocation67_spill] sm:$0xff]  ;;  %v18517_v24 = vld [vmem:[#allocation68_spill] sm:$0xff]  ;;  %v18518_v44 = vld [vmem:[#allocation69_spill] sm:$0xff]  ;;  %v15962_v2 = vadd.f32 %v15810_v33, %v15795_v1  ;;  %v4969_v32 = vpop.f32.mrf.mxu1 }
 0x256   : > { %v5324_v0 = vpop.f32.mrf.mxu0  ;;  %v15933_v29 = vadd.f32 %v18517_v24, %v18516_v34  ;;  %v18519_v42 = vld [vmem:[#allocation70_spill] sm:$0xff]  ;;  %v18520_v46 = vld [vmem:[#allocation72_spill] sm:$0xff]  ;;  %v18521_v19 = vld [vmem:[#allocation73_spill] sm:$0xff]  ;;  %v15980_v33 = vadd.f32 %v4966_v18, %v15857_v28 }
 0x257   : > { %v5492_v27 = vadd.f32 %v15899_v36, %v5453_v12  ;;  %v5451_v4 = vadd.f32 %v5324_v0, %v4981_v45  ;;  %v15938_v41 = vadd.f32 %v18519_v42, %v18518_v44  ;;  %v15941_v59 = vadd.f32 %v18520_v46, %v4272_v9  ;;  %v18522_v20 = vld [vmem:[#allocation74_spill] sm:$0xff]  ;;  %v18524_v11 = vld [vmem:[#allocation13_spill] sm:$0xff] }
 0x258   : > { %v15945_v56 = vadd.f32 %v18522_v20, %v18521_v19  ;;  %v12700_v35 = vpop.f32.mrf.mxu0  ;;  %v18523_v17 = vld [vmem:[#allocation14_spill] sm:$0xff]  ;;  %v15955_v0 = vadd.f32 %v15780_v7, %v15770_v23  ;;  %v15958_v9 = vadd.f32 %v15790_v55, %v4276_v53  ;;  %v15971_v7 = vadd.f32 %v15839_v51, %v15816_v10 }
 0x259   : > { %v15950_v43 = vadd.f32 %v18524_v11, %v18523_v17  ;;  %v5524_v12 = vmax.f32 %v5492_v27, 0.0  ;;  %v5490_v45 = vadd.f32 %v15899_v36, %v5451_v4  ;;  %v5454_v47 = vadd.f32 %v12700_v35, %v4984_v37  ;;  %v5979_v18 = vld [vmem:[#allocation3 + $0x18] sm:$0xf]  ;;  %v5972_v17 = vld [vmem:[#allocation3 + $0xc] sm:$0xf] }
 0x25a   : > { %v5327_v21 = vpop.f32.mrf.mxu0  ;;  %v15967_v37 = vadd.f32 %v15824_v40, %v15804_v14  ;;  %v15974_v23 = vadd.f32 %v15851_v58, %v4280_v38  ;;  %v15977_v55 = vadd.f32 %v12693_v31, %v15845_v48  ;;  %v15983_v14 = vadd.f32 %v12694_v8, %v15866_v60 }
 0x25b   : > { %v11896_v34 = vpack.c.bf16 %v5524_v12, %v5524_v12  ;;  %v5522_v24 = vmax.f32 %v5490_v45, 0.0  ;;  %v5493_v27 = vadd.f32 %v15899_v36, %v5454_v47  ;;  %v5452_v4 = vadd.f32 %v5327_v21, %v4982_v13 }
 0x25c   : > { %v12703_v1 = vpop.f32.mrf.mxu0  ;;  %v15985_v40 = vadd.f32 %v4969_v32, %v4284_v25 }
 0x25d   : > { %v5668_v16 = vshrl.u32 %v11896_v34, 16  ;;  %v11894_v13 = vpack.c.bf16 %v5522_v24, %v5522_v24  ;;  %v5525_v54 = vmax.f32 %v5493_v27, 0.0  ;;  %v5491_v10 = vadd.f32 %v15899_v36, %v5452_v4 }
 0x25e   : > { %v5457_v51 = vadd.f32 %v12703_v1, %v4987_v49  ;;  %v5340_v58 = vpop.f32.mrf.mxu0  ;;  %v5671_v44 = vshll.u32 %v11896_v34, 16 }
 0x25f   : > { %v5670_v53 = vrot.slane %v5668_v16, 7  ;;  %v5651_v48 = vshrl.u32 %v11894_v13, 16  ;;  %v11897_v31 = vpack.c.bf16 %v5525_v54, %v5525_v54  ;;  %v5654_v42 = vshll.u32 %v11894_v13, 16 }
 0x260   : > { %v5523_v60 = vmax.f32 %v5491_v10, 0.0  ;;  %v5496_v8 = vadd.f32 %v15899_v36, %v5457_v51  ;;  %v5455_v46 = vadd.f32 %v5340_v58, %v15876_v50  ;;  %v12704_v19 = vpop.f32.mrf.mxu0  ;;  %v5983_v50 = vld [vmem:[#allocation3 + $0x20] sm:$0x1] }
 0x261   : > { %v5673_v49 = vor.u32 %v5671_v44, %v5670_v53  ;;  %v5674_v20 = vrot.slane %v5670_v53, 4  ;;  %v5653_v38 = vrot.slane %v5651_v48, 7  ;;  %v5676_v35 = vshrl.u32 %v11897_v31, 16 }
 0x262   : > { %v5679_v11 = vshll.u32 %v11897_v31, 16  ;;  %v11895_v12 = vpack.c.bf16 %v5523_v60, %v5523_v60  ;;  %v5528_v45 = vmax.f32 %v5496_v8, 0.0  ;;  %v5494_v47 = vadd.f32 %v15899_v36, %v5455_v46  ;;  %v5343_v25 = vpop.f32.mrf.mxu0  ;;  %v5976_v46 = vld [vmem:[#allocation3 + $0x14] sm:$0x1] }
 0x263   : > { %v5980_v21 = vsel %vm15990_vm6, %v5673_v49, %v5979_v18  ;;  %v5656_v32 = vor.u32 %v5654_v42, %v5653_v38  ;;  %v5657_v34 = vrot.slane %v5653_v38, 4  ;;  %v5678_v24 = vrot.slane %v5676_v35, 7 }
 0x264   : > { %5981 = vst [vmem:[#allocation3 + $0x18] sm:$0xf] %v5980_v21  ;;  %v5659_v27 = vshrl.u32 %v11895_v12, 16  ;;  %v5662_v4 = vshll.u32 %v11895_v12, 16  ;;  %v11900_v1 = vpack.c.bf16 %v5528_v45, %v5528_v45  ;;  %v5526_v16 = vmax.f32 %v5494_v47, 0.0  ;;  %v12707_v13 = vpop.f32.mrf.mxu0 }
 0x265   : > { %v5973_v54 = vsel %vm15990_vm6, %v5656_v32, %v5972_v17  ;;  %v5681_v10 = vor.u32 %v5679_v11, %v5678_v24  ;;  %v5683_v51 = vrot.slane %v5678_v24, 4  ;;  %v5458_v58 = vadd.f32 %v12704_v19, %v15880_v57  ;;  %v5993_v12 = vld [vmem:[#allocation3 + $0x30] sm:$0xf] }
 0x266   : > { %5974 = vst [vmem:[#allocation3 + $0xc] sm:$0xf] %v5973_v54  ;;  %v5661_v53 = vrot.slane %v5659_v27, 7  ;;  %v5702_v44 = vshrl.u32 %v11900_v1, 16  ;;  %v5705_v48 = vshll.u32 %v11900_v1, 16  ;;  %v11898_v31 = vpack.c.bf16 %v5526_v16, %v5526_v16  ;;  %v5356_v18 = vpop.f32.mrf.mxu0 }
 0x267   : > { %v5682_v60 = vsel %vm13683_vm12, %v5674_v20, %v5681_v10  ;;  %v5984_v8 = vsel %vm15501_vm2, %v5683_v51, %v5983_v50  ;;  %v5497_v49 = vadd.f32 %v15899_v36, %v5458_v58  ;;  %v5456_v38 = vadd.f32 %v5343_v25, %v15883_v15 }
 0x268   : > { %5982 = vst [vmem:[#allocation3 + $0x1c] sm:$0xf] %v5682_v60  ;;  %5985 = vst [vmem:[#allocation3 + $0x20] sm:$0x1] %v5984_v8  ;;  %v5664_v57 = vor.u32 %v5662_v4, %v5661_v53  ;;  %v5666_v19 = vrot.slane %v5661_v53, 4  ;;  %v5704_v35 = vrot.slane %v5702_v44, 7  ;;  %v12708_v11 = vpop.f32.mrf.mxu0  ;;  %v5461_v21 = vadd.f32 %v12707_v13, %v15889_v62 }
 0x269   : > { %v5685_v17 = vshrl.u32 %v11898_v31, 16  ;;  %v5688_v45 = vshll.u32 %v11898_v31, 16  ;;  %v5529_v47 = vmax.f32 %v5497_v49, 0.0  ;;  %v5495_v20 = vadd.f32 %v15899_v36, %v5456_v38  ;;  %v5986_v62 = vld [vmem:[#allocation3 + $0x24] sm:$0xf] }
 0x26a   : > { %v5665_v32 = vsel %vm13683_vm12, %v5657_v34, %v5664_v57  ;;  %v5977_v15 = vsel %vm15501_vm2, %v5666_v19, %v5976_v46  ;;  %v5707_v25 = vor.u32 %v5705_v48, %v5704_v35  ;;  %v5708_v24 = vrot.slane %v5704_v35, 4  ;;  %v5359_v50 = vpop.f32.mrf.mxu0  ;;  %v5997_v38 = vld [vmem:[#allocation3 + $0x38] sm:$0x1] }
 0x26b   : > { %5975 = vst [vmem:[#allocation3 + $0x10] sm:$0xf] %v5665_v32  ;;  %5978 = vst [vmem:[#allocation3 + $0x14] sm:$0x1] %v5977_v15  ;;  %v5687_v27 = vrot.slane %v5685_v17, 7  ;;  %v11901_v4 = vpack.c.bf16 %v5529_v47, %v5529_v47  ;;  %v5527_v1 = vmax.f32 %v5495_v20, 0.0  ;;  %v5500_v16 = vadd.f32 %v15899_v36, %v5461_v21 }
 0x26c   : > { %v5994_v54 = vsel %vm15990_vm6, %v5707_v25, %v5993_v12  ;;  %v5459_v13 = vadd.f32 %v5356_v18, %v15893_v63  ;;  %v5462_v34 = vadd.f32 %v12708_v11, %v15905_v22  ;;  %v5460_v10 = vadd.f32 %v5359_v50, %v15908_v5  ;;  %v12711_v51 = vpop.f32.mrf.mxu0 }
 0x26d   : > { %5995 = vst [vmem:[#allocation3 + $0x30] sm:$0xf] %v5994_v54  ;;  %v5690_v58 = vor.u32 %v5688_v45, %v5687_v27  ;;  %v5691_v53 = vrot.slane %v5687_v27, 4  ;;  %v5710_v44 = vshrl.u32 %v11901_v4, 16  ;;  %v5713_v48 = vshll.u32 %v11901_v4, 16 }
 0x26e   : > { %v11899_v31 = vpack.c.bf16 %v5527_v1, %v5527_v1  ;;  %v5532_v60 = vmax.f32 %v5500_v16, 0.0  ;;  %v5498_v8 = vadd.f32 %v15899_v36, %v5459_v13  ;;  %v5501_v46 = vadd.f32 %v15899_v36, %v5462_v34  ;;  %v5372_v49 = vpop.f32.mrf.mxu0  ;;  %v5990_v27 = vld [vmem:[#allocation3 + $0x2c] sm:$0x1]  ;;  %v6007_v13 = vld [vmem:[#allocation3 + $0x48] sm:$0xf] }
 0x26f   : > { %v5987_v63 = vsel %vm15990_vm6, %v5690_v58, %v5986_v62  ;;  %v5712_v18 = vrot.slane %v5710_v44, 7  ;;  %v5499_v22 = vadd.f32 %v15899_v36, %v5460_v10  ;;  %v5465_v5 = vadd.f32 %v12711_v51, %v15912_v3 }
 0x270   : > { %5988 = vst [vmem:[#allocation3 + $0x24] sm:$0xf] %v5987_v63  ;;  %v5693_v57 = vshrl.u32 %v11899_v31, 16  ;;  %v5696_v19 = vshll.u32 %v11899_v31, 16  ;;  %v11904_v35 = vpack.c.bf16 %v5532_v60, %v5532_v60  ;;  %v5530_v17 = vmax.f32 %v5498_v8, 0.0  ;;  %v12712_v11 = vpop.f32.mrf.mxu0 }
 0x271   : > { %v5715_v12 = vor.u32 %v5713_v48, %v5712_v18  ;;  %v5717_v45 = vrot.slane %v5712_v18, 4  ;;  %v5533_v47 = vmax.f32 %v5501_v46, 0.0  ;;  %v5531_v20 = vmax.f32 %v5499_v22, 0.0  ;;  %v6000_v63 = vld [vmem:[#allocation3 + $0x3c] sm:$0xf] }
 0x272   : > { %v5695_v21 = vrot.slane %v5693_v57, 7  ;;  %v5736_v32 = vshrl.u32 %v11904_v35, 16  ;;  %v5739_v15 = vshll.u32 %v11904_v35, 16  ;;  %v11902_v25 = vpack.c.bf16 %v5530_v17, %v5530_v17  ;;  %v5375_v10 = vpop.f32.mrf.mxu0  ;;  %v6004_v35 = vld [vmem:[#allocation3 + $0x44] sm:$0x1] }
 0x273   : > { %v5716_v50 = vsel %vm13683_vm12, %v5708_v24, %v5715_v12  ;;  %v5998_v3 = vsel %vm15501_vm2, %v5717_v45, %v5997_v38  ;;  %v11905_v4 = vpack.c.bf16 %v5533_v47, %v5533_v47  ;;  %v11903_v1 = vpack.c.bf16 %v5531_v20, %v5531_v20 }
 0x274   : > { %5996 = vst [vmem:[#allocation3 + $0x34] sm:$0xf] %v5716_v50  ;;  %5999 = vst [vmem:[#allocation3 + $0x38] sm:$0x1] %v5998_v3  ;;  %v5698_v16 = vor.u32 %v5696_v19, %v5695_v21  ;;  %v5700_v54 = vrot.slane %v5695_v21, 4  ;;  %v5738_v62 = vrot.slane %v5736_v32, 7  ;;  %v5504_v17 = vadd.f32 %v15899_v36, %v5465_v5  ;;  %v12715_v45 = vpop.f32.mrf.mxu0 }
 0x275   : > { %v5719_v34 = vshrl.u32 %v11902_v25, 16  ;;  %v5722_v51 = vshll.u32 %v11902_v25, 16  ;;  %v5744_v58 = vshrl.u32 %v11905_v4, 16  ;;  %v5747_v44 = vshll.u32 %v11905_v4, 16  ;;  %v6011_v19 = vld [vmem:[#allocation3 + $0x50] sm:$0x1] }
 0x276   : > { %v5727_v48 = vshrl.u32 %v11903_v1, 16  ;;  %v5699_v24 = vsel %vm13683_vm12, %v5691_v53, %v5698_v16  ;;  %v5991_v31 = vsel %vm15501_vm2, %v5700_v54, %v5990_v27  ;;  %v5741_v60 = vor.u32 %v5739_v15, %v5738_v62  ;;  %v6086_v27 = vld [vmem:[#allocation3 + $0xc] sm:$0xf]  ;;  %v16051_v54 = vpop.f32.mrf.mxu0 }
 0x277   : > { %v5742_v8 = vrot.slane %v5738_v62, 4  ;;  %5989 = vst [vmem:[#allocation3 + $0x28] sm:$0xf] %v5699_v24  ;;  %5992 = vst [vmem:[#allocation3 + $0x2c] sm:$0x1] %v5991_v31  ;;  %v5721_v46 = vrot.slane %v5719_v34, 7  ;;  %v5463_v53 = vadd.f32 %v5372_v49, %v15917_v61  ;;  %v5466_v12 = vadd.f32 %v12712_v11, %v15921_v39 }
 0x278   : > { %v5746_v18 = vrot.slane %v5744_v58, 7  ;;  %v5729_v22 = vrot.slane %v5727_v48, 7  ;;  %v5730_v38 = vshll.u32 %v11903_v1, 16  ;;  %v6008_v57 = vsel %vm15990_vm6, %v5741_v60, %v6007_v13  ;;  %v6021_v31 = vld [vmem:[#allocation3 + $0x60] sm:$0xf] }
 0x279   : > { %6009 = vst [vmem:[#allocation3 + $0x48] sm:$0xf] %v6008_v57  ;;  %v5724_v47 = vor.u32 %v5722_v51, %v5721_v46  ;;  %v5725_v20 = vrot.slane %v5721_v46, 4  ;;  %v5536_v50 = vmax.f32 %v5504_v17, 0.0  ;;  %v5502_v3 = vadd.f32 %v15899_v36, %v5463_v53  ;;  %v12716_v57 = vpop.f32.mrf.mxu0 }
 0x27a   : > { %v5749_v21 = vor.u32 %v5747_v44, %v5746_v18  ;;  %v5751_v32 = vrot.slane %v5746_v18, 4  ;;  %v5732_v15 = vor.u32 %v5730_v38, %v5729_v22  ;;  %v5734_v25 = vrot.slane %v5729_v22, 4 }
 0x27b   : > { %v6001_v4 = vsel %vm15990_vm6, %v5724_v47, %v6000_v63  ;;  %v5505_v49 = vadd.f32 %v15899_v36, %v5466_v12  ;;  %v11908_v1 = vpack.c.bf16 %v5536_v50, %v5536_v50  ;;  %v5534_v16 = vmax.f32 %v5502_v3, 0.0  ;;  %v16057_v63 = vld [vmem:[#allocation3 + $0x10] sm:$0xf]  ;;  %v13304_v3 = vld [vmem:[#allocation4 + $0xf0] sm:$0xff]  }
 0x27c   : > { %v5750_v61 = vsel %vm13683_vm12, %v5742_v8, %v5749_v21  ;;  %v6012_v39 = vsel %vm15501_vm2, %v5751_v32, %v6011_v19  ;;  %6002 = vst [vmem:[#allocation3 + $0x3c] sm:$0xf] %v6001_v4  ;;  %v5733_v5 = vsel %vm13683_vm12, %v5725_v20, %v5732_v15  ;;  %v6005_v11 = vsel %vm15501_vm2, %v5734_v25, %v6004_v35  ;;  %v6014_v21 = vld [vmem:[#allocation3 + $0x54] sm:$0xf] }
 0x27d   : > { %6010 = vst [vmem:[#allocation3 + $0x4c] sm:$0xf] %v5750_v61  ;;  %6013 = vst [vmem:[#allocation3 + $0x50] sm:$0x1] %v6012_v39  ;;  %v5537_v62 = vmax.f32 %v5505_v49, 0.0  ;;  %v5464_v13 = vadd.f32 %v5375_v10, %v15924_v26  ;;  %v5469_v34 = vadd.f32 %v12715_v45, %v15929_v52  ;;  %v6173_v51 = vshrl.u32 %v6086_v27, 16 }
 0x27e   : > { %6003 = vst [vmem:[#allocation3 + $0x40] sm:$0xf] %v5733_v5  ;;  %6006 = vst [vmem:[#allocation3 + $0x44] sm:$0x1] %v6005_v11  ;;  %v5770_v58 = vshrl.u32 %v11908_v1, 16  ;;  %v5773_v44 = vshll.u32 %v11908_v1, 16  ;;  %v11906_v48 = vpack.c.bf16 %v5534_v16, %v5534_v16  ;;  %v11616_v50 = vcombine.low %v6086_v27, %v16057_v63  ;;  %v5391_v11 = vpop.f32.mrf.mxu0 }
 0x27f   : > { %v6176_v24 = vshll.u32 %v6086_v27, 16  ;;  %v11909_v60 = vpack.c.bf16 %v5537_v62, %v5537_v62  ;;  %v5503_v8 = vadd.f32 %v15899_v36, %v5464_v13  ;;  %v5508_v46 = vadd.f32 %v15899_v36, %v5469_v34  ;;  %v6088_v52 = vld [vmem:[#allocation3 + $0x18] sm:$0xf]  ;;  %v6025_v49 = vld [vmem:[#allocation3 + $0x68] sm:$0x1] }
 0x280   : > { %v16059_v18 = vrot.slane %v6173_v51, 4  ;;  %v5772_v22 = vrot.slane %v5770_v58, 7  ;;  %v5753_v38 = vshrl.u32 %v11906_v48, 16  ;;  %v5756_v26 = vshll.u32 %v11906_v48, 16  ;;  %12794 = vmatmul.mubr.bf16.vlgmr.msra.gmra.mxu0 %v11616_v50  ;;  %v16067_v34 = vld [vmem:[#allocation3 + $0x1c] sm:$0xf] }
 0x281   : > { %v16061_v10 = vrot.slane %v6176_v24, 5  ;;  %v5778_v19 = vshrl.u32 %v11909_v60, 16  ;;  %v5781_v35 = vshll.u32 %v11909_v60, 16  ;;  %v5535_v17 = vmax.f32 %v5503_v8, 0.0  ;;  %12874 = vmatpush3.bf16.msra.mxu0 %v15885_v6  ;;  %v13307_v48 = vld [vmem:[#allocation4 + $0xe8] sm:$0xff]  }
 0x282   : > { %v5540_v53 = vmax.f32 %v5508_v46, 0.0  ;;  %v5775_v12 = vor.u32 %v5773_v44, %v5772_v22  ;;  %v5776_v45 = vrot.slane %v5772_v22, 4  ;;  %v5755_v47 = vrot.slane %v5753_v38, 7  ;;  %12875 = vmatprep.subr.bf16.mxu0 %v13304_v3  ;;  %v6018_v46 = vld [vmem:[#allocation3 + $0x5c] sm:$0x1] }
 0x283   : > { %v6186_v20 = vshrl.u32 %v16057_v63, 16  ;;  %v5780_v32 = vrot.slane %v5778_v19, 7  ;;  %v11907_v15 = vpack.c.bf16 %v5535_v17, %v5535_v17  ;;  %v6197_v5 = vshrl.u32 %v6088_v52, 16  ;;  %v6035_v38 = vld [vmem:[#allocation3 + $0x78] sm:$0xf] }
 0x284   : > { %v11912_v25 = vpack.c.bf16 %v5540_v53, %v5540_v53  ;;  %v6022_v4 = vsel %vm15990_vm6, %v5775_v12, %v6021_v31  ;;  %v5758_v61 = vor.u32 %v5756_v26, %v5755_v47  ;;  %v5759_v39 = vrot.slane %v5755_v47, 4  ;;  %v6090_v47 = vld [vmem:[#allocation3 + $0x24] sm:$0xf] }
 0x285   : > { %6023 = vst [vmem:[#allocation3 + $0x60] sm:$0xf] %v6022_v4  ;;  %v5783_v1 = vor.u32 %v5781_v35, %v5780_v32  ;;  %v5785_v16 = vrot.slane %v5780_v32, 4  ;;  %v5761_v62 = vshrl.u32 %v11907_v15, 16  ;;  %v5764_v13 = vshll.u32 %v11907_v15, 16  ;;  %v12719_v35 = vpop.f32.mrf.mxu0  ;;  %12876 = vmatpush3.bf16.msra.mxu0 %v13304_v3 }
 0x286   : > { %v6015_v27 = vsel %vm15990_vm6, %v5758_v61, %v6014_v21  ;;  %v5804_v51 = vshrl.u32 %v11912_v25, 16  ;;  %v5807_v58 = vshll.u32 %v11912_v25, 16  ;;  %v16071_v44 = vrot.slane %v6197_v5, 4  ;;  %v16091_v25 = vld [vmem:[#allocation3 + $0x28] sm:$0xf]  ;;  %12877 = vmatprep.subr.bf16.mxu0 %v13307_v48 }
 0x287   : > { %6016 = vst [vmem:[#allocation3 + $0x54] sm:$0xf] %v6015_v27  ;;  %v5784_v24 = vsel %vm13683_vm12, %v5776_v45, %v5783_v1  ;;  %v6026_v31 = vsel %vm15501_vm2, %v5785_v16, %v6025_v49  ;;  %v5763_v60 = vrot.slane %v5761_v62, 7  ;;  %v6200_v8 = vshll.u32 %v6088_v52, 16 }
 0x288   : > { %6024 = vst [vmem:[#allocation3 + $0x64] sm:$0xf] %v5784_v24  ;;  %6027 = vst [vmem:[#allocation3 + $0x68] sm:$0x1] %v6026_v31  ;;  %v16078_v22 = vrot.slane %v5804_v51, 7  ;;  %v6210_v26 = vshrl.u32 %v16067_v34, 16  ;;  %v11617_v6 = vcombine.low %v6088_v52, %v16067_v34  ;;  %v5467_v19 = vadd.f32 %v16051_v54, %v15933_v29 }
 0x289   : > { %v5766_v17 = vor.u32 %v5764_v13, %v5763_v60  ;;  %v5768_v53 = vrot.slane %v5763_v60, 4  ;;  %v16084_v12 = vrot.slane %v6200_v8, 5  ;;  %v5470_v45 = vadd.f32 %v12716_v57, %v15938_v41  ;;  %v13309_v29 = vld [vmem:[#allocation4 + $0xe0] sm:$0xff]   ;;  %v16107_v13 = vpop.f32.mrf.mxu0  ;;  %12878 = vmatpush3.bf16.msra.mxu0 %v13307_v48  ;;  %v13312_v31 = vld [vmem:[#allocation4 + $0xd8] sm:$0xff]  }
 0x28a   : > { %v5809_v21 = vor.u32 %v5807_v58, %v16078_v22  ;;  %v5810_v32 = vrot.slane %v16078_v22, 4  ;;  %12797 = vmatprep.mubr.bf16.mxu0 %v11617_v6  ;;  %v5506_v15 = vadd.f32 %v15899_v36, %v5467_v19  ;;  %v5468_v52 = vadd.f32 %v5391_v11, %v15941_v59  ;;  %12879 = vmatprep.subr.bf16.mxu0 %v13309_v29  ;;  %v6028_v6 = vld [vmem:[#allocation3 + $0x6c] sm:$0xf] }
 0x28b   : > { %v5767_v54 = vsel %vm13683_vm12, %v5759_v39, %v5766_v17  ;;  %v6019_v41 = vsel %vm15501_vm2, %v5768_v53, %v6018_v46  ;;  %v5509_v57 = vadd.f32 %v15899_v36, %v5470_v45  ;;  %v5473_v50 = vadd.f32 %v12719_v35, %v15945_v56  ;;  %v6039_v45 = vld [vmem:[#allocation3 + $0x80] sm:$0x1] }
 0x28c   : > { %6017 = vst [vmem:[#allocation3 + $0x58] sm:$0xf] %v5767_v54  ;;  %6020 = vst [vmem:[#allocation3 + $0x5c] sm:$0x1] %v6019_v41  ;;  %v6036_v59 = vsel %vm15990_vm6, %v5809_v21, %v6035_v38  ;;  %v5538_v4 = vmax.f32 %v5506_v15, 0.0  ;;  %v5507_v3 = vadd.f32 %v15899_v36, %v5468_v52  ;;  %v6221_v61 = vshrl.u32 %v6090_v47, 16  ;;  %v16114_v52 = vpop.f32.mrf.mxu0 }
 0x28d   : > { %6037 = vst [vmem:[#allocation3 + $0x78] sm:$0xf] %v6036_v59  ;;  %v5541_v49 = vmax.f32 %v5509_v57, 0.0  ;;  %v5512_v39 = vadd.f32 %v15899_v36, %v5473_v50  ;;  %v6224_v5 = vshll.u32 %v6090_v47, 16  ;;  %v6234_v11 = vshrl.u32 %v16091_v25, 16  ;;  %12880 = vmatpush3.bf16.msra.mxu0 %v13309_v29 }
 0x28e   : > { %v11910_v1 = vpack.c.bf16 %v5538_v4, %v5538_v4  ;;  %v5539_v16 = vmax.f32 %v5507_v3, 0.0  ;;  %v16104_v56 = vrot.slane %v6221_v61, 4  ;;  %v11618_v62 = vcombine.low %v6090_v47, %v16091_v25  ;;  %v6133_v57 = vld [vmem:[#allocation3 + $0x14] sm:$0x1]  ;;  %12881 = vmatprep.subr.bf16.mxu0 %v13312_v31 }
 0x28f   : > { %v11913_v27 = vpack.c.bf16 %v5541_v49, %v5541_v49  ;;  %v5544_v51 = vmax.f32 %v5512_v39, 0.0  ;;  %v16109_v58 = vrot.slane %v6224_v5, 5  ;;  %v6179_v24 = vor.u32 %v16061_v10, %v16059_v18  ;;  %v13314_v18 = vld [vmem:[#allocation4 + $0xd0] sm:$0xff]   ;;  %v6032_v61 = vld [vmem:[#allocation3 + $0x74] sm:$0x1] }
 0x290   : > { %v5787_v60 = vshrl.u32 %v11910_v1, 16  ;;  %v5790_v8 = vshll.u32 %v11910_v1, 16  ;;  %v11911_v46 = vpack.c.bf16 %v5539_v16, %v5539_v16  ;;  %12798 = vmatmul.mubr.bf16.gmra.mxu0 %v11618_v62  ;;  %v6182_v38 = vshll.u32 %v16057_v63, 16  ;;  %v6049_v49 = vld [vmem:[#allocation3 + $0x90] sm:$0xf] }
 0x291   : > { %v5812_v19 = vshrl.u32 %v11913_v27, 16  ;;  %v5815_v35 = vshll.u32 %v11913_v27, 16  ;;  %v11916_v17 = vpack.c.bf16 %v5544_v51, %v5544_v51  ;;  %v6180_v48 = vrot.slane %v6179_v24, 4  ;;  %v6092_v27 = vld [vmem:[#allocation3 + $0x30] sm:$0xf]  ;;  %12882 = vmatpush3.bf16.msra.mxu0 %v13312_v31 }
 0x292   : > { %v5789_v53 = vrot.slane %v5787_v60, 7  ;;  %v5795_v47 = vshrl.u32 %v11911_v46, 16  ;;  %v5798_v21 = vshll.u32 %v11911_v46, 16  ;;  %v6184_v15 = vrot.slane %v6182_v38, 5  ;;  %v16124_v60 = vld [vmem:[#allocation3 + $0x34] sm:$0xf]  ;;  %12883 = vmatprep.subr.bf16.mxu0 %v13314_v18 }
 0x293   : > { %v5814_v10 = vrot.slane %v5812_v19, 7  ;;  %v5838_v54 = vshrl.u32 %v11916_v17, 16  ;;  %v5841_v41 = vshll.u32 %v11916_v17, 16  ;;  %v6188_v50 = vrot.slane %v6186_v20, 4 }
 0x294   : > { %v5792_v59 = vor.u32 %v5790_v8, %v5789_v53  ;;  %v5793_v4 = vrot.slane %v5789_v53, 4  ;;  %v5797_v3 = vrot.slane %v5795_v47, 7  ;;  %v6185_v5 = vsel %vm13667_vm11, %v6180_v48, %v6184_v15  ;;  %v5407_v8 = vpop.f32.mrf.mxu0 }
 0x295   : > { %v5817_v1 = vor.u32 %v5815_v35, %v5814_v10  ;;  %v5819_v16 = vrot.slane %v5814_v10, 4  ;;  %v16120_v29 = vrot.slane %v5838_v54, 7  ;;  %v6189_v62 = vor.u32 %v6188_v50, %v6184_v15  ;;  %v13317_v35 = vld [vmem:[#allocation4 + $0xc8] sm:$0xff]   ;;  %v6094_v50 = vld [vmem:[#allocation3 + $0x3c] sm:$0xf]  ;;  %12884 = vmatpush3.bf16.msra.mxu0 %v13314_v18 }
 0x296   : > { %v6029_v51 = vsel %vm15990_vm6, %v5792_v59, %v6028_v6  ;;  %v5800_v63 = vor.u32 %v5798_v21, %v5797_v3  ;;  %v5802_v20 = vrot.slane %v5797_v3, 4  ;;  %v6192_v24 = vshll.u32 %v6133_v57, 16  ;;  %v12723_v57 = vpop.f32.mrf.mxu0  ;;  %12885 = vmatprep.subr.bf16.mxu0 %v13317_v35 }
 0x297   : > { %6030 = vst [vmem:[#allocation3 + $0x6c] sm:$0xf] %v6029_v51  ;;  %v5818_v46 = vsel %vm13683_vm12, %v5810_v32, %v5817_v1  ;;  %v6040_v38 = vsel %vm15501_vm2, %v5819_v16, %v6039_v45  ;;  %v5843_v19 = vor.u32 %v5841_v41, %v16120_v29  ;;  %v5844_v6 = vrot.slane %v16120_v29, 4  ;;  %v6134_v32 = vld [vmem:[#allocation3 + $0x20] sm:$0x1] }
 0x298   : > { %6038 = vst [vmem:[#allocation3 + $0x7c] sm:$0xf] %v5818_v46  ;;  %6041 = vst [vmem:[#allocation3 + $0x80] sm:$0x1] %v6040_v38  ;;  %v5801_v31 = vsel %vm13683_vm12, %v5793_v4, %v5800_v63  ;;  %v6033_v22 = vsel %vm15501_vm2, %v5802_v20, %v6032_v61  ;;  %v6190_v17 = vrot.slane %v6189_v62, 4  ;;  %v6194_v48 = vrot.slane %v6192_v24, 5 }
 0x299   : > { %6031 = vst [vmem:[#allocation3 + $0x70] sm:$0xf] %v5801_v31  ;;  %6034 = vst [vmem:[#allocation3 + $0x74] sm:$0x1] %v6033_v22  ;;  %v6050_v53 = vsel %vm15990_vm6, %v5843_v19, %v6049_v49  ;;  %v6245_v45 = vshrl.u32 %v6092_v27, 16  ;;  %v6248_v47 = vshll.u32 %v6092_v27, 16  ;;  %v11619_v10 = vcombine.low %v6092_v27, %v16124_v60  ;;  %12886 = vmatpush3.bf16.msra.mxu0 %v13317_v35 }
 0x29a   : > { %v6258_v21 = vshrl.u32 %v16124_v60, 16  ;;  %6051 = vst [vmem:[#allocation3 + $0x90] sm:$0xf] %v6050_v53  ;;  %v6195_v15 = vsel %vm13667_vm11, %v6190_v17, %v6194_v48  ;;  %v5471_v54 = vadd.f32 %v16107_v13, %v15950_v43  ;;  %v6203_v41 = vor.u32 %v16084_v12, %v16071_v44  ;;  %v13295_v49 = vld [vmem:[#allocation4 + $0xb0] sm:$0xff]   ;;  %v13319_v12 = vld [vmem:[#allocation4 + $0xc0] sm:$0xff]   ;;  %v13410_v27 = vld [vmem:[#allocation4 + $0xb8] sm:$0xff]  }
 0x29b   : > { %v11592_v59 = vcombine.low %v6185_v5, %v6195_v15  ;;  %v16148_v4 = vrot.slane %v6245_v45, 4  ;;  %v16150_v3 = vrot.slane %v6248_v47, 5  ;;  %v6206_v61 = vshll.u32 %v16067_v34, 16  ;;  %12801 = vmatprep.mubr.bf16.mxu0 %v11619_v10  ;;  %v16160_v20 = vld [vmem:[#allocation3 + $0x40] sm:$0xf]  ;;  %12887 = vmatprep.subr.bf16.mxu0 %v13319_v12  ;;  %v16171_v31 = vld [vmem:[#allocation4 + $0x178] sm:$0xff]   ;;  %v16175_v15 = vpop.f32.mrf.mxu0 }
 0x29c   : > { %v5510_v1 = vadd.f32 %v15899_v36, %v5471_v54  ;;  %v6204_v16 = vrot.slane %v6203_v41, 4  ;;  %v6212_v43 = vrot.slane %v6210_v26, 4  ;;  %v6216_v44 = vshll.u32 %v6134_v32, 16 }
 0x29d   : > { %12746 = vmatmul.mubr.bf16.vlgmr.msra.gmra.mxu1 %v11592_v59  ;;  %v6208_v13 = vrot.slane %v6206_v61, 5  ;;  %v5474_v18 = vadd.f32 %v16114_v52, %v15955_v0  ;;  %v5472_v5 = vadd.f32 %v5407_v8, %v15958_v9  ;;  %v5477_v62 = vadd.f32 %v12723_v57, %v15962_v2  ;;  %v13298_v9 = vld [vmem:[#allocation4 + $0xa8] sm:$0xff]   ;;  %12888 = vmatpush3.bf16.msra.mxu0 %v13319_v12  ;;  %v13301_v57 = vld [vmem:[#allocation4 + $0xa0] sm:$0xff]  }
 0x29e   : > { %12826 = vmatpush3.bf16.msra.mxu1 %v13410_v27  ;;  %v5542_v51 = vmax.f32 %v5510_v1, 0.0  ;;  %v6218_v63 = vrot.slane %v6216_v44, 5  ;;  %v6269_v24 = vshrl.u32 %v6094_v50, 16  ;;  %v6272_v34 = vshll.u32 %v6094_v50, 16  ;;  %v6042_v61 = vld [vmem:[#allocation3 + $0x84] sm:$0xf]  ;;  %12969 = vmatprep.subr.bf16.mxu0 %v16171_v31  ;;  %v16185_v27 = vpop.f32.mrf.mxu0 }
 0x29f   : > { %v6209_v26 = vsel %vm13667_vm11, %v6204_v16, %v6208_v13  ;;  %v6213_v46 = vor.u32 %v6212_v43, %v6208_v13  ;;  %v5513_v38 = vadd.f32 %v15899_v36, %v5474_v18  ;;  %v5511_v0 = vadd.f32 %v15899_v36, %v5472_v5  ;;  %12827 = vmatprep.subr.bf16.mxu1 %v13295_v49  ;;  %v16183_v13 = vld [vmem:[#allocation3 + $0x2c] sm:$0x1] }
 0x2a0   : > { %v11914_v2 = vpack.c.bf16 %v5542_v51, %v5542_v51  ;;  %v5516_v52 = vadd.f32 %v15899_v36, %v5477_v62  ;;  %v16167_v8 = vrot.slane %v6269_v24, 4  ;;  %v16169_v19 = vrot.slane %v6272_v34, 5 }
 0x2a1   : > { %v6214_v35 = vrot.slane %v6213_v46, 4  ;;  %v5545_v22 = vmax.f32 %v5513_v38, 0.0  ;;  %v5543_v17 = vmax.f32 %v5511_v0, 0.0  ;;  %v6282_v48 = vshrl.u32 %v16160_v20, 16  ;;  %v6046_v38 = vld [vmem:[#allocation3 + $0x8c] sm:$0x1] }
 0x2a2   : > { %v5821_v32 = vshrl.u32 %v11914_v2, 16  ;;  %v5824_v53 = vshll.u32 %v11914_v2, 16  ;;  %v5548_v45 = vmax.f32 %v5516_v52, 0.0  ;;  %v11620_v47 = vcombine.low %v6094_v50, %v16160_v20  ;;  %12828 = vmatpush3.bf16.msra.mxu1 %v13295_v49  ;;  %v6108_v42 = vld [vmem:[#allocation3 + $0x90] sm:$0xf] }
 0x2a3   : > { %v6219_v36 = vsel %vm13667_vm11, %v6214_v35, %v6218_v63  ;;  %v11917_v10 = vpack.c.bf16 %v5545_v22, %v5545_v22  ;;  %v11915_v54 = vpack.c.bf16 %v5543_v17, %v5543_v17  ;;  %v6227_v41 = vor.u32 %v16109_v58, %v16104_v56  ;;  %12829 = vmatprep.subr.bf16.mxu1 %v13298_v9  ;;  %v6053_v56 = vld [vmem:[#allocation3 + $0x98] sm:$0x1] }
 0x2a4   : > { %v5823_v59 = vrot.slane %v5821_v32, 7  ;;  %v11593_v1 = vcombine.low %v6209_v26, %v6219_v36  ;;  %v11920_v16 = vpack.c.bf16 %v5548_v45, %v5548_v45  ;;  %12802 = vmatmul.mubr.bf16.gmra.mxu0 %v11620_v47  ;;  %v6230_v50 = vshll.u32 %v16091_v25, 16  ;;  %v13306_v26 = vld [vmem:[#allocation4 + $0x98] sm:$0xff]   ;;  %v6063_v32 = vld [vmem:[#allocation3 + $0xa8] sm:$0xf]  ;;  %v5423_v25 = vpop.f32.mrf.mxu0 }
 0x2a5   : > { %v5846_v49 = vshrl.u32 %v11917_v10, 16  ;;  %v5849_v43 = vshll.u32 %v11917_v10, 16  ;;  %v5829_v44 = vshrl.u32 %v11915_v54, 16  ;;  %v5832_v12 = vshll.u32 %v11915_v54, 16  ;;  %v16198_v54 = vld [vmem:[#allocation3 + $0x4c] sm:$0xf] }
 0x2a6   : > { %v5826_v18 = vor.u32 %v5824_v53, %v5823_v59  ;;  %v5827_v5 = vrot.slane %v5823_v59, 4  ;;  %12749 = vmatprep.mubr.bf16.mxu1 %v11593_v1  ;;  %v5872_v58 = vshrl.u32 %v11920_v16, 16  ;;  %v5875_v62 = vshll.u32 %v11920_v16, 16  ;;  %12830 = vmatpush3.bf16.msra.mxu1 %v13298_v9  ;;  %v6096_v53 = vld [vmem:[#allocation3 + $0x48] sm:$0xf] }
 0x2a7   : > { %v5848_v51 = vrot.slane %v5846_v49, 7  ;;  %v5831_v63 = vrot.slane %v5829_v44, 7  ;;  %v6228_v24 = vrot.slane %v6227_v41, 4  ;;  %v6232_v34 = vrot.slane %v6230_v50, 5  ;;  %12831 = vmatprep.subr.bf16.mxu1 %v13301_v57  ;;  %v13311_v1 = vld [vmem:[#allocation4 + $0x90] sm:$0xff]  }
 0x2a8   : > { %v6043_v46 = vsel %vm15990_vm6, %v5826_v18, %v6042_v61  ;;  %v16189_v0 = vrot.slane %v5872_v58, 7  ;;  %v6236_v2 = vrot.slane %v6234_v11, 4  ;;  %v6240_v52 = vshll.u32 %v16183_v13, 16 }
 0x2a9   : > { %6044 = vst [vmem:[#allocation3 + $0x84] sm:$0xf] %v6043_v46  ;;  %v5851_v35 = vor.u32 %v5849_v43, %v5848_v51  ;;  %v5853_v9 = vrot.slane %v5848_v51, 4  ;;  %v5834_v22 = vor.u32 %v5832_v12, %v5831_v63  ;;  %v5836_v17 = vrot.slane %v5831_v63, 4  ;;  %v16216_v12 = vld [vmem:[#allocation3 + $0x38] sm:$0x1] }
 0x2aa   : > { %v5877_v45 = vor.u32 %v5875_v62, %v16189_v0  ;;  %v5878_v47 = vrot.slane %v16189_v0, 4  ;;  %v6233_v36 = vsel %vm13667_vm11, %v6228_v24, %v6232_v34  ;;  %v6237_v10 = vor.u32 %v6236_v2, %v6232_v34  ;;  %12832 = vmatpush3.bf16.msra.mxu1 %v13301_v57  ;;  %v12727_v62 = vpop.f32.mrf.mxu0  ;;  %v6098_v51 = vld [vmem:[#allocation3 + $0x54] sm:$0xf] }
 0x2ab   : > { %v5852_v11 = vsel %vm13683_vm12, %v5844_v6, %v5851_v35  ;;  %v6054_v41 = vsel %vm15501_vm2, %v5853_v9, %v6053_v56  ;;  %v5835_v59 = vsel %vm13683_vm12, %v5827_v5, %v5834_v22  ;;  %v6047_v61 = vsel %vm15501_vm2, %v5836_v17, %v6046_v38  ;;  %12833 = vmatprep.subr.bf16.mxu1 %v13306_v26  ;;  %v16240_v9 = vld [vmem:[#allocation3 + $0x58] sm:$0xf] }
 0x2ac   : > { %6052 = vst [vmem:[#allocation3 + $0x94] sm:$0xf] %v5852_v11  ;;  %6055 = vst [vmem:[#allocation3 + $0x98] sm:$0x1] %v6054_v41  ;;  %v6064_v29 = vsel %vm15990_vm6, %v5877_v45, %v6063_v32  ;;  %v6238_v57 = vrot.slane %v6237_v10, 4  ;;  %v6242_v6 = vrot.slane %v6240_v52, 5  ;;  %v11621_v43 = vcombine.low %v6096_v53, %v16198_v54 }
 0x2ad   : > { %6045 = vst [vmem:[#allocation3 + $0x88] sm:$0xf] %v5835_v59  ;;  %6048 = vst [vmem:[#allocation3 + $0x8c] sm:$0x1] %v6047_v61  ;;  %v6293_v16 = vshrl.u32 %v6096_v53, 16  ;;  %v6296_v50 = vshll.u32 %v6096_v53, 16  ;;  %v5475_v44 = vadd.f32 %v16175_v15, %v15967_v37  ;;  %v6251_v56 = vor.u32 %v16150_v3, %v16148_v4 }
 0x2ae   : > { %6065 = vst [vmem:[#allocation3 + $0xa8] sm:$0xf] %v6064_v29  ;;  %v6306_v49 = vshrl.u32 %v16198_v54, 16  ;;  %v6243_v18 = vsel %vm13667_vm11, %v6238_v57, %v6242_v6  ;;  %v6254_v58 = vshll.u32 %v16124_v60, 16  ;;  %12834 = vmatpush3.bf16.msra.mxu1 %v13306_v26  ;;  %12805 = vmatprep.mubr.bf16.mxu0 %v11621_v43  ;;  %v16230_v37 = vld [vmem:[%s18301_s2] ss:$0 sm:$0xff]  ;;  %v5478_v38 = vadd.f32 %v16185_v27, %v15971_v7 }
 0x2af   : > { %v16220_v5 = vrot.slane %v6293_v16, 4  ;;  %v11594_v63 = vcombine.low %v6233_v36, %v6243_v18  ;;  %v16225_v24 = vrot.slane %v6296_v50, 5  ;;  %v5514_v15 = vadd.f32 %v16230_v37, %v5475_v44  ;;  %12835 = vmatprep.subr.bf16.mxu1 %v13311_v1  ;;  %v13316_v4 = vld [vmem:[#allocation4 + $0x88] sm:$0xff]   ;;  %v16255_v18 = vld [vmem:[#allocation4 + $0x138] sm:$0xff]  }
 0x2b0   : > { %v6260_v34 = vrot.slane %v6258_v21, 4  ;;  %v6252_v3 = vrot.slane %v6251_v56, 4  ;;  %v6256_v46 = vrot.slane %v6254_v58, 5  ;;  %v6264_v26 = vshll.u32 %v16216_v12, 16  ;;  %v6056_v56 = vld [vmem:[#allocation3 + $0x9c] sm:$0xf] }
 0x2b1   : > { %12750 = vmatmul.mubr.bf16.gmra.mxu1 %v11594_v63  ;;  %v5546_v2 = vmax.f32 %v5514_v15, 0.0  ;;  %v5476_v52 = vadd.f32 %v5423_v25, %v15974_v23  ;;  %v5481_v35 = vadd.f32 %v12727_v62, %v15977_v55  ;;  %v6317_v22 = vshrl.u32 %v6098_v51, 16  ;;  %v13320_v23 = vld [vmem:[#allocation4 + $0x80] sm:$0xff]  }
 0x2b2   : > { %v6257_v60 = vsel %vm13667_vm11, %v6252_v3, %v6256_v46  ;;  %v6261_v21 = vor.u32 %v6260_v34, %v6256_v46  ;;  %v6266_v17 = vrot.slane %v6264_v26, 5  ;;  %v5517_v32 = vadd.f32 %v16230_v37, %v5478_v38  ;;  %12836 = vmatpush3.bf16.msra.mxu1 %v13311_v1  ;;  %v16260_v46 = vld [vmem:[#allocation3 + $0x44] sm:$0x1]  ;;  %v5436_v26 = vpop.f32.mrf.mxu0 }
 0x2b3   : > { %v11918_v53 = vpack.c.bf16 %v5546_v2, %v5546_v2  ;;  %v5515_v7 = vadd.f32 %v16230_v37, %v5476_v52  ;;  %v5520_v27 = vadd.f32 %v16230_v37, %v5481_v35  ;;  %v16247_v45 = vrot.slane %v6317_v22, 4  ;;  %12837 = vmatprep.subr.bf16.mxu1 %v13316_v4  ;;  %v6067_v2 = vld [vmem:[#allocation3 + $0xb0] sm:$0x1] }
 0x2b4   : > { %v6262_v55 = vrot.slane %v6261_v21, 4  ;;  %v5549_v36 = vmax.f32 %v5517_v32, 0.0  ;;  %v6320_v10 = vshll.u32 %v6098_v51, 16  ;;  %v6330_v25 = vshrl.u32 %v16240_v9, 16 }
 0x2b5   : > { %v5855_v11 = vshrl.u32 %v11918_v53, 16  ;;  %v5858_v41 = vshll.u32 %v11918_v53, 16  ;;  %v5547_v59 = vmax.f32 %v5515_v7, 0.0  ;;  %v5552_v61 = vmax.f32 %v5520_v27, 0.0  ;;  %v6077_v27 = vld [vmem:[#allocation3 + $0xc0] sm:$0xf] }
 0x2b6   : > { %v6267_v1 = vsel %vm13667_vm11, %v6262_v55, %v6266_v17  ;;  %v11921_v29 = vpack.c.bf16 %v5549_v36, %v5549_v36  ;;  %v16252_v57 = vrot.slane %v6320_v10, 5  ;;  %v11622_v6 = vcombine.low %v6098_v51, %v16240_v9  ;;  %12838 = vmatpush3.bf16.msra.mxu1 %v13316_v4 }
 0x2b7   : > { %v5857_v16 = vrot.slane %v5855_v11, 7  ;;  %v11595_v50 = vcombine.low %v6257_v60, %v6267_v1  ;;  %v11919_v43 = vpack.c.bf16 %v5547_v59, %v5547_v59  ;;  %v11924_v44 = vpack.c.bf16 %v5552_v61, %v5552_v61  ;;  %12839 = vmatprep.subr.bf16.mxu1 %v13320_v23  ;;  %v16272_v59 = vld [vmem:[#allocation3 + $0x64] sm:$0xf] }
 0x2b8   : > { %v5880_v58 = vshrl.u32 %v11921_v29, 16  ;;  %v5883_v62 = vshll.u32 %v11921_v29, 16  ;;  %12806 = vmatmul.mubr.bf16.gmra.mxu0 %v11622_v6  ;;  %v6275_v63 = vor.u32 %v16169_v19, %v16167_v8  ;;  %v6278_v15 = vshll.u32 %v16160_v20, 16  ;;  %v6060_v19 = vld [vmem:[#allocation3 + $0xa4] sm:$0x1]  ;;  %v12728_v20 = vpop.f32.mrf.mxu0 }
 0x2b9   : > { %v5860_v34 = vor.u32 %v5858_v41, %v5857_v16  ;;  %v5861_v3 = vrot.slane %v5857_v16, 4  ;;  %12753 = vmatprep.mubr.bf16.mxu1 %v11595_v50  ;;  %v5863_v51 = vshrl.u32 %v11919_v43, 16  ;;  %v5866_v4 = vshll.u32 %v11919_v43, 16  ;;  %v6100_v41 = vld [vmem:[#allocation3 + $0x60] sm:$0xf] }
 0x2ba   : > { %v5882_v38 = vrot.slane %v5880_v58, 7  ;;  %v5906_v52 = vshrl.u32 %v11924_v44, 16  ;;  %v5909_v35 = vshll.u32 %v11924_v44, 16  ;;  %v6276_v22 = vrot.slane %v6275_v63, 4  ;;  %12840 = vmatpush3.bf16.msra.mxu1 %v13320_v23  ;;  %v16286_v43 = vld [vmem:[#allocation3 + $0x50] sm:$0x1] }
 0x2bb   : > { %v6057_v60 = vsel %vm15990_vm6, %v5860_v34, %v6056_v56  ;;  %v5865_v8 = vrot.slane %v5863_v51, 7  ;;  %v6280_v21 = vrot.slane %v6278_v15, 5  ;;  %v6284_v17 = vrot.slane %v6282_v48, 4  ;;  %12921 = vmatprep.subr.bf16.mxu1 %v16255_v18  ;;  %v5439_v51 = vpop.f32.mrf.mxu0 }
 0x2bc   : > { %6058 = vst [vmem:[#allocation3 + $0x9c] sm:$0xf] %v6057_v60  ;;  %v5885_v32 = vor.u32 %v5883_v62, %v5882_v38  ;;  %v5887_v53 = vrot.slane %v5882_v38, 4  ;;  %v16267_v7 = vrot.slane %v5906_v52, 7  ;;  %v6288_v55 = vshll.u32 %v16260_v46, 16 }
 0x2bd   : > { %v5868_v23 = vor.u32 %v5866_v4, %v5865_v8  ;;  %v5870_v36 = vrot.slane %v5865_v8, 4  ;;  %v6281_v10 = vsel %vm13667_vm11, %v6276_v22, %v6280_v21  ;;  %v6285_v11 = vor.u32 %v6284_v17, %v6280_v21  ;;  %v6102_v62 = vld [vmem:[#allocation3 + $0x6c] sm:$0xf]  ;;  %v16297_v4 = vld [vmem:[#allocation3 + $0x70] sm:$0xf] }
 0x2be   : > { %v5886_v48 = vsel %vm13683_vm12, %v5878_v47, %v5885_v32  ;;  %v6068_v61 = vsel %vm15501_vm2, %v5887_v53, %v6067_v2  ;;  %v5911_v1 = vor.u32 %v5909_v35, %v16267_v7  ;;  %v5912_v29 = vrot.slane %v16267_v7, 4 }
 0x2bf   : > { %6066 = vst [vmem:[#allocation3 + $0xac] sm:$0xf] %v5886_v48  ;;  %6069 = vst [vmem:[#allocation3 + $0xb0] sm:$0x1] %v6068_v61  ;;  %v5869_v6 = vsel %vm13683_vm12, %v5861_v3, %v5868_v23  ;;  %v6061_v16 = vsel %vm15501_vm2, %v5870_v36, %v6060_v19  ;;  %v6286_v50 = vrot.slane %v6285_v11, 4  ;;  %v6290_v0 = vrot.slane %v6288_v55, 5 }
 0x2c0   : > { %6059 = vst [vmem:[#allocation3 + $0xa0] sm:$0xf] %v5869_v6  ;;  %6062 = vst [vmem:[#allocation3 + $0xa4] sm:$0x1] %v6061_v16  ;;  %v6078_v47 = vsel %vm15990_vm6, %v5911_v1, %v6077_v27  ;;  %v6341_v44 = vshrl.u32 %v6100_v41, 16  ;;  %v6344_v56 = vshll.u32 %v6100_v41, 16  ;;  %v11623_v15 = vcombine.low %v6100_v41, %v16272_v59 }
 0x2c1   : > { %v6354_v58 = vshrl.u32 %v16272_v59, 16  ;;  %6079 = vst [vmem:[#allocation3 + $0xc0] sm:$0xf] %v6078_v47  ;;  %v6291_v63 = vsel %vm13667_vm11, %v6286_v50, %v6290_v0  ;;  %v5479_v34 = vadd.f32 %v5436_v26, %v15980_v33  ;;  %v6299_v3 = vor.u32 %v16225_v24, %v16220_v5  ;;  %v16320_v11 = vld [vmem:[#allocation3 + $0x5c] sm:$0x1] }
 0x2c2   : > { %v11596_v38 = vcombine.low %v6281_v10, %v6291_v63  ;;  %v16299_v2 = vrot.slane %v6341_v44, 4  ;;  %v16301_v52 = vrot.slane %v6344_v56, 5  ;;  %v6302_v35 = vshll.u32 %v16198_v54, 16  ;;  %12809 = vmatprep.mubr.bf16.mxu0 %v11623_v15  ;;  %v6070_v50 = vld [vmem:[#allocation3 + $0xb4] sm:$0xf] }
 0x2c3   : > { %v5518_v22 = vadd.f32 %v16230_v37, %v5479_v34  ;;  %v6300_v60 = vrot.slane %v6299_v3, 4  ;;  %v6308_v33 = vrot.slane %v6306_v49, 4  ;;  %v6312_v26 = vshll.u32 %v16286_v43, 16 }
 0x2c4   : > { %12754 = vmatmul.mubr.bf16.gmra.mxu1 %v11596_v38  ;;  %v6304_v5 = vrot.slane %v6302_v35, 5  ;;  %v5482_v24 = vadd.f32 %v12728_v20, %v15983_v14  ;;  %v5480_v8 = vadd.f32 %v5439_v51, %v15985_v40  ;;  %v6365_v19 = vshrl.u32 %v6102_v62, 16  ;;  %v16330_v35 = vld [vmem:[#allocation3 + $0x7c] sm:$0xf] }
 0x2c5   : > { %v5550_v21 = vmax.f32 %v5518_v22, 0.0  ;;  %v6314_v17 = vrot.slane %v6312_v26, 5  ;;  %v6368_v32 = vshll.u32 %v6102_v62, 16  ;;  %v6378_v53 = vshrl.u32 %v16297_v4, 16 }
 0x2c6   : > { %v6305_v27 = vsel %vm13667_vm11, %v6300_v60, %v6304_v5  ;;  %v6309_v55 = vor.u32 %v6308_v33, %v6304_v5  ;;  %v5521_v49 = vadd.f32 %v16230_v37, %v5482_v24  ;;  %v5519_v23 = vadd.f32 %v16230_v37, %v5480_v8  ;;  %v6081_v5 = vld [vmem:[#allocation3 + $0xc8] sm:$0x1] }
 0x2c7   : > { %v11922_v36 = vpack.c.bf16 %v5550_v21, %v5550_v21  ;;  %v16315_v10 = vrot.slane %v6365_v19, 4  ;;  %v16317_v14 = vrot.slane %v6368_v32, 5  ;;  %v11624_v40 = vcombine.low %v6102_v62, %v16297_v4 }
 0x2c8   : > { %v6310_v41 = vrot.slane %v6309_v55, 4  ;;  %v5553_v20 = vmax.f32 %v5521_v49, 0.0  ;;  %v5551_v48 = vmax.f32 %v5519_v23, 0.0  ;;  %v6323_v61 = vor.u32 %v16252_v57, %v16247_v45  ;;  %v6104_v57 = vld [vmem:[#allocation3 + $0x78] sm:$0xf] }
 0x2c9   : > { %v5889_v1 = vshrl.u32 %v11922_v36, 16  ;;  %v5892_v6 = vshll.u32 %v11922_v36, 16  ;;  %12810 = vmatmul.mubr.bf16.gmra.mxu0 %v11624_v40  ;;  %v6326_v37 = vshll.u32 %v16240_v9, 16  ;;  %v6332_v16 = vrot.slane %v6330_v25, 4 }
 0x2ca   : > { %v6315_v0 = vsel %vm13667_vm11, %v6310_v41, %v6314_v17  ;;  %v11925_v47 = vpack.c.bf16 %v5553_v20, %v5553_v20  ;;  %v11923_v44 = vpack.c.bf16 %v5551_v48, %v5551_v48  ;;  %v6324_v56 = vrot.slane %v6323_v61, 4  ;;  %v6074_v17 = vld [vmem:[#allocation3 + $0xbc] sm:$0x1]  ;;  %v16337_v41 = vld [vmem:[#allocation3 + $0x68] sm:$0x1] }
 0x2cb   : > { %v5891_v62 = vrot.slane %v5889_v1, 7  ;;  %v11597_v63 = vcombine.low %v6305_v27, %v6315_v0  ;;  %v6328_v15 = vrot.slane %v6326_v37, 5  ;;  %v6336_v45 = vshll.u32 %v16320_v11, 16  ;;  %v6106_v1 = vld [vmem:[#allocation3 + $0x84] sm:$0xf] }
 0x2cc   : > { %v5914_v34 = vshrl.u32 %v11925_v47, 16  ;;  %v5917_v3 = vshll.u32 %v11925_v47, 16  ;;  %v5897_v51 = vshrl.u32 %v11923_v44, 16  ;;  %v5900_v38 = vshll.u32 %v11923_v44, 16 }
 0x2cd   : > { %v5894_v25 = vor.u32 %v5892_v6, %v5891_v62  ;;  %v5895_v22 = vrot.slane %v5891_v62, 4  ;;  %12757 = vmatprep.mubr.bf16.mxu1 %v11597_v63  ;;  %v6329_v60 = vsel %vm13667_vm11, %v6324_v56, %v6328_v15  ;;  %v6333_v33 = vor.u32 %v6332_v16, %v6328_v15  ;;  %v16342_v6 = vld [vmem:[#allocation3 + $0x88] sm:$0xf]  ;;  %v16359_v56 = vld [vmem:[#allocation3 + $0x74] sm:$0x1] }
 0x2ce   : > { %v5916_v26 = vrot.slane %v5914_v34, 7  ;;  %v5899_v24 = vrot.slane %v5897_v51, 7  ;;  %v6338_v8 = vrot.slane %v6336_v45, 5  ;;  %v6389_v19 = vshrl.u32 %v6104_v57, 16  ;;  %v16363_v45 = vld [vmem:[#allocation3 + $0x94] sm:$0xf] }
 0x2cf   : > { %v6071_v21 = vsel %vm15990_vm6, %v5894_v25, %v6070_v50  ;;  %v6334_v32 = vrot.slane %v6333_v33, 4  ;;  %v6392_v27 = vshll.u32 %v6104_v57, 16  ;;  %v6402_v55 = vshrl.u32 %v16330_v35, 16 }
 0x2d0   : > { %6072 = vst [vmem:[#allocation3 + $0xb4] sm:$0xf] %v6071_v21  ;;  %v5919_v49 = vor.u32 %v5917_v3, %v5916_v26  ;;  %v5921_v23 = vrot.slane %v5916_v26, 4  ;;  %v5902_v36 = vor.u32 %v5900_v38, %v5899_v24  ;;  %v5904_v40 = vrot.slane %v5899_v24, 4  ;;  %v16376_v21 = vld [vmem:[#allocation3 + $0x80] sm:$0x1] }
 0x2d1   : > { %v6339_v20 = vsel %vm13667_vm11, %v6334_v32, %v6338_v8  ;;  %v6391_v48 = vrot.slane %v6389_v19, 4  ;;  %v6394_v61 = vrot.slane %v6392_v27, 5  ;;  %v11625_v28 = vcombine.low %v6104_v57, %v16330_v35 }
 0x2d2   : > { %v5920_v37 = vsel %vm13683_vm12, %v5912_v29, %v5919_v49  ;;  %v6082_v16 = vsel %vm15501_vm2, %v5921_v23, %v6081_v5  ;;  %v5903_v50 = vsel %vm13683_vm12, %v5895_v22, %v5902_v36  ;;  %v6075_v0 = vsel %vm15501_vm2, %v5904_v40, %v6074_v17  ;;  %v16380_v36 = vld [vmem:[#allocation3 + $0xa0] sm:$0xf] }
 0x2d3   : > { %6080 = vst [vmem:[#allocation3 + $0xc4] sm:$0xf] %v5920_v37  ;;  %6083 = vst [vmem:[#allocation3 + $0xc8] sm:$0x1] %v6082_v16  ;;  %v11598_v47 = vcombine.low %v6329_v60, %v6339_v20  ;;  %12813 = vmatprep.mubr.bf16.mxu0 %v11625_v28  ;;  %v6347_v7 = vor.u32 %v16301_v52, %v16299_v2  ;;  %v6350_v29 = vshll.u32 %v16272_v59, 16  ;;  %v6356_v44 = vrot.slane %v6354_v58, 4 }
 0x2d4   : > { %6073 = vst [vmem:[#allocation3 + $0xb8] sm:$0xf] %v5903_v50  ;;  %6076 = vst [vmem:[#allocation3 + $0xbc] sm:$0x1] %v6075_v0  ;;  %v6360_v30 = vshll.u32 %v16337_v41, 16  ;;  %v6413_v62 = vshrl.u32 %v6106_v1, 16  ;;  %v11626_v2 = vcombine.low %v6106_v1, %v16342_v6  ;;  %v6371_v52 = vor.u32 %v16317_v14, %v16315_v10 }
 0x2d5   : > { %v6416_v63 = vshll.u32 %v6106_v1, 16  ;;  %v6426_v15 = vshrl.u32 %v16342_v6, 16  ;;  %12758 = vmatmul.mubr.bf16.gmra.mxu1 %v11598_v47  ;;  %v6348_v57 = vrot.slane %v6347_v7, 4  ;;  %v6352_v34 = vrot.slane %v6350_v29, 5 }
 0x2d6   : > { %v6362_v58 = vrot.slane %v6360_v30, 5  ;;  %v6415_v3 = vrot.slane %v6413_v62, 4  ;;  %v6374_v38 = vshll.u32 %v16297_v4, 16  ;;  %12814 = vmatmul.mubr.bf16.gmra.mxu0 %v11626_v2  ;;  %v6372_v60 = vrot.slane %v6371_v52, 4  ;;  %v16392_v30 = vld [vmem:[#allocation3 + $0x8c] sm:$0x1] }
 0x2d7   : > { %v6418_v51 = vrot.slane %v6416_v63, 5  ;;  %v6353_v25 = vsel %vm13667_vm11, %v6348_v57, %v6352_v34  ;;  %v6357_v22 = vor.u32 %v6356_v44, %v6352_v34  ;;  %v6380_v33 = vrot.slane %v6378_v53, 4  ;;  %v6110_v53 = vld [vmem:[#allocation3 + $0x9c] sm:$0xf]  ;;  %v6112_v63 = vld [vmem:[#allocation3 + $0xa8] sm:$0xf] }
 0x2d8   : > { %v6376_v26 = vrot.slane %v6374_v38, 5  ;;  %v6384_v5 = vshll.u32 %v16359_v56, 16  ;;  %v6437_v24 = vshrl.u32 %v6108_v42, 16  ;;  %v6440_v8 = vshll.u32 %v6108_v42, 16  ;;  %v16396_v52 = vld [vmem:[#allocation3 + $0xac] sm:$0xf] }
 0x2d9   : > { %v6358_v10 = vrot.slane %v6357_v22, 4  ;;  %v6450_v14 = vshrl.u32 %v16363_v45, 16  ;;  %v11627_v19 = vcombine.low %v6108_v42, %v16363_v45  ;;  %v6395_v17 = vor.u32 %v6394_v61, %v6391_v48 }
 0x2da   : > { %v6377_v32 = vsel %vm13667_vm11, %v6372_v60, %v6376_v26  ;;  %v6381_v27 = vor.u32 %v6380_v33, %v6376_v26  ;;  %v6386_v49 = vrot.slane %v6384_v5, 5  ;;  %v6439_v23 = vrot.slane %v6437_v24, 4  ;;  %v16399_v60 = vld [vmem:[#allocation3 + $0x98] sm:$0x1]  ;;  %v6114_v5 = vld [vmem:[#allocation3 + $0xb4] sm:$0xf] }
 0x2db   : > { %v6363_v40 = vsel %vm13667_vm11, %v6358_v10, %v6362_v58  ;;  %v6442_v20 = vrot.slane %v6440_v8, 5  ;;  %12817 = vmatprep.mubr.bf16.mxu0 %v11627_v19  ;;  %v6396_v28 = vrot.slane %v6395_v17, 4  ;;  %v6398_v1 = vshll.u32 %v16330_v35, 16 }
 0x2dc   : > { %v11599_v37 = vcombine.low %v6353_v25, %v6363_v40  ;;  %v6382_v16 = vrot.slane %v6381_v27, 4  ;;  %v6404_v48 = vrot.slane %v6402_v55, 4  ;;  %v6408_v61 = vshll.u32 %v16376_v21, 16 }
 0x2dd   : > { %v6400_v50 = vrot.slane %v6398_v1, 5  ;;  %v6461_v0 = vshrl.u32 %v6110_v53, 16  ;;  %v6464_v47 = vshll.u32 %v6110_v53, 16  ;;  %v6474_v7 = vshrl.u32 %v16380_v36, 16 }
 0x2de   : > { %12761 = vmatprep.mubr.bf16.mxu1 %v11599_v37  ;;  %v6387_v29 = vsel %vm13667_vm11, %v6382_v16, %v6386_v49  ;;  %v6410_v44 = vrot.slane %v6408_v61, 5  ;;  %v11628_v42 = vcombine.low %v6110_v53, %v16380_v36  ;;  %v6419_v62 = vor.u32 %v6418_v51, %v6415_v3  ;;  %v16406_v49 = vld [vmem:[#allocation3 + $0xb8] sm:$0xf] }
 0x2df   : > { %v11600_v57 = vcombine.low %v6377_v32, %v6387_v29  ;;  %v6401_v55 = vsel %vm13667_vm11, %v6396_v28, %v6400_v50  ;;  %v6405_v34 = vor.u32 %v6404_v48, %v6400_v50  ;;  %v6463_v2 = vrot.slane %v6461_v0, 4 }
 0x2e0   : > { %v6466_v58 = vrot.slane %v6464_v47, 5  ;;  %12818 = vmatmul.mubr.bf16.gmra.mxu0 %v11628_v42  ;;  %v6420_v38 = vrot.slane %v6419_v62, 4  ;;  %v6422_v25 = vshll.u32 %v16342_v6, 16  ;;  %v6428_v22 = vrot.slane %v6426_v15, 4  ;;  %v16414_v42 = vld [vmem:[#allocation3 + $0xa4] sm:$0x1] }
 0x2e1   : > { %12762 = vmatmul.mubr.bf16.gmra.mxu1 %v11600_v57  ;;  %v6406_v33 = vrot.slane %v6405_v34, 4  ;;  %v6432_v3 = vshll.u32 %v16392_v30, 16  ;;  %v6485_v51 = vshrl.u32 %v6112_v63, 16  ;;  %v6488_v26 = vshll.u32 %v6112_v63, 16 }
 0x2e2   : > { %v6424_v24 = vrot.slane %v6422_v25, 5  ;;  %v6498_v8 = vshrl.u32 %v16396_v52, 16  ;;  %v11629_v10 = vcombine.low %v6112_v63, %v16396_v52  ;;  %v6443_v19 = vor.u32 %v6442_v20, %v6439_v23  ;;  %v13318_v63 = vld [vmem:[#allocation3 + $0xc] sm:$0xff]  }
 0x2e3   : > { %v6411_v17 = vsel %vm13667_vm11, %v6406_v33, %v6410_v44  ;;  %v6434_v32 = vrot.slane %v6432_v3, 5  ;;  %v6487_v15 = vrot.slane %v6485_v51, 4  ;;  %v6490_v27 = vrot.slane %v6488_v26, 5 }
 0x2e4   : > { %v11601_v53 = vcombine.low %v6401_v55, %v6411_v17  ;;  %v6425_v40 = vsel %vm13667_vm11, %v6420_v38, %v6424_v24  ;;  %v6429_v28 = vor.u32 %v6428_v22, %v6424_v24  ;;  %12821 = vmatprep.mubr.bf16.mxu0 %v11629_v10  ;;  %v6444_v1 = vrot.slane %v6443_v19, 4  ;;  %v16419_v38 = vld [vmem:[#allocation3 + $0xb0] sm:$0x1] }
 0x2e5   : > { %v6446_v37 = vshll.u32 %v16363_v45, 16  ;;  %v6452_v16 = vrot.slane %v6450_v14, 4  ;;  %v6456_v23 = vshll.u32 %v16399_v60, 16  ;;  %v6509_v20 = vshrl.u32 %v6114_v5, 16 }
 0x2e6   : > { %12765 = vmatprep.mubr.bf16.mxu1 %v11601_v53  ;;  %v6430_v48 = vrot.slane %v6429_v28, 4  ;;  %v6512_v61 = vshll.u32 %v6114_v5, 16  ;;  %v6522_v50 = vshrl.u32 %v16406_v49, 16  ;;  %v11630_v0 = vcombine.low %v6114_v5, %v16406_v49  ;;  %v7127_v28 = vld [vmem:[#allocation3] sm:$0xe] }
 0x2e7   : > { %v6448_v47 = vrot.slane %v6446_v37, 5  ;;  %v6458_v29 = vrot.slane %v6456_v23, 5  ;;  %v6511_v44 = vrot.slane %v6509_v20, 4  ;;  %v6467_v62 = vor.u32 %v6466_v58, %v6463_v2  ;;  %v13321_v20 = vld [vmem:[#allocation3 + $0x18] sm:$0xff]  }
 0x2e8   : > { %v6435_v14 = vsel %vm13667_vm11, %v6430_v48, %v6434_v32  ;;  %v6514_v57 = vrot.slane %v6512_v61, 5  ;;  %12822 = vmatmul.mubr.bf16.gmra.mxu0 %v11630_v0  ;;  %v6470_v55 = vshll.u32 %v16380_v36, 16  ;;  %v6476_v34 = vrot.slane %v6474_v7, 4  ;;  %v13336_v0 = vld [vmem:[#allocation4 + $0x170] sm:$0xff]  }
 0x2e9   : > { %v11602_v25 = vcombine.low %v6425_v40, %v6435_v14  ;;  %v6449_v22 = vsel %vm13667_vm11, %v6444_v1, %v6448_v47  ;;  %v6453_v33 = vor.u32 %v6452_v16, %v6448_v47  ;;  %v6468_v3 = vrot.slane %v6467_v62, 4  ;;  %12889 = vmatprep.mubr.bf16.mxu0 %v13318_v63  ;;  %v16428_v40 = vld [vmem:[#allocation3 + $0xbc] sm:$0x1]  ;;  %v13322_v63 = vld [vmem:[#allocation3 + $0x24] sm:$0xff]  }
 0x2ea   : > { %v6472_v51 = vrot.slane %v6470_v55, 5  ;;  %v6480_v2 = vshll.u32 %v16414_v42, 16  ;;  %v6491_v58 = vor.u32 %v6490_v27, %v6487_v15  ;;  %v6494_v26 = vshll.u32 %v16396_v52, 16  ;;  %v13412_v55 = vld [vmem:[#allocation3 + $0x4] sm:$0xf] }
 0x2eb   : > { %12766 = vmatmul.mubr.bf16.gmra.mxu1 %v11602_v25  ;;  %v6454_v5 = vrot.slane %v6453_v33, 4  ;;  %v6500_v24 = vrot.slane %v6498_v8, 4  ;;  %v6504_v7 = vshll.u32 %v16419_v38, 16  ;;  %v6515_v10 = vor.u32 %v6514_v57, %v6511_v44  ;;  %v7128_v8 = vld [vmem:[#allocation3 + $0xc] sm:$0xe] }
 0x2ec   : > { %v6473_v19 = vsel %vm13667_vm11, %v6468_v3, %v6472_v51  ;;  %v6477_v17 = vor.u32 %v6476_v34, %v6472_v51  ;;  %v6482_v32 = vrot.slane %v6480_v2, 5  ;;  %v6492_v53 = vrot.slane %v6491_v58, 4  ;;  %v13413_v25 = vld [vmem:[#allocation3 + $0x8] sm:$0x1] }
 0x2ed   : > { %v6459_v15 = vsel %vm13667_vm11, %v6454_v5, %v6458_v29  ;;  %v6496_v27 = vrot.slane %v6494_v26, 5  ;;  %v6506_v1 = vrot.slane %v6504_v7, 5  ;;  %v16432_v37 = vrot.slane %v6515_v10, 4  ;;  %v13339_v10 = vld [vmem:[#allocation4 + $0x168] sm:$0xff]  }
 0x2ee   : > { %v11603_v16 = vcombine.low %v6449_v22, %v6459_v15  ;;  %v6478_v23 = vrot.slane %v6477_v17, 4  ;;  %v6518_v48 = vshll.u32 %v16406_v49, 16  ;;  %v6524_v61 = vrot.slane %v6522_v50, 4  ;;  %v7129_v50 = vld [vmem:[#allocation3 + $0x18] sm:$0xe] }
 0x2ef   : > { %v6497_v47 = vsel %vm13667_vm11, %v6492_v53, %v6496_v27  ;;  %v6501_v44 = vor.u32 %v6500_v24, %v6496_v27  ;;  %v6528_v62 = vshll.u32 %v16428_v40, 16  ;;  %v11639_v29 = vrot.slane %v7127_v28, 9  ;;  %v13414_v17 = vld [vmem:[#allocation3 + $0x10] sm:$0xf]  ;;  %v13415_v53 = vld [vmem:[#allocation3 + $0x14] sm:$0x1] }
 0x2f0   : > { %12769 = vmatprep.mubr.bf16.mxu1 %v11603_v16  ;;  %v6483_v14 = vsel %vm13667_vm11, %v6478_v23, %v6482_v32  ;;  %12890 = vmatmul.mubr.bf16.vlgmr.msra.gmra.mxu0 %v13321_v20  ;;  %v6520_v57 = vrot.slane %v6518_v48, 5  ;;  %v7177_v34 = vrot.slane %v13412_v55, 5  ;;  %v7180_v22 = vrot.slane %v13413_v25, 5  ;;  %v7130_v15 = vld [vmem:[#allocation3 + $0x24] sm:$0xe]  ;;  %v13341_v55 = vld [vmem:[#allocation4 + $0x160] sm:$0xff]  }
 0x2f1   : > { %v11604_v33 = vcombine.low %v6473_v19, %v6483_v14  ;;  %v6502_v3 = vrot.slane %v6501_v44, 4  ;;  %v6530_v51 = vrot.slane %v6528_v62, 5  ;;  %12893 = vmatprep.mubr.bf16.mxu0 %v13322_v63  ;;  %v11640_v2 = vrot.slane %v7128_v8, 9  ;;  %12970 = vmatpush3.bf16.msra.mxu0 %v16171_v31  ;;  %v13416_v16 = vld [vmem:[#allocation3 + $0x1c] sm:$0xf]  ;;  %v13323_v63 = vld [vmem:[#allocation3 + $0x30] sm:$0xff]  }
 0x2f2   : > { %v6521_v58 = vsel %vm13667_vm11, %v16432_v37, %v6520_v57  ;;  %v6525_v26 = vor.u32 %v6524_v61, %v6520_v57  ;;  %v16446_v24 = vsel %vm14077_vm1, %v11639_v29, %v7177_v34  ;;  %v7179_v7 = vrot.slane %v7177_v34, 4  ;;  %12971 = vmatprep.subr.bf16.mxu0 %v13336_v0  ;;  %v13417_v61 = vld [vmem:[#allocation3 + $0x20] sm:$0x1]  ;;  %v7131_v62 = vld [vmem:[#allocation3 + $0x30] sm:$0xe] }
 0x2f3   : > { %12770 = vmatmul.mubr.bf16.gmra.mxu1 %v11604_v33  ;;  %v6507_v19 = vsel %vm13667_vm11, %v6502_v3, %v6506_v1  ;;  %v7184_v32 = vrot.slane %v13414_v17, 5  ;;  %v7187_v31 = vrot.slane %v13415_v53, 5  ;;  %v11641_v28 = vrot.slane %v7129_v50, 9  ;;  %v7132_v3 = vld [vmem:[#allocation3 + $0x3c] sm:$0xe] }
 0x2f4   : > { %v11605_v27 = vcombine.low %v6497_v47, %v6507_v19  ;;  %v6526_v37 = vrot.slane %v6525_v26, 4  ;;  %v7181_v8 = vsel %vm14077_vm1, %v7179_v7, %v7180_v22  ;;  %v7191_v23 = vrot.slane %v13416_v16, 5  ;;  %v13325_v22 = vld [vmem:[#allocation3 + $0x3c] sm:$0xff]   ;;  %v7133_v7 = vld [vmem:[#allocation3 + $0x48] sm:$0xe] }
 0x2f5   : > { %v11655_v20 = vcombine.low %v16446_v24, %v7181_v8  ;;  %v16455_v48 = vsel %vm14077_vm1, %v11640_v2, %v7184_v32  ;;  %v7186_v1 = vrot.slane %v7184_v32, 4  ;;  %v7194_v44 = vrot.slane %v13417_v61, 5  ;;  %12972 = vmatpush3.bf16.msra.mxu0 %v13336_v0  ;;  %v13418_v0 = vld [vmem:[#allocation3 + $0x28] sm:$0xf] }
 0x2f6   : > { %12773 = vmatprep.mubr.bf16.mxu1 %v11605_v27  ;;  %v6531_v47 = vsel %vm13667_vm11, %v6526_v37, %v6530_v51  ;;  %v16461_v29 = vsel %vm14077_vm1, %v11641_v28, %v7191_v23  ;;  %v7193_v14 = vrot.slane %v7191_v23, 4  ;;  %v11642_v57 = vrot.slane %v7130_v15, 9  ;;  %12973 = vmatprep.subr.bf16.mxu0 %v13339_v10  ;;  %v13420_v15 = vld [vmem:[#allocation3 + $0x40] sm:$0xf]  ;;  %v13344_v37 = vld [vmem:[#allocation4 + $0x158] sm:$0xff]  }
 0x2f7   : > { %v11606_v34 = vcombine.low %v6521_v58, %v6531_v47  ;;  %v16465_v25 = vsel %vm14077_vm1, %v7186_v1, %v7187_v31  ;;  %v7198_v50 = vrot.slane %v13418_v0, 5  ;;  %v7201_v33 = vrot.slane %v16183_v13, 5  ;;  %v13419_v58 = vld [vmem:[#allocation3 + $0x34] sm:$0xf]  ;;  %v7135_v47 = vld [vmem:[#allocation3 + $0x60] sm:$0xe] }
 0x2f8   : > { %12894 = vmatmul.mubr.bf16.gmra.mxu0 %v13323_v63  ;;  %v11656_v51 = vcombine.low %v16455_v48, %v16465_v25  ;;  %v16472_v2 = vsel %vm14077_vm1, %v7193_v14, %v7194_v44  ;;  %v11643_v26 = vrot.slane %v7131_v62, 9  ;;  %v7205_v24 = vrot.slane %v13419_v58, 5  ;;  %v13326_v63 = vld [vmem:[#allocation3 + $0x48] sm:$0xff]  }
 0x2f9   : > { %12897 = vmatprep.mubr.bf16.mxu0 %v13325_v22  ;;  %v11657_v19 = vcombine.low %v16461_v29, %v16472_v2  ;;  %v16478_v13 = vsel %vm14077_vm1, %v11642_v57, %v7198_v50  ;;  %v7200_v17 = vrot.slane %v7198_v50, 4  ;;  %v7208_v32 = vrot.slane %v16216_v12, 5  ;;  %12974 = vmatpush3.bf16.msra.mxu0 %v13339_v10  ;;  %v7134_v10 = vld [vmem:[#allocation3 + $0x54] sm:$0xe]  ;;  %v7136_v50 = vld [vmem:[#allocation3 + $0x6c] sm:$0xe] }
 0x2fa   : > { %v16483_v53 = vsel %vm14077_vm1, %v11643_v26, %v7205_v24  ;;  %v7207_v31 = vrot.slane %v7205_v24, 4  ;;  %v11644_v28 = vrot.slane %v7132_v3, 9  ;;  %v7212_v27 = vrot.slane %v13420_v15, 5  ;;  %12975 = vmatprep.subr.bf16.mxu0 %v13341_v55  ;;  %v13328_v3 = vld [vmem:[#allocation3 + $0x54] sm:$0xff]  }
 0x2fb   : > { %12774 = vmatmul.mubr.bf16.gmra.mxu1 %v11606_v34  ;;  %v16487_v8 = vsel %vm14077_vm1, %v7200_v17, %v7201_v33  ;;  %v7215_v16 = vrot.slane %v16260_v46, 5  ;;  %v11645_v23 = vrot.slane %v7133_v7, 9  ;;  %v7219_v12 = vrot.slane %v16198_v54, 5  ;;  %v13346_v33 = vld [vmem:[#allocation4 + $0x150] sm:$0xff]   ;;  %v7137_v24 = vld [vmem:[#allocation3 + $0x78] sm:$0xe] }
 0x2fc   : > { %12841 = vmatprep.mubr.bf16.mxu1 %v11655_v20  ;;  %v11658_v1 = vcombine.low %v16478_v13, %v16487_v8  ;;  %v16495_v61 = vsel %vm14077_vm1, %v7207_v31, %v7208_v32  ;;  %v16499_v44 = vsel %vm14077_vm1, %v11644_v28, %v7212_v27  ;;  %v7214_v62 = vrot.slane %v7212_v27, 4  ;;  %v13327_v32 = vld [vmem:[#allocation4 + $0x130] sm:$0xff]  }
 0x2fd   : > { %v11659_v46 = vcombine.low %v16483_v53, %v16495_v61  ;;  %v16505_v54 = vsel %vm14077_vm1, %v11645_v23, %v7219_v12  ;;  %v7221_v20 = vrot.slane %v7219_v12, 4  ;;  %v7222_v14 = vrot.slane %v16286_v43, 5  ;;  %12976 = vmatpush3.bf16.msra.mxu0 %v13341_v55  ;;  %v7138_v12 = vld [vmem:[#allocation3 + $0x84] sm:$0xe] }
 0x2fe   : > { %v16510_v57 = vsel %vm14077_vm1, %v7214_v62, %v7215_v16  ;;  %v11646_v34 = vrot.slane %v7134_v10, 9  ;;  %v7226_v22 = vrot.slane %v16240_v9, 5  ;;  %v7229_v0 = vrot.slane %v16320_v11, 5  ;;  %12977 = vmatprep.subr.bf16.mxu0 %v13344_v37  ;;  %v13349_v10 = vld [vmem:[#allocation4 + $0x148] sm:$0xff]  }
 0x2ff   : > { %v11660_v26 = vcombine.low %v16499_v44, %v16510_v57  ;;  %v16518_v43 = vsel %vm14077_vm1, %v7221_v20, %v7222_v14  ;;  %v11647_v55 = vrot.slane %v7135_v47, 9  ;;  %v7233_v58 = vrot.slane %v16272_v59, 5  ;;  %v13330_v20 = vld [vmem:[#allocation4 + $0x128] sm:$0xff]  }
 0x300   : > { %12898 = vmatmul.mubr.bf16.gmra.mxu0 %v13326_v63  ;;  %v11661_v9 = vcombine.low %v16505_v54, %v16518_v43  ;;  %v16525_v11 = vsel %vm14077_vm1, %v11646_v34, %v7226_v22  ;;  %v7228_v7 = vrot.slane %v7226_v22, 4  ;;  %v7236_v17 = vrot.slane %v16337_v41, 5  ;;  %v8749_v63 = vld [vmem:[#allocation3 + $0xc] sm:$0xe]  ;;  %v13329_v34 = vld [vmem:[#allocation3 + $0x60] sm:$0xff]  }
 0x301   : > { %12901 = vmatprep.mubr.bf16.mxu0 %v13328_v3  ;;  %v16530_v31 = vsel %vm14077_vm1, %v11647_v55, %v7233_v58  ;;  %v7235_v28 = vrot.slane %v7233_v58, 4  ;;  %v11648_v59 = vrot.slane %v7136_v50, 9  ;;  %v7240_v15 = vrot.slane %v16297_v4, 5  ;;  %12978 = vmatpush3.bf16.msra.mxu0 %v13344_v37  ;;  %v16576_v3 = vld [vmem:[#allocation3 + $0x10] sm:$0xf] }
 0x302   : > { %v16535_v27 = vsel %vm14077_vm1, %v7228_v7, %v7229_v0  ;;  %v7243_v16 = vrot.slane %v16359_v56, 5  ;;  %v11649_v23 = vrot.slane %v7137_v24, 9  ;;  %v7247_v41 = vrot.slane %v16330_v35, 5  ;;  %12979 = vmatprep.subr.bf16.mxu0 %v13346_v33  ;;  %v7139_v35 = vld [vmem:[#allocation3 + $0x90] sm:$0xe]  ;;  %v13350_v7 = vld [vmem:[#allocation4 + $0x140] sm:$0xff]  }
 0x303   : > { %12842 = vmatmul.mubr.bf16.vlgmr.msra.gmra.mxu1 %v11656_v51  ;;  %v11662_v4 = vcombine.low %v16525_v11, %v16535_v27  ;;  %v16546_v37 = vsel %vm14077_vm1, %v7235_v28, %v7236_v17  ;;  %v16550_v56 = vsel %vm14077_vm1, %v11648_v59, %v7240_v15  ;;  %v7242_v62 = vrot.slane %v7240_v15, 4  ;;  %v13331_v55 = vld [vmem:[#allocation3 + $0x6c] sm:$0xff]   ;;  %v16585_v24 = vld [vmem:[#allocation3 + $0x14] sm:$0x1]  ;;  %v8750_v15 = vld [vmem:[#allocation3 + $0x18] sm:$0xe] }
 0x304   : > { %12922 = vmatpush3.bf16.msra.mxu1 %v16255_v18  ;;  %12845 = vmatprep.mubr.bf16.mxu1 %v11657_v19  ;;  %v11663_v48 = vcombine.low %v16530_v31, %v16546_v37  ;;  %v16560_v25 = vsel %vm14077_vm1, %v11649_v23, %v7247_v41  ;;  %v7249_v51 = vrot.slane %v7247_v41, 4  ;;  %v7250_v47 = vrot.slane %v16376_v21, 5  ;;  %v7140_v19 = vld [vmem:[#allocation3 + $0x9c] sm:$0xe]  ;;  %v13342_v31 = vld [vmem:[#allocation3 + $0xa8] sm:$0xff]  }
 0x305   : > { %12923 = vmatprep.subr.bf16.mxu1 %v13327_v32  ;;  %v16565_v18 = vsel %vm14077_vm1, %v7242_v62, %v7243_v16  ;;  %v11650_v14 = vrot.slane %v7138_v12, 9  ;;  %v7254_v29 = vrot.slane %v16342_v6, 5  ;;  %v7257_v2 = vrot.slane %v16392_v30, 5  ;;  %12980 = vmatpush3.bf16.msra.mxu0 %v13346_v33  ;;  %v13333_v16 = vld [vmem:[#allocation4 + $0x120] sm:$0xff]   ;;  %v7141_v12 = vld [vmem:[#allocation3 + $0xa8] sm:$0xe] }
 0x306   : > { %v11664_v22 = vcombine.low %v16550_v56, %v16565_v18  ;;  %v16573_v21 = vsel %vm14077_vm1, %v7249_v51, %v7250_v47  ;;  %v11651_v0 = vrot.slane %v7139_v35, 9  ;;  %v7261_v50 = vrot.slane %v16363_v45, 5  ;;  %12981 = vmatprep.subr.bf16.mxu0 %v13349_v10  ;;  %v16608_v47 = vld [vmem:[#allocation3 + $0x1c] sm:$0xf] }
 0x307   : > { %v11665_v6 = vcombine.low %v16560_v25, %v16573_v21  ;;  %v16582_v30 = vsel %vm14077_vm1, %v11650_v14, %v7254_v29  ;;  %v7256_v33 = vrot.slane %v7254_v29, 4  ;;  %v7264_v58 = vrot.slane %v16399_v60, 5 }
 0x308   : > { %12924 = vmatpush3.bf16.msra.mxu1 %v13327_v32  ;;  %12902 = vmatmul.mubr.bf16.gmra.mxu0 %v13329_v34  ;;  %v16589_v45 = vsel %vm14077_vm1, %v11651_v0, %v7261_v50  ;;  %v7263_v17 = vrot.slane %v7261_v50, 4  ;;  %v11652_v28 = vrot.slane %v7140_v19, 9  ;;  %v7268_v59 = vrot.slane %v16380_v36, 5  ;;  %v16622_v19 = vld [vmem:[#allocation4 + $0x1f8] sm:$0xff]  }
 0x309   : > { %12925 = vmatprep.subr.bf16.mxu1 %v13330_v20  ;;  %12905 = vmatprep.mubr.bf16.mxu0 %v13331_v55  ;;  %v16594_v60 = vsel %vm14077_vm1, %v7256_v33, %v7257_v2  ;;  %v7271_v23 = vrot.slane %v16414_v42, 5  ;;  %v11727_v32 = vrot.slane %v8749_v63, 9  ;;  %v8815_v41 = vrot.slane %v16576_v3, 5  ;;  %v16610_v42 = vld [vmem:[#allocation3 + $0x20] sm:$0x1]  ;;  %v13338_v50 = vld [vmem:[#allocation4 + $0x118] sm:$0xff]  }
 0x30a   : > { %v11666_v62 = vcombine.low %v16582_v30, %v16594_v60  ;;  %v16602_v36 = vsel %vm14077_vm1, %v7263_v17, %v7264_v58  ;;  %v16606_v35 = vsel %vm14077_vm1, %v11652_v28, %v7268_v59  ;;  %v7270_v51 = vrot.slane %v7268_v59, 4  ;;  %12982 = vmatpush3.bf16.msra.mxu0 %v13349_v10  ;;  %v8751_v10 = vld [vmem:[#allocation3 + $0x24] sm:$0xe]  ;;  %v7142_v0 = vld [vmem:[#allocation3 + $0xb4] sm:$0xe]  ;;  %v13332_v33 = vld [vmem:[#allocation3 + $0x78] sm:$0xff]  }
 0x30b   : > { %12846 = vmatmul.mubr.bf16.gmra.mxu1 %v11658_v1  ;;  %v11667_v63 = vcombine.low %v16589_v45, %v16602_v36  ;;  %v16619_v14 = vsel %vm14077_vm1, %v11727_v32, %v8815_v41  ;;  %v8817_v29 = vrot.slane %v8815_v41, 4  ;;  %v8818_v2 = vrot.slane %v16585_v24, 5  ;;  %12983 = vmatprep.subr.bf16.mxu0 %v13350_v7  ;;  %v13335_v28 = vld [vmem:[#allocation3 + $0x84] sm:$0xff]   ;;  %v16654_v41 = vld [vmem:[#allocation3 + $0x2c] sm:$0x1] }
 0x30c   : > { %12849 = vmatprep.mubr.bf16.mxu1 %v11659_v46  ;;  %12926 = vmatpush3.bf16.msra.mxu1 %v13330_v20  ;;  %v16629_v13 = vsel %vm14077_vm1, %v7270_v51, %v7271_v23  ;;  %v11653_v8 = vrot.slane %v7141_v12, 9  ;;  %v7275_v1 = vrot.slane %v16396_v52, 5  ;;  %v7278_v34 = vrot.slane %v16419_v38, 5  ;;  %v16640_v20 = vld [vmem:[#allocation3 + $0x28] sm:$0xf] }
 0x30d   : > { %12927 = vmatprep.subr.bf16.mxu1 %v13333_v16  ;;  %v16637_v53 = vsel %vm14077_vm1, %v8817_v29, %v8818_v2  ;;  %v11728_v61 = vrot.slane %v8750_v15, 9  ;;  %v8822_v46 = vrot.slane %v16608_v47, 5  ;;  %v8825_v17 = vrot.slane %v16610_v42, 5  ;;  %v7995_v2 = vld [vmem:[#allocation3 + $0xc] sm:$0xf] }
 0x30e   : > { %v11743_v52 = vcombine.low %v16619_v14, %v16637_v53  ;;  %v16646_v38 = vsel %vm14077_vm1, %v11653_v8, %v7275_v1  ;;  %v7277_v58 = vrot.slane %v7275_v1, 4  ;;  %12984 = vmatpush3.bf16.msra.mxu0 %v13350_v7  ;;  %v11654_v23 = vrot.slane %v7142_v0, 9  ;;  %v13343_v8 = vld [vmem:[#allocation4 + $0x110] sm:$0xff]  }
 0x30f   : > { %v16651_v59 = vsel %vm14077_vm1, %v11728_v61, %v8822_v46  ;;  %v8824_v15 = vrot.slane %v8822_v46, 4  ;;  %v7282_v32 = vrot.slane %v16406_v49, 5  ;;  %13065 = vmatprep.subr.bf16.mxu0 %v16622_v19  ;;  %v7285_v12 = vrot.slane %v16428_v40, 5  ;;  %v8752_v46 = vld [vmem:[#allocation3 + $0x30] sm:$0xe] }
 0x310   : > { %12906 = vmatmul.mubr.bf16.gmra.mxu0 %v13332_v33  ;;  %12928 = vmatpush3.bf16.msra.mxu1 %v13333_v16  ;;  %v16659_v7 = vsel %vm14077_vm1, %v7277_v58, %v7278_v34  ;;  %v11729_v51 = vrot.slane %v8751_v10, 9  ;;  %v8829_v29 = vrot.slane %v16640_v20, 5  ;;  %v8832_v61 = vrot.slane %v16654_v41, 5 }
 0x311   : > { %12909 = vmatprep.mubr.bf16.mxu0 %v13335_v28  ;;  %12929 = vmatprep.subr.bf16.mxu1 %v13338_v50  ;;  %v16667_v1 = vsel %vm14077_vm1, %v8824_v15, %v8825_v17  ;;  %v16671_v16 = vsel %vm14077_vm1, %v11654_v23, %v7282_v32  ;;  %v7284_v34 = vrot.slane %v7282_v32, 4  ;;  %v8044_v58 = vshrl.u32 %v7995_v2, 16  ;;  %v16688_v15 = vld [vmem:[#allocation3 + $0x34] sm:$0xf]  ;;  %v16701_v32 = vld [vmem:[#allocation3 + $0x38] sm:$0x1] }
 0x312   : > { %v16677_v10 = vsel %vm14077_vm1, %v11729_v51, %v8829_v29  ;;  %v8831_v0 = vrot.slane %v8829_v29, 4  ;;  %v8047_v17 = vshll.u32 %v7995_v2, 16  ;;  %v8053_v28 = vshll.u32 %v16576_v3, 16  ;;  %v13348_v51 = vld [vmem:[#allocation4 + $0x108] sm:$0xff]   ;;  %v13337_v29 = vld [vmem:[#allocation3 + $0x90] sm:$0xff]  }
 0x313   : > { %12850 = vmatmul.mubr.bf16.gmra.mxu1 %v11660_v26  ;;  %v16685_v33 = vsel %vm14077_vm1, %v7284_v34, %v7285_v12  ;;  %v8057_v57 = vshrl.u32 %v16576_v3, 16  ;;  %v8063_v26 = vshll.u32 %v16585_v24, 16  ;;  %v7998_v12 = vld [vmem:[#allocation3 + $0x18] sm:$0xf]  ;;  %v8046_v43 = vrot.slane %v8044_v58, 4  ;;  %v13340_v3 = vld [vmem:[#allocation3 + $0x9c] sm:$0xff]  }
 0x314   : > { %12853 = vmatprep.mubr.bf16.mxu1 %v11661_v9  ;;  %12930 = vmatpush3.bf16.msra.mxu1 %v13338_v50  ;;  %v16697_v44 = vsel %vm14077_vm1, %v8831_v0, %v8832_v61  ;;  %v8049_v9 = vrot.slane %v8047_v17, 5  ;;  %v8055_v50 = vrot.slane %v8053_v28, 5  ;;  %v11730_v0 = vrot.slane %v8752_v46, 9  ;;  %v8753_v46 = vld [vmem:[#allocation3 + $0x3c] sm:$0xe] }
 0x315   : > { %12931 = vmatprep.subr.bf16.mxu1 %v13343_v8  ;;  %v8059_v2 = vrot.slane %v8057_v57, 4  ;;  %v8065_v34 = vrot.slane %v8063_v26, 5  ;;  %v8836_v61 = vrot.slane %v16688_v15, 5  ;;  %v8839_v24 = vrot.slane %v16701_v32, 5  ;;  %v16712_v57 = vld [vmem:[#allocation3 + $0x40] sm:$0xf] }
 0x316   : > { %v8050_v23 = vor.u32 %v8049_v9, %v8046_v43  ;;  %v8068_v49 = vshrl.u32 %v7998_v12, 16  ;;  %v8071_v55 = vshll.u32 %v7998_v12, 16  ;;  %v8077_v28 = vshll.u32 %v16608_v47, 16  ;;  %v13351_v26 = vld [vmem:[#allocation4 + $0x100] sm:$0xff]  }
 0x317   : > { %v8060_v40 = vor.u32 %v8059_v2, %v8055_v50  ;;  %v16709_v58 = vsel %vm14077_vm1, %v11730_v0, %v8836_v61  ;;  %v8838_v17 = vrot.slane %v8836_v61, 4  ;;  %v8081_v12 = vshrl.u32 %v16608_v47, 16  ;;  %v16720_v61 = vld [vmem:[#allocation3 + $0x44] sm:$0x1] }
 0x318   : > { %12910 = vmatmul.mubr.bf16.gmra.mxu0 %v13337_v29  ;;  %12932 = vmatpush3.bf16.msra.mxu1 %v13343_v8  ;;  %v8051_v43 = vrot.slane %v8050_v23, 4  ;;  %v8070_v9 = vrot.slane %v8068_v49, 4  ;;  %v8073_v54 = vrot.slane %v8071_v55, 5  ;;  %v8079_v2 = vrot.slane %v8077_v28, 5  ;;  %v8001_v23 = vld [vmem:[#allocation3 + $0x24] sm:$0xf] }
 0x319   : > { %12913 = vmatprep.mubr.bf16.mxu0 %v13340_v3  ;;  %12933 = vmatprep.subr.bf16.mxu1 %v13348_v51  ;;  %v8061_v8 = vrot.slane %v8060_v40, 4  ;;  %v16717_v29 = vsel %vm14077_vm1, %v8838_v17, %v8839_v24  ;;  %v8087_v0 = vshll.u32 %v16610_v42, 16  ;;  %v8083_v40 = vrot.slane %v8081_v12, 4  ;;  %v8754_v28 = vld [vmem:[#allocation3 + $0x48] sm:$0xe] }
 0x31a   : > { %v8056_v49 = vsel %vm13667_vm11, %v8051_v43, %v8055_v50  ;;  %v11746_v47 = vcombine.low %v16709_v58, %v16717_v29  ;;  %v8074_v55 = vor.u32 %v8073_v54, %v8070_v9  ;;  %v11731_v11 = vrot.slane %v8753_v46, 9  ;;  %v16737_v50 = vld [vmem:[#allocation4 + $0x1b8] sm:$0xff]  }
 0x31b   : > { %12854 = vmatmul.mubr.bf16.gmra.mxu1 %v11662_v4  ;;  %v8066_v42 = vsel %vm13667_vm11, %v8061_v8, %v8065_v34  ;;  %v8089_v3 = vrot.slane %v8087_v0, 5  ;;  %v8843_v27 = vrot.slane %v16712_v57, 5  ;;  %v8084_v24 = vor.u32 %v8083_v40, %v8079_v2  ;;  %v8004_v46 = vld [vmem:[#allocation3 + $0x30] sm:$0xf]  ;;  %v13345_v43 = vld [vmem:[#allocation3 + $0xb4] sm:$0xff]  }
 0x31c   : > { %12857 = vmatprep.mubr.bf16.mxu1 %v11663_v48  ;;  %12934 = vmatpush3.bf16.msra.mxu1 %v13348_v51  ;;  %v16735_v4 = vcombine.low %v8056_v49, %v8066_v42  ;;  %v8075_v54 = vrot.slane %v8074_v55, 4  ;;  %v8846_v17 = vrot.slane %v16720_v61, 5  ;;  %v8092_v51 = vshrl.u32 %v8001_v23, 16  ;;  %v16748_v49 = vld [vmem:[#allocation3 + $0x4c] sm:$0xf] }
 0x31d   : > { %12935 = vmatprep.subr.bf16.mxu1 %v13351_v26  ;;  %v16742_v37 = vsel %vm14077_vm1, %v11731_v11, %v8843_v27  ;;  %v8845_v48 = vrot.slane %v8843_v27, 4  ;;  %v8095_v34 = vshll.u32 %v8001_v23, 16  ;;  %v8085_v12 = vrot.slane %v8084_v24, 4  ;;  %v16755_v11 = vld [vmem:[#allocation3 + $0x50] sm:$0x1] }
 0x31e   : > { %v8080_v9 = vsel %vm13667_vm11, %v8075_v54, %v8079_v2  ;;  %v8101_v8 = vshll.u32 %v16640_v20, 16  ;;  %v8105_v0 = vshrl.u32 %v16640_v20, 16  ;;  %v8094_v40 = vrot.slane %v8092_v51, 4 }
 0x31f   : > { %v16752_v55 = vsel %vm14077_vm1, %v8845_v48, %v8846_v17  ;;  %v8097_v23 = vrot.slane %v8095_v34, 5  ;;  %v8111_v42 = vshll.u32 %v16654_v41, 16  ;;  %v8090_v20 = vsel %vm13667_vm11, %v8085_v12, %v8089_v3  ;;  %v8755_v12 = vld [vmem:[#allocation3 + $0x54] sm:$0xe] }
 0x320   : > { %12914 = vmatmul.mubr.bf16.gmra.mxu0 %v13342_v31  ;;  %12936 = vmatpush3.bf16.msra.mxu1 %v13351_v26  ;;  %v11747_v2 = vcombine.low %v16742_v37, %v16752_v55  ;;  %v8103_v26 = vrot.slane %v8101_v8, 5  ;;  %v8107_v27 = vrot.slane %v8105_v0, 4  ;;  %v16762_v54 = vcombine.low %v8080_v9, %v8090_v20  ;;  %v8007_v8 = vld [vmem:[#allocation3 + $0x3c] sm:$0xf]  ;;  %v13362_v37 = vld [vmem:[#allocation4 + $0x1d8] sm:$0xff]  }
 0x321   : > { %12917 = vmatprep.mubr.bf16.mxu0 %v13345_v43  ;;  %13017 = vmatprep.subr.bf16.mxu1 %v16737_v50  ;;  %v8098_v24 = vor.u32 %v8097_v23, %v8094_v40  ;;  %v8113_v17 = vrot.slane %v8111_v42, 5  ;;  %v11732_v31 = vrot.slane %v8754_v28, 9  ;;  %v8850_v48 = vrot.slane %v16748_v49, 5  ;;  %v16778_v40 = vld [vmem:[#allocation3 + $0x58] sm:$0xf]  ;;  %v13347_v23 = vld [vmem:[#allocation3 + $0xc0] sm:$0xff]  }
 0x322   : > { %v8108_v41 = vor.u32 %v8107_v27, %v8103_v26  ;;  %v8853_v51 = vrot.slane %v16755_v11, 5  ;;  %v8116_v3 = vshrl.u32 %v8004_v46, 16  ;;  %v8119_v43 = vshll.u32 %v8004_v46, 16  ;;  %v16782_v42 = vld [vmem:[#allocation3 + $0x5c] sm:$0x1] }
 0x323   : > { %12858 = vmatmul.mubr.bf16.gmra.mxu1 %v11664_v22  ;;  %v8099_v34 = vrot.slane %v8098_v24, 4  ;;  %v8125_v9 = vshll.u32 %v16688_v15, 16  ;;  %v8129_v28 = vshrl.u32 %v16688_v15, 16  ;;  %v16776_v18 = vsel %vm14077_vm1, %v11732_v31, %v8850_v48 }
 0x324   : > { %12861 = vmatprep.mubr.bf16.mxu1 %v11665_v6  ;;  %v8109_v56 = vrot.slane %v8108_v41, 4  ;;  %v8852_v22 = vrot.slane %v8850_v48, 4  ;;  %v8118_v0 = vrot.slane %v8116_v3, 4  ;;  %v8121_v21 = vrot.slane %v8119_v43, 5 }
 0x325   : > { %v8104_v25 = vsel %vm13667_vm11, %v8099_v34, %v8103_v26  ;;  %v8127_v6 = vrot.slane %v8125_v9, 5  ;;  %v8131_v46 = vrot.slane %v8129_v28, 4  ;;  %v8135_v27 = vshll.u32 %v16701_v32, 16 }
 0x326   : > { %v8114_v15 = vsel %vm13667_vm11, %v8109_v56, %v8113_v17  ;;  %v16788_v20 = vsel %vm14077_vm1, %v8852_v22, %v8853_v51  ;;  %v11733_v24 = vrot.slane %v8755_v12, 9  ;;  %v8122_v41 = vor.u32 %v8121_v21, %v8118_v0  ;;  %v16801_v12 = vld [vmem:[#allocation3 + $0x64] sm:$0xf]  ;;  %v8756_v22 = vld [vmem:[#allocation3 + $0x60] sm:$0xe] }
 0x327   : > { %v16791_v31 = vcombine.low %v8104_v25, %v8114_v15  ;;  %v11748_v26 = vcombine.low %v16776_v18, %v16788_v20  ;;  %v8132_v48 = vor.u32 %v8131_v46, %v8127_v6  ;;  %v8137_v17 = vrot.slane %v8135_v27, 5  ;;  %v16818_v0 = vld [vmem:[#allocation3 + $0x68] sm:$0x1] }
 0x328   : > { %12918 = vmatmul.mubr.bf16.gmra.mxu0 %v13347_v23  ;;  %v8857_v3 = vrot.slane %v16778_v40, 5  ;;  %v8860_v51 = vrot.slane %v16782_v42, 5  ;;  %v8140_v34 = vshrl.u32 %v8007_v8, 16  ;;  %v8123_v32 = vrot.slane %v8122_v41, 4  ;;  %v8010_v23 = vld [vmem:[#allocation3 + $0x48] sm:$0xf] }
 0x329   : > { %12985 = vmatprep.mubr.bf16.mxu0 %v11743_v52  ;;  %v8133_v43 = vrot.slane %v8132_v48, 4  ;;  %v8143_v9 = vshll.u32 %v8007_v8, 16  ;;  %v8149_v28 = vshll.u32 %v16712_v57, 16  ;;  %v8153_v56 = vshrl.u32 %v16712_v57, 16  ;;  %v13357_v15 = vld [vmem:[#allocation4 + $0x1f0] sm:$0xff]  }
 0x32a   : > { %v16808_v14 = vsel %vm14077_vm1, %v11733_v24, %v8857_v3  ;;  %v8859_v53 = vrot.slane %v8857_v3, 4  ;;  %v8142_v52 = vrot.slane %v8140_v34, 4  ;;  %v8128_v8 = vsel %vm13667_vm11, %v8123_v32, %v8127_v6  ;;  %v8757_v32 = vld [vmem:[#allocation3 + $0x6c] sm:$0xe] }
 0x32b   : > { %12862 = vmatmul.mubr.bf16.gmra.mxu1 %v11666_v62  ;;  %v8138_v30 = vsel %vm13667_vm11, %v8133_v43, %v8137_v17  ;;  %v8145_v60 = vrot.slane %v8143_v9, 5  ;;  %v8151_v62 = vrot.slane %v8149_v28, 5  ;;  %v8155_v21 = vrot.slane %v8153_v56, 4  ;;  %v8013_v43 = vld [vmem:[#allocation3 + $0x54] sm:$0xf] }
 0x32c   : > { %12865 = vmatprep.mubr.bf16.mxu1 %v11667_v63  ;;  %v16820_v25 = vcombine.low %v8128_v8, %v8138_v30  ;;  %v16824_v57 = vsel %vm14077_vm1, %v8859_v53, %v8860_v51  ;;  %v8159_v45 = vshll.u32 %v16720_v61, 16  ;;  %v11734_v6 = vrot.slane %v8756_v22, 9  ;;  %v13359_v30 = vld [vmem:[#allocation4 + $0x1e8] sm:$0xff]  }
 0x32d   : > { %v11749_v36 = vcombine.low %v16808_v14, %v16824_v57  ;;  %v8146_v63 = vor.u32 %v8145_v60, %v8142_v52  ;;  %v8864_v46 = vrot.slane %v16801_v12, 5  ;;  %v8156_v27 = vor.u32 %v8155_v21, %v8151_v62 }
 0x32e   : > { %v8161_v24 = vrot.slane %v8159_v45, 5  ;;  %v8867_v41 = vrot.slane %v16818_v0, 5  ;;  %v8164_v48 = vshrl.u32 %v8010_v23, 16  ;;  %v18530_v17 = vcombine.low %v16651_v59, %v16667_v1  ;;  %v16843_v1 = vld [vmem:[#allocation3 + $0x70] sm:$0xf] }
 0x32f   : > { %v8147_v3 = vrot.slane %v8146_v63, 4  ;;  %v16836_v61 = vsel %vm14077_vm1, %v11734_v6, %v8864_v46  ;;  %v8866_v51 = vrot.slane %v8864_v46, 4  ;;  %v8167_v34 = vshll.u32 %v8010_v23, 16 }
 0x330   : > { %12986 = vmatmul.mubr.bf16.vlgmr.msra.gmra.mxu0 %v18530_v17  ;;  %v18531_v9 = vcombine.low %v16677_v10, %v16697_v44  ;;  %v8157_v28 = vrot.slane %v8156_v27, 4  ;;  %v8166_v53 = vrot.slane %v8164_v48, 4  ;;  %v8173_v52 = vshll.u32 %v16748_v49, 16  ;;  %v16853_v44 = vld [vmem:[#allocation3 + $0x74] sm:$0x1] }
 0x331   : > { %v8177_v59 = vshrl.u32 %v16748_v49, 16  ;;  %13066 = vmatpush3.bf16.msra.mxu0 %v16622_v19  ;;  %v8152_v56 = vsel %vm13667_vm11, %v8147_v3, %v8151_v62  ;;  %v16850_v22 = vsel %vm14077_vm1, %v8866_v51, %v8867_v41  ;;  %v8169_v8 = vrot.slane %v8167_v34, 5  ;;  %v13360_v3 = vld [vmem:[#allocation4 + $0x1e0] sm:$0xff]  }
 0x332   : > { %12989 = vmatprep.mubr.bf16.mxu0 %v18531_v9  ;;  %v8183_v10 = vshll.u32 %v16755_v11, 16  ;;  %13067 = vmatprep.subr.bf16.mxu0 %v13357_v15  ;;  %v18532_v49 = vcombine.low %v16606_v35, %v16629_v13  ;;  %v8162_v19 = vsel %vm13667_vm11, %v8157_v28, %v8161_v24  ;;  %v11750_v60 = vcombine.low %v16836_v61, %v16850_v22  ;;  %v8758_v24 = vld [vmem:[#allocation3 + $0x78] sm:$0xe]  ;;  %v16875_v28 = vld [vmem:[#allocation3 + $0x7c] sm:$0xf] }
 0x333   : > { %v8175_v62 = vrot.slane %v8173_v52, 5  ;;  %v8179_v23 = vrot.slane %v8177_v59, 4  ;;  %v18533_v21 = vcombine.low %v16646_v38, %v16659_v7  ;;  %v16865_v11 = vcombine.low %v8152_v56, %v8162_v19  ;;  %v8016_v7 = vld [vmem:[#allocation3 + $0x60] sm:$0xf] }
 0x334   : > { %12866 = vmatmul.mubr.bf16.gmra.mxu1 %v18532_v49  ;;  %v8170_v45 = vor.u32 %v8169_v8, %v8166_v53  ;;  %v8185_v63 = vrot.slane %v8183_v10, 5  ;;  %v11735_v6 = vrot.slane %v8757_v32, 9  ;;  %v8871_v35 = vrot.slane %v16843_v1, 5  ;;  %v16882_v52 = vld [vmem:[#allocation3 + $0x80] sm:$0x1] }
 0x335   : > { %12869 = vmatprep.mubr.bf16.mxu1 %v18533_v21  ;;  %v8180_v46 = vor.u32 %v8179_v23, %v8175_v62  ;;  %v8874_v13 = vrot.slane %v16853_v44, 5  ;;  %v8188_v27 = vshrl.u32 %v8013_v43, 16  ;;  %13068 = vmatpush3.bf16.msra.mxu0 %v13357_v15  ;;  %v8191_v48 = vshll.u32 %v8013_v43, 16 }
 0x336   : > { %v8171_v41 = vrot.slane %v8170_v45, 4  ;;  %v8197_v17 = vshll.u32 %v16778_v40, 16  ;;  %v8201_v38 = vshrl.u32 %v16778_v40, 16  ;;  %13069 = vmatprep.subr.bf16.mxu0 %v13359_v30  ;;  %v16873_v34 = vsel %vm14077_vm1, %v11735_v6, %v8871_v35  ;;  %v8019_v6 = vld [vmem:[#allocation3 + $0x6c] sm:$0xf] }
 0x337   : > { %v8181_v51 = vrot.slane %v8180_v46, 4  ;;  %v8873_v32 = vrot.slane %v8871_v35, 4  ;;  %v8190_v9 = vrot.slane %v8188_v27, 4  ;;  %v8193_v40 = vrot.slane %v8191_v48, 5  ;;  %v16916_v48 = vld [vmem:[#allocation3 + $0x8c] sm:$0x1] }
 0x338   : > { %12990 = vmatmul.mubr.bf16.gmra.mxu0 %v11746_v47  ;;  %v8176_v15 = vsel %vm13667_vm11, %v8171_v41, %v8175_v62  ;;  %v8199_v43 = vrot.slane %v8197_v17, 5  ;;  %v8203_v53 = vrot.slane %v8201_v38, 4  ;;  %v8207_v58 = vshll.u32 %v16782_v42, 16  ;;  %v13363_v17 = vld [vmem:[#allocation4 + $0x1d0] sm:$0xff]  }
 0x339   : > { %12993 = vmatprep.mubr.bf16.mxu0 %v11747_v2  ;;  %v8186_v59 = vsel %vm13667_vm11, %v8181_v51, %v8185_v63  ;;  %v16891_v56 = vsel %vm14077_vm1, %v8873_v32, %v8874_v13  ;;  %v11736_v29 = vrot.slane %v8758_v24, 9  ;;  %13070 = vmatpush3.bf16.msra.mxu0 %v13359_v30  ;;  %v8194_v10 = vor.u32 %v8193_v40, %v8190_v9  ;;  %v8759_v30 = vld [vmem:[#allocation3 + $0x84] sm:$0xe]  ;;  %v16910_v13 = vld [vmem:[#allocation3 + $0x88] sm:$0xf] }
 0x33a   : > { %v16894_v47 = vcombine.low %v8176_v15, %v8186_v59  ;;  %v11751_v8 = vcombine.low %v16873_v34, %v16891_v56  ;;  %v8204_v49 = vor.u32 %v8203_v53, %v8199_v43  ;;  %13071 = vmatprep.subr.bf16.mxu0 %v13360_v3  ;;  %v18534_v55 = vcombine.low %v16671_v16, %v16685_v33  ;;  %v13353_v40 = vld [vmem:[#allocation4 + $0x1b0] sm:$0xff]   ;;  %v16981_v34 = vld [vmem:[#allocation3 + $0xa4] sm:$0x1] }
 0x33b   : > { %v8209_v2 = vrot.slane %v8207_v58, 5  ;;  %v8878_v19 = vrot.slane %v16875_v28, 5  ;;  %v8881_v42 = vrot.slane %v16882_v52, 5  ;;  %v8212_v62 = vshrl.u32 %v8016_v7, 16 }
 0x33c   : > { %12870 = vmatmul.mubr.bf16.gmra.mxu1 %v18534_v55  ;;  %v8195_v23 = vrot.slane %v8194_v10, 4  ;;  %v8205_v21 = vrot.slane %v8204_v49, 4  ;;  %v8215_v45 = vshll.u32 %v8016_v7, 16  ;;  %v8221_v63 = vshll.u32 %v16801_v12, 16  ;;  %v13365_v10 = vld [vmem:[#allocation4 + $0x1c8] sm:$0xff]  }
 0x33d   : > { %12937 = vmatprep.mubr.bf16.mxu1 %v16735_v4  ;;  %v16907_v46 = vsel %vm14077_vm1, %v11736_v29, %v8878_v19  ;;  %v8880_v16 = vrot.slane %v8878_v19, 4  ;;  %v8214_v33 = vrot.slane %v8212_v62, 4  ;;  %v8225_v35 = vshrl.u32 %v16801_v12, 16  ;;  %13072 = vmatpush3.bf16.msra.mxu0 %v13360_v3  ;;  %v16939_v29 = vld [vmem:[#allocation3 + $0x94] sm:$0xf] }
 0x33e   : > { %v8200_v4 = vsel %vm13667_vm11, %v8195_v23, %v8199_v43  ;;  %v8210_v27 = vsel %vm13667_vm11, %v8205_v21, %v8209_v2  ;;  %v8217_v24 = vrot.slane %v8215_v45, 5  ;;  %v8223_v41 = vrot.slane %v8221_v63, 5  ;;  %13073 = vmatprep.subr.bf16.mxu0 %v13362_v37  ;;  %v8022_v62 = vld [vmem:[#allocation3 + $0x78] sm:$0xf] }
 0x33f   : > { %v16918_v38 = vcombine.low %v8200_v4, %v8210_v27  ;;  %v16922_v12 = vsel %vm14077_vm1, %v8880_v16, %v8881_v42  ;;  %v8227_v7 = vrot.slane %v8225_v35, 4  ;;  %v8231_v3 = vshll.u32 %v16818_v0, 16  ;;  %v16953_v42 = vld [vmem:[#allocation3 + $0x98] sm:$0x1] }
 0x340   : > { %12994 = vmatmul.mubr.bf16.gmra.mxu0 %v11748_v26  ;;  %v11752_v51 = vcombine.low %v16907_v46, %v16922_v12  ;;  %v8218_v32 = vor.u32 %v8217_v24, %v8214_v33  ;;  %v11737_v9 = vrot.slane %v8759_v30, 9  ;;  %v8885_v15 = vrot.slane %v16910_v13, 5  ;;  %v13366_v4 = vld [vmem:[#allocation4 + $0x1c0] sm:$0xff]  }
 0x341   : > { %12997 = vmatprep.mubr.bf16.mxu0 %v11749_v36  ;;  %v8228_v43 = vor.u32 %v8227_v7, %v8223_v41  ;;  %v8233_v53 = vrot.slane %v8231_v3, 5  ;;  %v8888_v0 = vrot.slane %v16916_v48, 5  ;;  %v8236_v59 = vshrl.u32 %v8019_v6, 16  ;;  %13074 = vmatpush3.bf16.msra.mxu0 %v13362_v37  ;;  %v8760_v37 = vld [vmem:[#allocation3 + $0x90] sm:$0xe] }
 0x342   : > { %v8219_v18 = vrot.slane %v8218_v32, 4  ;;  %v16937_v20 = vsel %vm14077_vm1, %v11737_v9, %v8885_v15  ;;  %v8887_v26 = vrot.slane %v8885_v15, 4  ;;  %v8239_v58 = vshll.u32 %v8019_v6, 16  ;;  %13075 = vmatprep.subr.bf16.mxu0 %v13363_v17  ;;  %v8761_v7 = vld [vmem:[#allocation3 + $0x9c] sm:$0xe] }
 0x343   : > { %v8229_v14 = vrot.slane %v8228_v43, 4  ;;  %v8238_v57 = vrot.slane %v8236_v59, 4  ;;  %v8245_v36 = vshll.u32 %v16843_v1, 16  ;;  %v8249_v49 = vshrl.u32 %v16843_v1, 16  ;;  %v13354_v1 = vld [vmem:[#allocation4 + $0x1a8] sm:$0xff]   ;;  %v13355_v32 = vld [vmem:[#allocation4 + $0x1a0] sm:$0xff]  }
 0x344   : > { %12938 = vmatmul.mubr.bf16.vlgmr.msra.gmra.mxu1 %v16762_v54  ;;  %v8224_v55 = vsel %vm13667_vm11, %v8219_v18, %v8223_v41  ;;  %v16950_v2 = vsel %vm14077_vm1, %v8887_v26, %v8888_v0  ;;  %v8241_v19 = vrot.slane %v8239_v58, 5  ;;  %v8255_v54 = vshll.u32 %v16853_v44, 16  ;;  %v8025_v3 = vld [vmem:[#allocation3 + $0x84] sm:$0xf] }
 0x345   : > { %13018 = vmatpush3.bf16.msra.mxu1 %v16737_v50  ;;  %12941 = vmatprep.mubr.bf16.mxu1 %v16791_v31  ;;  %v8234_v50 = vsel %vm13667_vm11, %v8229_v14, %v8233_v53  ;;  %v11753_v31 = vcombine.low %v16937_v20, %v16950_v2  ;;  %v8247_v30 = vrot.slane %v8245_v36, 5  ;;  %v8251_v23 = vrot.slane %v8249_v49, 4  ;;  %v13358_v14 = vld [vmem:[#allocation4 + $0x198] sm:$0xff]  }
 0x346   : > { %13019 = vmatprep.subr.bf16.mxu1 %v13353_v40  ;;  %13076 = vmatpush3.bf16.msra.mxu0 %v13363_v17  ;;  %v16959_v21 = vcombine.low %v8224_v55, %v8234_v50  ;;  %v8242_v45 = vor.u32 %v8241_v19, %v8238_v57  ;;  %v8257_v63 = vrot.slane %v8255_v54, 5  ;;  %v11738_v6 = vrot.slane %v8760_v37, 9 }
 0x347   : > { %13077 = vmatprep.subr.bf16.mxu0 %v13365_v10  ;;  %v8252_v44 = vor.u32 %v8251_v23, %v8247_v30  ;;  %v8892_v16 = vrot.slane %v16939_v29, 5  ;;  %v8895_v33 = vrot.slane %v16953_v42, 5  ;;  %v8260_v35 = vshrl.u32 %v8022_v62, 16 }
 0x348   : > { %12998 = vmatmul.mubr.bf16.gmra.mxu0 %v11750_v60  ;;  %v8243_v27 = vrot.slane %v8242_v45, 4  ;;  %v8263_v24 = vshll.u32 %v8022_v62, 16  ;;  %v8269_v41 = vshll.u32 %v16875_v28, 16  ;;  %v8273_v17 = vshrl.u32 %v16875_v28, 16  ;;  %v16975_v60 = vld [vmem:[#allocation3 + $0xa0] sm:$0xf] }
 0x349   : > { %13020 = vmatpush3.bf16.msra.mxu1 %v13353_v40  ;;  %13001 = vmatprep.mubr.bf16.mxu0 %v11751_v8  ;;  %v8253_v9 = vrot.slane %v8252_v44, 4  ;;  %v16973_v15 = vsel %vm14077_vm1, %v11738_v6, %v8892_v16  ;;  %v8894_v61 = vrot.slane %v8892_v16, 4  ;;  %v8262_v22 = vrot.slane %v8260_v35, 4  ;;  %v16977_v40 = vpop.f32.mrf.mxu0  ;;  %v8028_v62 = vld [vmem:[#allocation3 + $0x90] sm:$0xf] }
 0x34a   : > { %13021 = vmatprep.subr.bf16.mxu1 %v13354_v1  ;;  %v8248_v28 = vsel %vm13667_vm11, %v8243_v27, %v8247_v30  ;;  %v8265_v43 = vrot.slane %v8263_v24, 5  ;;  %v8271_v53 = vrot.slane %v8269_v41, 5  ;;  %v8275_v0 = vrot.slane %v8273_v17, 4  ;;  %13078 = vmatpush3.bf16.msra.mxu0 %v13365_v10  ;;  %v8762_v45 = vld [vmem:[#allocation3 + $0xa8] sm:$0xe] }
 0x34b   : > { %v8258_v56 = vsel %vm13667_vm11, %v8253_v9, %v8257_v63  ;;  %v16988_v8 = vsel %vm14077_vm1, %v8894_v61, %v8895_v33  ;;  %v8279_v59 = vshll.u32 %v16882_v52, 16  ;;  %v11739_v18 = vrot.slane %v8761_v7, 9  ;;  %13079 = vmatprep.subr.bf16.mxu0 %v13366_v4  ;;  %v16998_v37 = vpop.f32.mrf.mxu0  ;;  %v17014_v33 = vld [vmem:[#allocation3 + $0xac] sm:$0xf]  ;;  %v17016_v35 = vld [vmem:[#allocation3 + $0xb0] sm:$0x1] }
 0x34c   : > { %12942 = vmatmul.mubr.bf16.gmra.mxu1 %v16820_v25  ;;  %v16992_v26 = vcombine.low %v8248_v28, %v8258_v56  ;;  %v11754_v58 = vcombine.low %v16973_v15, %v16988_v8  ;;  %v8266_v25 = vor.u32 %v8265_v43, %v8262_v22  ;;  %v8899_v10 = vrot.slane %v16975_v60, 5  ;;  %v8763_v22 = vld [vmem:[#allocation3 + $0xb4] sm:$0xe]  ;;  %v8031_v28 = vld [vmem:[#allocation3 + $0x9c] sm:$0xf] }
 0x34d   : > { %12945 = vmatprep.mubr.bf16.mxu1 %v16865_v11  ;;  %13022 = vmatpush3.bf16.msra.mxu1 %v13354_v1  ;;  %v8276_v57 = vor.u32 %v8275_v0, %v8271_v53  ;;  %v8281_v36 = vrot.slane %v8279_v59, 5  ;;  %v8902_v49 = vrot.slane %v16981_v34, 5  ;;  %v8284_v52 = vshrl.u32 %v8025_v3, 16  ;;  %v17024_v27 = vpop.f32.mrf.mxu0  ;;  %v17038_v56 = vld [vmem:[#allocation3 + $0xb8] sm:$0xf] }
 0x34e   : > { %13023 = vmatprep.subr.bf16.mxu1 %v13355_v32  ;;  %v8267_v55 = vrot.slane %v8266_v25, 4  ;;  %v17002_v11 = vsel %vm14077_vm1, %v11739_v18, %v8899_v10  ;;  %v8901_v19 = vrot.slane %v8899_v10, 4  ;;  %v8287_v54 = vshll.u32 %v8025_v3, 16  ;;  %13080 = vmatpush3.bf16.msra.mxu0 %v13366_v4  ;;  %v13361_v4 = vld [vmem:[#allocation4 + $0x190] sm:$0xff]   ;;  %v17044_v10 = vld [vmem:[#allocation3 + $0xbc] sm:$0x1] }
 0x34f   : > { %v8277_v1 = vrot.slane %v8276_v57, 4  ;;  %v8286_v50 = vrot.slane %v8284_v52, 4  ;;  %v8293_v30 = vshll.u32 %v16910_v13, 16  ;;  %v8297_v23 = vshrl.u32 %v16910_v13, 16 }
 0x350   : > { %13002 = vmatmul.mubr.bf16.gmra.mxu0 %v11752_v51  ;;  %v8272_v63 = vsel %vm13667_vm11, %v8267_v55, %v8271_v53  ;;  %v8903_v6 = vsel %vm14077_vm1, %v8901_v19, %v8902_v49  ;;  %v8289_v44 = vrot.slane %v8287_v54, 5  ;;  %v8303_v16 = vshll.u32 %v16916_v48, 16 }
 0x351   : > { %13024 = vmatpush3.bf16.msra.mxu1 %v13355_v32  ;;  %13005 = vmatprep.mubr.bf16.mxu0 %v11753_v31  ;;  %v8282_v46 = vsel %vm13667_vm11, %v8277_v1, %v8281_v36  ;;  %v11755_v13 = vcombine.low %v17002_v11, %v8903_v6  ;;  %v8295_v12 = vrot.slane %v8293_v30, 5  ;;  %v8299_v51 = vrot.slane %v8297_v23, 4 }
 0x352   : > { %13025 = vmatprep.subr.bf16.mxu1 %v13358_v14  ;;  %v17026_v48 = vcombine.low %v8272_v63, %v8282_v46  ;;  %v8290_v24 = vor.u32 %v8289_v44, %v8286_v50  ;;  %v8305_v41 = vrot.slane %v8303_v16, 5  ;;  %v11740_v17 = vrot.slane %v8762_v45, 9  ;;  %v13367_v63 = vld [vmem:[#allocation4 + $0x180] sm:$0xff]  }
 0x353   : > { %v8300_v20 = vor.u32 %v8299_v51, %v8295_v12  ;;  %v8906_v2 = vrot.slane %v17014_v33, 5  ;;  %v8909_v31 = vrot.slane %v17016_v35, 5  ;;  %v8308_v7 = vshrl.u32 %v8028_v62, 16 }
 0x354   : > { %12946 = vmatmul.mubr.bf16.gmra.mxu1 %v16894_v47  ;;  %v8291_v3 = vrot.slane %v8290_v24, 4  ;;  %v8311_v32 = vshll.u32 %v8028_v62, 16  ;;  %v8317_v9 = vshll.u32 %v16939_v29, 16  ;;  %v8321_v61 = vshrl.u32 %v16939_v29, 16 }
 0x355   : > { %12949 = vmatprep.mubr.bf16.mxu1 %v16918_v38  ;;  %13026 = vmatpush3.bf16.msra.mxu1 %v13358_v14  ;;  %v8301_v43 = vrot.slane %v8300_v20, 4  ;;  %v17036_v47 = vsel %vm14077_vm1, %v11740_v17, %v8906_v2  ;;  %v8908_v53 = vrot.slane %v8906_v2, 4  ;;  %v8310_v0 = vrot.slane %v8308_v7, 4  ;;  %v17040_v38 = vpop.f32.mrf.mxu0  ;;  %v13364_v14 = vld [vmem:[#allocation4 + $0x188] sm:$0xff]  }
 0x356   : > { %13027 = vmatprep.subr.bf16.mxu1 %v13361_v4  ;;  %v8296_v59 = vsel %vm13667_vm11, %v8291_v3, %v8295_v12  ;;  %v8313_v18 = vrot.slane %v8311_v32, 5  ;;  %v8319_v25 = vrot.slane %v8317_v9, 5  ;;  %v8323_v29 = vrot.slane %v8321_v61, 4  ;;  %v17083_v9 = vld [vmem:[#allocation4 + $0x238] sm:$0xff]  }
 0x357   : > { %v8306_v57 = vsel %vm13667_vm11, %v8301_v43, %v8305_v41  ;;  %v8910_v36 = vsel %vm14077_vm1, %v8908_v53, %v8909_v31  ;;  %v8327_v49 = vshll.u32 %v16953_v42, 16  ;;  %v11741_v52 = vrot.slane %v8763_v22, 9  ;;  %v8764_v42 = vld [vmem:[#allocation3 + $0xc0] sm:$0xe]  ;;  %v17059_v23 = vpop.f32.mrf.mxu0  ;;  %v8034_v41 = vld [vmem:[#allocation3 + $0xa8] sm:$0xf] }
 0x358   : > { %13006 = vmatmul.mubr.bf16.gmra.mxu0 %v11754_v58  ;;  %v17054_v55 = vcombine.low %v8296_v59, %v8306_v57  ;;  %v11756_v11 = vcombine.low %v17036_v47, %v8910_v36  ;;  %v8314_v19 = vor.u32 %v8313_v18, %v8310_v0  ;;  %v8324_v54 = vor.u32 %v8323_v29, %v8319_v25 }
 0x359   : > { %13009 = vmatprep.mubr.bf16.mxu0 %v11755_v13  ;;  %v8329_v62 = vrot.slane %v8327_v49, 5  ;;  %v8913_v1 = vrot.slane %v17038_v56, 5  ;;  %v8916_v50 = vrot.slane %v17044_v10, 5  ;;  %13028 = vmatpush3.bf16.msra.mxu1 %v13361_v4  ;;  %v8332_v30 = vshrl.u32 %v8031_v28, 16  ;;  %v17066_v13 = vld [vmem:[#allocation3 + $0xc4] sm:$0xf] }
 0x35a   : > { %v8315_v45 = vrot.slane %v8314_v19, 4  ;;  %v8325_v15 = vrot.slane %v8324_v54, 4  ;;  %v8335_v8 = vshll.u32 %v8031_v28, 16  ;;  %v8341_v58 = vshll.u32 %v16975_v60, 16  ;;  %13029 = vmatprep.subr.bf16.mxu1 %v13364_v14  ;;  %v17097_v19 = vld [vmem:[#allocation3 + $0x1c] sm:$0xf] }
 0x35b   : > { %v8914_v6 = vsel %vm14077_vm1, %v11741_v52, %v8913_v1  ;;  %v8915_v44 = vrot.slane %v8913_v1, 4  ;;  %v8334_v16 = vrot.slane %v8332_v30, 4  ;;  %v8345_v46 = vshrl.u32 %v16975_v60, 16  ;;  %v8037_v30 = vld [vmem:[#allocation3 + $0xb4] sm:$0xf] }
 0x35c   : > { %12950 = vmatmul.mubr.bf16.gmra.mxu1 %v16959_v21  ;;  %v8320_v12 = vsel %vm13667_vm11, %v8315_v45, %v8319_v25  ;;  %v8330_v51 = vsel %vm13667_vm11, %v8325_v15, %v8329_v62  ;;  %v8337_v4 = vrot.slane %v8335_v8, 5  ;;  %v8343_v24 = vrot.slane %v8341_v58, 5  ;;  %v17073_v21 = vld [vmem:[#allocation3 + $0xc8] sm:$0x1] }
 0x35d   : > { %12953 = vmatprep.mubr.bf16.mxu1 %v16992_v26  ;;  %v17075_v17 = vcombine.low %v8320_v12, %v8330_v51  ;;  %v8917_v60 = vsel %vm14077_vm1, %v8915_v44, %v8916_v50  ;;  %v8347_v20 = vrot.slane %v8345_v46, 4  ;;  %v8351_v2 = vshll.u32 %v16981_v34, 16  ;;  %13030 = vmatpush3.bf16.msra.mxu1 %v13364_v14  ;;  %v17080_v26 = vpop.f32.mrf.mxu0  ;;  %v9634_v14 = vld [vmem:[#allocation3 + $0x18] sm:$0xf]  ;;  %v17103_v50 = vld [vmem:[#allocation3 + $0x20] sm:$0x1] }
 0x35e   : > { %v11757_v31 = vcombine.low %v8914_v6, %v8917_v60  ;;  %v8338_v7 = vor.u32 %v8337_v4, %v8334_v16  ;;  %v11742_v3 = vrot.slane %v8764_v42, 9  ;;  %v8920_v32 = vrot.slane %v17066_v13, 5  ;;  %13031 = vmatprep.subr.bf16.mxu1 %v13367_v63  ;;  %v17108_v6 = vpop.f32.mrf.mxu1 }
 0x35f   : > { %v8348_v61 = vor.u32 %v8347_v20, %v8343_v24  ;;  %v8353_v22 = vrot.slane %v8351_v2, 5  ;;  %v8923_v28 = vrot.slane %v17073_v21, 5  ;;  %v8356_v43 = vshrl.u32 %v8034_v41, 16  ;;  %v17090_v57 = vpop.f32.mrf.mxu0 }
 0x360   : > { %13010 = vmatmul.mubr.bf16.gmra.mxu0 %v11756_v11  ;;  %v8339_v47 = vrot.slane %v8338_v7, 4  ;;  %v8921_v34 = vsel %vm14077_vm1, %v11742_v3, %v8920_v32  ;;  %v8922_v53 = vrot.slane %v8920_v32, 4  ;;  %v8359_v0 = vshll.u32 %v8034_v41, 16  ;;  %v9637_v7 = vld [vmem:[#allocation3 + $0x24] sm:$0xf] }
 0x361   : > { %13013 = vmatprep.mubr.bf16.mxu0 %v11757_v31  ;;  %v8349_v59 = vrot.slane %v8348_v61, 4  ;;  %v8358_v18 = vrot.slane %v8356_v43, 4  ;;  %v8365_v25 = vshll.u32 %v17014_v33, 16  ;;  %v8369_v29 = vshrl.u32 %v17014_v33, 16  ;;  %13032 = vmatpush3.bf16.msra.mxu1 %v13367_v63  ;;  %v17110_v44 = vpop.f32.mrf.mxu0 }
 0x362   : > { %v8344_v36 = vsel %vm13667_vm11, %v8339_v47, %v8343_v24  ;;  %v8924_v49 = vsel %vm14077_vm1, %v8922_v53, %v8923_v28  ;;  %v8361_v52 = vrot.slane %v8359_v0, 5  ;;  %v8375_v11 = vshll.u32 %v17016_v35, 16  ;;  %13113 = vmatprep.subr.bf16.mxu1 %v17083_v9  ;;  %18535 = vst [vmem:[#allocation16_spill] sm:$0xff] %v17110_v44  ;;  %v17118_v28 = vpop.f32.mrf.mxu1 }
 0x363   : > { %v8354_v33 = vsel %vm13667_vm11, %v8349_v59, %v8353_v22  ;;  %v11758_v54 = vcombine.low %v8921_v34, %v8924_v49  ;;  %v8367_v62 = vrot.slane %v8365_v25, 5  ;;  %v8371_v1 = vrot.slane %v8369_v29, 4  ;;  %v17124_v59 = vld [vmem:[#allocation3 + $0x28] sm:$0xf] }
 0x364   : > { %12954 = vmatmul.mubr.bf16.gmra.mxu1 %v17026_v48  ;;  %v11715_v42 = vcombine.low %v8344_v36, %v8354_v33  ;;  %v8362_v45 = vor.u32 %v8361_v52, %v8358_v18  ;;  %v8377_v35 = vrot.slane %v8375_v11, 5  ;;  %v9683_v15 = vshrl.u32 %v9634_v14, 16  ;;  %v17120_v43 = vpop.f32.mrf.mxu0 }
 0x365   : > { %12957 = vmatprep.mubr.bf16.mxu1 %v17054_v55  ;;  %v8372_v8 = vor.u32 %v8371_v1, %v8367_v62  ;;  %v9686_v58 = vshll.u32 %v9634_v14, 16  ;;  %v9692_v63 = vshll.u32 %v17097_v19, 16  ;;  %v9696_v48 = vshrl.u32 %v17097_v19, 16  ;;  %v17127_v14 = vld [vmem:[#allocation3 + $0x2c] sm:$0x1]  ;;  %v17134_v1 = vpop.f32.mrf.mxu1 }
 0x366   : > { %v8363_v16 = vrot.slane %v8362_v45, 4  ;;  %v9685_v46 = vrot.slane %v9683_v15, 4  ;;  %v9702_v12 = vshll.u32 %v17103_v50, 16  ;;  %v8380_v51 = vshrl.u32 %v8037_v30, 16 }
 0x367   : > { %v8373_v55 = vrot.slane %v8372_v8, 4  ;;  %v9688_v4 = vrot.slane %v9686_v58, 5  ;;  %v9694_v24 = vrot.slane %v9692_v63, 5  ;;  %v9698_v41 = vrot.slane %v9696_v48, 4 }
 0x368   : > { %13014 = vmatmul.mubr.bf16.gmra.mxu0 %v11758_v54  ;;  %v8368_v60 = vsel %vm13667_vm11, %v8363_v16, %v8367_v62  ;;  %v9704_v20 = vrot.slane %v9702_v12, 5  ;;  %v8382_v2 = vrot.slane %v8380_v51, 4  ;;  %v8383_v31 = vshll.u32 %v8037_v30, 16  ;;  %v8040_v54 = vld [vmem:[#allocation3 + $0xc0] sm:$0xf]  ;;  %v17136_v30 = vpop.f32.mrf.mxu0 }
 0x369   : > { %v8378_v3 = vsel %vm13667_vm11, %v8373_v55, %v8377_v35  ;;  %v9689_v32 = vor.u32 %v9688_v4, %v9685_v46  ;;  %v9699_v61 = vor.u32 %v9698_v41, %v9694_v24  ;;  %v8389_v22 = vshll.u32 %v17038_v56, 16 }
 0x36a   : > { %v11716_v47 = vcombine.low %v8368_v60, %v8378_v3  ;;  %v8385_v34 = vrot.slane %v8383_v31, 5  ;;  %v8393_v53 = vshrl.u32 %v17038_v56, 16  ;;  %v8399_v0 = vshll.u32 %v17044_v10, 16  ;;  %v9640_v60 = vld [vmem:[#allocation3 + $0x30] sm:$0xf] }
 0x36b   : > { %v9690_v18 = vrot.slane %v9689_v32, 4  ;;  %v9700_v25 = vrot.slane %v9699_v61, 4  ;;  %v8391_v29 = vrot.slane %v8389_v22, 5  ;;  %v9707_v36 = vshrl.u32 %v9637_v7, 16  ;;  %v17150_v61 = vld [vmem:[#allocation3 + $0x34] sm:$0xf] }
 0x36c   : > { %12958 = vmatmul.mubr.bf16.gmra.mxu1 %v17075_v17  ;;  %v8386_v49 = vor.u32 %v8385_v34, %v8382_v2  ;;  %v8395_v52 = vrot.slane %v8393_v53, 4  ;;  %v8401_v11 = vrot.slane %v8399_v0, 5  ;;  %v9710_v33 = vshll.u32 %v9637_v7, 16  ;;  %v17145_v2 = vpop.f32.mrf.mxu0 }
 0x36d   : > { %12961 = vmatprep.mubr.bf16.mxu1 %v11715_v42  ;;  %v9695_v56 = vsel %vm13667_vm11, %v9690_v18, %v9694_v24  ;;  %v9705_v10 = vsel %vm13667_vm11, %v9700_v25, %v9704_v20  ;;  %v9709_v62 = vrot.slane %v9707_v36, 4  ;;  %v9716_v17 = vshll.u32 %v17124_v59, 16  ;;  %v17143_v20 = vpop.f32.mrf.mxu1  ;;  %v17155_v36 = vld [vmem:[#allocation3 + $0x38] sm:$0x1] }
 0x36e   : > { %v11791_v45 = vcombine.low %v9695_v56, %v9705_v10  ;;  %v8387_v42 = vrot.slane %v8386_v49, 4  ;;  %v8396_v35 = vor.u32 %v8395_v52, %v8391_v29  ;;  %v9712_v15 = vrot.slane %v9710_v33, 5 }
 0x36f   : > { %v9718_v8 = vrot.slane %v9716_v17, 5  ;;  %v9720_v58 = vshrl.u32 %v17124_v59, 16  ;;  %v9726_v63 = vshll.u32 %v17127_v14, 16  ;;  %v8404_v48 = vshrl.u32 %v8040_v54, 16  ;;  %v9643_v17 = vld [vmem:[#allocation3 + $0x3c] sm:$0xf] }
 0x370   : > { %13081 = vmatprep.mubr.bf16.mxu0 %v11791_v45  ;;  %v8392_v16 = vsel %vm13667_vm11, %v8387_v42, %v8391_v29  ;;  %v8397_v46 = vrot.slane %v8396_v35, 4  ;;  %v9713_v12 = vor.u32 %v9712_v15, %v9709_v62  ;;  %v8407_v51 = vshll.u32 %v8040_v54, 16  ;;  %v17160_v54 = vpop.f32.mrf.mxu0 }
 0x371   : > { %v9722_v55 = vrot.slane %v9720_v58, 4  ;;  %v9728_v4 = vrot.slane %v9726_v63, 5  ;;  %v8406_v24 = vrot.slane %v8404_v48, 4  ;;  %v8413_v41 = vshll.u32 %v17066_v13, 16 }
 0x372   : > { %v8402_v31 = vsel %vm13667_vm11, %v8397_v46, %v8401_v11  ;;  %v9714_v7 = vrot.slane %v9713_v12, 4  ;;  %v8409_v3 = vrot.slane %v8407_v51, 5  ;;  %v8417_v32 = vshrl.u32 %v17066_v13, 16  ;;  %v17170_v51 = vld [vmem:[#allocation3 + $0x44] sm:$0x1] }
 0x373   : > { %v11717_v22 = vcombine.low %v8392_v16, %v8402_v31  ;;  %v9723_v34 = vor.u32 %v9722_v55, %v9718_v8  ;;  %v8415_v53 = vrot.slane %v8413_v41, 5  ;;  %v8423_v0 = vshll.u32 %v17073_v21, 16 }
 0x374   : > { %12962 = vmatmul.mubr.bf16.gmra.mxu1 %v11716_v47  ;;  %v9719_v18 = vsel %vm13667_vm11, %v9714_v7, %v9718_v8  ;;  %v8410_v25 = vor.u32 %v8409_v3, %v8406_v24  ;;  %v8419_v29 = vrot.slane %v8417_v32, 4  ;;  %v9731_v49 = vshrl.u32 %v9640_v60, 16  ;;  %v17158_v47 = vpop.f32.mrf.mxu1  ;;  %v17166_v8 = vld [vmem:[#allocation3 + $0x40] sm:$0xf]  ;;  %v9646_v32 = vld [vmem:[#allocation3 + $0x48] sm:$0xf] }
 0x375   : > { %12965 = vmatprep.mubr.bf16.mxu1 %v11717_v22  ;;  %v9724_v52 = vrot.slane %v9723_v34, 4  ;;  %v8425_v11 = vrot.slane %v8423_v0, 5  ;;  %v9734_v13 = vshll.u32 %v9640_v60, 16  ;;  %v9740_v33 = vshll.u32 %v17150_v61, 16 }
 0x376   : > { %v8411_v56 = vrot.slane %v8410_v25, 4  ;;  %v8420_v21 = vor.u32 %v8419_v29, %v8415_v53  ;;  %v9733_v10 = vrot.slane %v9731_v49, 4  ;;  %v9744_v62 = vshrl.u32 %v17150_v61, 16  ;;  %v17172_v41 = vpop.f32.mrf.mxu1 }
 0x377   : > { %v9729_v45 = vsel %vm13667_vm11, %v9724_v52, %v9728_v4  ;;  %v9736_v42 = vrot.slane %v9734_v13, 5  ;;  %v9742_v35 = vrot.slane %v9740_v33, 5  ;;  %v9750_v15 = vshll.u32 %v17155_v36, 16  ;;  %v17181_v13 = vld [vmem:[#allocation3 + $0x4c] sm:$0xf] }
 0x378   : > { %v11792_v58 = vcombine.low %v9719_v18, %v9729_v45  ;;  %v8416_v63 = vsel %vm13667_vm11, %v8411_v56, %v8415_v53  ;;  %v8421_v48 = vrot.slane %v8420_v21, 4  ;;  %v9746_v16 = vrot.slane %v9744_v62, 4  ;;  %v17174_v4 = vpop.f32.mrf.mxu0  ;;  %v13368_v53 = vld [vmem:[#allocation3 + $0x18] sm:$0xff]   ;;  %v17189_v21 = vld [vmem:[#allocation3 + $0x50] sm:$0x1]  ;;  %v17191_v62 = vpop.f32.mrf.mxu1 }
 0x379   : > { %v9737_v46 = vor.u32 %v9736_v42, %v9733_v10  ;;  %v9752_v12 = vrot.slane %v9750_v15, 5  ;;  %v9755_v55 = vshrl.u32 %v9643_v17, 16  ;;  %v9758_v24 = vshll.u32 %v9643_v17, 16 }
 0x37a   : > { %13082 = vmatmul.mubr.bf16.vlgmr.msra.gmra.mxu0 %v11792_v58  ;;  %v8426_v60 = vsel %vm13667_vm11, %v8421_v48, %v8425_v11  ;;  %v9747_v31 = vor.u32 %v9746_v16, %v9742_v35  ;;  %v9764_v7 = vshll.u32 %v17166_v8, 16  ;;  %v9768_v3 = vshrl.u32 %v17166_v8, 16  ;;  %v17193_v17 = vpop.f32.mrf.mxu0 }
 0x37b   : > { %v11718_v22 = vcombine.low %v8416_v63, %v8426_v60  ;;  %v9738_v34 = vrot.slane %v9737_v46, 4  ;;  %v9757_v0 = vrot.slane %v9755_v55, 4  ;;  %v9760_v18 = vrot.slane %v9758_v24, 5  ;;  %v9649_v24 = vld [vmem:[#allocation3 + $0x54] sm:$0xf] }
 0x37c   : > { %v9748_v25 = vrot.slane %v9747_v31, 4  ;;  %v9766_v29 = vrot.slane %v9764_v7, 5  ;;  %v9770_v49 = vrot.slane %v9768_v3, 4  ;;  %v9774_v52 = vshll.u32 %v17170_v51, 16  ;;  %v17208_v7 = vld [vmem:[#allocation3 + $0x58] sm:$0xf]  ;;  %v17210_v3 = vpop.f32.mrf.mxu1 }
 0x37d   : > { %12966 = vmatmul.mubr.bf16.gmra.mxu1 %v11718_v22  ;;  %v9743_v11 = vsel %vm13667_vm11, %v9738_v34, %v9742_v35  ;;  %v9761_v33 = vor.u32 %v9760_v18, %v9757_v0  ;;  %v17187_v56 = vadd.f32 %v16977_v40, %v17108_v6  ;;  %v9779_v10 = vshrl.u32 %v9646_v32, 16  ;;  %18536 = vst [vmem:[#allocation15_spill] sm:$0xff] %v17210_v3  ;;  %v13370_v18 = vld [vmem:[#allocation3 + $0x24] sm:$0xff]  }
 0x37e   : > { %v9753_v45 = vsel %vm13667_vm11, %v9748_v25, %v9752_v12  ;;  %13033 = vmatprep.mubr.bf16.mxu1 %v13368_v53  ;;  %v9771_v42 = vor.u32 %v9770_v49, %v9766_v29  ;;  %v9776_v15 = vrot.slane %v9774_v52, 5  ;;  %v9782_v58 = vshll.u32 %v9646_v32, 16  ;;  %v17212_v32 = vpop.f32.mrf.mxu0  ;;  %v13372_v49 = vld [vmem:[#allocation4 + $0x230] sm:$0xff]  }
 0x37f   : > { %v11793_v35 = vcombine.low %v9743_v11, %v9753_v45  ;;  %v9762_v63 = vrot.slane %v9761_v33, 4  ;;  %v9781_v48 = vrot.slane %v9779_v10, 4  ;;  %v9788_v40 = vshll.u32 %v17181_v13, 16  ;;  %v13371_v33 = vld [vmem:[#allocation3 + $0x30] sm:$0xff]   ;;  %v9652_v45 = vld [vmem:[#allocation3 + $0x60] sm:$0xf] }
 0x380   : > { %v9772_v6 = vrot.slane %v9771_v42, 4  ;;  %v9784_v16 = vrot.slane %v9782_v58, 5  ;;  %v9792_v46 = vshrl.u32 %v17181_v13, 16  ;;  %v9798_v55 = vshll.u32 %v17189_v21, 16 }
 0x381   : > { %13085 = vmatprep.mubr.bf16.mxu0 %v11793_v35  ;;  %v9790_v60 = vrot.slane %v9788_v40, 5  ;;  %v17202_v12 = vadd.f32 %v16998_v37, %v17118_v28  ;;  %v17206_v31 = vadd.f32 %v17024_v27, %v17134_v1  ;;  %v9767_v22 = vsel %vm13667_vm11, %v9762_v63, %v9766_v29  ;;  %v17218_v37 = vld [vmem:[#allocation3 + $0x5c] sm:$0x1]  ;;  %v17227_v63 = vld [vmem:[#allocation3 + $0x64] sm:$0xf]  ;;  %v17231_v40 = vpop.f32.mrf.mxu0 }
 0x382   : > { %v9777_v34 = vsel %vm13667_vm11, %v9772_v6, %v9776_v15  ;;  %v9785_v53 = vor.u32 %v9784_v16, %v9781_v48  ;;  %v9794_v0 = vrot.slane %v9792_v46, 4  ;;  %v9800_v27 = vrot.slane %v9798_v55, 5 }
 0x383   : > { %v11794_v28 = vcombine.low %v9767_v22, %v9777_v34  ;;  %v9803_v1 = vshrl.u32 %v9649_v24, 16  ;;  %v9806_v25 = vshll.u32 %v9649_v24, 16  ;;  %v9812_v10 = vshll.u32 %v17208_v7, 16 }
 0x384   : > { %v9786_v52 = vrot.slane %v9785_v53, 4  ;;  %v9795_v11 = vor.u32 %v9794_v0, %v9790_v60  ;;  %v9816_v29 = vshrl.u32 %v17208_v7, 16  ;;  %v9822_v58 = vshll.u32 %v17218_v37, 16  ;;  %v17229_v48 = vpop.f32.mrf.mxu1 }
 0x385   : > { %13086 = vmatmul.mubr.bf16.gmra.mxu0 %v11794_v28  ;;  %13034 = vmatmul.mubr.bf16.vlgmr.msra.gmra.mxu1 %v13370_v18  ;;  %v9805_v42 = vrot.slane %v9803_v1, 4  ;;  %v9808_v15 = vrot.slane %v9806_v25, 5  ;;  %v17225_v35 = vadd.f32 %v17059_v23, %v17158_v47  ;;  %v9814_v46 = vrot.slane %v9812_v10, 5  ;;  %v17236_v23 = vld [vmem:[#allocation3 + $0x68] sm:$0x1]  ;;  %v13375_v18 = vld [vmem:[#allocation4 + $0x228] sm:$0xff]  }
 0x386   : > { %v9791_v6 = vsel %vm13667_vm11, %v9786_v52, %v9790_v60  ;;  %v9796_v16 = vrot.slane %v9795_v11, 4  ;;  %13114 = vmatpush3.bf16.msra.mxu1 %v17083_v9  ;;  %13037 = vmatprep.mubr.bf16.mxu1 %v13371_v33  ;;  %v9818_v55 = vrot.slane %v9816_v29, 4  ;;  %v9824_v22 = vrot.slane %v9822_v58, 5  ;;  %v13373_v25 = vld [vmem:[#allocation3 + $0x3c] sm:$0xff]   ;;  %v17242_v33 = vpop.f32.mrf.mxu1 }
 0x387   : > { %18537 = vst [vmem:[#allocation18_spill] sm:$0xff] %v17225_v35  ;;  %v9809_v24 = vor.u32 %v9808_v15, %v9805_v42  ;;  %13115 = vmatprep.subr.bf16.mxu1 %v13372_v49  ;;  %v9827_v47 = vshrl.u32 %v9652_v45, 16  ;;  %v9830_v34 = vshll.u32 %v9652_v45, 16  ;;  %v9836_v28 = vshll.u32 %v17227_v63, 16  ;;  %v9655_v15 = vld [vmem:[#allocation3 + $0x6c] sm:$0xf] }
 0x388   : > { %v9801_v53 = vsel %vm13667_vm11, %v9796_v16, %v9800_v27  ;;  %v9819_v0 = vor.u32 %v9818_v55, %v9814_v46  ;;  %v9840_v60 = vshrl.u32 %v17227_v63, 16  ;;  %v9846_v27 = vshll.u32 %v17236_v23, 16  ;;  %v17255_v55 = vld [vmem:[#allocation3 + $0x70] sm:$0xf]  ;;  %v17291_v35 = vld [vmem:[#allocation3 + $0x88] sm:$0xf] }
 0x389   : > { %v11795_v9 = vcombine.low %v9791_v6, %v9801_v53  ;;  %v9810_v1 = vrot.slane %v9809_v24, 4  ;;  %v9829_v52 = vrot.slane %v9827_v47, 4  ;;  %v9832_v11 = vrot.slane %v9830_v34, 5  ;;  %v17244_v10 = vpop.f32.mrf.mxu0  ;;  %v17257_v24 = vld [vmem:[#allocation3 + $0x74] sm:$0x1]  ;;  %v13378_v47 = vld [vmem:[#allocation4 + $0x220] sm:$0xff]  }
 0x38a   : > { %v9820_v29 = vrot.slane %v9819_v0, 4  ;;  %v9838_v45 = vrot.slane %v9836_v28, 5  ;;  %v9842_v42 = vrot.slane %v9840_v60, 4  ;;  %13116 = vmatpush3.bf16.msra.mxu1 %v13372_v49  ;;  %v17249_v6 = vadd.f32 %v17080_v26, %v17172_v41  ;;  %v13374_v41 = vld [vmem:[#allocation3 + $0x48] sm:$0xff]  }
 0x38b   : > { %13089 = vmatprep.mubr.bf16.mxu0 %v11795_v9  ;;  %v9833_v58 = vor.u32 %v9832_v11, %v9829_v52  ;;  %v17253_v16 = vadd.f32 %v17090_v57, %v17191_v62  ;;  %v17259_v34 = vpop.f32.mrf.mxu0  ;;  %v9815_v49 = vsel %vm13667_vm11, %v9810_v1, %v9814_v46  ;;  %v9848_v26 = vrot.slane %v9846_v27, 5  ;;  %13117 = vmatprep.subr.bf16.mxu1 %v13375_v18  ;;  %v9658_v9 = vld [vmem:[#allocation3 + $0x78] sm:$0xf]  ;;  %v12756_v52 = vpop.f32.mrf.mxu1 }
 0x38c   : > { %18538 = vst [vmem:[#allocation17_spill] sm:$0xff] %v17249_v6  ;;  %v9825_v53 = vsel %vm13667_vm11, %v9820_v29, %v9824_v22  ;;  %v9843_v0 = vor.u32 %v9842_v42, %v9838_v45  ;;  %v9851_v62 = vshrl.u32 %v9655_v15, 16  ;;  %v9854_v60 = vshll.u32 %v9655_v15, 16  ;;  %v17268_v22 = vld [vmem:[#allocation3 + $0x7c] sm:$0xf]  ;;  %v13377_v6 = vld [vmem:[#allocation3 + $0x60] sm:$0xff]  }
 0x38d   : > { %18539 = vst [vmem:[#allocation24_spill] sm:$0xff] %v17253_v16  ;;  %v11796_v28 = vcombine.low %v9815_v49, %v9825_v53  ;;  %13038 = vmatmul.mubr.bf16.gmra.mxu1 %v13373_v25  ;;  %v9834_v57 = vrot.slane %v9833_v58, 4  ;;  %v9860_v16 = vshll.u32 %v17255_v55, 16  ;;  %v9864_v46 = vshrl.u32 %v17255_v55, 16  ;;  %v17276_v15 = vld [vmem:[#allocation3 + $0x80] sm:$0x1]  ;;  %v17278_v58 = vpop.f32.mrf.mxu0 }
 0x38e   : > { %v9844_v11 = vrot.slane %v9843_v0, 4  ;;  %13041 = vmatprep.mubr.bf16.mxu1 %v13374_v41  ;;  %v9870_v1 = vshll.u32 %v17257_v24, 16  ;;  %13118 = vmatpush3.bf16.msra.mxu1 %v13375_v18  ;;  %v9853_v29 = vrot.slane %v9851_v62, 4  ;;  %v9856_v42 = vrot.slane %v9854_v60, 5  ;;  %18541 = vst [vmem:[#allocation33_spill] sm:$0xff] %v17276_v15  ;;  %v13381_v49 = vld [vmem:[#allocation4 + $0x218] sm:$0xff]   ;;  %v6730_v60 = vpop.f32.mrf.mxu1 }
 0x38f   : > { %13090 = vmatmul.mubr.bf16.gmra.mxu0 %v11796_v28  ;;  %v9839_v25 = vsel %vm13667_vm11, %v9834_v57, %v9838_v45  ;;  %v17274_v27 = vadd.f32 %v17120_v43, %v17229_v48  ;;  %13119 = vmatprep.subr.bf16.mxu1 %v13378_v47  ;;  %v9862_v18 = vrot.slane %v9860_v16, 5  ;;  %v9866_v0 = vrot.slane %v9864_v46, 4  ;;  %v13376_v43 = vld [vmem:[#allocation3 + $0x54] sm:$0xff]  }
 0x390   : > { %v9849_v53 = vsel %vm13667_vm11, %v9844_v11, %v9848_v26  ;;  %v9872_v41 = vrot.slane %v9870_v1, 5  ;;  %v9857_v45 = vor.u32 %v9856_v42, %v9853_v29  ;;  %v9875_v57 = vshrl.u32 %v9658_v9, 16  ;;  %v17289_v1 = vpop.f32.mrf.mxu0 }
 0x391   : > { %18540 = vst [vmem:[#allocation21_spill] sm:$0xff] %v17274_v27  ;;  %v11797_v28 = vcombine.low %v9839_v25, %v9849_v53  ;;  %v9878_v62 = vshll.u32 %v9658_v9, 16  ;;  %v9867_v44 = vor.u32 %v9866_v0, %v9862_v18  ;;  %v9884_v48 = vshll.u32 %v17268_v22, 16  ;;  %v9661_v9 = vld [vmem:[#allocation3 + $0x84] sm:$0xf]  ;;  %v13384_v25 = vld [vmem:[#allocation4 + $0x210] sm:$0xff]  }
 0x392   : > { %v9888_v27 = vshrl.u32 %v17268_v22, 16  ;;  %v9894_v3 = vshll.u32 %v17276_v15, 16  ;;  %13120 = vmatpush3.bf16.msra.mxu1 %v13378_v47  ;;  %v9858_v26 = vrot.slane %v9857_v45, 4  ;;  %v9877_v16 = vrot.slane %v9875_v57, 4 }
 0x393   : > { %13093 = vmatprep.mubr.bf16.mxu0 %v11797_v28  ;;  %v9880_v11 = vrot.slane %v9878_v62, 5  ;;  %v17287_v46 = vadd.f32 %v17136_v30, %v17242_v33  ;;  %13121 = vmatprep.subr.bf16.mxu1 %v13381_v49  ;;  %v9868_v29 = vrot.slane %v9867_v44, 4  ;;  %v9886_v42 = vrot.slane %v9884_v48, 5  ;;  %v17301_v33 = vld [vmem:[#allocation3 + $0x8c] sm:$0x1] }
 0x394   : > { %v9890_v53 = vrot.slane %v9888_v27, 4  ;;  %v9896_v0 = vrot.slane %v9894_v3, 5  ;;  %v9863_v47 = vsel %vm13667_vm11, %v9858_v26, %v9862_v18  ;;  %v17296_v45 = vadd.f32 %v17145_v2, %v12756_v52  ;;  %18545 = vst [vmem:[#allocation47_spill] sm:$0xff] %v17301_v33  ;;  %v9664_v52 = vld [vmem:[#allocation3 + $0x90] sm:$0xf]  ;;  %v13387_v26 = vld [vmem:[#allocation4 + $0x208] sm:$0xff]  }
 0x395   : > { %18542 = vst [vmem:[#allocation28_spill] sm:$0xff] %v17287_v46  ;;  %13042 = vmatmul.mubr.bf16.gmra.mxu1 %v13376_v43  ;;  %v9881_v28 = vor.u32 %v9880_v11, %v9877_v16  ;;  %v17299_v30 = vadd.f32 %v17160_v54, %v6730_v60  ;;  %v12759_v57 = vpop.f32.mrf.mxu1  ;;  %v9873_v44 = vsel %vm13667_vm11, %v9868_v29, %v9872_v41  ;;  %v9899_v27 = vshrl.u32 %v9661_v9, 16  ;;  %v17310_v29 = vld [vmem:[#allocation3 + $0x94] sm:$0xf] }
 0x396   : > { %18543 = vst [vmem:[#allocation43_spill] sm:$0xff] %v17296_v45  ;;  %v9891_v3 = vor.u32 %v9890_v53, %v9886_v42  ;;  %13045 = vmatprep.mubr.bf16.mxu1 %v13377_v6  ;;  %v9902_v62 = vshll.u32 %v9661_v9, 16  ;;  %13122 = vmatpush3.bf16.msra.mxu1 %v13381_v49  ;;  %v11798_v18 = vcombine.low %v9863_v47, %v9873_v44  ;;  %v9908_v48 = vshll.u32 %v17291_v35, 16  ;;  %v17307_v60 = vpop.f32.mrf.mxu0 }
 0x397   : > { %18544 = vst [vmem:[#allocation40_spill] sm:$0xff] %v17299_v30  ;;  %v9882_v43 = vrot.slane %v9881_v28, 4  ;;  %v9912_v2 = vshrl.u32 %v17291_v35, 16  ;;  %v6743_v54 = vpop.f32.mrf.mxu1  ;;  %13123 = vmatprep.subr.bf16.mxu1 %v13384_v25  ;;  %v9901_v11 = vrot.slane %v9899_v27, 4  ;;  %v9918_v6 = vshll.u32 %v17301_v33, 16 }
 0x398   : > { %v9892_v16 = vrot.slane %v9891_v3, 4  ;;  %v9904_v41 = vrot.slane %v9902_v62, 5  ;;  %13094 = vmatmul.mubr.bf16.gmra.mxu0 %v11798_v18  ;;  %v9910_v9 = vrot.slane %v9908_v48, 5  ;;  %v17315_v47 = vadd.f32 %v17174_v4, %v12759_v57  ;;  %v17317_v28 = vld [vmem:[#allocation3 + $0x98] sm:$0x1]  ;;  %v17319_v30 = vpop.f32.mrf.mxu0 }
 0x399   : > { %v9887_v49 = vsel %vm13667_vm11, %v9882_v43, %v9886_v42  ;;  %v9914_v53 = vrot.slane %v9912_v2, 4  ;;  %18547 = vst [vmem:[#allocation25_spill] sm:$0xff] %v17317_v28  ;;  %v12760_v44 = vpop.f32.mrf.mxu1  ;;  %v9920_v62 = vrot.slane %v9918_v6, 5  ;;  %v9923_v45 = vshrl.u32 %v9664_v52, 16  ;;  %v13379_v42 = vld [vmem:[#allocation3 + $0x6c] sm:$0xff]   ;;  %v13380_v4 = vld [vmem:[#allocation3 + $0x78] sm:$0xff]  }
 0x39a   : > { %18546 = vst [vmem:[#allocation30_spill] sm:$0xff] %v17315_v47  ;;  %v9897_v3 = vsel %vm13667_vm11, %v9892_v16, %v9896_v0  ;;  %v9905_v27 = vor.u32 %v9904_v41, %v9901_v11  ;;  %13124 = vmatpush3.bf16.msra.mxu1 %v13384_v25  ;;  %v9926_v43 = vshll.u32 %v9664_v52, 16  ;;  %v9932_v48 = vshll.u32 %v17310_v29, 16  ;;  %v17324_v57 = vpop.f32.mrf.mxu0  ;;  %v13390_v2 = vld [vmem:[#allocation4 + $0x200] sm:$0xff]  }
 0x39b   : > { %v11799_v18 = vcombine.low %v9887_v49, %v9897_v3  ;;  %v9915_v46 = vor.u32 %v9914_v53, %v9910_v9  ;;  %13125 = vmatprep.subr.bf16.mxu1 %v13387_v26  ;;  %v9925_v33 = vrot.slane %v9923_v45, 4  ;;  %v9936_v15 = vshrl.u32 %v17310_v29, 16  ;;  %v6746_v16 = vpop.f32.mrf.mxu1  ;;  %v9667_v11 = vld [vmem:[#allocation3 + $0x9c] sm:$0xf]  ;;  %v17331_v49 = vld [vmem:[#allocation3 + $0xa0] sm:$0xf] }
 0x39c   : > { %v9906_v47 = vrot.slane %v9905_v27, 4  ;;  %v9942_v0 = vshll.u32 %v17317_v28, 16  ;;  %v9928_v41 = vrot.slane %v9926_v43, 5  ;;  %v9934_v52 = vrot.slane %v9932_v48, 5  ;;  %18549 = vst [vmem:[#allocation26_spill] sm:$0xff] %v17331_v49  ;;  %v17333_v53 = vpop.f32.mrf.mxu0 }
 0x39d   : > { %13097 = vmatprep.mubr.bf16.mxu0 %v11799_v18  ;;  %v9916_v25 = vrot.slane %v9915_v46, 4  ;;  %13046 = vmatmul.mubr.bf16.gmra.mxu1 %v13379_v42  ;;  %v17329_v6 = vadd.f32 %v17193_v17, %v6743_v54  ;;  %v9938_v3 = vrot.slane %v9936_v15, 4  ;;  %v17338_v28 = vadd.f32 %v17212_v32, %v12760_v44  ;;  %v17340_v46 = vld [vmem:[#allocation3 + $0xa4] sm:$0x1]  ;;  %v9670_v48 = vld [vmem:[#allocation3 + $0xa8] sm:$0xf] }
 0x39e   : > { %v9911_v45 = vsel %vm13667_vm11, %v9906_v47, %v9910_v9  ;;  %v9944_v27 = vrot.slane %v9942_v0, 5  ;;  %13049 = vmatprep.mubr.bf16.mxu1 %v13380_v4  ;;  %18551 = vst [vmem:[#allocation35_spill] sm:$0xff] %v17340_v46  ;;  %13126 = vmatpush3.bf16.msra.mxu1 %v13387_v26  ;;  %v9929_v54 = vor.u32 %v9928_v41, %v9925_v33  ;;  %v9947_v42 = vshrl.u32 %v9667_v11, 16  ;;  %v17352_v0 = vld [vmem:[#allocation3 + $0xac] sm:$0xf] }
 0x39f   : > { %18548 = vst [vmem:[#allocation20_spill] sm:$0xff] %v17329_v6  ;;  %18550 = vst [vmem:[#allocation19_spill] sm:$0xff] %v17338_v28  ;;  %v9921_v17 = vsel %vm13667_vm11, %v9916_v25, %v9920_v62  ;;  %v17345_v18 = vadd.f32 %v17231_v40, %v6746_v16  ;;  %13127 = vmatprep.subr.bf16.mxu1 %v13390_v2  ;;  %v9939_v9 = vor.u32 %v9938_v3, %v9934_v52 }
 0x3a0   : > { %v11800_v43 = vcombine.low %v9911_v45, %v9921_v17  ;;  %v9950_v15 = vshll.u32 %v9667_v11, 16  ;;  %v9956_v47 = vshll.u32 %v17331_v49, 16  ;;  %v17348_v32 = vpop.f32.mrf.mxu0  ;;  %v9930_v44 = vrot.slane %v9929_v54, 4  ;;  %v13382_v54 = vld [vmem:[#allocation3 + $0x84] sm:$0xff]  }
 0x3a1   : > { %18552 = vst [vmem:[#allocation34_spill] sm:$0xff] %v17345_v18  ;;  %v9949_v4 = vrot.slane %v9947_v42, 4  ;;  %v9960_v26 = vshrl.u32 %v17331_v49, 16  ;;  %v9966_v62 = vshll.u32 %v17340_v46, 16  ;;  %v12763_v33 = vpop.f32.mrf.mxu1  ;;  %v9940_v40 = vrot.slane %v9939_v9, 4 }
 0x3a2   : > { %13098 = vmatmul.mubr.bf16.gmra.mxu0 %v11800_v43  ;;  %v9952_v16 = vrot.slane %v9950_v15, 5  ;;  %v9958_v25 = vrot.slane %v9956_v47, 5  ;;  %v17355_v11 = vadd.f32 %v17244_v10, %v12763_v33  ;;  %v17357_v41 = vpop.f32.mrf.mxu0  ;;  %13128 = vmatpush3.bf16.msra.mxu1 %v13390_v2  ;;  %v9935_v45 = vsel %vm13667_vm11, %v9930_v44, %v9934_v52  ;;  %v17361_v42 = vld [vmem:[#allocation3 + $0xb0] sm:$0x1] }
 0x3a3   : > { %v9962_v3 = vrot.slane %v9960_v26, 4  ;;  %v9968_v17 = vrot.slane %v9966_v62, 5  ;;  %18554 = vst [vmem:[#allocation31_spill] sm:$0xff] %v17361_v42  ;;  %v9971_v18 = vshrl.u32 %v9670_v48, 16  ;;  %v6759_v28 = vpop.f32.mrf.mxu1  ;;  %v9945_v43 = vsel %vm13667_vm11, %v9940_v40, %v9944_v27  ;;  %v13383_v47 = vld [vmem:[#allocation3 + $0x90] sm:$0xff]  }
 0x3a4   : > { %18553 = vst [vmem:[#allocation22_spill] sm:$0xff] %v17355_v11  ;;  %v9953_v9 = vor.u32 %v9952_v16, %v9949_v4  ;;  %v9974_v15 = vshll.u32 %v9670_v48, 16  ;;  %v9980_v10 = vshll.u32 %v17352_v0, 16  ;;  %v17366_v33 = vpop.f32.mrf.mxu0  ;;  %v11801_v2 = vcombine.low %v9935_v45, %v9945_v43  ;;  %v9673_v27 = vld [vmem:[#allocation3 + $0xb4] sm:$0xf] }
 0x3a5   : > { %v9963_v11 = vor.u32 %v9962_v3, %v9958_v25  ;;  %13050 = vmatmul.mubr.bf16.gmra.mxu1 %v13382_v54  ;;  %v9973_v52 = vrot.slane %v9971_v18, 4  ;;  %v9984_v44 = vshrl.u32 %v17352_v0, 16  ;;  %v12764_v26 = vpop.f32.mrf.mxu1  ;;  %v9990_v49 = vshll.u32 %v17361_v42, 16  ;;  %v17378_v3 = vld [vmem:[#allocation3 + $0xb8] sm:$0xf] }
 0x3a6   : > { %v9954_v62 = vrot.slane %v9953_v9, 4  ;;  %v9976_v6 = vrot.slane %v9974_v15, 5  ;;  %v9982_v46 = vrot.slane %v9980_v10, 5  ;;  %13053 = vmatprep.mubr.bf16.mxu1 %v13383_v47  ;;  %v17370_v48 = vpop.f32.mrf.mxu0  ;;  %13101 = vmatprep.mubr.bf16.mxu0 %v11801_v2  ;;  %v17373_v16 = vadd.f32 %v17259_v34, %v6759_v28  ;;  %18557 = vst [vmem:[#allocation41_spill] sm:$0xff] %v17378_v3  ;;  %v17385_v10 = vld [vmem:[#allocation3 + $0xbc] sm:$0x1] }
 0x3a7   : > { %v9964_v4 = vrot.slane %v9963_v11, 4  ;;  %v9986_v40 = vrot.slane %v9984_v44, 4  ;;  %v17376_v18 = vadd.f32 %v17278_v58, %v12764_v26  ;;  %v6762_v45 = vpop.f32.mrf.mxu1  ;;  %v9992_v9 = vrot.slane %v9990_v49, 5  ;;  %18559 = vst [vmem:[#allocation39_spill] sm:$0xff] %v17385_v10  ;;  %v13385_v49 = vld [vmem:[#allocation3 + $0x9c] sm:$0xff]  }
 0x3a8   : > { %18555 = vst [vmem:[#allocation27_spill] sm:$0xff] %v17373_v16  ;;  %v9959_v54 = vsel %vm13667_vm11, %v9954_v62, %v9958_v25  ;;  %v9977_v43 = vor.u32 %v9976_v6, %v9973_v52  ;;  %v17383_v15 = vadd.f32 %v17289_v1, %v6762_v45  ;;  %v17387_v11 = vpop.f32.mrf.mxu0  ;;  %v9995_v28 = vshrl.u32 %v9673_v27, 16  ;;  %v9676_v25 = vld [vmem:[#allocation3 + $0xc0] sm:$0xf] }
 0x3a9   : > { %18556 = vst [vmem:[#allocation23_spill] sm:$0xff] %v17376_v18  ;;  %v9969_v34 = vsel %vm13667_vm11, %v9964_v4, %v9968_v17  ;;  %v9987_v58 = vor.u32 %v9986_v40, %v9982_v46  ;;  %v9998_v47 = vshll.u32 %v9673_v27, 16  ;;  %v10004_v26 = vshll.u32 %v17378_v3, 16  ;;  %v17396_v17 = vld [vmem:[#allocation3 + $0xc4] sm:$0xf] }
 0x3aa   : > { %18558 = vst [vmem:[#allocation37_spill] sm:$0xff] %v17383_v15  ;;  %v11802_v2 = vcombine.low %v9959_v54, %v9969_v34  ;;  %v9978_v44 = vrot.slane %v9977_v43, 4  ;;  %v10008_v6 = vshrl.u32 %v17378_v3, 16  ;;  %v17393_v1 = vpop.f32.mrf.mxu0  ;;  %v9997_v62 = vrot.slane %v9995_v28, 4  ;;  %v17403_v43 = vld [vmem:[#allocation3 + $0xc8] sm:$0x1] }
 0x3ab   : > { %v9988_v52 = vrot.slane %v9987_v58, 4  ;;  %v10000_v45 = vrot.slane %v9998_v47, 5  ;;  %v10014_v15 = vshll.u32 %v17385_v10, 16  ;;  %v12767_v18 = vpop.f32.mrf.mxu1  ;;  %v10006_v4 = vrot.slane %v10004_v26, 5  ;;  %18561 = vst [vmem:[#allocation46_spill] sm:$0xff] %v17403_v43  ;;  %v13386_v34 = vld [vmem:[#allocation3 + $0xa8] sm:$0xff]  }
 0x3ac   : > { %13102 = vmatmul.mubr.bf16.gmra.mxu0 %v11802_v2  ;;  %v9983_v27 = vsel %vm13667_vm11, %v9978_v44, %v9982_v46  ;;  %v10010_v40 = vrot.slane %v10008_v6, 4  ;;  %v17401_v54 = vadd.f32 %v17307_v60, %v12767_v18  ;;  %v17405_v58 = vpop.f32.mrf.mxu0  ;;  %v10019_v2 = vshrl.u32 %v9676_v25, 16 }
 0x3ad   : > { %v9993_v28 = vsel %vm13667_vm11, %v9988_v52, %v9992_v9  ;;  %v10001_v47 = vor.u32 %v10000_v45, %v9997_v62  ;;  %v10016_v16 = vrot.slane %v10014_v15, 5  ;;  %13054 = vmatmul.mubr.bf16.gmra.mxu1 %v13385_v49  ;;  %v6775_v10 = vpop.f32.mrf.mxu1  ;;  %v10022_v44 = vshll.u32 %v9676_v25, 16  ;;  %v10388_v45 = vld [vmem:[#allocation3 + $0x18] sm:$0xe] }
 0x3ae   : > { %18560 = vst [vmem:[#allocation44_spill] sm:$0xff] %v17401_v54  ;;  %v11803_v42 = vcombine.low %v9983_v27, %v9993_v28  ;;  %v10011_v46 = vor.u32 %v10010_v40, %v10006_v4  ;;  %v10028_v26 = vshll.u32 %v17396_v17, 16  ;;  %13057 = vmatprep.mubr.bf16.mxu1 %v13386_v34  ;;  %v17410_v60 = vpop.f32.mrf.mxu0  ;;  %v10021_v6 = vrot.slane %v10019_v2, 4 }
 0x3af   : > { %v10002_v18 = vrot.slane %v10001_v47, 4  ;;  %v10032_v54 = vshrl.u32 %v17396_v17, 16  ;;  %v10038_v3 = vshll.u32 %v17403_v43, 16  ;;  %v12768_v9 = vpop.f32.mrf.mxu1  ;;  %v10024_v49 = vrot.slane %v10022_v44, 5  ;;  %v9679_v47 = vld [vmem:[#allocation3 + $0xcc] sm:$0xf] }
 0x3b0   : > { %13105 = vmatprep.mubr.bf16.mxu0 %v11803_v42  ;;  %v10012_v15 = vrot.slane %v10011_v46, 4  ;;  %v10030_v52 = vrot.slane %v10028_v26, 5  ;;  %v17415_v62 = vadd.f32 %v17319_v30, %v6775_v10  ;;  %v17417_v25 = vpop.f32.mrf.mxu0  ;;  %v17422_v34 = vadd.f32 %v17324_v57, %v12768_v9  ;;  %v17431_v44 = vld [vmem:[#allocation3 + $0xd0] sm:$0xf] }
 0x3b1   : > { %v10007_v27 = vsel %vm13667_vm11, %v10002_v18, %v10006_v4  ;;  %v10034_v40 = vrot.slane %v10032_v54, 4  ;;  %v6778_v28 = vpop.f32.mrf.mxu1  ;;  %v10025_v2 = vor.u32 %v10024_v49, %v10021_v6  ;;  %v10040_v46 = vrot.slane %v10038_v3, 5  ;;  %v13388_v18 = vld [vmem:[#allocation3 + $0xb4] sm:$0xff]  }
 0x3b2   : > { %18562 = vst [vmem:[#allocation38_spill] sm:$0xff] %v17422_v34  ;;  %v10017_v42 = vsel %vm13667_vm11, %v10012_v15, %v10016_v16  ;;  %v17427_v30 = vadd.f32 %v17333_v53, %v6778_v28  ;;  %v17429_v10 = vpop.f32.mrf.mxu0  ;;  %v11815_v57 = vrot.slane %v10388_v45, 9  ;;  %v10454_v9 = vrot.slane %v17097_v19, 5  ;;  %v13389_v16 = vld [vmem:[#allocation3 + $0xc0] sm:$0xff]   ;;  %v17446_v28 = vld [vmem:[#allocation3 + $0xd4] sm:$0x1] }
 0x3b3   : > { %v11804_v26 = vcombine.low %v10007_v27, %v10017_v42  ;;  %v10035_v4 = vor.u32 %v10034_v40, %v10030_v52  ;;  %v12771_v54 = vpop.f32.mrf.mxu1  ;;  %v10026_v34 = vrot.slane %v10025_v2, 4  ;;  %v10043_v3 = vshrl.u32 %v9679_v47, 16  ;;  %18565 = vst [vmem:[#allocation42_spill] sm:$0xff] %v17446_v28 }
 0x3b4   : > { %v17435_v43 = vadd.f32 %v17348_v32, %v12771_v54  ;;  %v10046_v6 = vshll.u32 %v9679_v47, 16  ;;  %v17437_v53 = vpop.f32.mrf.mxu0  ;;  %v10456_v27 = vrot.slane %v10454_v9, 4  ;;  %v10457_v40 = vrot.slane %v17103_v50, 5 }
 0x3b5   : > { %13106 = vmatmul.mubr.bf16.gmra.mxu0 %v11804_v26  ;;  %v10036_v15 = vrot.slane %v10035_v4, 4  ;;  %13058 = vmatmul.mubr.bf16.gmra.mxu1 %v13388_v18  ;;  %v6791_v49 = vpop.f32.mrf.mxu1  ;;  %v10052_v45 = vshll.u32 %v17431_v44, 16  ;;  %v10031_v19 = vsel %vm13667_vm11, %v10026_v34, %v10030_v52  ;;  %v10045_v47 = vrot.slane %v10043_v3, 4  ;;  %v10389_v34 = vld [vmem:[#allocation3 + $0x24] sm:$0xe] }
 0x3b6   : > { %18563 = vst [vmem:[#allocation29_spill] sm:$0xff] %v17435_v43  ;;  %13061 = vmatprep.mubr.bf16.mxu1 %v13389_v16  ;;  %v17444_v32 = vadd.f32 %v17357_v41, %v6791_v49  ;;  %v10048_v42 = vrot.slane %v10046_v6, 5  ;;  %v17448_v2 = vpop.f32.mrf.mxu0  ;;  %v10458_v50 = vsel %vm14077_vm1, %v10456_v27, %v10457_v40  ;;  %v10056_v52 = vshrl.u32 %v17431_v44, 16 }
 0x3b7   : > { %v10041_v26 = vsel %vm13667_vm11, %v10036_v15, %v10040_v46  ;;  %v12772_v4 = vpop.f32.mrf.mxu1  ;;  %v10054_v54 = vrot.slane %v10052_v45, 5  ;;  %v17457_v41 = vadd.f32 %v17040_v38, %v17143_v20  ;;  %v13391_v15 = vld [vmem:[#allocation3 + $0xcc] sm:$0xff]   ;;  %v10455_v49 = vsel %vm14077_vm1, %v11815_v57, %v10454_v9  ;;  %v10391_v9 = vld [vmem:[#allocation3 + $0x3c] sm:$0xe] }
 0x3b8   : > { %18564 = vst [vmem:[#allocation32_spill] sm:$0xff] %v17444_v32  ;;  %v11805_v18 = vcombine.low %v10031_v19, %v10041_v26  ;;  %v17460_v16 = vadd.f32 %v17366_v33, %v12772_v4  ;;  %v10049_v3 = vor.u32 %v10048_v42, %v10045_v47  ;;  %v17462_v6 = vpop.f32.mrf.mxu0  ;;  %v10058_v27 = vrot.slane %v10056_v52, 4  ;;  %v10390_v32 = vld [vmem:[#allocation3 + $0x30] sm:$0xe] }
 0x3b9   : > { %v6794_v46 = vpop.f32.mrf.mxu1  ;;  %v10062_v40 = vshll.u32 %v17446_v28, 16  ;;  %v10461_v45 = vrot.slane %v17124_v59, 5  ;;  %v11831_v20 = vcombine.low %v10455_v49, %v10458_v50  ;;  %v11816_v19 = vrot.slane %v10389_v34, 9  ;;  %v18585_v28 = vld [vmem:[#allocation39_spill] sm:$0xff] }
 0x3ba   : > { %18566 = vst [vmem:[#allocation36_spill] sm:$0xff] %v17460_v16  ;;  %13109 = vmatprep.mubr.bf16.mxu0 %v11805_v18  ;;  %v17469_v38 = vadd.f32 %v17370_v48, %v6794_v46  ;;  %v10050_v33 = vrot.slane %v10049_v3, 4  ;;  %v17471_v47 = vpop.f32.mrf.mxu0  ;;  %v10059_v26 = vor.u32 %v10058_v27, %v10054_v54  ;;  %v10464_v57 = vrot.slane %v17127_v14, 5 }
 0x3bb   : > { %v12775_v42 = vpop.f32.mrf.mxu1  ;;  %v10064_v4 = vrot.slane %v10062_v40, 5  ;;  %v10463_v16 = vrot.slane %v10461_v45, 4  ;;  %v10462_v59 = vsel %vm14077_vm1, %v11816_v19, %v10461_v45  ;;  %v11817_v48 = vrot.slane %v10390_v32, 9  ;;  %v10392_v40 = vld [vmem:[#allocation3 + $0x48] sm:$0xe] }
 0x3bc   : > { %18567 = vst [vmem:[#allocation45_spill] sm:$0xff] %v17469_v38  ;;  %v17475_v52 = vadd.f32 %v17387_v11, %v12775_v42  ;;  %v10468_v50 = vrot.slane %v17150_v61, 5  ;;  %v17480_v18 = vpop.f32.mrf.mxu0  ;;  %v10055_v3 = vsel %vm13667_vm11, %v10050_v33, %v10054_v54  ;;  %v10060_v46 = vrot.slane %v10059_v26, 4  ;;  %v10393_v26 = vld [vmem:[#allocation3 + $0x54] sm:$0xe] }
 0x3bd   : > { %13062 = vmatmul.mubr.bf16.gmra.mxu1 %v13391_v15  ;;  %v6807_v34 = vpop.f32.mrf.mxu1  ;;  %v10465_v14 = vsel %vm14077_vm1, %v10463_v16, %v10464_v57  ;;  %v10475_v11 = vrot.slane %v17166_v8, 5  ;;  %v10471_v61 = vrot.slane %v17155_v36, 5  ;;  %v11818_v15 = vrot.slane %v10391_v9, 9 }
 0x3be   : > { %18568 = vst [vmem:[#allocation48_spill] sm:$0xff] %v17475_v52  ;;  %13129 = vmatprep.mubr.bf16.mxu1 %v11831_v20  ;;  %v17488_v49 = vadd.f32 %v17393_v1, %v6807_v34  ;;  %v10470_v32 = vrot.slane %v10468_v50, 4  ;;  %v17491_v27 = vpop.f32.mrf.mxu0  ;;  %v10065_v54 = vsel %vm13667_vm11, %v10060_v46, %v10064_v4  ;;  %v11832_v33 = vcombine.low %v10462_v59, %v10465_v14 }
 0x3bf   : > { %v12776_v45 = vpop.f32.mrf.mxu1  ;;  %v10477_v19 = vrot.slane %v10475_v11, 4  ;;  %v10478_v16 = vrot.slane %v17170_v51, 5  ;;  %v11806_v8 = vcombine.low %v10055_v3, %v10065_v54  ;;  %v10469_v1 = vsel %vm14077_vm1, %v11817_v48, %v10468_v50  ;;  %v10394_v3 = vld [vmem:[#allocation3 + $0x60] sm:$0xe] }
 0x3c0   : > { %18569 = vst [vmem:[#allocation49_spill] sm:$0xff] %v17488_v49  ;;  %v17497_v20 = vadd.f32 %v17405_v58, %v12776_v45  ;;  %v10472_v36 = vsel %vm14077_vm1, %v10470_v32, %v10471_v61  ;;  %v17503_v42 = vpop.f32.mrf.mxu0  ;;  %v17507_v4 = vsel %vm14077_vm1, %v11818_v15, %v10475_v11  ;;  %v11819_v58 = vrot.slane %v10392_v40, 9  ;;  %v10395_v61 = vld [vmem:[#allocation3 + $0x6c] sm:$0xe] }
 0x3c1   : > { %v6810_v39 = vpop.f32.mrf.mxu1  ;;  %v17511_v51 = vsel %vm14077_vm1, %v10477_v19, %v10478_v16  ;;  %v10482_v57 = vrot.slane %v17181_v13, 5  ;;  %13110 = vmatmul.mubr.bf16.gmra.mxu0 %v11806_v8  ;;  %v11833_v59 = vcombine.low %v10469_v1, %v10472_v36  ;;  %v10485_v50 = vrot.slane %v17189_v21, 5  ;;  %v10396_v36 = vld [vmem:[#allocation3 + $0x78] sm:$0xe] }
 0x3c2   : > { %18570 = vst [vmem:[#allocation50_spill] sm:$0xff] %v17497_v20  ;;  %v17515_v9 = vadd.f32 %v17410_v60, %v6810_v39  ;;  %v17517_v48 = vpop.f32.mrf.mxu0  ;;  %v10489_v34 = vrot.slane %v17208_v7, 5  ;;  %v11834_v14 = vcombine.low %v17507_v4, %v17511_v51  ;;  %v11820_v32 = vrot.slane %v10393_v26, 9  ;;  %v18580_v4 = vld [vmem:[#allocation24_spill] sm:$0xff]  ;;  %v18581_v20 = vld [vmem:[#allocation35_spill] sm:$0xff] }
 0x3c3   : > { %v12843_v46 = vpop.f32.mrf.mxu1  ;;  %v10483_v11 = vsel %vm14077_vm1, %v11819_v58, %v10482_v57  ;;  %v10484_v13 = vrot.slane %v10482_v57, 4  ;;  %v10492_v21 = vrot.slane %v17218_v37, 5  ;;  %v10496_v7 = vrot.slane %v17227_v63, 5 }
 0x3c4   : > { %18571 = vst [vmem:[#allocation51_spill] sm:$0xff] %v17515_v9  ;;  %v17526_v60 = vadd.f32 %v12843_v46, %v17187_v56  ;;  %v17528_v15 = vpop.f32.mrf.mxu0  ;;  %v10491_v40 = vrot.slane %v10489_v34, 4  ;;  %v17536_v19 = vsel %vm14077_vm1, %v11820_v32, %v10489_v34  ;;  %v11821_v16 = vrot.slane %v10394_v3, 9 }
 0x3c5   : > { %13130 = vmatmul.mubr.bf16.vlgmr.msra.gmra.mxu1 %v11832_v33  ;;  %v7450_v54 = vpop.f32.mrf.mxu1  ;;  %v10486_v45 = vsel %vm14077_vm1, %v10484_v13, %v10485_v50  ;;  %v10503_v56 = vrot.slane %v17255_v55, 5  ;;  %v10499_v63 = vrot.slane %v17236_v23, 5  ;;  %v11822_v33 = vrot.slane %v10395_v61, 9  ;;  %v10397_v50 = vld [vmem:[#allocation3 + $0x84] sm:$0xe]  ;;  %v18572_v61 = vld [vmem:[#allocation33_spill] sm:$0xff] }
 0x3c6   : > { %13133 = vmatprep.mubr.bf16.mxu1 %v11833_v59  ;;  %v17540_v8 = vadd.f32 %v7450_v54, %v17202_v12  ;;  %v17542_v1 = vpop.f32.mrf.mxu0  ;;  %v17546_v37 = vsel %vm14077_vm1, %v10491_v40, %v10492_v21  ;;  %v11835_v39 = vcombine.low %v10483_v11, %v10486_v45  ;;  %v10498_v55 = vrot.slane %v10496_v7, 4  ;;  %v10398_v21 = vld [vmem:[#allocation3 + $0x90] sm:$0xe] }
 0x3c7   : > { %v12844_v26 = vpop.f32.mrf.mxu1  ;;  %v10505_v51 = vrot.slane %v10503_v56, 4  ;;  %v17558_v57 = vsel %vm14077_vm1, %v11821_v16, %v10496_v7  ;;  %v10506_v23 = vrot.slane %v17257_v24, 5  ;;  %v10510_v59 = vrot.slane %v17268_v22, 5  ;;  %v18573_v16 = vld [vmem:[#allocation18_spill] sm:$0xff] }
 0x3c8   : > { %v17552_v12 = vadd.f32 %v12844_v26, %v17206_v31  ;;  %v17554_v58 = vpop.f32.mrf.mxu0  ;;  %v17564_v3 = vsel %vm14077_vm1, %v10498_v55, %v10499_v63  ;;  %v17568_v31 = vsel %vm14077_vm1, %v11822_v33, %v10503_v56  ;;  %v11823_v46 = vrot.slane %v10396_v36, 9  ;;  %v18574_v36 = vld [vmem:[#allocation47_spill] sm:$0xff] }
 0x3c9   : > { %v7453_v34 = vpop.f32.mrf.mxu1  ;;  %v10517_v11 = vrot.slane %v17291_v35, 5  ;;  %v17580_v22 = vsel %vm14077_vm1, %v10505_v51, %v10506_v23  ;;  %v10513_v40 = vrot.slane %v18572_v61, 5  ;;  %v10512_v35 = vrot.slane %v10510_v59, 4  ;;  %v10399_v51 = vld [vmem:[#allocation3 + $0x9c] sm:$0xe] }
 0x3ca   : > { %v17572_v13 = vadd.f32 %v7453_v34, %v17457_v41  ;;  %v17574_v32 = vpop.f32.mrf.mxu0  ;;  %v11824_v45 = vrot.slane %v10397_v50, 9  ;;  %v17592_v33 = vsel %vm14077_vm1, %v11823_v46, %v10510_v59  ;;  %v10520_v26 = vrot.slane %v18574_v36, 5  ;;  %v18576_v59 = vld [vmem:[#allocation17_spill] sm:$0xff] }
 0x3cb   : > { %v12847_v7 = vpop.f32.mrf.mxu1  ;;  %v10519_v41 = vrot.slane %v10517_v11, 4  ;;  %v10524_v55 = vrot.slane %v17310_v29, 5  ;;  %v17598_v50 = vsel %vm14077_vm1, %v10512_v35, %v10513_v40  ;;  %v11825_v61 = vrot.slane %v10398_v21, 9  ;;  %v18577_v40 = vld [vmem:[#allocation25_spill] sm:$0xff] }
 0x3cc   : > { %v17586_v56 = vadd.f32 %v12847_v7, %v18573_v16  ;;  %v17588_v63 = vpop.f32.mrf.mxu0  ;;  %v17602_v34 = vsel %vm14077_vm1, %v11824_v45, %v10517_v11  ;;  %v18575_v7 = vld [vmem:[#allocation26_spill] sm:$0xff]  ;;  %v10527_v35 = vrot.slane %v18577_v40, 5  ;;  %v11826_v45 = vrot.slane %v10399_v51, 9 }
 0x3cd   : > { %13134 = vmatmul.mubr.bf16.gmra.mxu1 %v11834_v14  ;;  %v7466_v23 = vpop.f32.mrf.mxu1  ;;  %v10531_v16 = vrot.slane %v18575_v7, 5  ;;  %v17612_v14 = vsel %vm14077_vm1, %v10519_v41, %v10520_v26  ;;  %v10526_v21 = vrot.slane %v10524_v55, 4  ;;  %v10400_v7 = vld [vmem:[#allocation3 + $0xa8] sm:$0xe]  ;;  %v10534_v41 = vrot.slane %v18581_v20, 5 }
 0x3ce   : > { %13137 = vmatprep.mubr.bf16.mxu1 %v11835_v39  ;;  %v7581_v46 = vadd.f32 %v7466_v23, %v18576_v59  ;;  %v17606_v36 = vpop.f32.mrf.mxu0  ;;  %v18578_v23 = vld [vmem:[#allocation15_spill] sm:$0xff]  ;;  %v18579_v59 = vld [vmem:[#allocation16_spill] sm:$0xff]  ;;  %v10538_v26 = vrot.slane %v17352_v0, 5  ;;  %v17626_v49 = vsel %vm14077_vm1, %v11825_v61, %v10524_v55  ;;  %v11827_v61 = vrot.slane %v10400_v7, 9 }
 0x3cf   : > { %v12848_v54 = vpop.f32.mrf.mxu1  ;;  %v10533_v39 = vrot.slane %v10531_v16, 4  ;;  %v7020_v24 = vadd.f32 %v18579_v59, %v18578_v23  ;;  %v17630_v51 = vsel %vm14077_vm1, %v10526_v21, %v10527_v35  ;;  %v17634_v23 = vsel %vm14077_vm1, %v11826_v45, %v10531_v16  ;;  %v18583_v45 = vld [vmem:[#allocation31_spill] sm:$0xff] }
 0x3d0   : > { %v7584_v9 = vadd.f32 %v12848_v54, %v18580_v4  ;;  %v17620_v29 = vpop.f32.mrf.mxu0  ;;  %v10401_v4 = vld [vmem:[#allocation3 + $0xb4] sm:$0xe]  ;;  %v10540_v16 = vrot.slane %v10538_v26, 4  ;;  %v10541_v52 = vrot.slane %v18583_v45, 5  ;;  %v10548_v0 = vrot.slane %v18585_v28, 5 }
 0x3d1   : > { %v7469_v40 = vpop.f32.mrf.mxu1  ;;  %v18582_v54 = vld [vmem:[#allocation41_spill] sm:$0xff]  ;;  %v17643_v55 = vsel %vm14077_vm1, %v10533_v39, %v10534_v41  ;;  %v11828_v43 = vrot.slane %v10401_v4, 9  ;;  %v18586_v39 = vcombine.low %v17536_v19, %v17546_v37  ;;  %v17657_v41 = vsel %vm14077_vm1, %v11827_v61, %v10538_v26  ;;  %v18588_v4 = vld [vmem:[#allocation28_spill] sm:$0xff] }
 0x3d2   : > { %v10545_v59 = vrot.slane %v18582_v54, 5  ;;  %v7582_v11 = vadd.f32 %v7469_v40, %v7020_v24  ;;  %v17637_v20 = vpop.f32.mrf.mxu0  ;;  %v11842_v21 = vcombine.low %v17634_v23, %v17643_v55  ;;  %v18584_v54 = vld [vmem:[#allocation21_spill] sm:$0xff]  ;;  %v17661_v45 = vsel %vm14077_vm1, %v10540_v16, %v10541_v52  ;;  %v18605_v55 = vld [vmem:[#allocation38_spill] sm:$0xff] }
 0x3d3   : > { %v12851_v35 = vpop.f32.mrf.mxu1  ;;  %v11843_v19 = vcombine.low %v17657_v41, %v17661_v45 }
 0x3d4   : > { %v10547_v38 = vrot.slane %v10545_v59, 4  ;;  %v7587_v24 = vadd.f32 %v12851_v35, %v18584_v54  ;;  %v17649_v40 = vpop.f32.mrf.mxu0  ;;  %v18587_v35 = vcombine.low %v17558_v57, %v17564_v3  ;;  %v17671_v37 = vsel %vm14077_vm1, %v11828_v43, %v10545_v59  ;;  %v18589_v57 = vld [vmem:[#allocation43_spill] sm:$0xff] }
 0x3d5   : > { %13138 = vmatmul.mubr.bf16.gmra.mxu1 %v18586_v39  ;;  %v7482_v7 = vpop.f32.mrf.mxu1  ;;  %v17684_v39 = vadd.f32 %v17417_v25, %v17526_v60  ;;  %v17688_v43 = vadd.f32 %v17429_v10, %v17540_v8  ;;  %v17707_v8 = vadd.f32 %v17480_v18, %v7584_v9  ;;  %v18592_v18 = vcombine.low %v17568_v31, %v17580_v22  ;;  %v18594_v9 = vld [vmem:[#allocation20_spill] sm:$0xff]  ;;  %v18596_v22 = vld [vmem:[#allocation34_spill] sm:$0xff] }
 0x3d6   : > { %13141 = vmatprep.mubr.bf16.mxu1 %v18587_v35  ;;  %v7585_v54 = vadd.f32 %v7482_v7, %v18588_v4  ;;  %v7903_v28 = vpop.f32.mrf.mxu0  ;;  %v17675_v26 = vsel %vm14077_vm1, %v10547_v38, %v10548_v0  ;;  %v17692_v38 = vadd.f32 %v17437_v53, %v17552_v12  ;;  %v17696_v0 = vadd.f32 %v17448_v2, %v17572_v13  ;;  %v18590_v35 = vld [vmem:[#allocation40_spill] sm:$0xff]  ;;  %v18591_v12 = vld [vmem:[#allocation30_spill] sm:$0xff] }
 0x3d7   : > { %v12852_v52 = vpop.f32.mrf.mxu1  ;;  %v11844_v61 = vcombine.low %v17671_v37, %v17675_v26  ;;  %v17700_v7 = vadd.f32 %v17462_v6, %v17586_v56  ;;  %v17704_v4 = vadd.f32 %v17471_v47, %v7581_v46  ;;  %v17710_v53 = vadd.f32 %v17491_v27, %v7582_v11 }
 0x3d8   : > { %v7588_v3 = vadd.f32 %v12852_v52, %v18589_v57  ;;  %v17680_v16 = vpop.f32.mrf.mxu0  ;;  %v17713_v2 = vadd.f32 %v17503_v42, %v7587_v24  ;;  %v17719_v56 = vadd.f32 %v17517_v48, %v7585_v54  ;;  %v18593_v42 = vcombine.low %v17592_v33, %v17598_v50  ;;  %v18595_v54 = vld [vmem:[#allocation19_spill] sm:$0xff] }
 0x3d9   : > { %v7485_v59 = vpop.f32.mrf.mxu1 }
 0x3da   : > { %v7586_v25 = vadd.f32 %v7485_v59, %v18590_v35  ;;  %v7916_v60 = vpop.f32.mrf.mxu0  ;;  %v17722_v47 = vadd.f32 %v17528_v15, %v7588_v3  ;;  %v18597_v35 = vld [vmem:[#allocation22_spill] sm:$0xff] }
 0x3db   : > { %v12855_v10 = vpop.f32.mrf.mxu1 }
 0x3dc   : > { %v7591_v13 = vadd.f32 %v12855_v10, %v18591_v12  ;;  %v17716_v6 = vpop.f32.mrf.mxu0  ;;  %v17725_v46 = vadd.f32 %v17542_v1, %v7586_v25 }
 0x3dd   : > { %13142 = vmatmul.mubr.bf16.gmra.mxu1 %v18592_v18  ;;  %v7498_v27 = vpop.f32.mrf.mxu1  ;;  %v18600_v18 = vld [vmem:[#allocation27_spill] sm:$0xff] }
 0x3de   : > { %13145 = vmatprep.mubr.bf16.mxu1 %v18593_v42  ;;  %v7589_v11 = vadd.f32 %v7498_v27, %v18594_v9  ;;  %v7919_v24 = vpop.f32.mrf.mxu0  ;;  %v17735_v48 = vadd.f32 %v17554_v58, %v7591_v13  ;;  %v18599_v13 = vcombine.low %v17626_v49, %v17630_v51  ;;  %v18602_v49 = vld [vmem:[#allocation37_spill] sm:$0xff] }
 0x3df   : > { %v12856_v15 = vpop.f32.mrf.mxu1 }
 0x3e0   : > { %v7592_v52 = vadd.f32 %v12856_v15, %v18595_v54  ;;  %v17738_v1 = vpop.f32.mrf.mxu0  ;;  %v17741_v57 = vadd.f32 %v17574_v32, %v7589_v11  ;;  %v18598_v32 = vcombine.low %v17602_v34, %v17612_v14  ;;  %v18601_v11 = vld [vmem:[#allocation23_spill] sm:$0xff]  ;;  %v10552_v54 = vrot.slane %v17396_v17, 5 }
 0x3e1   : > { %v7501_v31 = vpop.f32.mrf.mxu1 }
 0x3e2   : > { %v7590_v3 = vadd.f32 %v7501_v31, %v18596_v22  ;;  %v17744_v59 = vpop.f32.mrf.mxu0  ;;  %v17747_v33 = vadd.f32 %v17588_v63, %v7592_v52  ;;  %v18603_v22 = vld [vmem:[#allocation44_spill] sm:$0xff]  ;;  %v10554_v17 = vrot.slane %v10552_v54, 4 }
 0x3e3   : > { %v12859_v50 = vpop.f32.mrf.mxu1 }
 0x3e4   : > { %v7595_v58 = vadd.f32 %v12859_v50, %v18597_v35  ;;  %v17750_v25 = vpop.f32.mrf.mxu0  ;;  %v17753_v10 = vadd.f32 %v17606_v36, %v7590_v3 }
 0x3e5   : > { %13146 = vmatmul.mubr.bf16.gmra.mxu1 %v18598_v32  ;;  %v7514_v12 = vpop.f32.mrf.mxu1 }
 0x3e6   : > { %13149 = vmatprep.mubr.bf16.mxu1 %v18599_v13  ;;  %v7593_v63 = vadd.f32 %v7514_v12, %v18600_v18  ;;  %v17762_v27 = vpop.f32.mrf.mxu0  ;;  %v17765_v42 = vadd.f32 %v17620_v29, %v7595_v58  ;;  %v10402_v58 = vld [vmem:[#allocation3 + $0xc0] sm:$0xe]  ;;  %v10403_v12 = vld [vmem:[#allocation3 + $0xcc] sm:$0xe]  ;;  %v10559_v13 = vrot.slane %v17431_v44, 5 }
 0x3e7   : > { %v12860_v9 = vpop.f32.mrf.mxu1  ;;  %v11829_v45 = vrot.slane %v10402_v58, 9  ;;  %v18608_v58 = vld [vmem:[#allocation32_spill] sm:$0xff] }
 0x3e8   : > { %v7596_v36 = vadd.f32 %v12860_v9, %v18601_v11  ;;  %v17768_v15 = vpop.f32.mrf.mxu0  ;;  %v17771_v34 = vadd.f32 %v17637_v20, %v7593_v63  ;;  %v18604_v63 = vld [vmem:[#allocation46_spill] sm:$0xff]  ;;  %v10561_v44 = vrot.slane %v10559_v13, 4 }
 0x3e9   : > { %v7517_v14 = vpop.f32.mrf.mxu1  ;;  %v10555_v23 = vrot.slane %v18604_v63, 5 }
 0x3ea   : > { %v7594_v51 = vadd.f32 %v7517_v14, %v18602_v49  ;;  %v17775_v52 = vpop.f32.mrf.mxu0  ;;  %v17778_v31 = vadd.f32 %v17649_v40, %v7596_v36  ;;  %v18606_v14 = vld [vmem:[#allocation42_spill] sm:$0xff] }
 0x3eb   : > { %v12863_v29 = vpop.f32.mrf.mxu1 }
 0x3ec   : > { %v7599_v3 = vadd.f32 %v12863_v29, %v18603_v22  ;;  %v17781_v50 = vpop.f32.mrf.mxu0  ;;  %v17783_v35 = vadd.f32 %v7903_v28, %v7594_v51  ;;  %v18607_v22 = vld [vmem:[#allocation29_spill] sm:$0xff] }
 0x3ed   : > { %13150 = vmatmul.mubr.bf16.gmra.mxu1 %v11842_v21  ;;  %v7530_v20 = vpop.f32.mrf.mxu1 }
 0x3ee   : > { %13153 = vmatprep.mubr.bf16.mxu1 %v11843_v19  ;;  %v7597_v40 = vadd.f32 %v7530_v20, %v17415_v62  ;;  %v7951_v32 = vpop.f32.mrf.mxu0  ;;  %v17794_v28 = vadd.f32 %v17680_v16, %v7599_v3  ;;  %v10556_v62 = vsel %vm14077_vm1, %v10554_v17, %v10555_v23  ;;  %v11830_v19 = vrot.slane %v10403_v12, 9  ;;  %v18609_v23 = vld [vmem:[#allocation36_spill] sm:$0xff] }
 0x3ef   : > { %v12864_v18 = vpop.f32.mrf.mxu1  ;;  %v10562_v16 = vrot.slane %v18606_v14, 5 }
 0x3f0   : > { %v7600_v21 = vadd.f32 %v12864_v18, %v18605_v55  ;;  %v12987_v9 = vpop.f32.mrf.mxu0  ;;  %v17798_v11 = vadd.f32 %v7916_v60, %v7597_v40  ;;  %v10553_v60 = vsel %vm14077_vm1, %v11829_v45, %v10552_v54  ;;  %v10560_v12 = vsel %vm14077_vm1, %v11830_v19, %v10559_v13  ;;  %v18611_v19 = vld [vmem:[#allocation48_spill] sm:$0xff] }
 0x3f1   : > { %v7533_v41 = vpop.f32.mrf.mxu1  ;;  %v11845_v20 = vcombine.low %v10553_v60, %v10556_v62  ;;  %v10563_v54 = vsel %vm14077_vm1, %v10561_v44, %v10562_v16 }
 0x3f2   : > { %v7598_v36 = vadd.f32 %v7533_v41, %v17427_v30  ;;  %v9088_v49 = vpop.f32.mrf.mxu0  ;;  %v17805_v51 = vadd.f32 %v17716_v6, %v7600_v21  ;;  %v11846_v21 = vcombine.low %v10560_v12, %v10563_v54  ;;  %v18610_v41 = vld [vmem:[#allocation45_spill] sm:$0xff] }
 0x3f4   : > { %v12867_v29 = vpop.f32.mrf.mxu1  ;;  %v17810_v40 = vpop.f32.mrf.mxu0  ;;  %v17812_v17 = vadd.f32 %v7919_v24, %v7598_v36 }
 0x3f5   : > { %v7603_v3 = vadd.f32 %v12867_v29, %v18607_v22  ;;  %13154 = vmatmul.mubr.bf16.gmra.mxu1 %v11844_v61 }
 0x3f6   : > { %v7546_v30 = vpop.f32.mrf.mxu1  ;;  %13157 = vmatprep.mubr.bf16.mxu1 %v11845_v20  ;;  %v17822_v18 = vpop.f32.mrf.mxu0 }
 0x3f7   : > { %v7601_v6 = vadd.f32 %v7546_v30, %v18608_v58  ;;  %v17825_v63 = vadd.f32 %v17738_v1, %v7603_v3 }
 0x3f8   : > { %v12868_v24 = vpop.f32.mrf.mxu1  ;;  %v12991_v37 = vpop.f32.mrf.mxu0 }
 0x3f9   : > { %v7604_v55 = vadd.f32 %v12868_v24, %v18609_v23  ;;  %v17829_v26 = vadd.f32 %v17744_v59, %v7601_v6  ;;  %v18612_v59 = vld [vmem:[#allocation49_spill] sm:$0xff]  ;;  %v18614_v6 = vld [vmem:[#allocation51_spill] sm:$0xff] }
 0x3fa   : > { %v7549_v61 = vpop.f32.mrf.mxu1  ;;  %v9104_v13 = vpop.f32.mrf.mxu0 }
 0x3fb   : > { %v7602_v45 = vadd.f32 %v7549_v61, %v18610_v41  ;;  %v17833_v5 = vadd.f32 %v17750_v25, %v7604_v55  ;;  %v18613_v25 = vld [vmem:[#allocation50_spill] sm:$0xff] }
 0x3fc   : > { %v12871_v62 = vpop.f32.mrf.mxu1  ;;  %v17836_v1 = vpop.f32.mrf.mxu0 }
 0x3fd   : > { %v7607_v36 = vadd.f32 %v12871_v62, %v18611_v19  ;;  %v17839_v44 = vadd.f32 %v17762_v27, %v7602_v45  ;;  %13158 = vmatmul.mubr.bf16.gmra.mxu1 %v11846_v21 }
 0x3fe   : > { %v7562_v14 = vpop.f32.mrf.mxu1  ;;  %v17842_v29 = vpop.f32.mrf.mxu0 }
 0x3ff   : > { %v7605_v16 = vadd.f32 %v7562_v14, %v18612_v59  ;;  %v17845_v60 = vadd.f32 %v17768_v15, %v7607_v36 }
 0x400   : > { %v12872_v22 = vpop.f32.mrf.mxu1  ;;  %v12995_v20 = vpop.f32.mrf.mxu0 }
 0x401   : > { %v7608_v3 = vadd.f32 %v12872_v22, %v18613_v25  ;;  %v17849_v30 = vadd.f32 %v17775_v52, %v7605_v16 }
 0x402   : > { %v7565_v58 = vpop.f32.mrf.mxu1  ;;  %v9120_v12 = vpop.f32.mrf.mxu0 }
 0x403   : > { %v7606_v27 = vadd.f32 %v7565_v58, %v18614_v6  ;;  %v17853_v54 = vadd.f32 %v17781_v50, %v7608_v3 }
 0x404   : > { %v12939_v24 = vpop.f32.mrf.mxu1  ;;  %v17856_v55 = vpop.f32.mrf.mxu0 }
 0x405   : > { %v8719_v23 = vadd.f32 %v12939_v24, %v17684_v39  ;;  %v17858_v15 = vadd.f32 %v7951_v32, %v7606_v27 }
 0x406   : > { %v8590_v61 = vpop.f32.mrf.mxu1  ;;  %v17861_v41 = vpop.f32.mrf.mxu0 }
 0x407   : > { %v8717_v21 = vadd.f32 %v8590_v61, %v17688_v43  ;;  %v17863_v52 = vadd.f32 %v12987_v9, %v8719_v23 }
 0x408   : > { %v12940_v45 = vpop.f32.mrf.mxu1  ;;  %v12999_v50 = vpop.f32.mrf.mxu0 }
 0x409   : > { %v17866_v62 = vadd.f32 %v12940_v45, %v17692_v38  ;;  %v17868_v19 = vadd.f32 %v9088_v49, %v8717_v21 }
 0x40a   : > { %v8593_v36 = vpop.f32.mrf.mxu1  ;;  %v9136_v32 = vpop.f32.mrf.mxu0 }
 0x40b   : > { %v17871_v39 = vadd.f32 %v8593_v36, %v17696_v0 }
 0x40c   : > { %v12943_v14 = vpop.f32.mrf.mxu1  ;;  %v17874_v43 = vpop.f32.mrf.mxu0 }
 0x40d   : > { %v8723_v59 = vadd.f32 %v12943_v14, %v17700_v7 }
 0x40e   : > { %v8606_v16 = vpop.f32.mrf.mxu1  ;;  %v17877_v22 = vpop.f32.mrf.mxu0 }
 0x40f   : > { %v8721_v9 = vadd.f32 %v8606_v16, %v17704_v4  ;;  %v17879_v38 = vadd.f32 %v12991_v37, %v8723_v59 }
 0x410   : > { %v12944_v25 = vpop.f32.mrf.mxu1  ;;  %v13003_v3 = vpop.f32.mrf.mxu0 }
 0x411   : > { %v17882_v49 = vadd.f32 %v12944_v25, %v17707_v8  ;;  %v17884_v0 = vadd.f32 %v9104_v13, %v8721_v9 }
 0x412   : > { %v8609_v58 = vpop.f32.mrf.mxu1  ;;  %v9152_v7 = vpop.f32.mrf.mxu0 }
 0x413   : > { %v17887_v6 = vadd.f32 %v8609_v58, %v17710_v53 }
 0x414   : > { %v12947_v27 = vpop.f32.mrf.mxu1  ;;  %v17890_v4 = vpop.f32.mrf.mxu0 }
 0x415   : > { %v8727_v24 = vadd.f32 %v12947_v27, %v17713_v2 }
 0x416   : > { %v8622_v23 = vpop.f32.mrf.mxu1  ;;  %v17893_v61 = vpop.f32.mrf.mxu0 }
 0x417   : > { %v8725_v37 = vadd.f32 %v8622_v23, %v17719_v56  ;;  %18615 = vst [vmem:[#allocation54_spill] sm:$0xff] %v17893_v61  ;;  %v17895_v8 = vadd.f32 %v12995_v20, %v8727_v24 }
 0x418   : > { %v12948_v21 = vpop.f32.mrf.mxu1  ;;  %v13007_v45 = vpop.f32.mrf.mxu0 }
 0x419   : > { %v17898_v13 = vadd.f32 %v12948_v21, %v17722_v47  ;;  %v17900_v53 = vadd.f32 %v9120_v12, %v8725_v37 }
 0x41a   : > { %v8625_v36 = vpop.f32.mrf.mxu1  ;;  %v9168_v2 = vpop.f32.mrf.mxu0 }
 0x41b   : > { %v17903_v14 = vadd.f32 %v8625_v36, %v17725_v46 }
 0x41c   : > { %v12951_v59 = vpop.f32.mrf.mxu1  ;;  %v17906_v9 = vpop.f32.mrf.mxu0 }
 0x41d   : > { %v8731_v16 = vadd.f32 %v12951_v59, %v17735_v48  ;;  %18616 = vst [vmem:[#allocation52_spill] sm:$0xff] %v17906_v9 }
 0x41e   : > { %v8638_v56 = vpop.f32.mrf.mxu1  ;;  %v17916_v46 = vpop.f32.mrf.mxu0 }
 0x41f   : > { %v8729_v20 = vadd.f32 %v8638_v56, %v17741_v57  ;;  %v17909_v25 = vadd.f32 %v12999_v50, %v8731_v16  ;;  %18617 = vst [vmem:[#allocation53_spill] sm:$0xff] %v17916_v46 }
 0x420   : > { %v12952_v47 = vpop.f32.mrf.mxu1  ;;  %v13011_v21 = vpop.f32.mrf.mxu0 }
 0x421   : > { %v17912_v58 = vadd.f32 %v12952_v47, %v17747_v33  ;;  %v17914_v12 = vadd.f32 %v9136_v32, %v8729_v20 }
 0x422   : > { %v8641_v27 = vpop.f32.mrf.mxu1  ;;  %v9184_v16 = vpop.f32.mrf.mxu0 }
 0x423   : > { %v17919_v24 = vadd.f32 %v8641_v27, %v17753_v10 }
 0x424   : > { %v12955_v48 = vpop.f32.mrf.mxu1  ;;  %v17934_v47 = vpop.f32.mrf.mxu0 }
 0x425   : > { %v8735_v23 = vadd.f32 %v12955_v48, %v17765_v42  ;;  %18618 = vst [vmem:[#allocation71_spill] sm:$0xff] %v17934_v47 }
 0x426   : > { %v8654_v37 = vpop.f32.mrf.mxu1  ;;  %v17944_v48 = vpop.f32.mrf.mxu0 }
 0x427   : > { %v8733_v57 = vadd.f32 %v8654_v37, %v17771_v34  ;;  %v17923_v50 = vadd.f32 %v13003_v3, %v8735_v23  ;;  %18620 = vst [vmem:[#allocation55_spill] sm:$0xff] %v17944_v48 }
 0x428   : > { %v12956_v36 = vpop.f32.mrf.mxu1 }
 0x429   : > { %v17926_v33 = vadd.f32 %v12956_v36, %v17778_v31  ;;  %v17928_v32 = vadd.f32 %v9152_v7, %v8733_v57  ;;  %v13015_v57 = vpop.f32.mrf.mxu0 }
 0x42a   : > { %v8657_v59 = vpop.f32.mrf.mxu1 }
 0x42b   : > { %v17931_v10 = vadd.f32 %v8657_v59, %v17783_v35 }
 0x42c   : > { %v12959_v56 = vpop.f32.mrf.mxu1 }
 0x42d   : > { %v8739_v42 = vadd.f32 %v12959_v56, %v17794_v28  ;;  %v9200_v56 = vpop.f32.mrf.mxu0 }
 0x42e   : > { %v8670_v20 = vpop.f32.mrf.mxu1 }
 0x42f   : > { %v8737_v34 = vadd.f32 %v8670_v20, %v17798_v11  ;;  %v17937_v3 = vadd.f32 %v13007_v45, %v8739_v42  ;;  %v17961_v20 = vpop.f32.mrf.mxu0 }
 0x430   : > { %v12960_v27 = vpop.f32.mrf.mxu1  ;;  %18624 = vst [vmem:[#allocation61_spill] sm:$0xff] %v17961_v20 }
 0x431   : > { %v17940_v31 = vadd.f32 %v12960_v27, %v17805_v51  ;;  %v17942_v7 = vadd.f32 %v9168_v2, %v8737_v34 }
 0x432   : > { %v8673_v35 = vpop.f32.mrf.mxu1 }
 0x433   : > { %18619 = vst [vmem:[#allocation57_spill] sm:$0xff] %v17940_v31  ;;  %v17947_v23 = vadd.f32 %v8673_v35, %v17812_v17  ;;  %v17967_v35 = vpop.f32.mrf.mxu0 }
 0x434   : > { %v12963_v28 = vpop.f32.mrf.mxu1  ;;  %18625 = vst [vmem:[#allocation60_spill] sm:$0xff] %v17967_v35 }
 0x435   : > { %18621 = vst [vmem:[#allocation56_spill] sm:$0xff] %v17947_v23  ;;  %v8743_v37 = vadd.f32 %v12963_v28, %v17825_v63 }
 0x436   : > { %v8686_v36 = vpop.f32.mrf.mxu1 }
 0x437   : > { %v8741_v11 = vadd.f32 %v8686_v36, %v17829_v26  ;;  %v17951_v45 = vadd.f32 %v13011_v21, %v8743_v37 }
 0x438   : > { %v12964_v59 = vpop.f32.mrf.mxu1 }
 0x439   : > { %v17954_v51 = vadd.f32 %v12964_v59, %v17833_v5  ;;  %v17956_v2 = vadd.f32 %v9184_v16, %v8741_v11 }
 0x43a   : > { %v8689_v42 = vpop.f32.mrf.mxu1  ;;  %v17977_v36 = vpop.f32.mrf.mxu0 }
 0x43b   : > { %18622 = vst [vmem:[#allocation59_spill] sm:$0xff] %v17954_v51  ;;  %v17959_v17 = vadd.f32 %v8689_v42, %v17839_v44 }
 0x43c   : > { %v17985_v59 = vpop.f32.mrf.mxu0 }
 0x43d   : > { %18623 = vst [vmem:[#allocation58_spill] sm:$0xff] %v17959_v17  ;;  %v12967_v63 = vpop.f32.mrf.mxu1 }
 0x43e   : > { %v8747_v34 = vadd.f32 %v12967_v63, %v17845_v60 }
 0x43f   : > { %v8702_v27 = vpop.f32.mrf.mxu1 }
 0x440   : > { %v8745_v26 = vadd.f32 %v8702_v27, %v17849_v30  ;;  %v17965_v21 = vadd.f32 %v13015_v57, %v8747_v34 }
 0x441   : > { %v12968_v5 = vpop.f32.mrf.mxu1 }
 0x442   : > { %v17970_v16 = vadd.f32 %v12968_v5, %v17853_v54  ;;  %v17972_v28 = vadd.f32 %v9200_v56, %v8745_v26  ;;  %v17989_v56 = vpop.f32.mrf.mxu0 }
 0x443   : > { %v8705_v44 = vpop.f32.mrf.mxu1 }
 0x444   : > { %18626 = vst [vmem:[#allocation63_spill] sm:$0xff] %v17970_v16  ;;  %v17975_v37 = vadd.f32 %v8705_v44, %v17858_v15 }
 0x445   : > { %v13035_v60 = vpop.f32.mrf.mxu1 }
 0x446   : > { %18627 = vst [vmem:[#allocation62_spill] sm:$0xff] %v17975_v37  ;;  %v17980_v11 = vadd.f32 %v13035_v60, %v17863_v52  ;;  %v17997_v52 = vpop.f32.mrf.mxu0 }
 0x447   : > { %v9475_v30 = vpop.f32.mrf.mxu1 }
 0x448   : > { %v17983_v57 = vadd.f32 %v9475_v30, %v17868_v19  ;;  %v18003_v5 = vpop.f32.mrf.mxu0 }
 0x449   : > { %v13036_v54 = vpop.f32.mrf.mxu1 }
 0x44b   : > { %v17987_v42 = vpop.f32.mrf.mxu1 }
 0x44d   : > { %v13039_v63 = vpop.f32.mrf.mxu1 }
 0x44e   : > { %v17992_v15 = vadd.f32 %v13039_v63, %v17879_v38  ;;  %v18011_v63 = vpop.f32.mrf.mxu0 }
 0x44f   : > { %v9491_v34 = vpop.f32.mrf.mxu1 }
 0x450   : > { %v17995_v27 = vadd.f32 %v9491_v34, %v17884_v0  ;;  %v18017_v35 = vpop.f32.mrf.mxu0 }
 0x451   : > { %v17999_v26 = vpop.f32.mrf.mxu1 }
 0x453   : > { %v18001_v19 = vpop.f32.mrf.mxu1 }
 0x455   : > { %v13043_v44 = vpop.f32.mrf.mxu1 }
 0x456   : > { %v18006_v60 = vadd.f32 %v13043_v44, %v17895_v8  ;;  %v18025_v44 = vpop.f32.mrf.mxu0 }
 0x457   : > { %v9507_v30 = vpop.f32.mrf.mxu1 }
 0x458   : > { %v18009_v38 = vadd.f32 %v9507_v30, %v17900_v53  ;;  %v18031_v48 = vpop.f32.mrf.mxu0 }
 0x459   : > { %v18013_v0 = vpop.f32.mrf.mxu1 }
 0x45b   : > { %v18015_v34 = vpop.f32.mrf.mxu1 }
 0x45d   : > { %v13047_v37 = vpop.f32.mrf.mxu1 }
 0x45e   : > { %v18020_v20 = vadd.f32 %v13047_v37, %v17909_v25  ;;  %v18039_v37 = vpop.f32.mrf.mxu0 }
 0x45f   : > { %v9523_v16 = vpop.f32.mrf.mxu1 }
 0x460   : > { %v18023_v8 = vadd.f32 %v9523_v16, %v17914_v12  ;;  %v18045_v46 = vpop.f32.mrf.mxu0 }
 0x461   : > { %v18027_v53 = vpop.f32.mrf.mxu1 }
 0x463   : > { %v18029_v30 = vpop.f32.mrf.mxu1 }
 0x465   : > { %v13051_v17 = vpop.f32.mrf.mxu1 }
 0x466   : > { %v18034_v47 = vadd.f32 %v13051_v17, %v17923_v50  ;;  %v18053_v17 = vpop.f32.mrf.mxu0 }
 0x467   : > { %v9539_v51 = vpop.f32.mrf.mxu1 }
 0x468   : > { %18628 = vst [vmem:[#allocation64_spill] sm:$0xff] %v18034_v47  ;;  %v18037_v25 = vadd.f32 %v9539_v51, %v17928_v32 }
 0x469   : > { %v18041_v12 = vpop.f32.mrf.mxu1 }
 0x46a   : > { %18629 = vst [vmem:[#allocation65_spill] sm:$0xff] %v18037_v25  ;;  %v18059_v25 = vpop.f32.mrf.mxu0 }
 0x46b   : > { %v18043_v16 = vpop.f32.mrf.mxu1 }
 0x46c   : > { %18630 = vst [vmem:[#allocation66_spill] sm:$0xff] %v18043_v16 }
 0x46d   : > { %v13055_v23 = vpop.f32.mrf.mxu1 }
 0x46e   : > { %v18048_v9 = vadd.f32 %v13055_v23, %v17937_v3  ;;  %v18067_v23 = vpop.f32.mrf.mxu0 }
 0x46f   : > { %v9555_v31 = vpop.f32.mrf.mxu1 }
 0x470   : > { %18631 = vst [vmem:[#allocation67_spill] sm:$0xff] %v18048_v9  ;;  %v18051_v50 = vadd.f32 %v9555_v31, %v17942_v7 }
 0x471   : > { %v18055_v32 = vpop.f32.mrf.mxu1 }
 0x472   : > { %18632 = vst [vmem:[#allocation68_spill] sm:$0xff] %v18051_v50  ;;  %18633 = vst [vmem:[#allocation69_spill] sm:$0xff] %v18055_v32  ;;  %v18073_v50 = vpop.f32.mrf.mxu0 }
 0x473   : > { %v18057_v51 = vpop.f32.mrf.mxu1 }
 0x474   : > { %18634 = vst [vmem:[#allocation70_spill] sm:$0xff] %v18057_v51 }
 0x475   : > { %v13059_v47 = vpop.f32.mrf.mxu1 }
 0x476   : > { %v18062_v16 = vadd.f32 %v13059_v47, %v17951_v45  ;;  %v18081_v45 = vpop.f32.mrf.mxu0 }
 0x477   : > { %v9571_v61 = vpop.f32.mrf.mxu1 }
 0x478   : > { %18635 = vst [vmem:[#allocation72_spill] sm:$0xff] %v18062_v16  ;;  %v18065_v3 = vadd.f32 %v9571_v61, %v17956_v2  ;;  %v9218_v2 = vadd.f32 %v17810_v40, %v17866_v62  ;;  %v9216_v16 = vadd.f32 %v17822_v18, %v17871_v39  ;;  %v18101_v40 = vld [vmem:[%s18303_s4] ss:$0 sm:$0xff] }
 0x479   : > { %v18069_v31 = vpop.f32.mrf.mxu1 }
 0x47a   : > { %18636 = vst [vmem:[#allocation73_spill] sm:$0xff] %v18065_v3 }
 0x47b   : > { %v18071_v7 = vpop.f32.mrf.mxu1 }
 0x47c   : > { %18637 = vst [vmem:[#allocation74_spill] sm:$0xff] %v18071_v7  ;;  %v9605_v7 = vadd.f32 %v13036_v54, %v9218_v2  ;;  %v9220_v2 = vadd.f32 %v17842_v29, %v17887_v6 }
 0x47d   : > { %v13063_v9 = vpop.f32.mrf.mxu1 }
 0x47e   : > { %v18076_v51 = vadd.f32 %v13063_v9, %v17965_v21  ;;  %v10358_v9 = vadd.f32 %v17977_v36, %v17980_v11  ;;  %v18093_v21 = vpop.f32.mrf.mxu0  ;;  %v10359_v39 = vadd.f32 %v17989_v56, %v9605_v7  ;;  %v9222_v36 = vadd.f32 %v17836_v1, %v17882_v49 }
 0x47f   : > { %v9587_v32 = vpop.f32.mrf.mxu1  ;;  %v10362_v7 = vadd.f32 %v18003_v5, %v17992_v15 }
 0x480   : > { %18638 = vst [vmem:[#allocation14_spill] sm:$0xff] %v18076_v51  ;;  %v18079_v47 = vadd.f32 %v9587_v32, %v17972_v28  ;;  %v9603_v32 = vadd.f32 %v17987_v42, %v9216_v16  ;;  %v10356_v51 = vadd.f32 %v17985_v59, %v17983_v57  ;;  %v18106_v11 = vpop.f32.mrf.mxu0  ;;  %v9609_v16 = vadd.f32 %v17999_v26, %v9222_v36 }
 0x481   : > { %v18083_v61 = vpop.f32.mrf.mxu1  ;;  %v10360_v26 = vadd.f32 %v18011_v63, %v17995_v27 }
 0x482   : > { %18639 = vst [vmem:[#allocation13_spill] sm:$0xff] %v18079_v47  ;;  %v10357_v59 = vadd.f32 %v17997_v52, %v9603_v32 }
 0x483   : > { %v18087_v3 = vpop.f32.mrf.mxu1 }
 0x485   : > { %v13131_v28 = vpop.f32.mrf.mxu1 }
 0x486   : > { %v10856_v47 = vadd.f32 %v13131_v28, %v10358_v9  ;;  %v18121_v9 = vpop.f32.mrf.mxu0 }
 0x487   : > { %v10727_v62 = vpop.f32.mrf.mxu1 }
 0x488   : > { %v10854_v18 = vadd.f32 %v10727_v62, %v10356_v51  ;;  %v10895_v42 = vadd.f32 %v18101_v40, %v10856_v47  ;;  %v9607_v47 = vadd.f32 %v18001_v19, %v9220_v2  ;;  %v9226_v19 = vadd.f32 %v17856_v55, %v17898_v13  ;;  %v18129_v5 = vpop.f32.mrf.mxu0 }
 0x489   : > { %v13132_v54 = vpop.f32.mrf.mxu1 }
 0x48a   : > { %v10857_v57 = vadd.f32 %v13132_v54, %v10359_v39  ;;  %v10893_v56 = vadd.f32 %v18101_v40, %v10854_v18  ;;  %v10927_v29 = vmax.f32 %v10895_v42, 0.0  ;;  %v10363_v18 = vadd.f32 %v18017_v35, %v9609_v16 }
 0x48b   : > { %v10730_v51 = vpop.f32.mrf.mxu1  ;;  %v10361_v35 = vadd.f32 %v18025_v44, %v9607_v47  ;;  %v9224_v16 = vadd.f32 %v17861_v41, %v17903_v14 }
 0x48c   : > { %v10896_v1 = vadd.f32 %v18101_v40, %v10857_v57  ;;  %v10855_v49 = vadd.f32 %v10730_v51, %v10357_v59  ;;  %v10925_v39 = vmax.f32 %v10893_v56, 0.0  ;;  %v9613_v59 = vadd.f32 %v18013_v0, %v9226_v19 }
 0x48d   : > { %v13135_v52 = vpop.f32.mrf.mxu1  ;;  %v10366_v56 = vadd.f32 %v18031_v48, %v18006_v60  ;;  %v10364_v0 = vadd.f32 %v18039_v37, %v18009_v38 }
 0x48e   : > { %v10928_v6 = vmax.f32 %v10896_v1, 0.0  ;;  %v10894_v28 = vadd.f32 %v18101_v40, %v10855_v49  ;;  %v10860_v32 = vadd.f32 %v13135_v52, %v10362_v7  ;;  %v9611_v1 = vadd.f32 %v18015_v34, %v9224_v16  ;;  %v18145_v49 = vpop.f32.mrf.mxu0 }
 0x48f   : > { %v10743_v62 = vpop.f32.mrf.mxu1  ;;  %v9234_v16 = vadd.f32 %v17890_v4, %v17926_v33 }
 0x490   : > { %v11967_v36 = vpack.c.bf16 %v10928_v6, %v10927_v29  ;;  %v10926_v54 = vmax.f32 %v10894_v28, 0.0  ;;  %v10858_v15 = vadd.f32 %v10743_v62, %v10360_v26  ;;  %v10899_v63 = vadd.f32 %v18101_v40, %v10860_v32  ;;  %v18153_v28 = vpop.f32.mrf.mxu0 }
 0x491   : > { %v13136_v57 = vpop.f32.mrf.mxu1  ;;  %v10367_v26 = vadd.f32 %v18045_v46, %v9613_v59  ;;  %v9230_v6 = vadd.f32 %v17874_v43, %v17912_v58 }
 0x492   : > { %12039 = vst [vmem:[%s18131_s14 + $0x8] sm:$0xff] %v11967_v36   ;;  %v11962_v27 = vpack.c.bf16 %v10926_v54, %v10925_v39  ;;  %v10861_v42 = vadd.f32 %v13136_v57, %v10363_v18  ;;  %v10897_v13 = vadd.f32 %v18101_v40, %v10858_v15  ;;  %v10931_v41 = vmax.f32 %v10899_v63, 0.0  ;;  %v18167_v57 = vpop.f32.mrf.mxu0 }
 0x493   : > { %v10746_v55 = vpop.f32.mrf.mxu1  ;;  %v10365_v18 = vadd.f32 %v18053_v17, %v9611_v1  ;;  %v9617_v46 = vadd.f32 %v18027_v53, %v9230_v6  ;;  %v9228_v39 = vadd.f32 %v17877_v22, %v17919_v24  ;;  %v10370_v15 = vadd.f32 %v18059_v25, %v18020_v20 }
 0x494   : > { %11963 = vst [vmem:[%s18131_s14] sm:$0xff] %v11962_v27   ;;  %v10900_v2 = vadd.f32 %v18101_v40, %v10861_v42  ;;  %v10859_v51 = vadd.f32 %v10746_v55, %v10361_v35  ;;  %v10929_v29 = vmax.f32 %v10897_v13, 0.0  ;;  %v10368_v53 = vadd.f32 %v18067_v23, %v18023_v8  ;;  %v18175_v55 = vpop.f32.mrf.mxu0 }
 0x495   : > { %v13139_v44 = vpop.f32.mrf.mxu1  ;;  %v9615_v19 = vadd.f32 %v18029_v30, %v9228_v39  ;;  %v10371_v35 = vadd.f32 %v18073_v50, %v9617_v46  ;;  %v9621_v50 = vadd.f32 %v18041_v12, %v9234_v16  ;;  %v18645_v46 = vld [vmem:[#allocation52_spill] sm:$0xff] }
 0x496   : > { %v10932_v14 = vmax.f32 %v10900_v2, 0.0  ;;  %v10898_v7 = vadd.f32 %v18101_v40, %v10859_v51  ;;  %v10864_v47 = vadd.f32 %v13139_v44, %v10366_v56  ;;  %v18640_v56 = vld [vmem:[#allocation54_spill] sm:$0xff] }
 0x497   : > { %v10759_v52 = vpop.f32.mrf.mxu1  ;;  %v10369_v51 = vadd.f32 %v18081_v45, %v9615_v19  ;;  %v9232_v1 = vadd.f32 %v18640_v56, %v17931_v10  ;;  %v10375_v6 = vadd.f32 %v18121_v9, %v9621_v50  ;;  %v18647_v9 = vld [vmem:[#allocation56_spill] sm:$0xff] }
 0x498   : > { %v11977_v48 = vpack.c.bf16 %v10932_v14, %v10931_v41  ;;  %v10930_v60 = vmax.f32 %v10898_v7, 0.0  ;;  %v10862_v34 = vadd.f32 %v10759_v52, %v10364_v0  ;;  %v10903_v37 = vadd.f32 %v18101_v40, %v10864_v47  ;;  %v18641_v41 = vld [vmem:[#allocation64_spill] sm:$0xff]  ;;  %v18642_v7 = vld [vmem:[#allocation66_spill] sm:$0xff]  ;;  %v13107_v52 = vpop.f32.mrf.mxu0 }
 0x499   : > { %v13140_v32 = vpop.f32.mrf.mxu1  ;;  %v10374_v14 = vadd.f32 %v18093_v21, %v18641_v41  ;;  %v9619_v47 = vadd.f32 %v18642_v7, %v9232_v1 }
 0x49a   : > { %12041 = vst [vmem:[%s18131_s14 + $0x18] sm:$0xff] %v11977_v48   ;;  %v11972_v38 = vpack.c.bf16 %v10930_v60, %v10929_v29  ;;  %v10865_v62 = vadd.f32 %v13140_v32, %v10367_v26  ;;  %v10901_v54 = vadd.f32 %v18101_v40, %v10862_v34  ;;  %v10935_v22 = vmax.f32 %v10903_v37, 0.0  ;;  %v18643_v26 = vld [vmem:[#allocation65_spill] sm:$0xff] }
 0x49b   : > { %v10762_v36 = vpop.f32.mrf.mxu1  ;;  %v10372_v12 = vadd.f32 %v18106_v11, %v18643_v26 }
 0x49c   : > { %12040 = vst [vmem:[%s18131_s14 + $0x10] sm:$0xff] %v11972_v38   ;;  %v10904_v43 = vadd.f32 %v18101_v40, %v10865_v62  ;;  %v10863_v58 = vadd.f32 %v10762_v36, %v10365_v18  ;;  %v10933_v59 = vmax.f32 %v10901_v54, 0.0  ;;  %v10325_v62 = vpop.f32.mrf.mxu0  ;;  %v18644_v18 = vld [vmem:[#allocation57_spill] sm:$0xff] }
 0x49d   : > { %v13143_v17 = vpop.f32.mrf.mxu1  ;;  %v9238_v39 = vadd.f32 %v18645_v46, %v18644_v18 }
 0x49e   : > { %v10936_v24 = vmax.f32 %v10904_v43, 0.0  ;;  %v10902_v27 = vadd.f32 %v18101_v40, %v10863_v58  ;;  %v10868_v63 = vadd.f32 %v13143_v17, %v10370_v15  ;;  %v10373_v58 = vadd.f32 %v18129_v5, %v9619_v47  ;;  %v18646_v15 = vld [vmem:[#allocation69_spill] sm:$0xff] }
 0x49f   : > { %v10775_v42 = vpop.f32.mrf.mxu1  ;;  %v9625_v19 = vadd.f32 %v18646_v15, %v9238_v39  ;;  %v18648_v17 = vld [vmem:[#allocation53_spill] sm:$0xff] }
 0x4a0   : > { %v11987_v20 = vpack.c.bf16 %v10936_v24, %v10935_v22  ;;  %v10934_v25 = vmax.f32 %v10902_v27, 0.0  ;;  %v10866_v30 = vadd.f32 %v10775_v42, %v10368_v53  ;;  %v10907_v23 = vadd.f32 %v18101_v40, %v10868_v63  ;;  %v18649_v42 = vld [vmem:[#allocation67_spill] sm:$0xff] }
 0x4a1   : > { %v13144_v13 = vpop.f32.mrf.mxu1  ;;  %v9236_v53 = vadd.f32 %v18648_v17, %v18647_v9  ;;  %v10379_v50 = vadd.f32 %v18167_v57, %v9625_v19  ;;  %v18654_v57 = vld [vmem:[#allocation58_spill] sm:$0xff] }
 0x4a2   : > { %12043 = vst [vmem:[%s18131_s14 + $0x28] sm:$0xff] %v11987_v20   ;;  %v11982_v8 = vpack.c.bf16 %v10934_v25, %v10933_v59  ;;  %v10869_v2 = vadd.f32 %v13144_v13, %v10371_v35  ;;  %v10905_v0 = vadd.f32 %v18101_v40, %v10866_v30  ;;  %v10939_v29 = vmax.f32 %v10907_v23, 0.0  ;;  %v13108_v59 = vpop.f32.mrf.mxu0  ;;  %v18650_v20 = vld [vmem:[#allocation70_spill] sm:$0xff]  ;;  %v18651_v30 = vld [vmem:[#allocation68_spill] sm:$0xff] }
 0x4a3   : > { %v10778_v44 = vpop.f32.mrf.mxu1  ;;  %v10378_v35 = vadd.f32 %v18145_v49, %v18649_v42  ;;  %v9623_v25 = vadd.f32 %v18650_v20, %v9236_v53  ;;  %v10376_v16 = vadd.f32 %v18153_v28, %v18651_v30  ;;  %v18660_v53 = vld [vmem:[#allocation61_spill] sm:$0xff]  ;;  %v18661_v20 = vld [vmem:[#allocation62_spill] sm:$0xff] }
 0x4a4   : > { %12042 = vst [vmem:[%s18131_s14 + $0x20] sm:$0xff] %v11982_v8   ;;  %v10908_v4 = vadd.f32 %v18101_v40, %v10869_v2  ;;  %v10867_v33 = vadd.f32 %v10778_v44, %v10369_v51  ;;  %v10937_v32 = vmax.f32 %v10905_v0, 0.0  ;;  %v10328_v0 = vpop.f32.mrf.mxu0 }
 0x4a5   : > { %v13147_v45 = vpop.f32.mrf.mxu1 }
 0x4a6   : > { %v10940_v10 = vmax.f32 %v10908_v4, 0.0  ;;  %v10906_v48 = vadd.f32 %v18101_v40, %v10867_v33  ;;  %v10872_v60 = vadd.f32 %v13147_v45, %v10374_v14  ;;  %v18652_v4 = vld [vmem:[#allocation59_spill] sm:$0xff]  ;;  %v10377_v45 = vadd.f32 %v18175_v55, %v9623_v25  ;;  %v18658_v55 = vld [vmem:[#allocation73_spill] sm:$0xff]  ;;  %v18662_v25 = vld [vmem:[#allocation60_spill] sm:$0xff] }
 0x4a7   : > { %v10791_v34 = vpop.f32.mrf.mxu1  ;;  %v18653_v33 = vld [vmem:[#allocation71_spill] sm:$0xff]  ;;  %v10380_v46 = vadd.f32 %v10325_v62, %v18658_v55 }
 0x4a8   : > { %v11997_v38 = vpack.c.bf16 %v10940_v10, %v10939_v29  ;;  %v10938_v21 = vmax.f32 %v10906_v48, 0.0  ;;  %v10870_v37 = vadd.f32 %v10791_v34, %v10372_v12  ;;  %v10911_v54 = vadd.f32 %v18101_v40, %v10872_v60  ;;  %v18655_v12 = vld [vmem:[#allocation55_spill] sm:$0xff]  ;;  %v13111_v10 = vpop.f32.mrf.mxu0 }
 0x4a9   : > { %v13148_v36 = vpop.f32.mrf.mxu1  ;;  %v9242_v41 = vadd.f32 %v18653_v33, %v18652_v4  ;;  %v9240_v29 = vadd.f32 %v18655_v12, %v18654_v57 }
 0x4aa   : > { %12045 = vst [vmem:[%s18131_s14 + $0x38] sm:$0xff] %v11997_v38   ;;  %v11992_v11 = vpack.c.bf16 %v10938_v21, %v10937_v32  ;;  %v10873_v43 = vadd.f32 %v13148_v36, %v10375_v6  ;;  %v10909_v24 = vadd.f32 %v18101_v40, %v10870_v37  ;;  %v10943_v13 = vmax.f32 %v10911_v54, 0.0  ;;  %v18656_v32 = vld [vmem:[#allocation72_spill] sm:$0xff]  ;;  %v18657_v21 = vld [vmem:[#allocation74_spill] sm:$0xff]  ;;  %v10341_v54 = vpop.f32.mrf.mxu0 }
 0x4ab   : > { %v10794_v22 = vpop.f32.mrf.mxu1  ;;  %v9629_v26 = vadd.f32 %v18069_v31, %v9242_v41  ;;  %v10382_v38 = vadd.f32 %v13107_v52, %v18656_v32  ;;  %v9627_v37 = vadd.f32 %v18657_v21, %v9240_v29  ;;  %v18659_v52 = vld [vmem:[#allocation63_spill] sm:$0xff] }
 0x4ac   : > { %12044 = vst [vmem:[%s18131_s14 + $0x30] sm:$0xff] %v11992_v11   ;;  %v10912_v27 = vadd.f32 %v18101_v40, %v10873_v43  ;;  %v10871_v63 = vadd.f32 %v10794_v22, %v10373_v58  ;;  %v10941_v56 = vmax.f32 %v10909_v24, 0.0  ;;  %v9246_v22 = vadd.f32 %v18660_v53, %v18659_v52 }
 0x4ad   : > { %v13151_v5 = vpop.f32.mrf.mxu1  ;;  %v10383_v58 = vadd.f32 %v13108_v59, %v9629_v26  ;;  %v10381_v42 = vadd.f32 %v10328_v0, %v9627_v37  ;;  %v9244_v59 = vadd.f32 %v18662_v25, %v18661_v20 }
 0x4ae   : > { %v10944_v8 = vmax.f32 %v10912_v27, 0.0  ;;  %v10910_v23 = vadd.f32 %v18101_v40, %v10871_v63  ;;  %v10876_v2 = vadd.f32 %v13151_v5, %v10378_v35  ;;  %v9633_v35 = vadd.f32 %v18083_v61, %v9246_v22  ;;  %v13112_v5 = vpop.f32.mrf.mxu0 }
 0x4af   : > { %v10807_v51 = vpop.f32.mrf.mxu1 }
 0x4b0   : > { %v12007_v1 = vpack.c.bf16 %v10944_v8, %v10943_v13  ;;  %v10942_v49 = vmax.f32 %v10910_v23, 0.0  ;;  %v10874_v44 = vadd.f32 %v10807_v51, %v10376_v16  ;;  %v10915_v7 = vadd.f32 %v18101_v40, %v10876_v2  ;;  %v18663_v16 = vld [vmem:[#allocation14_spill] sm:$0xff]  ;;  %v18664_v51 = vld [vmem:[#allocation13_spill] sm:$0xff]  ;;  %v10344_v33 = vpop.f32.mrf.mxu0 }
 0x4b1   : > { %v13152_v14 = vpop.f32.mrf.mxu1  ;;  %v10386_v13 = vadd.f32 %v13111_v10, %v18663_v16  ;;  %v10387_v4 = vadd.f32 %v13112_v5, %v9633_v35 }
 0x4b2   : > { %12047 = vst [vmem:[%s18131_s14 + $0x48] sm:$0xff] %v12007_v1   ;;  %v12002_v28 = vpack.c.bf16 %v10942_v49, %v10941_v56  ;;  %v10877_v47 = vadd.f32 %v13152_v14, %v10379_v50  ;;  %v10913_v60 = vadd.f32 %v18101_v40, %v10874_v44  ;;  %v10947_v31 = vmax.f32 %v10915_v7, 0.0 }
 0x4b3   : > { %v10810_v48 = vpop.f32.mrf.mxu1  ;;  %v10384_v50 = vadd.f32 %v10341_v54, %v18664_v51  ;;  %v9631_v56 = vadd.f32 %v18087_v3, %v9244_v59 }
 0x4b4   : > { %12046 = vst [vmem:[%s18131_s14 + $0x40] sm:$0xff] %v12002_v28   ;;  %v10916_v34 = vadd.f32 %v18101_v40, %v10877_v47  ;;  %v10875_v6 = vadd.f32 %v10810_v48, %v10377_v45  ;;  %v10945_v15 = vmax.f32 %v10913_v60, 0.0 }
 0x4b5   : > { %v13155_v18 = vpop.f32.mrf.mxu1  ;;  %v10385_v26 = vadd.f32 %v10344_v33, %v9631_v56 }
 0x4b6   : > { %v10948_v39 = vmax.f32 %v10916_v34, 0.0  ;;  %v10914_v36 = vadd.f32 %v18101_v40, %v10875_v6  ;;  %v10880_v11 = vadd.f32 %v13155_v18, %v10382_v38 }
 0x4b7   : > { %v10823_v43 = vpop.f32.mrf.mxu1 }
 0x4b8   : > { %v12017_v19 = vpack.c.bf16 %v10948_v39, %v10947_v31  ;;  %v10946_v9 = vmax.f32 %v10914_v36, 0.0  ;;  %v10878_v17 = vadd.f32 %v10823_v43, %v10380_v46  ;;  %v10919_v62 = vadd.f32 %v18101_v40, %v10880_v11 }
 0x4b9   : > { %v13156_v24 = vpop.f32.mrf.mxu1 }
 0x4ba   : > { %12049 = vst [vmem:[%s18131_s14 + $0x58] sm:$0xff] %v12017_v19   ;;  %v12012_v27 = vpack.c.bf16 %v10946_v9, %v10945_v15  ;;  %v10881_v63 = vadd.f32 %v13156_v24, %v10383_v58  ;;  %v10917_v8 = vadd.f32 %v18101_v40, %v10878_v17  ;;  %v10951_v61 = vmax.f32 %v10919_v62, 0.0 }
 0x4bb   : > { %v10826_v30 = vpop.f32.mrf.mxu1 }
 0x4bc   : > { %12048 = vst [vmem:[%s18131_s14 + $0x50] sm:$0xff] %v12012_v27   ;;  %v10920_v23 = vadd.f32 %v18101_v40, %v10881_v63  ;;  %v10879_v2 = vadd.f32 %v10826_v30, %v10381_v42  ;;  %v10949_v14 = vmax.f32 %v10917_v8, 0.0 }
 0x4bd   : > { %v13159_v1 = vpop.f32.mrf.mxu1 }
 0x4be   : > { %v10952_v49 = vmax.f32 %v10920_v23, 0.0  ;;  %v10918_v44 = vadd.f32 %v18101_v40, %v10879_v2  ;;  %v10884_v0 = vadd.f32 %v13159_v1, %v10386_v13 }
 0x4bf   : > { %v10839_v41 = vpop.f32.mrf.mxu1 }
 0x4c0   : > { %v12027_v28 = vpack.c.bf16 %v10952_v49, %v10951_v61  ;;  %v10950_v7 = vmax.f32 %v10918_v44, 0.0  ;;  %v10882_v47 = vadd.f32 %v10839_v41, %v10384_v50  ;;  %v10923_v57 = vadd.f32 %v18101_v40, %v10884_v0 }
 0x4c1   : > { %v13160_v45 = vpop.f32.mrf.mxu1 }
 0x4c2   : > { %12051 = vst [vmem:[%s18131_s14 + $0x68] sm:$0xff] %v12027_v28   ;;  %v12022_v3 = vpack.c.bf16 %v10950_v7, %v10949_v14  ;;  %v10885_v12 = vadd.f32 %v13160_v45, %v10387_v4  ;;  %v10921_v10 = vadd.f32 %v18101_v40, %v10882_v47  ;;  %v10955_v34 = vmax.f32 %v10923_v57, 0.0 }
 0x4c3   : > { %v10842_v29 = vpop.f32.mrf.mxu1 }
 0x4c4   : > { %12050 = vst [vmem:[%s18131_s14 + $0x60] sm:$0xff] %v12022_v3   ;;  %v10924_v48 = vadd.f32 %v18101_v40, %v10885_v12  ;;  %v10883_v60 = vadd.f32 %v10842_v29, %v10385_v26  ;;  %v10953_v38 = vmax.f32 %v10921_v10, 0.0 }
 0x4c6   : > { %v10956_v6 = vmax.f32 %v10924_v48, 0.0  ;;  %v10922_v32 = vadd.f32 %v18101_v40, %v10883_v60 }
 0x4c8   : > { %v12037_v21 = vpack.c.bf16 %v10956_v6, %v10955_v34  ;;  %v10954_v37 = vmax.f32 %v10922_v32, 0.0 }
 0x4ca   : > { %12053 = vst [vmem:[%s18131_s14 + $0x78] sm:$0xff] %v12037_v21   ;;  %v12032_v18 = vpack.c.bf16 %v10954_v37, %v10953_v38 }
 0x4cc   : > { %12052 = vst [vmem:[%s18131_s14 + $0x70] sm:$0xff] %v12032_v18  }
 0x4cd   : > { %13460 = shalt.err (!%p13457_p0)
}
 0x4ce   : > { %s13461_s8 = scalar_lea.hbm %s18251_s25, 2048  ;;  %s13465_s11 = scalar_lea.hbm %s18304_s5, 4096 }
 0x4cf   : > { %p13462_p1 = scmp.ne.s32.totalorder %s18251_s25, %s13461_s8  ;;  %p13466_p4 = scmp.lt.s32.totalorder %s18251_s25, %s18304_s5 }
 0x4d0   : > { %p13467_p7 = scmp.lt.s32.totalorder %s13465_s11, %s13461_s8 }
 0x4d1   : > { %p13463_p2 = pnand %p13462_p1, %p13588_p5 }
 0x4d2   : > { %p13468_p6 = por %p13467_p7, %p13466_p4 }
 0x4d3   : > { %p13464_p3 = pneg %p13463_p2 }
 0x4d5   : > { %p13469_p8 = pnand %p13468_p6, %p13464_p3 }
 0x4d7   : > { %13472 = shalt.err (!%p13469_p8)
}
 0x4d8   : > { %s13518_s14 = smov 64   ;;  %s13519_s15 = smov 4  }
 0x4d9   : > { %13174 = dma.vmem_to_hbm [thread:$0]  (%p13588_p5), %s18253_s16, 2048, %s18251_s25, %s18259_s26, %s13518_s14, %s13518_s14, %s13519_s15  }
 0x4da PF: > { %p13186_p9 = scmp.ge.s32.totalorder %s13511_s21, 2  ;;  %s11146_s17 = sand.u32 1, %s13499_s18  }
 0x4db   : > { %p18665_p10 = scmp.ne.s32.totalorder %s18329_s29, 0  ;;  %s11147_s23 = scalar_lea.sflag [#allocation6], %s11146_s17 }
 0x4dd   : > { %p13181_p11 = pnand %p13186_p9, %p18665_p10 }
 0x4df   : > { %p13182_p12 = pneg %p13181_p11 }
 0x4e1   : > { %13494 = dma.done.wait (%p13182_p12), %s11147_s23, 2048  }
 0x4e2   : > { %13496 = vsyncadd (%p13182_p12), %s11147_s23, 4294965248  ;;  %p16_p13 = scmp.ge.s32.totalorder %s13575_s24, 4   ;;  %s18666_s18 = smov %s13503_s19 }
 0x4e3   : > { %s18667_s19 = smov %s13507_s20  ;;  %s18668_s20 = smov %s13586_s27 }
 0x4e4   : > { %s18669_s21 = smov %s13575_s24  ;;  %18 = sbr.rel (!%p16_p13) target bundleno = 4 (0x4), region = 102 }
 0x4e9   :  { %11152 = vsyncpa [#allocation5], 1 }
 0x4ea   :  { %11154 = vsyncpa [#allocation5 + $0x1], 1 }
 0x4eb   :  { %11155 = vsyncpa [#allocation6], 1 }
 0x4ec   :  { %11157 = vsyncpa [#allocation6 + $0x1], 1 }

</bundles_post_ra>
